<compile_context>
chip_gen: v5e
topology: v5e:2x2
jax: 0.10.0
libtpu: 0.0.40
codegen_flags: <defaults>
</compile_context>

<pallas_src>
import functools

import jax
import jax.numpy as jnp
from jax import lax
from jax.experimental import pallas as pl
from jax.experimental.pallas import tpu as pltpu

EPS = 1e-5
LANE = 128
_EPI_TARGET_ROWS = 4096


# ---------------------------------------------------------------------------
# Small helpers
# ---------------------------------------------------------------------------
def _round_up(v, m):
    return (v + m - 1) // m * m


def _pad_axis(a, axis, size):
    if a.shape[axis] == size:
        return a
    pads = [(0, 0)] * a.ndim
    pads[axis] = (0, size - a.shape[axis])
    return jnp.pad(a, pads)


@functools.lru_cache(maxsize=None)
def _vmem_limit_bytes():
    """Scoped-VMEM budget: ~96 MiB on 128-MiB chips (v5e/v6e), ~48 MiB on v7x."""
    cap = 64 * 1024 * 1024
    try:
        cap = int(getattr(pltpu.get_tpu_info(), "vmem_capacity_bytes", cap))
    except Exception:
        pass
    return int(max(32 * 1024 * 1024,
                   min(cap - 16 * 1024 * 1024, 96 * 1024 * 1024)))


@functools.lru_cache(maxsize=None)
def _conv_target_rows():
    # Bigger row groups on 128-MiB-VMEM chips, smaller on v7x (64 MiB).
    return 1024 if _vmem_limit_bytes() >= 64 * 1024 * 1024 else 512


def _cparams():
    return pltpu.CompilerParams(dimension_semantics=("parallel",),
                                vmem_limit_bytes=_vmem_limit_bytes())


def _pick_group(n, rows_per_item, target_rows):
    """Images per grid step: biggest divisor of n under the row target while
    keeping >= 2 grid steps (v7x megacore) whenever the batch allows it."""
    best = 1
    for d in range(1, n + 1):
        if n % d:
            continue
        if d * rows_per_item > target_rows:
            continue
        if n >= 2 and n // d < 2:
            continue
        best = d
    return best


def _conv3x3_weight(w_oihw, cin_p, cout_p):
    """PyTorch OIHW -> (9, cin_p, cout_p) bf16, k = kh*3 + kw, zero padded."""
    o, i, _, _ = w_oihw.shape
    w = jnp.transpose(w_oihw, (2, 3, 1, 0)).reshape(9, i, o)
    return _pad_axis(_pad_axis(w, 1, cin_p), 2, cout_p).astype(jnp.bfloat16)


def _conv1x1_weight(w_oihw, cin_p, cout_p):
    w = jnp.transpose(w_oihw[:, :, 0, 0], (1, 0))            # (cin, cout)
    return _pad_axis(_pad_axis(w, 0, cin_p), 1, cout_p).astype(jnp.bfloat16)


def _moments_to_affine(s, ss, m_true, gamma, beta, cout_p):
    """Per-channel (sum, sum^2) -> BN scale/shift (PyTorch train-mode stats)."""
    mean = s / m_true
    var = ss / m_true - mean * mean                           # biased variance
    inv = lax.rsqrt(var + EPS)
    scale = _pad_axis(gamma, 0, cout_p) * inv
    shift = _pad_axis(beta, 0, cout_p) - mean * scale
    return (scale.reshape(1, cout_p).astype(jnp.float32),
            shift.reshape(1, cout_p).astype(jnp.float32))


def _reduce_partials(ps, cout_p, row):
    p = ps.reshape(-1, 8, cout_p)
    return jnp.sum(p[:, row, :], axis=0), jnp.sum(p[:, row + 1, :], axis=0)


# ---------------------------------------------------------------------------
# Pallas kernels (factories close over static shapes)
# ---------------------------------------------------------------------------
def _make_conv3x3_s1_kernel(gi, h, w, cin_p, cout_p):
    """3x3 / stride-1 conv on a group of `gi` images; patches built in VMEM."""
    rows = gi * h * w

    def kernel(x_ref, w_ref, y_ref, ps_ref, pad_ref):
        # Zero halo every step (megacore-safe: each core owns its own scratch).
        pad_ref[...] = jnp.zeros_like(pad_ref)
        pad_ref[:, 1:h + 1, 1:w + 1, :] = x_ref[...]
        acc = jnp.zeros((rows, cout_p), jnp.float32)
        for kh in range(3):
            for kw in range(3):
                win = pad_ref[:, kh:kh + h, kw:kw + w, :]
                acc = acc + jnp.dot(win.reshape(rows, cin_p),
                                    w_ref[kh * 3 + kw],
                                    preferred_element_type=jnp.float32)
        y_ref[...] = acc.reshape(gi, h, w, cout_p).astype(y_ref.dtype)
        # One full (8, C) store of the BN partials (no masked sub-block writes).
        ps_ref[...] = jnp.concatenate(
            [jnp.sum(acc, axis=0, keepdims=True),
             jnp.sum(acc * acc, axis=0, keepdims=True),
             jnp.zeros((6, cout_p), jnp.float32)], axis=0)

    return kernel


def _make_conv3x3_s2_kernel(gi, ho, wo, cin_p, cout_p):
    """3x3 / stride-2 conv from 4 parity-split, spatially pre-padded quarters."""
    rows = gi * ho * wo

    def kernel(xee_ref, xeo_ref, xoe_ref, xoo_ref, w_ref, y_ref, ps_ref):
        quarters = ((xee_ref, xeo_ref), (xoe_ref, xoo_ref))
        acc = jnp.zeros((rows, cout_p), jnp.float32)
        for kh in range(3):
            for kw in range(3):
                src = quarters[kh % 2][kw % 2]
                r0, c0 = kh // 2, kw // 2
                win = src[:, r0:r0 + ho, c0:c0 + wo, :]
                acc = acc + jnp.dot(win.reshape(rows, cin_p),
                                    w_ref[kh * 3 + kw],
                                    preferred_element_type=jnp.float32)
        y_ref[...] = acc.reshape(gi, ho, wo, cout_p).astype(y_ref.dtype)
        ps_ref[...] = jnp.concatenate(
            [jnp.sum(acc, axis=0, keepdims=True),
             jnp.sum(acc * acc, axis=0, keepdims=True),
             jnp.zeros((6, cout_p), jnp.float32)], axis=0)

    return kernel


def _make_conv2_kernel(gi, ho, wo, cout_p, cin_p=0, with_proj=False):
    """bn1-affine + ReLU fused into the in-VMEM patch build, 3x3/s1 conv, plus
    (optionally) the 1x1 projection-shortcut matmul in the same kernel."""
    rows = gi * ho * wo

    def conv_main(y1_ref, sc1_ref, sh1_ref, w2_ref, pad_ref):
        a1 = jnp.maximum(y1_ref[...] * sc1_ref[...] + sh1_ref[...], 0.0)
        pad_ref[...] = jnp.zeros_like(pad_ref)
        pad_ref[:, 1:ho + 1, 1:wo + 1, :] = a1.astype(pad_ref.dtype)
        acc = jnp.zeros((rows, cout_p), jnp.float32)
        for kh in range(3):
            for kw in range(3):
                win = pad_ref[:, kh:kh + ho, kw:kw + wo, :]
                acc = acc + jnp.dot(win.reshape(rows, cout_p),
                                    w2_ref[kh * 3 + kw],
                                    preferred_element_type=jnp.float32)
        return acc

    if with_proj:
        def kernel(y1_ref, sc1_ref, sh1_ref, xs_ref, w2_ref, ws_ref,
                   y2_ref, ysc_ref, ps_ref, pad_ref):
            acc = conv_main(y1_ref, sc1_ref, sh1_ref, w2_ref, pad_ref)
            acs = jnp.dot(xs_ref[...].reshape(rows, cin_p), ws_ref[...],
                          preferred_element_type=jnp.float32)
            y2_ref[...] = acc.reshape(gi, ho, wo, cout_p).astype(y2_ref.dtype)
            ysc_ref[...] = acs.reshape(gi, ho, wo, cout_p).astype(ysc_ref.dtype)
            ps_ref[...] = jnp.concatenate(
                [jnp.sum(acc, axis=0, keepdims=True),
                 jnp.sum(acc * acc, axis=0, keepdims=True),
                 jnp.sum(acs, axis=0, keepdims=True),
                 jnp.sum(acs * acs, axis=0, keepdims=True),
                 jnp.zeros((4, cout_p), jnp.float32)], axis=0)
        return kernel

    def kernel(y1_ref, sc1_ref, sh1_ref, w2_ref, y2_ref, ps_ref, pad_ref):
        acc = conv_main(y1_ref, sc1_ref, sh1_ref, w2_ref, pad_ref)
        y2_ref[...] = acc.reshape(gi, ho, wo, cout_p).astype(y2_ref.dtype)
        ps_ref[...] = jnp.concatenate(
            [jnp.sum(acc, axis=0, keepdims=True),
             jnp.sum(acc * acc, axis=0, keepdims=True),
             jnp.zeros((6, cout_p), jnp.float32)], axis=0)

    return kernel


def _epi_proj_kernel(y2_ref, ysc_ref, sc2_ref, sh2_ref, scs_ref, shs_ref, o_ref):
    v = (y2_ref[...] * sc2_ref[...] + sh2_ref[...]
         + ysc_ref[...] * scs_ref[...] + shs_ref[...])
    o_ref[...] = jnp.maximum(v, 0.0).astype(o_ref.dtype)


def _epi_identity_kernel(y2_ref, res_ref, sc2_ref, sh2_ref, o_ref):
    v = y2_ref[...] * sc2_ref[...] + sh2_ref[...] + res_ref[...]
    o_ref[...] = jnp.maximum(v, 0.0).astype(o_ref.dtype)


# ---------------------------------------------------------------------------
# pallas_call plumbing
# ---------------------------------------------------------------------------
def _conv1_call(x_bf, w1, stride, ho, wo, cin_p, cout_p):
    n, h, w, _ = x_bf.shape
    gi = _pick_group(n, ho * wo, _conv_target_rows())
    steps = n // gi

    def img_spec(shape):
        return pl.BlockSpec(shape, lambda g: (g, 0, 0, 0))

    w_spec = pl.BlockSpec((9, cin_p, cout_p), lambda g: (0, 0, 0))
    out_shape = (jax.ShapeDtypeStruct((n, ho, wo, cout_p), jnp.bfloat16),
                 jax.ShapeDtypeStruct((steps * 8, cout_p), jnp.float32))
    out_specs = (img_spec((gi, ho, wo, cout_p)),
                 pl.BlockSpec((8, cout_p), lambda g: (g, 0)))
    flops = 2 * n * ho * wo * 9 * cin_p * cout_p
    byts = x_bf.size * 2 + w1.size * 2 + n * ho * wo * cout_p * 2
    cost = pl.CostEstimate(flops=int(flops), transcendentals=0,
                           bytes_accessed=int(byts))

    if stride == 1:
        kernel = _make_conv3x3_s1_kernel(gi, h, w, cin_p, cout_p)
        return pl.pallas_call(
            kernel, out_shape=out_shape, grid=(steps,),
            in_specs=[img_spec((gi, h, w, cin_p)), w_spec],
            out_specs=out_specs,
            scratch_shapes=[pltpu.VMEM((gi, h + 2, w + 2, cin_p), jnp.bfloat16)],
            compiler_params=_cparams(), cost_estimate=cost,
        )(x_bf, w1)

    # stride 2: spatially pad once (tiny, on the block input) and parity-split
    # so the kernel only needs contiguous static slices (no strided reads).
    xp = jnp.pad(x_bf, ((0, 0), (1, 1), (1, 1), (0, 0)))
    quarters = [xp[:, r::2, c::2, :] for r in (0, 1) for c in (0, 1)]
    q_spec = img_spec((gi, ho + 1, wo + 1, cin_p))
    kernel = _make_conv3x3_s2_kernel(gi, ho, wo, cin_p, cout_p)
    return pl.pallas_call(
        kernel, out_shape=out_shape, grid=(steps,),
        in_specs=[q_spec, q_spec, q_spec, q_spec, w_spec],
        out_specs=out_specs,
        compiler_params=_cparams(), cost_estimate=cost,
    )(*quarters, w1)


# ---------------------------------------------------------------------------
# BasicBlock forward
# ---------------------------------------------------------------------------
def basic_block_forward(x_nchw, params, stride):
    """Pallas BasicBlock forward (train-mode BatchNorm), NCHW in / NCHW out."""
    x = jnp.transpose(x_nchw, (0, 2, 3, 1)).astype(jnp.float32)      # NHWC
    n, h, w, cin = x.shape
    planes = params["w1"].shape[0]
    cin_p = _round_up(cin, 8)
    cout_p = _round_up(planes, LANE)
    ho = (h - 1) // stride + 1
    wo = (w - 1) // stride + 1
    if stride != 1:
        assert h % 2 == 0 and w % 2 == 0, "stride-2 path expects even H, W"
    m = n * ho * wo

    x_bf = _pad_axis(x, 3, cin_p).astype(jnp.bfloat16)

    # ---- conv1 (3x3, stride): raw bf16 output + BN1 batch statistics ------
    w1 = _conv3x3_weight(params["w1"], cin_p, cout_p)
    y1, ps1 = _conv1_call(x_bf, w1, stride, ho, wo, cin_p, cout_p)
    s1, ss1 = _reduce_partials(ps1, cout_p, 0)
    sc1, sh1 = _moments_to_affine(s1, ss1, m, params["g1"], params["b1"], cout_p)

    # ---- conv2 (3x3, s=1) with fused bn1-affine+ReLU patch build ----------
    w2 = _conv3x3_weight(params["w2"], cout_p, cout_p)
    needs_proj = (stride != 1) or (cin != planes)
    gi = _pick_group(n, ho * wo, _conv_target_rows())
    steps = n // gi
    y_spec = pl.BlockSpec((gi, ho, wo, cout_p), lambda g: (g, 0, 0, 0))
    vec_spec = pl.BlockSpec((1, cout_p), lambda g: (0, 0))
    ps_spec = pl.BlockSpec((8, cout_p), lambda g: (g, 0))
    pad_scratch = pltpu.VMEM((gi, ho + 2, wo + 2, cout_p), jnp.bfloat16)
    conv2_flops = 2 * m * 9 * cout_p * cout_p

    if needs_proj:
        xs = x_bf[:, ::stride, ::stride, :]                  # (n, ho, wo, cin_p)
        ws = _conv1x1_weight(params["ws"], cin_p, cout_p)
        kernel = _make_conv2_kernel(gi, ho, wo, cout_p, cin_p, with_proj=True)
        cost = pl.CostEstimate(
            flops=int(conv2_flops + 2 * m * cin_p * cout_p), transcendentals=0,
            bytes_accessed=int((y1.size + xs.size + 2 * m * cout_p) * 2
                               + (w2.size + ws.size) * 2))
        y2, ysc, ps2 = pl.pallas_call(
            kernel,
            out_shape=(jax.ShapeDtypeStruct((n, ho, wo, cout_p), jnp.bfloat16),
                       jax.ShapeDtypeStruct((n, ho, wo, cout_p), jnp.bfloat16),
                       jax.ShapeDtypeStruct((steps * 8, cout_p), jnp.float32)),
            grid=(steps,),
            in_specs=[y_spec, vec_spec, vec_spec,
                      pl.BlockSpec((gi, ho, wo, cin_p), lambda g: (g, 0, 0, 0)),
                      pl.BlockSpec((9, cout_p, cout_p), lambda g: (0, 0, 0)),
                      pl.BlockSpec((cin_p, cout_p), lambda g: (0, 0))],
            out_specs=(y_spec, y_spec, ps_spec),
            scratch_shapes=[pad_scratch],
            compiler_params=_cparams(), cost_estimate=cost,
        )(y1, sc1, sh1, xs, w2, ws)

        s2, ss2 = _reduce_partials(ps2, cout_p, 0)
        sc2, sh2 = _moments_to_affine(s2, ss2, m, params["g2"], params["b2"], cout_p)
        s3, ss3 = _reduce_partials(ps2, cout_p, 2)
        scs, shs = _moments_to_affine(s3, ss3, m, params["gs"], params["bs"], cout_p)

        ge = _pick_group(n, ho * wo, _EPI_TARGET_ROWS)
        e_spec = pl.BlockSpec((ge, ho, wo, cout_p), lambda g: (g, 0, 0, 0))
        out = pl.pallas_call(
            _epi_proj_kernel,
            out_shape=jax.ShapeDtypeStruct((n, ho, wo, cout_p), jnp.float32),
            grid=(n // ge,),
            in_specs=[e_spec, e_spec, vec_spec, vec_spec, vec_spec, vec_spec],
            out_specs=e_spec,
            compiler_params=_cparams(),
        )(y2, ysc, sc2, sh2, scs, shs)
    else:
        kernel = _make_conv2_kernel(gi, ho, wo, cout_p, with_proj=False)
        cost = pl.CostEstimate(
            flops=int(conv2_flops), transcendentals=0,
            bytes_accessed=int((y1.size + m * cout_p) * 2 + w2.size * 2))
        y2, ps2 = pl.pallas_call(
            kernel,
            out_shape=(jax.ShapeDtypeStruct((n, ho, wo, cout_p), jnp.bfloat16),
                       jax.ShapeDtypeStruct((steps * 8, cout_p), jnp.float32)),
            grid=(steps,),
            in_specs=[y_spec, vec_spec, vec_spec,
                      pl.BlockSpec((9, cout_p, cout_p), lambda g: (0, 0, 0))],
            out_specs=(y_spec, ps_spec),
            scratch_shapes=[pad_scratch],
            compiler_params=_cparams(), cost_estimate=cost,
        )(y1, sc1, sh1, w2)

        s2, ss2 = _reduce_partials(ps2, cout_p, 0)
        sc2, sh2 = _moments_to_affine(s2, ss2, m, params["g2"], params["b2"], cout_p)

        res = _pad_axis(x, 3, cout_p)          # exact f32 identity residual
        ge = _pick_group(n, ho * wo, _EPI_TARGET_ROWS)
        e_spec = pl.BlockSpec((ge, ho, wo, cout_p), lambda g: (g, 0, 0, 0))
        out = pl.pallas_call(
            _epi_identity_kernel,
            out_shape=jax.ShapeDtypeStruct((n, ho, wo, cout_p), jnp.float32),
            grid=(n // ge,),
            in_specs=[e_spec, e_spec, vec_spec, vec_spec],
            out_specs=e_spec,
            compiler_params=_cparams(),
        )(y2, res, sc2, sh2)

    out = out[..., :planes]
    return jnp.transpose(out, (0, 3, 1, 2))                  # -> NCHW


# ---------------------------------------------------------------------------
# Pure-JAX reference (for correctness check)
# ---------------------------------------------------------------------------
def _ref_conv(x, w, stride, padding):
    return lax.conv_general_dilated(
        x, w, (stride, stride), [(padding, padding)] * 2,
        dimension_numbers=("NCHW", "OIHW", "NCHW"),
        precision=lax.Precision.HIGHEST)


def _ref_bn(x, g, b):
    mean = x.mean(axis=(0, 2, 3), keepdims=True)
    var = ((x - mean) ** 2).mean(axis=(0, 2, 3), keepdims=True)
    return ((x - mean) * lax.rsqrt(var + EPS) * g[None, :, None, None]
            + b[None, :, None, None])


def basic_block_reference(x, params, stride):
    planes = params["w1"].shape[0]
    out = jax.nn.relu(_ref_bn(_ref_conv(x, params["w1"], stride, 1),
                              params["g1"], params["b1"]))
    out = _ref_bn(_ref_conv(out, params["w2"], 1, 1), params["g2"], params["b2"])
    if stride != 1 or x.shape[1] != planes:
        sc = _ref_bn(_ref_conv(x, params["ws"], stride, 0),
                     params["gs"], params["bs"])
    else:
        sc = x
    return jax.nn.relu(out + sc)


# ---------------------------------------------------------------------------
if __name__ == "__main__":
    def make_params(key, in_planes, planes, with_proj):
        ks = jax.random.split(key, 9)
        p = {
            "w1": 0.1 * jax.random.normal(ks[0], (planes, in_planes, 3, 3), jnp.float32),
            "g1": 1.0 + 0.1 * jax.random.normal(ks[1], (planes,), jnp.float32),
            "b1": 0.1 * jax.random.normal(ks[2], (planes,), jnp.float32),
            "w2": 0.1 * jax.random.normal(ks[3], (planes, planes, 3, 3), jnp.float32),
            "g2": 1.0 + 0.1 * jax.random.normal(ks[4], (planes,), jnp.float32),
            "b2": 0.1 * jax.random.normal(ks[5], (planes,), jnp.float32),
        }
        if with_proj:
            p["ws"] = 0.1 * jax.random.normal(ks[6], (planes, in_planes, 1, 1), jnp.float32)
            p["gs"] = 1.0 + 0.1 * jax.random.normal(ks[7], (planes,), jnp.float32)
            p["bs"] = 0.1 * jax.random.normal(ks[8], (planes,), jnp.float32)
        return p

    key = jax.random.PRNGKey(0)
    fwd = jax.jit(basic_block_forward, static_argnums=2)

    configs = [
        (4, 8, 1),   # projection shortcut (channel change), two-dot fused kernel
        (8, 8, 1),   # identity shortcut
        (4, 8, 2),   # projection shortcut, strided (parity-split conv1 path)
    ]
    for idx, (cin, planes, stride) in enumerate(configs):
        kx, kp = jax.random.split(jax.random.fold_in(key, idx))
        x = jax.random.normal(kx, (2, cin, 16, 16), jnp.float32)
        params = make_params(kp, cin, planes,
                             with_proj=(stride != 1 or cin != planes))

        out = jax.block_until_ready(fwd(x, params, stride))
        ref = basic_block_reference(x, params, stride)

        assert out.shape == ref.shape, (out.shape, ref.shape)
        # bf16 MXU operands + bf16 conv intermediates (per perf review) vs the
        # f32 HIGHEST-precision reference -> allow a bf16-scale tolerance.
        max_err = float(jnp.max(jnp.abs(out - ref)))
        assert jnp.allclose(out, ref, atol=5e-2, rtol=5e-2), (idx, max_err)

    print("KERNEL_OK")
</pallas_src>

<mosaic_0001>
module attributes {stable_mosaic.version = 11 : i64} {
  func.func @kernel(%arg0: i32, %arg1: memref<1x16x16x8xbf16, #tpu.memory_space<vmem>>, %arg2: memref<9x8x128xbf16, #tpu.memory_space<vmem>>, %arg3: memref<1x16x16x128xbf16, #tpu.memory_space<vmem>>, %arg4: memref<8x128xf32, #tpu.memory_space<vmem>>, %arg5: memref<1x18x18x8xbf16, #tpu.memory_space<vmem>>) attributes {dimension_semantics = [#tpu.dimension_semantics<parallel>], iteration_bounds = array<i64: 2>, scalar_prefetch = 0 : i64, scratch_operands = 1 : i64, tpu.core_type = #tpu.core_type<tc>, window_params = [{transform_indices = @transform_0, window_bounds = array<i64: 1, 16, 16, 8>}, {pipeline_mode = #tpu.pipeline_mode<synchronous>, transform_indices = @transform_1, window_bounds = array<i64: 9, 8, 128>}, {transform_indices = @transform_2, window_bounds = array<i64: 1, 16, 16, 128>}, {transform_indices = @transform_3, window_bounds = array<i64: 8, 128>}]} {
    %cst = arith.constant 0.000000e+00 : bf16
    %0 = vector.broadcast %cst : bf16 to vector<1x18x18x8xbf16>
    %c0 = arith.constant 0 : index
    %c0_0 = arith.constant 0 : index
    %c0_1 = arith.constant 0 : index
    %c0_2 = arith.constant 0 : index
    %1 = vector.load %arg5[%c0, %c0_0, %c0_1, %c0_2] : memref<1x18x18x8xbf16, #tpu.memory_space<vmem>>, vector<1x18x18x8xbf16>
    tpu.vector_store %arg5[%c0, %c0_0, %c0_1, %c0_2], %0 {strides = array<i32>} : memref<1x18x18x8xbf16, #tpu.memory_space<vmem>>, vector<1x18x18x8xbf16>,
    %c0_3 = arith.constant 0 : index
    %c0_4 = arith.constant 0 : index
    %c0_5 = arith.constant 0 : index
    %c0_6 = arith.constant 0 : index
    %2 = vector.load %arg1[%c0_3, %c0_4, %c0_5, %c0_6] : memref<1x16x16x8xbf16, #tpu.memory_space<vmem>>, vector<1x16x16x8xbf16>
    %c0_7 = arith.constant 0 : index
    %c1 = arith.constant 1 : index
    %c1_8 = arith.constant 1 : index
    %c0_9 = arith.constant 0 : index
    %3 = vector.load %arg5[%c0_7, %c1, %c1_8, %c0_9] : memref<1x18x18x8xbf16, #tpu.memory_space<vmem>>, vector<1x16x16x8xbf16>
    tpu.vector_store %arg5[%c0_7, %c1, %c1_8, %c0_9], %2 {strides = array<i32>} : memref<1x18x18x8xbf16, #tpu.memory_space<vmem>>, vector<1x16x16x8xbf16>,
    %cst_10 = arith.constant 0.000000e+00 : f32
    %4 = vector.broadcast %cst_10 : f32 to vector<256x128xf32>
    %c0_11 = arith.constant 0 : index
    %c0_12 = arith.constant 0 : index
    %c0_13 = arith.constant 0 : index
    %c0_14 = arith.constant 0 : index
    %5 = vector.load %arg5[%c0_11, %c0_12, %c0_13, %c0_14] : memref<1x18x18x8xbf16, #tpu.memory_space<vmem>>, vector<1x16x16x8xbf16>
    %6 = vector.shape_cast %5 : vector<1x16x16x8xbf16> to vector<256x8xbf16>
    %c0_15 = arith.constant 0 : index
    %c0_16 = arith.constant 0 : index
    %c0_17 = arith.constant 0 : index
    %7 = vector.load %arg2[%c0_15, %c0_16, %c0_17] : memref<9x8x128xbf16, #tpu.memory_space<vmem>>, vector<1x8x128xbf16>
    %8 = vector.shape_cast %7 : vector<1x8x128xbf16> to vector<8x128xbf16>
    %cst_18 = arith.constant dense<0.000000e+00> : vector<256x128xf32>
    %9 = tpu.matmul %6, %8, %cst_18 {dimension_numbers = #tpu.dot_dimension_numbers<[1], [0], [0], [1], [0, 0, 1, 1], [], []>} : vector<256x8xbf16>, vector<8x128xbf16>, vector<256x128xf32> -> vector<256x128xf32>
    %10 = arith.addf %4, %9 : vector<256x128xf32>
    %c0_19 = arith.constant 0 : index
    %c0_20 = arith.constant 0 : index
    %c1_21 = arith.constant 1 : index
    %c0_22 = arith.constant 0 : index
    %11 = vector.load %arg5[%c0_19, %c0_20, %c1_21, %c0_22] : memref<1x18x18x8xbf16, #tpu.memory_space<vmem>>, vector<1x16x16x8xbf16>
    %12 = vector.shape_cast %11 : vector<1x16x16x8xbf16> to vector<256x8xbf16>
    %c1_23 = arith.constant 1 : index
    %c0_24 = arith.constant 0 : index
    %c0_25 = arith.constant 0 : index
    %13 = vector.load %arg2[%c1_23, %c0_24, %c0_25] : memref<9x8x128xbf16, #tpu.memory_space<vmem>>, vector<1x8x128xbf16>
    %14 = vector.shape_cast %13 : vector<1x8x128xbf16> to vector<8x128xbf16>
    %cst_26 = arith.constant dense<0.000000e+00> : vector<256x128xf32>
    %15 = tpu.matmul %12, %14, %cst_26 {dimension_numbers = #tpu.dot_dimension_numbers<[1], [0], [0], [1], [0, 0, 1, 1], [], []>} : vector<256x8xbf16>, vector<8x128xbf16>, vector<256x128xf32> -> vector<256x128xf32>
    %16 = arith.addf %10, %15 : vector<256x128xf32>
    %c0_27 = arith.constant 0 : index
    %c0_28 = arith.constant 0 : index
    %c2 = arith.constant 2 : index
    %c0_29 = arith.constant 0 : index
    %17 = vector.load %arg5[%c0_27, %c0_28, %c2, %c0_29] : memref<1x18x18x8xbf16, #tpu.memory_space<vmem>>, vector<1x16x16x8xbf16>
    %18 = vector.shape_cast %17 : vector<1x16x16x8xbf16> to vector<256x8xbf16>
    %c2_30 = arith.constant 2 : index
    %c0_31 = arith.constant 0 : index
    %c0_32 = arith.constant 0 : index
    %19 = vector.load %arg2[%c2_30, %c0_31, %c0_32] : memref<9x8x128xbf16, #tpu.memory_space<vmem>>, vector<1x8x128xbf16>
    %20 = vector.shape_cast %19 : vector<1x8x128xbf16> to vector<8x128xbf16>
    %cst_33 = arith.constant dense<0.000000e+00> : vector<256x128xf32>
    %21 = tpu.matmul %18, %20, %cst_33 {dimension_numbers = #tpu.dot_dimension_numbers<[1], [0], [0], [1], [0, 0, 1, 1], [], []>} : vector<256x8xbf16>, vector<8x128xbf16>, vector<256x128xf32> -> vector<256x128xf32>
    %22 = arith.addf %16, %21 : vector<256x128xf32>
    %c0_34 = arith.constant 0 : index
    %c1_35 = arith.constant 1 : index
    %c0_36 = arith.constant 0 : index
    %c0_37 = arith.constant 0 : index
    %23 = vector.load %arg5[%c0_34, %c1_35, %c0_36, %c0_37] : memref<1x18x18x8xbf16, #tpu.memory_space<vmem>>, vector<1x16x16x8xbf16>
    %24 = vector.shape_cast %23 : vector<1x16x16x8xbf16> to vector<256x8xbf16>
    %c3 = arith.constant 3 : index
    %c0_38 = arith.constant 0 : index
    %c0_39 = arith.constant 0 : index
    %25 = vector.load %arg2[%c3, %c0_38, %c0_39] : memref<9x8x128xbf16, #tpu.memory_space<vmem>>, vector<1x8x128xbf16>
    %26 = vector.shape_cast %25 : vector<1x8x128xbf16> to vector<8x128xbf16>
    %cst_40 = arith.constant dense<0.000000e+00> : vector<256x128xf32>
    %27 = tpu.matmul %24, %26, %cst_40 {dimension_numbers = #tpu.dot_dimension_numbers<[1], [0], [0], [1], [0, 0, 1, 1], [], []>} : vector<256x8xbf16>, vector<8x128xbf16>, vector<256x128xf32> -> vector<256x128xf32>
    %28 = arith.addf %22, %27 : vector<256x128xf32>
    %c0_41 = arith.constant 0 : index
    %c1_42 = arith.constant 1 : index
    %c1_43 = arith.constant 1 : index
    %c0_44 = arith.constant 0 : index
    %29 = vector.load %arg5[%c0_41, %c1_42, %c1_43, %c0_44] : memref<1x18x18x8xbf16, #tpu.memory_space<vmem>>, vector<1x16x16x8xbf16>
    %30 = vector.shape_cast %29 : vector<1x16x16x8xbf16> to vector<256x8xbf16>
    %c4 = arith.constant 4 : index
    %c0_45 = arith.constant 0 : index
    %c0_46 = arith.constant 0 : index
    %31 = vector.load %arg2[%c4, %c0_45, %c0_46] : memref<9x8x128xbf16, #tpu.memory_space<vmem>>, vector<1x8x128xbf16>
    %32 = vector.shape_cast %31 : vector<1x8x128xbf16> to vector<8x128xbf16>
    %cst_47 = arith.constant dense<0.000000e+00> : vector<256x128xf32>
    %33 = tpu.matmul %30, %32, %cst_47 {dimension_numbers = #tpu.dot_dimension_numbers<[1], [0], [0], [1], [0, 0, 1, 1], [], []>} : vector<256x8xbf16>, vector<8x128xbf16>, vector<256x128xf32> -> vector<256x128xf32>
    %34 = arith.addf %28, %33 : vector<256x128xf32>
    %c0_48 = arith.constant 0 : index
    %c1_49 = arith.constant 1 : index
    %c2_50 = arith.constant 2 : index
    %c0_51 = arith.constant 0 : index
    %35 = vector.load %arg5[%c0_48, %c1_49, %c2_50, %c0_51] : memref<1x18x18x8xbf16, #tpu.memory_space<vmem>>, vector<1x16x16x8xbf16>
    %36 = vector.shape_cast %35 : vector<1x16x16x8xbf16> to vector<256x8xbf16>
    %c5 = arith.constant 5 : index
    %c0_52 = arith.constant 0 : index
    %c0_53 = arith.constant 0 : index
    %37 = vector.load %arg2[%c5, %c0_52, %c0_53] : memref<9x8x128xbf16, #tpu.memory_space<vmem>>, vector<1x8x128xbf16>
    %38 = vector.shape_cast %37 : vector<1x8x128xbf16> to vector<8x128xbf16>
    %cst_54 = arith.constant dense<0.000000e+00> : vector<256x128xf32>
    %39 = tpu.matmul %36, %38, %cst_54 {dimension_numbers = #tpu.dot_dimension_numbers<[1], [0], [0], [1], [0, 0, 1, 1], [], []>} : vector<256x8xbf16>, vector<8x128xbf16>, vector<256x128xf32> -> vector<256x128xf32>
    %40 = arith.addf %34, %39 : vector<256x128xf32>
    %c0_55 = arith.constant 0 : index
    %c2_56 = arith.constant 2 : index
    %c0_57 = arith.constant 0 : index
    %c0_58 = arith.constant 0 : index
    %41 = vector.load %arg5[%c0_55, %c2_56, %c0_57, %c0_58] : memref<1x18x18x8xbf16, #tpu.memory_space<vmem>>, vector<1x16x16x8xbf16>
    %42 = vector.shape_cast %41 : vector<1x16x16x8xbf16> to vector<256x8xbf16>
    %c6 = arith.constant 6 : index
    %c0_59 = arith.constant 0 : index
    %c0_60 = arith.constant 0 : index
    %43 = vector.load %arg2[%c6, %c0_59, %c0_60] : memref<9x8x128xbf16, #tpu.memory_space<vmem>>, vector<1x8x128xbf16>
    %44 = vector.shape_cast %43 : vector<1x8x128xbf16> to vector<8x128xbf16>
    %cst_61 = arith.constant dense<0.000000e+00> : vector<256x128xf32>
    %45 = tpu.matmul %42, %44, %cst_61 {dimension_numbers = #tpu.dot_dimension_numbers<[1], [0], [0], [1], [0, 0, 1, 1], [], []>} : vector<256x8xbf16>, vector<8x128xbf16>, vector<256x128xf32> -> vector<256x128xf32>
    %46 = arith.addf %40, %45 : vector<256x128xf32>
    %c0_62 = arith.constant 0 : index
    %c2_63 = arith.constant 2 : index
    %c1_64 = arith.constant 1 : index
    %c0_65 = arith.constant 0 : index
    %47 = vector.load %arg5[%c0_62, %c2_63, %c1_64, %c0_65] : memref<1x18x18x8xbf16, #tpu.memory_space<vmem>>, vector<1x16x16x8xbf16>
    %48 = vector.shape_cast %47 : vector<1x16x16x8xbf16> to vector<256x8xbf16>
    %c7 = arith.constant 7 : index
    %c0_66 = arith.constant 0 : index
    %c0_67 = arith.constant 0 : index
    %49 = vector.load %arg2[%c7, %c0_66, %c0_67] : memref<9x8x128xbf16, #tpu.memory_space<vmem>>, vector<1x8x128xbf16>
    %50 = vector.shape_cast %49 : vector<1x8x128xbf16> to vector<8x128xbf16>
    %cst_68 = arith.constant dense<0.000000e+00> : vector<256x128xf32>
    %51 = tpu.matmul %48, %50, %cst_68 {dimension_numbers = #tpu.dot_dimension_numbers<[1], [0], [0], [1], [0, 0, 1, 1], [], []>} : vector<256x8xbf16>, vector<8x128xbf16>, vector<256x128xf32> -> vector<256x128xf32>
    %52 = arith.addf %46, %51 : vector<256x128xf32>
    %c0_69 = arith.constant 0 : index
    %c2_70 = arith.constant 2 : index
    %c2_71 = arith.constant 2 : index
    %c0_72 = arith.constant 0 : index
    %53 = vector.load %arg5[%c0_69, %c2_70, %c2_71, %c0_72] : memref<1x18x18x8xbf16, #tpu.memory_space<vmem>>, vector<1x16x16x8xbf16>
    %54 = vector.shape_cast %53 : vector<1x16x16x8xbf16> to vector<256x8xbf16>
    %c8 = arith.constant 8 : index
    %c0_73 = arith.constant 0 : index
    %c0_74 = arith.constant 0 : index
    %55 = vector.load %arg2[%c8, %c0_73, %c0_74] : memref<9x8x128xbf16, #tpu.memory_space<vmem>>, vector<1x8x128xbf16>
    %56 = vector.shape_cast %55 : vector<1x8x128xbf16> to vector<8x128xbf16>
    %cst_75 = arith.constant dense<0.000000e+00> : vector<256x128xf32>
    %57 = tpu.matmul %54, %56, %cst_75 {dimension_numbers = #tpu.dot_dimension_numbers<[1], [0], [0], [1], [0, 0, 1, 1], [], []>} : vector<256x8xbf16>, vector<8x128xbf16>, vector<256x128xf32> -> vector<256x128xf32>
    %58 = arith.addf %52, %57 : vector<256x128xf32>
    %59 = vector.shape_cast %58 : vector<256x128xf32> to vector<1x16x16x128xf32>
    %60 = arith.truncf %59 : vector<1x16x16x128xf32> to vector<1x16x16x128xbf16>
    %c0_76 = arith.constant 0 : index
    %c0_77 = arith.constant 0 : index
    %c0_78 = arith.constant 0 : index
    %c0_79 = arith.constant 0 : index
    %61 = vector.load %arg3[%c0_76, %c0_77, %c0_78, %c0_79] : memref<1x16x16x128xbf16, #tpu.memory_space<vmem>>, vector<1x16x16x128xbf16>
    tpu.vector_store %arg3[%c0_76, %c0_77, %c0_78, %c0_79], %60 {strides = array<i32>} : memref<1x16x16x128xbf16, #tpu.memory_space<vmem>>, vector<1x16x16x128xbf16>,
    %cst_80 = arith.constant dense<0.000000e+00> : vector<128xf32>
    %62 = vector.multi_reduction <add>, %58, %cst_80 [0] : vector<256x128xf32> to vector<128xf32>
    %63 = vector.shape_cast %62 : vector<128xf32> to vector<1x128xf32>
    %64 = arith.mulf %58, %58 : vector<256x128xf32>
    %cst_81 = arith.constant dense<0.000000e+00> : vector<128xf32>
    %65 = vector.multi_reduction <add>, %64, %cst_81 [0] : vector<256x128xf32> to vector<128xf32>
    %66 = vector.shape_cast %65 : vector<128xf32> to vector<1x128xf32>
    %cst_82 = arith.constant 0.000000e+00 : f32
    %67 = vector.broadcast %cst_82 : f32 to vector<6x128xf32>
    %68 = tpu.concatenate %63, %66, %67 in 0 : vector<1x128xf32>, vector<1x128xf32>, vector<6x128xf32> -> vector<8x128xf32>
    %c0_83 = arith.constant 0 : index
    %c0_84 = arith.constant 0 : index
    %69 = vector.load %arg4[%c0_83, %c0_84] : memref<8x128xf32, #tpu.memory_space<vmem>>, vector<8x128xf32>
    tpu.vector_store %arg4[%c0_83, %c0_84], %68 {strides = array<i32>} : memref<8x128xf32, #tpu.memory_space<vmem>>, vector<8x128xf32>,
    return
  }
  func.func @transform_0(%arg0: i32) -> (i32, i32, i32, i32) {
    %c0_i32 = arith.constant 0 : i32
    %c0_i32_0 = arith.constant 0 : i32
    %c0_i32_1 = arith.constant 0 : i32
    %c0_i32_2 = arith.constant 0 : i32
    return %arg0, %c0_i32, %c0_i32_0, %c0_i32_1 : i32, i32, i32, i32
  }
  func.func @transform_1(%arg0: i32) -> (i32, i32, i32) {
    %c0_i32 = arith.constant 0 : i32
    %c0_i32_0 = arith.constant 0 : i32
    %c0_i32_1 = arith.constant 0 : i32
    %c0_i32_2 = arith.constant 0 : i32
    return %c0_i32, %c0_i32_0, %c0_i32_1 : i32, i32, i32
  }
  func.func @transform_2(%arg0: i32) -> (i32, i32, i32, i32) {
    %c0_i32 = arith.constant 0 : i32
    %c0_i32_0 = arith.constant 0 : i32
    %c0_i32_1 = arith.constant 0 : i32
    %c0_i32_2 = arith.constant 0 : i32
    return %arg0, %c0_i32, %c0_i32_0, %c0_i32_1 : i32, i32, i32, i32
  }
  func.func @transform_3(%arg0: i32) -> (i32, i32) {
    %c0_i32 = arith.constant 0 : i32
    %c0_i32_0 = arith.constant 0 : i32
    return %arg0, %c0_i32 : i32, i32
  }
}

module attributes {stable_mosaic.version = 11 : i64} {
  func.func @_epi_proj_kernel(%arg0: i32, %arg1: memref<1x16x16x128xbf16, #tpu.memory_space<vmem>>, %arg2: memref<1x16x16x128xbf16, #tpu.memory_space<vmem>>, %arg3: memref<1x128xf32, #tpu.memory_space<vmem>>, %arg4: memref<1x128xf32, #tpu.memory_space<vmem>>, %arg5: memref<1x128xf32, #tpu.memory_space<vmem>>, %arg6: memref<1x128xf32, #tpu.memory_space<vmem>>, %arg7: memref<1x16x16x128xf32, #tpu.memory_space<vmem>>) attributes {dimension_semantics = [#tpu.dimension_semantics<parallel>], iteration_bounds = array<i64: 2>, scalar_prefetch = 0 : i64, scratch_operands = 0 : i64, tpu.core_type = #tpu.core_type<tc>, window_params = [{transform_indices = @transform_0, window_bounds = array<i64: 1, 16, 16, 128>}, {transform_indices = @transform_1, window_bounds = array<i64: 1, 16, 16, 128>}, {pipeline_mode = #tpu.pipeline_mode<synchronous>, transform_indices = @transform_2, window_bounds = array<i64: 1, 128>}, {pipeline_mode = #tpu.pipeline_mode<synchronous>, transform_indices = @transform_3, window_bounds = array<i64: 1, 128>}, {pipeline_mode = #tpu.pipeline_mode<synchronous>, transform_indices = @transform_4, window_bounds = array<i64: 1, 128>}, {pipeline_mode = #tpu.pipeline_mode<synchronous>, transform_indices = @transform_5, window_bounds = array<i64: 1, 128>}, {transform_indices = @transform_6, window_bounds = array<i64: 1, 16, 16, 128>}]} {
    %c0 = arith.constant 0 : index
    %c0_0 = arith.constant 0 : index
    %c0_1 = arith.constant 0 : index
    %c0_2 = arith.constant 0 : index
    %0 = vector.load %arg1[%c0, %c0_0, %c0_1, %c0_2] : memref<1x16x16x128xbf16, #tpu.memory_space<vmem>>, vector<1x16x16x128xbf16>
    %c0_3 = arith.constant 0 : index
    %c0_4 = arith.constant 0 : index
    %1 = vector.load %arg3[%c0_3, %c0_4] : memref<1x128xf32, #tpu.memory_space<vmem>>, vector<1x128xf32>
    %2 = arith.extf %0 : vector<1x16x16x128xbf16> to vector<1x16x16x128xf32>
    %3 = vector.shape_cast %1 : vector<1x128xf32> to vector<1x1x1x128xf32>
    %4 = vector.broadcast %3 : vector<1x1x1x128xf32> to vector<1x16x16x128xf32>
    %5 = arith.mulf %2, %4 : vector<1x16x16x128xf32>
    %c0_5 = arith.constant 0 : index
    %c0_6 = arith.constant 0 : index
    %6 = vector.load %arg4[%c0_5, %c0_6] : memref<1x128xf32, #tpu.memory_space<vmem>>, vector<1x128xf32>
    %7 = vector.shape_cast %6 : vector<1x128xf32> to vector<1x1x1x128xf32>
    %8 = vector.broadcast %7 : vector<1x1x1x128xf32> to vector<1x16x16x128xf32>
    %9 = arith.addf %5, %8 : vector<1x16x16x128xf32>
    %c0_7 = arith.constant 0 : index
    %c0_8 = arith.constant 0 : index
    %c0_9 = arith.constant 0 : index
    %c0_10 = arith.constant 0 : index
    %10 = vector.load %arg2[%c0_7, %c0_8, %c0_9, %c0_10] : memref<1x16x16x128xbf16, #tpu.memory_space<vmem>>, vector<1x16x16x128xbf16>
    %c0_11 = arith.constant 0 : index
    %c0_12 = arith.constant 0 : index
    %11 = vector.load %arg5[%c0_11, %c0_12] : memref<1x128xf32, #tpu.memory_space<vmem>>, vector<1x128xf32>
    %12 = arith.extf %10 : vector<1x16x16x128xbf16> to vector<1x16x16x128xf32>
    %13 = vector.shape_cast %11 : vector<1x128xf32> to vector<1x1x1x128xf32>
    %14 = vector.broadcast %13 : vector<1x1x1x128xf32> to vector<1x16x16x128xf32>
    %15 = arith.mulf %12, %14 : vector<1x16x16x128xf32>
    %16 = arith.addf %9, %15 : vector<1x16x16x128xf32>
    %c0_13 = arith.constant 0 : index
    %c0_14 = arith.constant 0 : index
    %17 = vector.load %arg6[%c0_13, %c0_14] : memref<1x128xf32, #tpu.memory_space<vmem>>, vector<1x128xf32>
    %18 = vector.shape_cast %17 : vector<1x128xf32> to vector<1x1x1x128xf32>
    %19 = vector.broadcast %18 : vector<1x1x1x128xf32> to vector<1x16x16x128xf32>
    %20 = arith.addf %16, %19 : vector<1x16x16x128xf32>
    %cst = arith.constant 0.000000e+00 : f32
    %21 = vector.broadcast %cst : f32 to vector<1x16x16x128xf32>
    %22 = arith.maximumf %20, %21 : vector<1x16x16x128xf32>
    %c0_15 = arith.constant 0 : index
    %c0_16 = arith.constant 0 : index
    %c0_17 = arith.constant 0 : index
    %c0_18 = arith.constant 0 : index
    %23 = vector.load %arg7[%c0_15, %c0_16, %c0_17, %c0_18] : memref<1x16x16x128xf32, #tpu.memory_space<vmem>>, vector<1x16x16x128xf32>
    tpu.vector_store %arg7[%c0_15, %c0_16, %c0_17, %c0_18], %22 {strides = array<i32>} : memref<1x16x16x128xf32, #tpu.memory_space<vmem>>, vector<1x16x16x128xf32>,
    return
  }
  func.func @transform_0(%arg0: i32) -> (i32, i32, i32, i32) {
    %c0_i32 = arith.constant 0 : i32
    %c0_i32_0 = arith.constant 0 : i32
    %c0_i32_1 = arith.constant 0 : i32
    %c0_i32_2 = arith.constant 0 : i32
    return %arg0, %c0_i32, %c0_i32_0, %c0_i32_1 : i32, i32, i32, i32
  }
  func.func @transform_1(%arg0: i32) -> (i32, i32, i32, i32) {
    %c0_i32 = arith.constant 0 : i32
    %c0_i32_0 = arith.constant 0 : i32
    %c0_i32_1 = arith.constant 0 : i32
    %c0_i32_2 = arith.constant 0 : i32
    return %arg0, %c0_i32, %c0_i32_0, %c0_i32_1 : i32, i32, i32, i32
  }
  func.func @transform_2(%arg0: i32) -> (i32, i32) {
    %c0_i32 = arith.constant 0 : i32
    %c0_i32_0 = arith.constant 0 : i32
    %c0_i32_1 = arith.constant 0 : i32
    return %c0_i32, %c0_i32_0 : i32, i32
  }
  func.func @transform_3(%arg0: i32) -> (i32, i32) {
    %c0_i32 = arith.constant 0 : i32
    %c0_i32_0 = arith.constant 0 : i32
    %c0_i32_1 = arith.constant 0 : i32
    return %c0_i32, %c0_i32_0 : i32, i32
  }
  func.func @transform_4(%arg0: i32) -> (i32, i32) {
    %c0_i32 = arith.constant 0 : i32
    %c0_i32_0 = arith.constant 0 : i32
    %c0_i32_1 = arith.constant 0 : i32
    return %c0_i32, %c0_i32_0 : i32, i32
  }
  func.func @transform_5(%arg0: i32) -> (i32, i32) {
    %c0_i32 = arith.constant 0 : i32
    %c0_i32_0 = arith.constant 0 : i32
    %c0_i32_1 = arith.constant 0 : i32
    return %c0_i32, %c0_i32_0 : i32, i32
  }
  func.func @transform_6(%arg0: i32) -> (i32, i32, i32, i32) {
    %c0_i32 = arith.constant 0 : i32
    %c0_i32_0 = arith.constant 0 : i32
    %c0_i32_1 = arith.constant 0 : i32
    %c0_i32_2 = arith.constant 0 : i32
    return %arg0, %c0_i32, %c0_i32_0, %c0_i32_1 : i32, i32, i32, i32
  }
}

module attributes {stable_mosaic.version = 11 : i64} {
  func.func @kernel(%arg0: i32, %arg1: memref<1x16x16x128xbf16, #tpu.memory_space<vmem>>, %arg2: memref<1x128xf32, #tpu.memory_space<vmem>>, %arg3: memref<1x128xf32, #tpu.memory_space<vmem>>, %arg4: memref<1x16x16x8xbf16, #tpu.memory_space<vmem>>, %arg5: memref<9x128x128xbf16, #tpu.memory_space<vmem>>, %arg6: memref<8x128xbf16, #tpu.memory_space<vmem>>, %arg7: memref<1x16x16x128xbf16, #tpu.memory_space<vmem>>, %arg8: memref<1x16x16x128xbf16, #tpu.memory_space<vmem>>, %arg9: memref<8x128xf32, #tpu.memory_space<vmem>>, %arg10: memref<1x18x18x128xbf16, #tpu.memory_space<vmem>>) attributes {dimension_semantics = [#tpu.dimension_semantics<parallel>], iteration_bounds = array<i64: 2>, scalar_prefetch = 0 : i64, scratch_operands = 1 : i64, tpu.core_type = #tpu.core_type<tc>, window_params = [{transform_indices = @transform_0, window_bounds = array<i64: 1, 16, 16, 128>}, {pipeline_mode = #tpu.pipeline_mode<synchronous>, transform_indices = @transform_1, window_bounds = array<i64: 1, 128>}, {pipeline_mode = #tpu.pipeline_mode<synchronous>, transform_indices = @transform_2, window_bounds = array<i64: 1, 128>}, {transform_indices = @transform_3, window_bounds = array<i64: 1, 16, 16, 8>}, {pipeline_mode = #tpu.pipeline_mode<synchronous>, transform_indices = @transform_4, window_bounds = array<i64: 9, 128, 128>}, {pipeline_mode = #tpu.pipeline_mode<synchronous>, transform_indices = @transform_5, window_bounds = array<i64: 8, 128>}, {transform_indices = @transform_6, window_bounds = array<i64: 1, 16, 16, 128>}, {transform_indices = @transform_7, window_bounds = array<i64: 1, 16, 16, 128>}, {transform_indices = @transform_8, window_bounds = array<i64: 8, 128>}]} {
    %c0 = arith.constant 0 : index
    %c0_0 = arith.constant 0 : index
    %c0_1 = arith.constant 0 : index
    %c0_2 = arith.constant 0 : index
    %0 = vector.load %arg1[%c0, %c0_0, %c0_1, %c0_2] : memref<1x16x16x128xbf16, #tpu.memory_space<vmem>>, vector<1x16x16x128xbf16>
    %c0_3 = arith.constant 0 : index
    %c0_4 = arith.constant 0 : index
    %1 = vector.load %arg2[%c0_3, %c0_4] : memref<1x128xf32, #tpu.memory_space<vmem>>, vector<1x128xf32>
    %2 = arith.extf %0 : vector<1x16x16x128xbf16> to vector<1x16x16x128xf32>
    %3 = vector.shape_cast %1 : vector<1x128xf32> to vector<1x1x1x128xf32>
    %4 = vector.broadcast %3 : vector<1x1x1x128xf32> to vector<1x16x16x128xf32>
    %5 = arith.mulf %2, %4 : vector<1x16x16x128xf32>
    %c0_5 = arith.constant 0 : index
    %c0_6 = arith.constant 0 : index
    %6 = vector.load %arg3[%c0_5, %c0_6] : memref<1x128xf32, #tpu.memory_space<vmem>>, vector<1x128xf32>
    %7 = vector.shape_cast %6 : vector<1x128xf32> to vector<1x1x1x128xf32>
    %8 = vector.broadcast %7 : vector<1x1x1x128xf32> to vector<1x16x16x128xf32>
    %9 = arith.addf %5, %8 : vector<1x16x16x128xf32>
    %cst = arith.constant 0.000000e+00 : f32
    %10 = vector.broadcast %cst : f32 to vector<1x16x16x128xf32>
    %11 = arith.maximumf %9, %10 : vector<1x16x16x128xf32>
    %cst_7 = arith.constant 0.000000e+00 : bf16
    %12 = vector.broadcast %cst_7 : bf16 to vector<1x18x18x128xbf16>
    %c0_8 = arith.constant 0 : index
    %c0_9 = arith.constant 0 : index
    %c0_10 = arith.constant 0 : index
    %c0_11 = arith.constant 0 : index
    %13 = vector.load %arg10[%c0_8, %c0_9, %c0_10, %c0_11] : memref<1x18x18x128xbf16, #tpu.memory_space<vmem>>, vector<1x18x18x128xbf16>
    tpu.vector_store %arg10[%c0_8, %c0_9, %c0_10, %c0_11], %12 {strides = array<i32>} : memref<1x18x18x128xbf16, #tpu.memory_space<vmem>>, vector<1x18x18x128xbf16>,
    %14 = arith.truncf %11 : vector<1x16x16x128xf32> to vector<1x16x16x128xbf16>
    %c0_12 = arith.constant 0 : index
    %c1 = arith.constant 1 : index
    %c1_13 = arith.constant 1 : index
    %c0_14 = arith.constant 0 : index
    %15 = vector.load %arg10[%c0_12, %c1, %c1_13, %c0_14] : memref<1x18x18x128xbf16, #tpu.memory_space<vmem>>, vector<1x16x16x128xbf16>
    tpu.vector_store %arg10[%c0_12, %c1, %c1_13, %c0_14], %14 {strides = array<i32>} : memref<1x18x18x128xbf16, #tpu.memory_space<vmem>>, vector<1x16x16x128xbf16>,
    %cst_15 = arith.constant 0.000000e+00 : f32
    %16 = vector.broadcast %cst_15 : f32 to vector<256x128xf32>
    %c0_16 = arith.constant 0 : index
    %c0_17 = arith.constant 0 : index
    %c0_18 = arith.constant 0 : index
    %c0_19 = arith.constant 0 : index
    %17 = vector.load %arg10[%c0_16, %c0_17, %c0_18, %c0_19] : memref<1x18x18x128xbf16, #tpu.memory_space<vmem>>, vector<1x16x16x128xbf16>
    %18 = vector.shape_cast %17 : vector<1x16x16x128xbf16> to vector<256x128xbf16>
    %c0_20 = arith.constant 0 : index
    %c0_21 = arith.constant 0 : index
    %c0_22 = arith.constant 0 : index
    %19 = vector.load %arg5[%c0_20, %c0_21, %c0_22] : memref<9x128x128xbf16, #tpu.memory_space<vmem>>, vector<1x128x128xbf16>
    %20 = vector.shape_cast %19 : vector<1x128x128xbf16> to vector<128x128xbf16>
    %cst_23 = arith.constant dense<0.000000e+00> : vector<256x128xf32>
    %21 = tpu.matmul %18, %20, %cst_23 {dimension_numbers = #tpu.dot_dimension_numbers<[1], [0], [0], [1], [0, 0, 1, 1], [], []>} : vector<256x128xbf16>, vector<128x128xbf16>, vector<256x128xf32> -> vector<256x128xf32>
    %22 = arith.addf %16, %21 : vector<256x128xf32>
    %c0_24 = arith.constant 0 : index
    %c0_25 = arith.constant 0 : index
    %c1_26 = arith.constant 1 : index
    %c0_27 = arith.constant 0 : index
    %23 = vector.load %arg10[%c0_24, %c0_25, %c1_26, %c0_27] : memref<1x18x18x128xbf16, #tpu.memory_space<vmem>>, vector<1x16x16x128xbf16>
    %24 = vector.shape_cast %23 : vector<1x16x16x128xbf16> to vector<256x128xbf16>
    %c1_28 = arith.constant 1 : index
    %c0_29 = arith.constant 0 : index
    %c0_30 = arith.constant 0 : index
    %25 = vector.load %arg5[%c1_28, %c0_29, %c0_30] : memref<9x128x128xbf16, #tpu.memory_space<vmem>>, vector<1x128x128xbf16>
    %26 = vector.shape_cast %25 : vector<1x128x128xbf16> to vector<128x128xbf16>
    %cst_31 = arith.constant dense<0.000000e+00> : vector<256x128xf32>
    %27 = tpu.matmul %24, %26, %cst_31 {dimension_numbers = #tpu.dot_dimension_numbers<[1], [0], [0], [1], [0, 0, 1, 1], [], []>} : vector<256x128xbf16>, vector<128x128xbf16>, vector<256x128xf32> -> vector<256x128xf32>
    %28 = arith.addf %22, %27 : vector<256x128xf32>
    %c0_32 = arith.constant 0 : index
    %c0_33 = arith.constant 0 : index
    %c2 = arith.constant 2 : index
    %c0_34 = arith.constant 0 : index
    %29 = vector.load %arg10[%c0_32, %c0_33, %c2, %c0_34] : memref<1x18x18x128xbf16, #tpu.memory_space<vmem>>, vector<1x16x16x128xbf16>
    %30 = vector.shape_cast %29 : vector<1x16x16x128xbf16> to vector<256x128xbf16>
    %c2_35 = arith.constant 2 : index
    %c0_36 = arith.constant 0 : index
    %c0_37 = arith.constant 0 : index
    %31 = vector.load %arg5[%c2_35, %c0_36, %c0_37] : memref<9x128x128xbf16, #tpu.memory_space<vmem>>, vector<1x128x128xbf16>
    %32 = vector.shape_cast %31 : vector<1x128x128xbf16> to vector<128x128xbf16>
    %cst_38 = arith.constant dense<0.000000e+00> : vector<256x128xf32>
    %33 = tpu.matmul %30, %32, %cst_38 {dimension_numbers = #tpu.dot_dimension_numbers<[1], [0], [0], [1], [0, 0, 1, 1], [], []>} : vector<256x128xbf16>, vector<128x128xbf16>, vector<256x128xf32> -> vector<256x128xf32>
    %34 = arith.addf %28, %33 : vector<256x128xf32>
    %c0_39 = arith.constant 0 : index
    %c1_40 = arith.constant 1 : index
    %c0_41 = arith.constant 0 : index
    %c0_42 = arith.constant 0 : index
    %35 = vector.load %arg10[%c0_39, %c1_40, %c0_41, %c0_42] : memref<1x18x18x128xbf16, #tpu.memory_space<vmem>>, vector<1x16x16x128xbf16>
    %36 = vector.shape_cast %35 : vector<1x16x16x128xbf16> to vector<256x128xbf16>
    %c3 = arith.constant 3 : index
    %c0_43 = arith.constant 0 : index
    %c0_44 = arith.constant 0 : index
    %37 = vector.load %arg5[%c3, %c0_43, %c0_44] : memref<9x128x128xbf16, #tpu.memory_space<vmem>>, vector<1x128x128xbf16>
    %38 = vector.shape_cast %37 : vector<1x128x128xbf16> to vector<128x128xbf16>
    %cst_45 = arith.constant dense<0.000000e+00> : vector<256x128xf32>
    %39 = tpu.matmul %36, %38, %cst_45 {dimension_numbers = #tpu.dot_dimension_numbers<[1], [0], [0], [1], [0, 0, 1, 1], [], []>} : vector<256x128xbf16>, vector<128x128xbf16>, vector<256x128xf32> -> vector<256x128xf32>
    %40 = arith.addf %34, %39 : vector<256x128xf32>
    %c0_46 = arith.constant 0 : index
    %c1_47 = arith.constant 1 : index
    %c1_48 = arith.constant 1 : index
    %c0_49 = arith.constant 0 : index
    %41 = vector.load %arg10[%c0_46, %c1_47, %c1_48, %c0_49] : memref<1x18x18x128xbf16, #tpu.memory_space<vmem>>, vector<1x16x16x128xbf16>
    %42 = vector.shape_cast %41 : vector<1x16x16x128xbf16> to vector<256x128xbf16>
    %c4 = arith.constant 4 : index
    %c0_50 = arith.constant 0 : index
    %c0_51 = arith.constant 0 : index
    %43 = vector.load %arg5[%c4, %c0_50, %c0_51] : memref<9x128x128xbf16, #tpu.memory_space<vmem>>, vector<1x128x128xbf16>
    %44 = vector.shape_cast %43 : vector<1x128x128xbf16> to vector<128x128xbf16>
    %cst_52 = arith.constant dense<0.000000e+00> : vector<256x128xf32>
    %45 = tpu.matmul %42, %44, %cst_52 {dimension_numbers = #tpu.dot_dimension_numbers<[1], [0], [0], [1], [0, 0, 1, 1], [], []>} : vector<256x128xbf16>, vector<128x128xbf16>, vector<256x128xf32> -> vector<256x128xf32>
    %46 = arith.addf %40, %45 : vector<256x128xf32>
    %c0_53 = arith.constant 0 : index
    %c1_54 = arith.constant 1 : index
    %c2_55 = arith.constant 2 : index
    %c0_56 = arith.constant 0 : index
    %47 = vector.load %arg10[%c0_53, %c1_54, %c2_55, %c0_56] : memref<1x18x18x128xbf16, #tpu.memory_space<vmem>>, vector<1x16x16x128xbf16>
    %48 = vector.shape_cast %47 : vector<1x16x16x128xbf16> to vector<256x128xbf16>
    %c5 = arith.constant 5 : index
    %c0_57 = arith.constant 0 : index
    %c0_58 = arith.constant 0 : index
    %49 = vector.load %arg5[%c5, %c0_57, %c0_58] : memref<9x128x128xbf16, #tpu.memory_space<vmem>>, vector<1x128x128xbf16>
    %50 = vector.shape_cast %49 : vector<1x128x128xbf16> to vector<128x128xbf16>
    %cst_59 = arith.constant dense<0.000000e+00> : vector<256x128xf32>
    %51 = tpu.matmul %48, %50, %cst_59 {dimension_numbers = #tpu.dot_dimension_numbers<[1], [0], [0], [1], [0, 0, 1, 1], [], []>} : vector<256x128xbf16>, vector<128x128xbf16>, vector<256x128xf32> -> vector<256x128xf32>
    %52 = arith.addf %46, %51 : vector<256x128xf32>
    %c0_60 = arith.constant 0 : index
    %c2_61 = arith.constant 2 : index
    %c0_62 = arith.constant 0 : index
    %c0_63 = arith.constant 0 : index
    %53 = vector.load %arg10[%c0_60, %c2_61, %c0_62, %c0_63] : memref<1x18x18x128xbf16, #tpu.memory_space<vmem>>, vector<1x16x16x128xbf16>
    %54 = vector.shape_cast %53 : vector<1x16x16x128xbf16> to vector<256x128xbf16>
    %c6 = arith.constant 6 : index
    %c0_64 = arith.constant 0 : index
    %c0_65 = arith.constant 0 : index
    %55 = vector.load %arg5[%c6, %c0_64, %c0_65] : memref<9x128x128xbf16, #tpu.memory_space<vmem>>, vector<1x128x128xbf16>
    %56 = vector.shape_cast %55 : vector<1x128x128xbf16> to vector<128x128xbf16>
    %cst_66 = arith.constant dense<0.000000e+00> : vector<256x128xf32>
    %57 = tpu.matmul %54, %56, %cst_66 {dimension_numbers = #tpu.dot_dimension_numbers<[1], [0], [0], [1], [0, 0, 1, 1], [], []>} : vector<256x128xbf16>, vector<128x128xbf16>, vector<256x128xf32> -> vector<256x128xf32>
    %58 = arith.addf %52, %57 : vector<256x128xf32>
    %c0_67 = arith.constant 0 : index
    %c2_68 = arith.constant 2 : index
    %c1_69 = arith.constant 1 : index
    %c0_70 = arith.constant 0 : index
    %59 = vector.load %arg10[%c0_67, %c2_68, %c1_69, %c0_70] : memref<1x18x18x128xbf16, #tpu.memory_space<vmem>>, vector<1x16x16x128xbf16>
    %60 = vector.shape_cast %59 : vector<1x16x16x128xbf16> to vector<256x128xbf16>
    %c7 = arith.constant 7 : index
    %c0_71 = arith.constant 0 : index
    %c0_72 = arith.constant 0 : index
    %61 = vector.load %arg5[%c7, %c0_71, %c0_72] : memref<9x128x128xbf16, #tpu.memory_space<vmem>>, vector<1x128x128xbf16>
    %62 = vector.shape_cast %61 : vector<1x128x128xbf16> to vector<128x128xbf16>
    %cst_73 = arith.constant dense<0.000000e+00> : vector<256x128xf32>
    %63 = tpu.matmul %60, %62, %cst_73 {dimension_numbers = #tpu.dot_dimension_numbers<[1], [0], [0], [1], [0, 0, 1, 1], [], []>} : vector<256x128xbf16>, vector<128x128xbf16>, vector<256x128xf32> -> vector<256x128xf32>
    %64 = arith.addf %58, %63 : vector<256x128xf32>
    %c0_74 = arith.constant 0 : index
    %c2_75 = arith.constant 2 : index
    %c2_76 = arith.constant 2 : index
    %c0_77 = arith.constant 0 : index
    %65 = vector.load %arg10[%c0_74, %c2_75, %c2_76, %c0_77] : memref<1x18x18x128xbf16, #tpu.memory_space<vmem>>, vector<1x16x16x128xbf16>
    %66 = vector.shape_cast %65 : vector<1x16x16x128xbf16> to vector<256x128xbf16>
    %c8 = arith.constant 8 : index
    %c0_78 = arith.constant 0 : index
    %c0_79 = arith.constant 0 : index
    %67 = vector.load %arg5[%c8, %c0_78, %c0_79] : memref<9x128x128xbf16, #tpu.memory_space<vmem>>, vector<1x128x128xbf16>
    %68 = vector.shape_cast %67 : vector<1x128x128xbf16> to vector<128x128xbf16>
    %cst_80 = arith.constant dense<0.000000e+00> : vector<256x128xf32>
    %69 = tpu.matmul %66, %68, %cst_80 {dimension_numbers = #tpu.dot_dimension_numbers<[1], [0], [0], [1], [0, 0, 1, 1], [], []>} : vector<256x128xbf16>, vector<128x128xbf16>, vector<256x128xf32> -> vector<256x128xf32>
    %70 = arith.addf %64, %69 : vector<256x128xf32>
    %c0_81 = arith.constant 0 : index
    %c0_82 = arith.constant 0 : index
    %c0_83 = arith.constant 0 : index
    %c0_84 = arith.constant 0 : index
    %71 = vector.load %arg4[%c0_81, %c0_82, %c0_83, %c0_84] : memref<1x16x16x8xbf16, #tpu.memory_space<vmem>>, vector<1x16x16x8xbf16>
    %72 = vector.shape_cast %71 : vector<1x16x16x8xbf16> to vector<256x8xbf16>
    %c0_85 = arith.constant 0 : index
    %c0_86 = arith.constant 0 : index
    %73 = vector.load %arg6[%c0_85, %c0_86] : memref<8x128xbf16, #tpu.memory_space<vmem>>, vector<8x128xbf16>
    %cst_87 = arith.constant dense<0.000000e+00> : vector<256x128xf32>
    %74 = tpu.matmul %72, %73, %cst_87 {dimension_numbers = #tpu.dot_dimension_numbers<[1], [0], [0], [1], [0, 0, 1, 1], [], []>} : vector<256x8xbf16>, vector<8x128xbf16>, vector<256x128xf32> -> vector<256x128xf32>
    %75 = vector.shape_cast %70 : vector<256x128xf32> to vector<1x16x16x128xf32>
    %76 = arith.truncf %75 : vector<1x16x16x128xf32> to vector<1x16x16x128xbf16>
    %c0_88 = arith.constant 0 : index
    %c0_89 = arith.constant 0 : index
    %c0_90 = arith.constant 0 : index
    %c0_91 = arith.constant 0 : index
    %77 = vector.load %arg7[%c0_88, %c0_89, %c0_90, %c0_91] : memref<1x16x16x128xbf16, #tpu.memory_space<vmem>>, vector<1x16x16x128xbf16>
    tpu.vector_store %arg7[%c0_88, %c0_89, %c0_90, %c0_91], %76 {strides = array<i32>} : memref<1x16x16x128xbf16, #tpu.memory_space<vmem>>, vector<1x16x16x128xbf16>,
    %78 = vector.shape_cast %74 : vector<256x128xf32> to vector<1x16x16x128xf32>
    %79 = arith.truncf %78 : vector<1x16x16x128xf32> to vector<1x16x16x128xbf16>
    %c0_92 = arith.constant 0 : index
    %c0_93 = arith.constant 0 : index
    %c0_94 = arith.constant 0 : index
    %c0_95 = arith.constant 0 : index
    %80 = vector.load %arg8[%c0_92, %c0_93, %c0_94, %c0_95] : memref<1x16x16x128xbf16, #tpu.memory_space<vmem>>, vector<1x16x16x128xbf16>
    tpu.vector_store %arg8[%c0_92, %c0_93, %c0_94, %c0_95], %79 {strides = array<i32>} : memref<1x16x16x128xbf16, #tpu.memory_space<vmem>>, vector<1x16x16x128xbf16>,
    %cst_96 = arith.constant dense<0.000000e+00> : vector<128xf32>
    %81 = vector.multi_reduction <add>, %70, %cst_96 [0] : vector<256x128xf32> to vector<128xf32>
    %82 = vector.shape_cast %81 : vector<128xf32> to vector<1x128xf32>
    %83 = arith.mulf %70, %70 : vector<256x128xf32>
    %cst_97 = arith.constant dense<0.000000e+00> : vector<128xf32>
    %84 = vector.multi_reduction <add>, %83, %cst_97 [0] : vector<256x128xf32> to vector<128xf32>
    %85 = vector.shape_cast %84 : vector<128xf32> to vector<1x128xf32>
    %cst_98 = arith.constant dense<0.000000e+00> : vector<128xf32>
    %86 = vector.multi_reduction <add>, %74, %cst_98 [0] : vector<256x128xf32> to vector<128xf32>
    %87 = vector.shape_cast %86 : vector<128xf32> to vector<1x128xf32>
    %88 = arith.mulf %74, %74 : vector<256x128xf32>
    %cst_99 = arith.constant dense<0.000000e+00> : vector<128xf32>
    %89 = vector.multi_reduction <add>, %88, %cst_99 [0] : vector<256x128xf32> to vector<128xf32>
    %90 = vector.shape_cast %89 : vector<128xf32> to vector<1x128xf32>
    %cst_100 = arith.constant 0.000000e+00 : f32
    %91 = vector.broadcast %cst_100 : f32 to vector<4x128xf32>
    %92 = tpu.concatenate %82, %85, %87, %90, %91 in 0 : vector<1x128xf32>, vector<1x128xf32>, vector<1x128xf32>, vector<1x128xf32>, vector<4x128xf32> -> vector<8x128xf32>
    %c0_101 = arith.constant 0 : index
    %c0_102 = arith.constant 0 : index
    %93 = vector.load %arg9[%c0_101, %c0_102] : memref<8x128xf32, #tpu.memory_space<vmem>>, vector<8x128xf32>
    tpu.vector_store %arg9[%c0_101, %c0_102], %92 {strides = array<i32>} : memref<8x128xf32, #tpu.memory_space<vmem>>, vector<8x128xf32>,
    return
  }
  func.func @transform_0(%arg0: i32) -> (i32, i32, i32, i32) {
    %c0_i32 = arith.constant 0 : i32
    %c0_i32_0 = arith.constant 0 : i32
    %c0_i32_1 = arith.constant 0 : i32
    %c0_i32_2 = arith.constant 0 : i32
    return %arg0, %c0_i32, %c0_i32_0, %c0_i32_1 : i32, i32, i32, i32
  }
  func.func @transform_1(%arg0: i32) -> (i32, i32) {
    %c0_i32 = arith.constant 0 : i32
    %c0_i32_0 = arith.constant 0 : i32
    %c0_i32_1 = arith.constant 0 : i32
    return %c0_i32, %c0_i32_0 : i32, i32
  }
  func.func @transform_2(%arg0: i32) -> (i32, i32) {
    %c0_i32 = arith.constant 0 : i32
    %c0_i32_0 = arith.constant 0 : i32
    %c0_i32_1 = arith.constant 0 : i32
    return %c0_i32, %c0_i32_0 : i32, i32
  }
  func.func @transform_3(%arg0: i32) -> (i32, i32, i32, i32) {
    %c0_i32 = arith.constant 0 : i32
    %c0_i32_0 = arith.constant 0 : i32
    %c0_i32_1 = arith.constant 0 : i32
    %c0_i32_2 = arith.constant 0 : i32
    return %arg0, %c0_i32, %c0_i32_0, %c0_i32_1 : i32, i32, i32, i32
  }
  func.func @transform_4(%arg0: i32) -> (i32, i32, i32) {
    %c0_i32 = arith.constant 0 : i32
    %c0_i32_0 = arith.constant 0 : i32
    %c0_i32_1 = arith.constant 0 : i32
    %c0_i32_2 = arith.constant 0 : i32
    return %c0_i32, %c0_i32_0, %c0_i32_1 : i32, i32, i32
  }
  func.func @transform_5(%arg0: i32) -> (i32, i32) {
    %c0_i32 = arith.constant 0 : i32
    %c0_i32_0 = arith.constant 0 : i32
    %c0_i32_1 = arith.constant 0 : i32
    return %c0_i32, %c0_i32_0 : i32, i32
  }
  func.func @transform_6(%arg0: i32) -> (i32, i32, i32, i32) {
    %c0_i32 = arith.constant 0 : i32
    %c0_i32_0 = arith.constant 0 : i32
    %c0_i32_1 = arith.constant 0 : i32
    %c0_i32_2 = arith.constant 0 : i32
    return %arg0, %c0_i32, %c0_i32_0, %c0_i32_1 : i32, i32, i32, i32
  }
  func.func @transform_7(%arg0: i32) -> (i32, i32, i32, i32) {
    %c0_i32 = arith.constant 0 : i32
    %c0_i32_0 = arith.constant 0 : i32
    %c0_i32_1 = arith.constant 0 : i32
    %c0_i32_2 = arith.constant 0 : i32
    return %arg0, %c0_i32, %c0_i32_0, %c0_i32_1 : i32, i32, i32, i32
  }
  func.func @transform_8(%arg0: i32) -> (i32, i32) {
    %c0_i32 = arith.constant 0 : i32
    %c0_i32_0 = arith.constant 0 : i32
    return %arg0, %c0_i32 : i32, i32
  }
}

</mosaic_0001>

<bundles_post_ra>
// kernel: basic_block_forward.5
= control target key start
LH: loop header
LB: loop body
LE: loop exit
PB: predicated region body
PF: predicated region fallthrough
CT: control target
= control target key end

     0   :  { %s936_s21 = smov 0   ;;  %s1178_s0 = inlined_call_operand.vmem [shape: bf16[2,16,16,128], index: 0, kind: input, shape index: {}]   ;;  %s1179_s1 = inlined_call_operand.vmem [shape: bf16[2,16,16,128], index: 1, kind: input, shape index: {}]   ;;  %s1180_s2 = inlined_call_operand.vmem [shape: f32[1,128], index: 2, kind: input, shape index: {}]   ;;  %s1181_s3 = inlined_call_operand.vmem [shape: f32[1,128], index: 3, kind: input, shape index: {}]   ;;  %s1182_s4 = inlined_call_operand.vmem [shape: f32[1,128], index: 4, kind: input, shape index: {}]   ;;  %s1183_s5 = inlined_call_operand.vmem [shape: f32[1,128], index: 5, kind: input, shape index: {}]   ;;  %s1184_s6 = inlined_call_operand.vmem [shape: f32[2,16,16,128], index: 6, kind: output, shape index: {}]  }
   0x1 LB: > { %s707_s22 = sadd.s32 4294967295, %s899_s21   ;;  %p711_p0 = scmp.ge.s32.totalorder %s899_s21, 1  ;;  %s899_s21 = sphi %s936_s21, %s16_s21  }
   0x2   : > { %p222_p1 = scmp.lt.s32.totalorder %s899_s21, 3 }
   0x4   : > { %p223_p2 = pnand %p711_p0, %p222_p1 }
   0x5   : > { %p257_p3 = scmp.lt.s32.totalorder (!%p223_p2), %s707_s22, 1 }
   0x6   : > { %226 = sbr.rel (%p223_p2) target bundleno = 87 (0x57), region = 44 }
   0xb   : > { %s1186_s22 = smov (!%p257_p3, %s707_s22), 1  ;;  %v960_v0 = vld [vmem:[%s1180_s2] ss:$0 sm:$0xff] }
   0xc   : > { %s720_s23 = sshll.u32 %s1186_s22, 7  ;;  %v965_v1 = vld [vmem:[%s1182_s4] ss:$0 sm:$0xff]  ;;  %s722_s14 = sshll.u32 %s1186_s22, 8 }
   0xd   : > { %s950_s26 = scalar_lea.vmem %s1178_s0, %s720_s23  ;;  %s955_s29 = scalar_lea.vmem %s1179_s1, %s720_s23  ;;  %v973_v6 = vld [vmem:[%s1181_s3] ss:$0 sm:$0xff] }
   0xe   : > { %v724_v2 = vld [vmem:[%s950_s26] sm:$0xff]   ;;  %v851_v4 = vld [vmem:[%s950_s26 + $0x8] sm:$0xff]   ;;  %v852_v15 = vld [vmem:[%s950_s26 + $0x10] sm:$0xff]   ;;  %s1008_s17 = scalar_lea.vmem %s1184_s6, %s722_s14 }
   0xf   : > { %v788_v3 = vld [vmem:[%s955_s29] sm:$0xff]   ;;  %v725_v5 = vunpack.c.l.bf16 %v724_v2  ;;  %v726_v8 = vunpack.c.h.bf16 %v724_v2  ;;  %v866_v10 = vld [vmem:[%s955_s29 + $0x8] sm:$0xff]   ;;  %v729_v11 = vunpack.c.l.bf16 %v851_v4  ;;  %v730_v13 = vunpack.c.h.bf16 %v851_v4  ;;  %v867_v16 = vld [vmem:[%s955_s29 + $0x10] sm:$0xff]  }
  0x10   : > { %v789_v7 = vunpack.c.l.bf16 %v788_v3  ;;  %v790_v9 = vunpack.c.h.bf16 %v788_v3  ;;  %v793_v12 = vunpack.c.l.bf16 %v866_v10  ;;  %v794_v14 = vunpack.c.h.bf16 %v866_v10  ;;  %v990_v26 = vld [vmem:[%s1183_s5] ss:$0 sm:$0xff]  ;;  %v853_v34 = vld [vmem:[%s950_s26 + $0x18] sm:$0xff]  }
  0x11   : > { %v340_v17 = vmul.f32 %v960_v0, %v725_v5  ;;  %v341_v19 = vmul.f32 %v960_v0, %v726_v8  ;;  %v342_v21 = vmul.f32 %v960_v0, %v729_v11  ;;  %v343_v23 = vmul.f32 %v960_v0, %v730_v13  ;;  %v868_v39 = vld [vmem:[%s955_s29 + $0x18] sm:$0xff]   ;;  %v854_v56 = vld [vmem:[%s950_s26 + $0x20] sm:$0xff]  }
  0x12   : > { %v476_v18 = vmul.f32 %v965_v1, %v789_v7  ;;  %v477_v20 = vmul.f32 %v965_v1, %v790_v9  ;;  %v478_v22 = vmul.f32 %v965_v1, %v793_v12  ;;  %v479_v24 = vmul.f32 %v965_v1, %v794_v14  ;;  %v869_v57 = vld [vmem:[%s955_s29 + $0x20] sm:$0xff]   ;;  %v855_v9 = vld [vmem:[%s950_s26 + $0x28] sm:$0xff]  }
  0x13   : > { %v376_v25 = vadd.f32 %v973_v6, %v340_v17  ;;  %v377_v27 = vadd.f32 %v973_v6, %v341_v19  ;;  %v733_v28 = vunpack.c.l.bf16 %v852_v15  ;;  %v797_v29 = vunpack.c.l.bf16 %v867_v16  ;;  %v870_v14 = vld [vmem:[%s955_s29 + $0x28] sm:$0xff]  }
  0x14   : > { %v378_v30 = vadd.f32 %v973_v6, %v342_v21  ;;  %v379_v31 = vadd.f32 %v973_v6, %v343_v23  ;;  %v734_v32 = vunpack.c.h.bf16 %v852_v15  ;;  %v798_v33 = vunpack.c.h.bf16 %v867_v16 }
  0x15   : > { %v508_v35 = vadd.f32 %v476_v18, %v376_v25  ;;  %v509_v36 = vadd.f32 %v477_v20, %v377_v27  ;;  %v344_v37 = vmul.f32 %v960_v0, %v733_v28  ;;  %v480_v38 = vmul.f32 %v965_v1, %v797_v29  ;;  %v856_v28 = vld [vmem:[%s950_s26 + $0x30] sm:$0xff]  }
  0x16   : > { %v510_v40 = vadd.f32 %v478_v22, %v378_v30  ;;  %v511_v41 = vadd.f32 %v479_v24, %v379_v31  ;;  %v345_v42 = vmul.f32 %v960_v0, %v734_v32  ;;  %v481_v43 = vmul.f32 %v965_v1, %v798_v33  ;;  %v871_v33 = vld [vmem:[%s955_s29 + $0x30] sm:$0xff]  }
  0x17   : > { %v544_v44 = vadd.f32 %v990_v26, %v508_v35  ;;  %v545_v45 = vadd.f32 %v990_v26, %v509_v36  ;;  %v380_v46 = vadd.f32 %v973_v6, %v344_v37  ;;  %v737_v47 = vunpack.c.l.bf16 %v853_v34 }
  0x18   : > { %v546_v48 = vadd.f32 %v990_v26, %v510_v40  ;;  %v547_v49 = vadd.f32 %v990_v26, %v511_v41  ;;  %v381_v50 = vadd.f32 %v973_v6, %v345_v42  ;;  %v801_v51 = vunpack.c.l.bf16 %v868_v39 }
  0x19   : > { %v576_v52 = vmax.f32 %v544_v44, 0.0  ;;  %v577_v53 = vmax.f32 %v545_v45, 0.0  ;;  %v512_v54 = vadd.f32 %v480_v38, %v380_v46  ;;  %v346_v55 = vmul.f32 %v960_v0, %v737_v47 }
  0x1a   : > { %v578_v58 = vmax.f32 %v546_v48, 0.0  ;;  %v579_v59 = vmax.f32 %v547_v49, 0.0  ;;  %v513_v60 = vadd.f32 %v481_v43, %v381_v50  ;;  %v482_v61 = vmul.f32 %v965_v1, %v801_v51  ;;  %v857_v50 = vld [vmem:[%s950_s26 + $0x38] sm:$0xff]  }
  0x1b   : > { %608 = vst [vmem:[%s1008_s17] sm:$0xff] %v576_v52  ;;  %v548_v62 = vadd.f32 %v990_v26, %v512_v54  ;;  %v382_v63 = vadd.f32 %v973_v6, %v346_v55  ;;  %v738_v2 = vunpack.c.h.bf16 %v853_v34  ;;  %v802_v3 = vunpack.c.h.bf16 %v868_v39  ;;  %v872_v51 = vld [vmem:[%s955_s29 + $0x38] sm:$0xff]  }
  0x1c   : > { %609 = vst [vmem:[%s1008_s17 + $0x8] sm:$0xff] %v577_v53  ;;  %v549_v4 = vadd.f32 %v990_v26, %v513_v60  ;;  %v741_v5 = vunpack.c.l.bf16 %v854_v56  ;;  %v805_v7 = vunpack.c.l.bf16 %v869_v57  ;;  %v742_v8 = vunpack.c.h.bf16 %v854_v56 }
  0x1d   : > { %610 = vst [vmem:[%s1008_s17 + $0x10] sm:$0xff] %v578_v58  ;;  %v580_v10 = vmax.f32 %v548_v62, 0.0  ;;  %v514_v11 = vadd.f32 %v482_v61, %v382_v63  ;;  %v347_v12 = vmul.f32 %v960_v0, %v738_v2  ;;  %v483_v13 = vmul.f32 %v965_v1, %v802_v3  ;;  %v858_v2 = vld [vmem:[%s950_s26 + $0x40] sm:$0xff]  }
  0x1e   : > { %611 = vst [vmem:[%s1008_s17 + $0x18] sm:$0xff] %v579_v59  ;;  %v581_v15 = vmax.f32 %v549_v4, 0.0  ;;  %v348_v16 = vmul.f32 %v960_v0, %v741_v5  ;;  %v484_v17 = vmul.f32 %v965_v1, %v805_v7  ;;  %v349_v18 = vmul.f32 %v960_v0, %v742_v8  ;;  %v873_v8 = vld [vmem:[%s955_s29 + $0x40] sm:$0xff]  }
  0x1f   : > { %612 = vst [vmem:[%s1008_s17 + $0x20] sm:$0xff] %v580_v10  ;;  %v550_v19 = vadd.f32 %v990_v26, %v514_v11  ;;  %v383_v20 = vadd.f32 %v973_v6, %v347_v12  ;;  %v806_v21 = vunpack.c.h.bf16 %v869_v57  ;;  %v745_v22 = vunpack.c.l.bf16 %v855_v9 }
  0x20   : > { %613 = vst [vmem:[%s1008_s17 + $0x28] sm:$0xff] %v581_v15  ;;  %v384_v23 = vadd.f32 %v973_v6, %v348_v16  ;;  %v385_v24 = vadd.f32 %v973_v6, %v349_v18  ;;  %v809_v25 = vunpack.c.l.bf16 %v870_v14  ;;  %v746_v27 = vunpack.c.h.bf16 %v855_v9 }
  0x21   : > { %v582_v29 = vmax.f32 %v550_v19, 0.0  ;;  %v515_v30 = vadd.f32 %v483_v13, %v383_v20  ;;  %v485_v31 = vmul.f32 %v965_v1, %v806_v21  ;;  %v350_v32 = vmul.f32 %v960_v0, %v745_v22  ;;  %v859_v21 = vld [vmem:[%s950_s26 + $0x48] sm:$0xff]  }
  0x22   : > { %v516_v34 = vadd.f32 %v484_v17, %v384_v23  ;;  %v486_v35 = vmul.f32 %v965_v1, %v809_v25  ;;  %v351_v36 = vmul.f32 %v960_v0, %v746_v27  ;;  %v810_v37 = vunpack.c.h.bf16 %v870_v14  ;;  %v874_v27 = vld [vmem:[%s955_s29 + $0x48] sm:$0xff]  }
  0x23   : > { %614 = vst [vmem:[%s1008_s17 + $0x30] sm:$0xff] %v582_v29  ;;  %v551_v38 = vadd.f32 %v990_v26, %v515_v30  ;;  %v517_v39 = vadd.f32 %v485_v31, %v385_v24  ;;  %v386_v40 = vadd.f32 %v973_v6, %v350_v32  ;;  %v749_v41 = vunpack.c.l.bf16 %v856_v28 }
  0x24   : > { %v552_v42 = vadd.f32 %v990_v26, %v516_v34  ;;  %v387_v43 = vadd.f32 %v973_v6, %v351_v36  ;;  %v487_v44 = vmul.f32 %v965_v1, %v810_v37  ;;  %v813_v45 = vunpack.c.l.bf16 %v871_v33 }
  0x25   : > { %v583_v46 = vmax.f32 %v551_v38, 0.0  ;;  %v553_v47 = vadd.f32 %v990_v26, %v517_v39  ;;  %v518_v48 = vadd.f32 %v486_v35, %v386_v40  ;;  %v352_v49 = vmul.f32 %v960_v0, %v749_v41 }
  0x26   : > { %v584_v52 = vmax.f32 %v552_v42, 0.0  ;;  %v519_v53 = vadd.f32 %v487_v44, %v387_v43  ;;  %v488_v54 = vmul.f32 %v965_v1, %v813_v45  ;;  %v750_v55 = vunpack.c.h.bf16 %v856_v28  ;;  %v860_v44 = vld [vmem:[%s950_s26 + $0x50] sm:$0xff]  }
  0x27   : > { %615 = vst [vmem:[%s1008_s17 + $0x38] sm:$0xff] %v583_v46  ;;  %v585_v56 = vmax.f32 %v553_v47, 0.0  ;;  %v554_v57 = vadd.f32 %v990_v26, %v518_v48  ;;  %v388_v58 = vadd.f32 %v973_v6, %v352_v49  ;;  %v814_v59 = vunpack.c.h.bf16 %v871_v33  ;;  %v875_v45 = vld [vmem:[%s955_s29 + $0x50] sm:$0xff]  }
  0x28   : > { %616 = vst [vmem:[%s1008_s17 + $0x40] sm:$0xff] %v584_v52  ;;  %v555_v60 = vadd.f32 %v990_v26, %v519_v53  ;;  %v353_v61 = vmul.f32 %v960_v0, %v750_v55  ;;  %v753_v62 = vunpack.c.l.bf16 %v857_v50  ;;  %v817_v63 = vunpack.c.l.bf16 %v872_v51 }
  0x29   : > { %617 = vst [vmem:[%s1008_s17 + $0x48] sm:$0xff] %v585_v56  ;;  %v586_v3 = vmax.f32 %v554_v57, 0.0  ;;  %v520_v4 = vadd.f32 %v488_v54, %v388_v58  ;;  %v489_v5 = vmul.f32 %v965_v1, %v814_v59  ;;  %v754_v7 = vunpack.c.h.bf16 %v857_v50  ;;  %v861_v58 = vld [vmem:[%s950_s26 + $0x58] sm:$0xff]  }
  0x2a   : > { %v587_v9 = vmax.f32 %v555_v60, 0.0  ;;  %v389_v10 = vadd.f32 %v973_v6, %v353_v61  ;;  %v354_v11 = vmul.f32 %v960_v0, %v753_v62  ;;  %v490_v12 = vmul.f32 %v965_v1, %v817_v63  ;;  %v876_v63 = vld [vmem:[%s955_s29 + $0x58] sm:$0xff]  }
  0x2b   : > { %618 = vst [vmem:[%s1008_s17 + $0x50] sm:$0xff] %v586_v3  ;;  %v556_v13 = vadd.f32 %v990_v26, %v520_v4  ;;  %v355_v14 = vmul.f32 %v960_v0, %v754_v7  ;;  %v818_v15 = vunpack.c.h.bf16 %v872_v51  ;;  %v757_v16 = vunpack.c.l.bf16 %v858_v2 }
  0x2c   : > { %619 = vst [vmem:[%s1008_s17 + $0x58] sm:$0xff] %v587_v9  ;;  %v521_v17 = vadd.f32 %v489_v5, %v389_v10  ;;  %v390_v18 = vadd.f32 %v973_v6, %v354_v11  ;;  %v821_v19 = vunpack.c.l.bf16 %v873_v8  ;;  %v758_v20 = vunpack.c.h.bf16 %v858_v2 }
  0x2d   : > { %v588_v22 = vmax.f32 %v556_v13, 0.0  ;;  %v391_v23 = vadd.f32 %v973_v6, %v355_v14  ;;  %v491_v24 = vmul.f32 %v965_v1, %v818_v15  ;;  %v356_v25 = vmul.f32 %v960_v0, %v757_v16  ;;  %v862_v15 = vld [vmem:[%s950_s26 + $0x60] sm:$0xff]  }
  0x2e   : > { %v557_v28 = vadd.f32 %v990_v26, %v521_v17  ;;  %v522_v29 = vadd.f32 %v490_v12, %v390_v18  ;;  %v492_v30 = vmul.f32 %v965_v1, %v821_v19  ;;  %v357_v31 = vmul.f32 %v960_v0, %v758_v20  ;;  %v877_v20 = vld [vmem:[%s955_s29 + $0x60] sm:$0xff]  }
  0x2f   : > { %620 = vst [vmem:[%s1008_s17 + $0x60] sm:$0xff] %v588_v22  ;;  %v523_v32 = vadd.f32 %v491_v24, %v391_v23  ;;  %v392_v33 = vadd.f32 %v973_v6, %v356_v25  ;;  %v822_v34 = vunpack.c.h.bf16 %v873_v8  ;;  %v761_v35 = vunpack.c.l.bf16 %v859_v21 }
  0x30   : > { %v589_v36 = vmax.f32 %v557_v28, 0.0  ;;  %v558_v37 = vadd.f32 %v990_v26, %v522_v29  ;;  %v393_v38 = vadd.f32 %v973_v6, %v357_v31  ;;  %v825_v39 = vunpack.c.l.bf16 %v874_v27 }
  0x31   : > { %v559_v40 = vadd.f32 %v990_v26, %v523_v32  ;;  %v524_v41 = vadd.f32 %v492_v30, %v392_v33  ;;  %v493_v42 = vmul.f32 %v965_v1, %v822_v34  ;;  %v358_v43 = vmul.f32 %v960_v0, %v761_v35 }
  0x32   : > { %621 = vst [vmem:[%s1008_s17 + $0x68] sm:$0xff] %v589_v36  ;;  %v590_v46 = vmax.f32 %v558_v37, 0.0  ;;  %v494_v47 = vmul.f32 %v965_v1, %v825_v39  ;;  %v762_v48 = vunpack.c.h.bf16 %v859_v21  ;;  %v826_v49 = vunpack.c.h.bf16 %v874_v27  ;;  %v878_v39 = vld [vmem:[%s955_s29 + $0x68] sm:$0xff]  }
  0x33   : > { %v591_v50 = vmax.f32 %v559_v40, 0.0  ;;  %v560_v51 = vadd.f32 %v990_v26, %v524_v41  ;;  %v525_v52 = vadd.f32 %v493_v42, %v393_v38  ;;  %v394_v53 = vadd.f32 %v973_v6, %v358_v43  ;;  %v863_v38 = vld [vmem:[%s950_s26 + $0x68] sm:$0xff]  }
  0x34   : > { %622 = vst [vmem:[%s1008_s17 + $0x70] sm:$0xff] %v590_v46  ;;  %v359_v54 = vmul.f32 %v960_v0, %v762_v48  ;;  %v495_v55 = vmul.f32 %v965_v1, %v826_v49  ;;  %v765_v56 = vunpack.c.l.bf16 %v860_v44  ;;  %v829_v57 = vunpack.c.l.bf16 %v875_v45 }
  0x35   : > { %623 = vst [vmem:[%s1008_s17 + $0x78] sm:$0xff] %v591_v50  ;;  %v592_v59 = vmax.f32 %v560_v51, 0.0  ;;  %v561_v60 = vadd.f32 %v990_v26, %v525_v52  ;;  %v526_v61 = vadd.f32 %v494_v47, %v394_v53  ;;  %v766_v62 = vunpack.c.h.bf16 %v860_v44  ;;  %v864_v52 = vld [vmem:[%s950_s26 + $0x70] sm:$0xff]  }
  0x36   : > { %v395_v2 = vadd.f32 %v973_v6, %v359_v54  ;;  %v360_v3 = vmul.f32 %v960_v0, %v765_v56  ;;  %v496_v4 = vmul.f32 %v965_v1, %v829_v57  ;;  %v830_v5 = vunpack.c.h.bf16 %v875_v45  ;;  %v879_v57 = vld [vmem:[%s955_s29 + $0x70] sm:$0xff]  }
  0x37   : > { %624 = vst [vmem:[%s1008_s17 + $0x80] sm:$0xff] %v592_v59  ;;  %v593_v7 = vmax.f32 %v561_v60, 0.0  ;;  %v562_v8 = vadd.f32 %v990_v26, %v526_v61  ;;  %v361_v9 = vmul.f32 %v960_v0, %v766_v62  ;;  %v769_v10 = vunpack.c.l.bf16 %v861_v58 }
  0x38   : > { %v527_v11 = vadd.f32 %v495_v55, %v395_v2  ;;  %v396_v12 = vadd.f32 %v973_v6, %v360_v3  ;;  %v497_v13 = vmul.f32 %v965_v1, %v830_v5  ;;  %v833_v14 = vunpack.c.l.bf16 %v876_v63 }
  0x39   : > { %625 = vst [vmem:[%s1008_s17 + $0x88] sm:$0xff] %v593_v7  ;;  %v594_v16 = vmax.f32 %v562_v8, 0.0  ;;  %v397_v17 = vadd.f32 %v973_v6, %v361_v9  ;;  %v362_v18 = vmul.f32 %v960_v0, %v769_v10  ;;  %v770_v19 = vunpack.c.h.bf16 %v861_v58  ;;  %v865_v9 = vld [vmem:[%s950_s26 + $0x78] sm:$0xff]  }
  0x3a   : > { %v563_v21 = vadd.f32 %v990_v26, %v527_v11  ;;  %v528_v22 = vadd.f32 %v496_v4, %v396_v12  ;;  %v498_v23 = vmul.f32 %v965_v1, %v833_v14  ;;  %v834_v24 = vunpack.c.h.bf16 %v876_v63  ;;  %v880_v14 = vld [vmem:[%s955_s29 + $0x78] sm:$0xff]  }
  0x3b   : > { %626 = vst [vmem:[%s1008_s17 + $0x90] sm:$0xff] %v594_v16  ;;  %v529_v25 = vadd.f32 %v497_v13, %v397_v17  ;;  %v398_v27 = vadd.f32 %v973_v6, %v362_v18  ;;  %v363_v28 = vmul.f32 %v960_v0, %v770_v19  ;;  %v773_v29 = vunpack.c.l.bf16 %v862_v15 }
  0x3c   : > { %v595_v30 = vmax.f32 %v563_v21, 0.0  ;;  %v564_v31 = vadd.f32 %v990_v26, %v528_v22  ;;  %v499_v32 = vmul.f32 %v965_v1, %v834_v24  ;;  %v837_v33 = vunpack.c.l.bf16 %v877_v20 }
  0x3d   : > { %v565_v34 = vadd.f32 %v990_v26, %v529_v25  ;;  %v530_v35 = vadd.f32 %v498_v23, %v398_v27  ;;  %v399_v36 = vadd.f32 %v973_v6, %v363_v28  ;;  %v364_v37 = vmul.f32 %v960_v0, %v773_v29 }
  0x3e   : > { %627 = vst [vmem:[%s1008_s17 + $0x98] sm:$0xff] %v595_v30  ;;  %v596_v40 = vmax.f32 %v564_v31, 0.0  ;;  %v500_v41 = vmul.f32 %v965_v1, %v837_v33  ;;  %v774_v42 = vunpack.c.h.bf16 %v862_v15  ;;  %v838_v43 = vunpack.c.h.bf16 %v877_v20 }
  0x3f   : > { %v597_v44 = vmax.f32 %v565_v34, 0.0  ;;  %v566_v45 = vadd.f32 %v990_v26, %v530_v35  ;;  %v531_v46 = vadd.f32 %v499_v32, %v399_v36  ;;  %v400_v47 = vadd.f32 %v973_v6, %v364_v37 }
  0x40   : > { %628 = vst [vmem:[%s1008_s17 + $0xa0] sm:$0xff] %v596_v40  ;;  %v365_v48 = vmul.f32 %v960_v0, %v774_v42  ;;  %v501_v49 = vmul.f32 %v965_v1, %v838_v43  ;;  %v777_v50 = vunpack.c.l.bf16 %v863_v38  ;;  %v841_v51 = vunpack.c.l.bf16 %v878_v39 }
  0x41   : > { %629 = vst [vmem:[%s1008_s17 + $0xa8] sm:$0xff] %v597_v44  ;;  %v598_v53 = vmax.f32 %v566_v45, 0.0  ;;  %v567_v54 = vadd.f32 %v990_v26, %v531_v46  ;;  %v532_v55 = vadd.f32 %v500_v41, %v400_v47  ;;  %v778_v56 = vunpack.c.h.bf16 %v863_v38 }
  0x42   : > { %v401_v58 = vadd.f32 %v973_v6, %v365_v48  ;;  %v366_v59 = vmul.f32 %v960_v0, %v777_v50  ;;  %v502_v60 = vmul.f32 %v965_v1, %v841_v51  ;;  %v842_v61 = vunpack.c.h.bf16 %v878_v39 }
  0x43   : > { %630 = vst [vmem:[%s1008_s17 + $0xb0] sm:$0xff] %v598_v53  ;;  %v599_v62 = vmax.f32 %v567_v54, 0.0  ;;  %v568_v63 = vadd.f32 %v990_v26, %v532_v55  ;;  %v367_v2 = vmul.f32 %v960_v0, %v778_v56  ;;  %v781_v3 = vunpack.c.l.bf16 %v864_v52 }
  0x44   : > { %v533_v4 = vadd.f32 %v501_v49, %v401_v58  ;;  %v402_v5 = vadd.f32 %v973_v6, %v366_v59  ;;  %v503_v7 = vmul.f32 %v965_v1, %v842_v61  ;;  %v845_v8 = vunpack.c.l.bf16 %v879_v57 }
  0x45   : > { %631 = vst [vmem:[%s1008_s17 + $0xb8] sm:$0xff] %v599_v62  ;;  %v600_v10 = vmax.f32 %v568_v63, 0.0  ;;  %v403_v11 = vadd.f32 %v973_v6, %v367_v2  ;;  %v368_v12 = vmul.f32 %v960_v0, %v781_v3  ;;  %v782_v13 = vunpack.c.h.bf16 %v864_v52 }
  0x46   : > { %v569_v15 = vadd.f32 %v990_v26, %v533_v4  ;;  %v534_v16 = vadd.f32 %v502_v60, %v402_v5  ;;  %v504_v17 = vmul.f32 %v965_v1, %v845_v8  ;;  %v846_v18 = vunpack.c.h.bf16 %v879_v57 }
  0x47   : > { %632 = vst [vmem:[%s1008_s17 + $0xc0] sm:$0xff] %v600_v10  ;;  %v535_v19 = vadd.f32 %v503_v7, %v403_v11  ;;  %v404_v20 = vadd.f32 %v973_v6, %v368_v12  ;;  %v369_v21 = vmul.f32 %v960_v0, %v782_v13  ;;  %v785_v22 = vunpack.c.l.bf16 %v865_v9 }
  0x48   : > { %v601_v23 = vmax.f32 %v569_v15, 0.0  ;;  %v570_v24 = vadd.f32 %v990_v26, %v534_v16  ;;  %v505_v25 = vmul.f32 %v965_v1, %v846_v18  ;;  %v849_v27 = vunpack.c.l.bf16 %v880_v14 }
  0x49   : > { %v571_v28 = vadd.f32 %v990_v26, %v535_v19  ;;  %v536_v29 = vadd.f32 %v504_v17, %v404_v20  ;;  %v405_v30 = vadd.f32 %v973_v6, %v369_v21  ;;  %v370_v31 = vmul.f32 %v960_v0, %v785_v22 }
  0x4a   : > { %633 = vst [vmem:[%s1008_s17 + $0xc8] sm:$0xff] %v601_v23  ;;  %v602_v32 = vmax.f32 %v570_v24, 0.0  ;;  %v506_v33 = vmul.f32 %v965_v1, %v849_v27  ;;  %v786_v34 = vunpack.c.h.bf16 %v865_v9  ;;  %v850_v35 = vunpack.c.h.bf16 %v880_v14 }
  0x4b   : > { %v603_v36 = vmax.f32 %v571_v28, 0.0  ;;  %v572_v37 = vadd.f32 %v990_v26, %v536_v29  ;;  %v537_v38 = vadd.f32 %v505_v25, %v405_v30  ;;  %v406_v39 = vadd.f32 %v973_v6, %v370_v31 }
  0x4c   : > { %634 = vst [vmem:[%s1008_s17 + $0xd0] sm:$0xff] %v602_v32  ;;  %v371_v40 = vmul.f32 %v960_v0, %v786_v34  ;;  %v507_v41 = vmul.f32 %v965_v1, %v850_v35 }
  0x4d   : > { %635 = vst [vmem:[%s1008_s17 + $0xd8] sm:$0xff] %v603_v36  ;;  %v604_v42 = vmax.f32 %v572_v37, 0.0  ;;  %v573_v43 = vadd.f32 %v990_v26, %v537_v38  ;;  %v538_v44 = vadd.f32 %v506_v33, %v406_v39 }
  0x4e   : > { %v407_v45 = vadd.f32 %v973_v6, %v371_v40 }
  0x4f   : > { %636 = vst [vmem:[%s1008_s17 + $0xe0] sm:$0xff] %v604_v42  ;;  %v605_v46 = vmax.f32 %v573_v43, 0.0  ;;  %v574_v47 = vadd.f32 %v990_v26, %v538_v44 }
  0x50   : > { %v539_v48 = vadd.f32 %v507_v41, %v407_v45 }
  0x51   : > { %637 = vst [vmem:[%s1008_s17 + $0xe8] sm:$0xff] %v605_v46  ;;  %v606_v49 = vmax.f32 %v574_v47, 0.0 }
  0x52   : > { %v575_v50 = vadd.f32 %v990_v26, %v539_v48 }
  0x53   : > { %638 = vst [vmem:[%s1008_s17 + $0xf0] sm:$0xff] %v606_v49 }
  0x54   : > { %v607_v0 = vmax.f32 %v575_v50, 0.0 }
  0x56   : > { %639 = vst [vmem:[%s1008_s17 + $0xf8] sm:$0xff] %v607_v0 }
  0x57 PF: > { %s16_s21 = sadd.s32 1, %s899_s21  }
  0x58   : > { %p13_p4 = scmp.ge.s32.totalorder %s16_s21, 4  }
  0x5a   :  { %15 = sbr.rel (!%p13_p4) target bundleno = 1 (0x1), region = 77 }

// kernel: basic_block_forward.3
= control target key start
LH: loop header
LB: loop body
LE: loop exit
PB: predicated region body
PF: predicated region fallthrough
CT: control target
= control target key end

     0   :  { %s5529_s12 = smov 0   ;;  %s6943_s0 = inlined_call_operand.vmem [shape: bf16[2,16,16,8], index: 0, kind: input, shape index: {}]   ;;  %s6944_s1 = inlined_call_operand.vmem [shape: bf16[9,8,128], index: 1, kind: input, shape index: {}]   ;;  %s6945_s2 = inlined_call_operand.vmem [shape: bf16[2,16,16,128], index: 2, kind: output, shape index: {0}]   ;;  %s6946_s3 = inlined_call_operand.vmem [shape: f32[16,128], index: 3, kind: output, shape index: {1}]  }
   0x1 LB: > { %s4883_s13 = sadd.s32 4294967295, %s5506_s12   ;;  %p4887_p0 = scmp.ge.s32.totalorder %s5506_s12, 1  ;;  %s5506_s12 = sphi %s5529_s12, %s14_s12  }
   0x2   : > { %p140_p1 = scmp.lt.s32.totalorder %s5506_s12, 3 }
   0x4   : > { %p141_p2 = pnand %p4887_p0, %p140_p1 }
   0x6   : > { %144 = sbr.rel (%p141_p2) target bundleno = 853 (0x355), region = 28 }
   0xb   : > { %v4893_v0 = vld [vmem:[%s6944_s1 + $0x4] sm:$0xf]  ;;  %vm1247_vm0 = vcmask 1043456   ;;  %p168_p3 = scmp.lt.s32.totalorder %s4883_s13, 1  ;;  %vm183_vm1 = vcmask 60416   ;;  %vm186_vm2 = vcmask 57344  }
   0xc   : > { %v1249_v1 = vsel %vm1247_vm0, %v4893_v0, 0  ;;  %v5508_v2 = vmov 0   ;;  %vm271_vm3 = vsmask.f32 256  ;;  %vm272_vm4 = vsmask.f32 4368 }
   0xd   : > { %197 = vst.msk [vmem:[#allocation2 + $0x30] sm:$0xf] %vm183_vm1, %v5508_v2  ;;  %5432 = vmatpush.bf16.msra.mxu1 %v1249_v1  ;;  %5433 = vmatpush.bf16.msra.mxu2 %v1249_v1  ;;  %s6976_s13 = smov (!%p168_p3, %s4883_s13), 1  ;;  %vm596_vm5 = vsmask.f32 7938  ;;  %vm5569_vm6 = vmand %vm186_vm2, %vm271_vm3  ;;  %vm1198_vm12 = vcmask 64512  }
   0xe   : > { %198 = vst.msk [vmem:[#allocation2 + $0x34] sm:$0xf] %vm183_vm1, %v5508_v2  ;;  %5434 = vmatpush.bf16.msra.mxu3 %v1249_v1  ;;  %1258 = vmatpush.bf16.msra.mxu0 %v1249_v1  ;;  %s5287_s16 = sshll.u32 %s6976_s13, 7  ;;  %vm5576_vm7 = vmor %vm271_vm3, %vm272_vm4  ;;  %vm761_vm9 = vsmask.f32 3328  ;;  %vm1608_vm13 = vcmask 1042432  }
   0xf   : > { %199 = vst.msk [vmem:[#allocation2 + $0x38] sm:$0x1] %vm186_vm2, %v5508_v2  ;;  %s5557_s19 = scalar_lea.vmem %s6943_s0, %s5287_s16  ;;  %vm5584_vm8 = vmand %vm183_vm1, %vm596_vm5  ;;  %vm762_vm10 = vsmask.f32 7440  ;;  %vm1609_vm14 = vcmask 1046532   ;;  %s6713_s11 = scalar_lea.vmem %s6945_s2, %s5287_s16 }
  0x10   : > { %184 = vst.msk [vmem:[#allocation2] sm:$0xf] %vm183_vm1, %v5508_v2  ;;  %v245_v3 = vld [vmem:[%s5557_s19 + $0x18] sm:$0xf]  ;;  %v246_v4 = vld [vmem:[%s5557_s19 + $0x1c] sm:$0xf]  ;;  %vm5625_vm11 = vmor %vm761_vm9, %vm762_vm10 }
  0x11   : > { %185 = vst.msk [vmem:[#allocation2 + $0x4] sm:$0xf] %vm183_vm1, %v5508_v2  ;;  %v326_v5 = vshrl.u32 %v245_v3, 16  ;;  %v329_v6 = vshll.u32 %v245_v3, 16  ;;  %v334_v7 = vshrl.u32 %v246_v4, 16  ;;  %v337_v8 = vshll.u32 %v246_v4, 16  ;;  %vm6028_vm15 = vmor %vm1608_vm13, %vm1609_vm14 }
  0x12   : > { %187 = vst.msk [vmem:[#allocation2 + $0x8] sm:$0x1] %vm186_vm2, %v5508_v2  ;;  %v5650_v46 = vld [vmem:[%s5557_s19 + $0x38] sm:$0xf]  ;;  %v5655_v47 = vld [vmem:[%s5557_s19 + $0x3c] sm:$0xf] }
  0x13   : > { %188 = vst.msk [vmem:[#allocation2 + $0xc] sm:$0xf] %vm183_vm1, %v5508_v2  ;;  %v328_v11 = vrot.slane %v326_v5, 7  ;;  %v336_v12 = vrot.slane %v334_v7, 7  ;;  %v5658_v48 = vld [vmem:[%s5557_s19 + $0x58] sm:$0xf] }
  0x14   : > { %189 = vst.msk [vmem:[#allocation2 + $0x10] sm:$0xf] %vm183_vm1, %v5508_v2  ;;  %v621_v14 = vld [vmem:[#allocation2 + $0x30] sm:$0xf]  ;;  %v394_v49 = vshrl.u32 %v5650_v46, 16  ;;  %v402_v50 = vshrl.u32 %v5655_v47, 16 }
  0x15   : > { %190 = vst.msk [vmem:[#allocation2 + $0x14] sm:$0x1] %vm186_vm2, %v5508_v2  ;;  %v331_v16 = vor.u32 %v329_v6, %v328_v11  ;;  %v332_v17 = vrot.slane %v328_v11, 4  ;;  %v339_v18 = vor.u32 %v337_v8, %v336_v12  ;;  %v341_v19 = vrot.slane %v336_v12, 4  ;;  %v5670_v51 = vld [vmem:[%s5557_s19 + $0x5c] sm:$0xf] }
  0x16   : > { %v625_v15 = vld [vmem:[#allocation2 + $0x38] sm:$0x1]  ;;  %191 = vst.msk [vmem:[#allocation2 + $0x18] sm:$0xf] %vm183_vm1, %v5508_v2  ;;  %v462_v52 = vshrl.u32 %v5658_v48, 16  ;;  %v5679_v59 = vrot.slane %v394_v49, 7 }
  0x17   : > { %192 = vst.msk [vmem:[#allocation2 + $0x1c] sm:$0xf] %vm183_vm1, %v5508_v2  ;;  %v340_v20 = vsel %vm5576_vm7, %v332_v17, %v339_v18  ;;  %v622_v21 = vsel %vm5584_vm8, %v331_v16, %v621_v14  ;;  %v626_v22 = vsel %vm5569_vm6, %v341_v19, %v625_v15  ;;  %v712_v53 = vld [vmem:[#allocation2] sm:$0xf]  ;;  %v470_v60 = vshrl.u32 %v5670_v51, 16  ;;  %s4892_s14 = sshll.u32 %s6976_s13, 3 }
  0x18   : > { %193 = vst.msk [vmem:[#allocation2 + $0x20] sm:$0x1] %vm186_vm2, %v5508_v2  ;;  %v713_v54 = vld [vmem:[#allocation2 + $0x4] sm:$0xf]  ;;  %v765_v55 = vshrl.u32 %v712_v53, 16  ;;  %v768_v56 = vshll.u32 %v712_v53, 16  ;;  %s181_s17 = scalar_lea.vmem %s6946_s3, %s4892_s14 }
  0x19   : > { %194 = vst.msk [vmem:[#allocation2 + $0x24] sm:$0xf] %vm183_vm1, %v5508_v2  ;;  %v774_v57 = vshll.u32 %v713_v54, 16  ;;  %v778_v58 = vshrl.u32 %v713_v54, 16  ;;  %v5683_v61 = vld [vmem:[%s5557_s19 + $0x20] sm:$0xf] }
  0x1a   : > { %623 = vst [vmem:[#allocation2 + $0x30] sm:$0xf] %v622_v21  ;;  %v767_v62 = vrot.slane %v765_v55, 4  ;;  %v770_v63 = vrot.slane %v768_v56, 5  ;;  %v745_v3 = vld [vmem:[#allocation2 + $0x8] sm:$0x1] }
  0x1b   : > { %624 = vst.msk [vmem:[#allocation2 + $0x34] sm:$0xf] %vm183_vm1, %v340_v20  ;;  %v776_v0 = vrot.slane %v774_v57, 5  ;;  %v780_v1 = vrot.slane %v778_v58, 4  ;;  %v5690_v4 = vld [vmem:[%s5557_s19 + $0x24] sm:$0xf] }
  0x1c   : > { %627 = vst [vmem:[#allocation2 + $0x38] sm:$0x1] %v626_v22  ;;  %v5694_v5 = vrot.slane %v462_v52, 7  ;;  %v771_v6 = vor.u32 %v770_v63, %v767_v62  ;;  %v784_v8 = vshll.u32 %v745_v3, 16  ;;  %v397_v11 = vshll.u32 %v5650_v46, 16 }
  0x1d   : > { %195 = vst.msk [vmem:[#allocation2 + $0x28] sm:$0xf] %vm183_vm1, %v5508_v2  ;;  %v781_v7 = vor.u32 %v780_v1, %v776_v0  ;;  %v5699_v12 = vrot.slane %v402_v50, 7  ;;  %v343_v14 = vshrl.u32 %v5683_v61, 16  ;;  %v351_v18 = vshrl.u32 %v5690_v4, 16 }
  0x1e   : > { %196 = vst.msk [vmem:[#allocation2 + $0x2c] sm:$0x1] %vm186_vm2, %v5508_v2  ;;  %v772_v15 = vrot.slane %v771_v6, 4  ;;  %v786_v17 = vrot.slane %v784_v8, 5  ;;  %v400_v19 = vrot.slane %v5679_v59, 4  ;;  %v405_v20 = vshll.u32 %v5655_v47, 16 }
  0x1f   : > { %200 = vst.msk [vmem:[#allocation2 + $0x3c] sm:$0xf] %vm183_vm1, %v5508_v2  ;;  %v782_v16 = vrot.slane %v781_v7, 4  ;;  %v409_v21 = vrot.slane %v5699_v12, 4  ;;  %v465_v22 = vshll.u32 %v5658_v48, 16  ;;  %v346_v46 = vshll.u32 %v5683_v61, 16 }
  0x20   : > { %201 = vst.msk [vmem:[#allocation2 + $0x40] sm:$0xf] %vm183_vm1, %v5508_v2  ;;  %v5104_v55 = vld [vmem:[%s6944_s1 + $0x10] sm:$0xf]  ;;  %v264_v6 = vld [vmem:[%s5557_s19 + $0x64] sm:$0xf] }
  0x21   : > { %v720_v23 = vld [vmem:[#allocation2 + $0x30] sm:$0xf]  ;;  %202 = vst.msk [vmem:[#allocation2 + $0x44] sm:$0x1] %vm186_vm2, %v5508_v2  ;;  %v467_v47 = vor.u32 %v465_v22, %v5694_v5  ;;  %v239_v22 = vld [vmem:[%s5557_s19] sm:$0xf] }
  0x22   : > { %v721_v24 = vld [vmem:[#allocation2 + $0x34] sm:$0xf]  ;;  %v861_v25 = vshrl.u32 %v720_v23, 16  ;;  %v864_v26 = vshll.u32 %v720_v23, 16  ;;  %203 = vst.msk [vmem:[#allocation2 + $0x48] sm:$0xf] %vm183_vm1, %v5508_v2 }
  0x23   : > { %v749_v27 = vld [vmem:[#allocation2 + $0x38] sm:$0x1]  ;;  %v870_v28 = vshll.u32 %v721_v24, 16  ;;  %v874_v29 = vshrl.u32 %v721_v24, 16  ;;  %204 = vst.msk [vmem:[#allocation2 + $0x4c] sm:$0xf] %vm183_vm1, %v5508_v2 }
  0x24   : > { %v863_v30 = vrot.slane %v861_v25, 4  ;;  %v866_v31 = vrot.slane %v864_v26, 5  ;;  %v880_v32 = vshll.u32 %v749_v27, 16  ;;  %205 = vst.msk [vmem:[#allocation2 + $0x50] sm:$0x1] %vm186_vm2, %v5508_v2  ;;  %v468_v23 = vrot.slane %v5694_v5, 4 }
  0x25   : > { %v872_v33 = vrot.slane %v870_v28, 5  ;;  %v876_v34 = vrot.slane %v874_v29, 4  ;;  %206 = vst.msk [vmem:[#allocation2 + $0x54] sm:$0xf] %vm183_vm1, %v5508_v2  ;;  %v5714_v24 = vrot.slane %v470_v60, 7  ;;  %v777_v25 = vsel %vm5625_vm11, %v772_v15, %v776_v0 }
  0x26   : > { %v867_v35 = vor.u32 %v866_v31, %v863_v30  ;;  %207 = vst.msk [vmem:[#allocation2 + $0x58] sm:$0xf] %vm183_vm1, %v5508_v2  ;;  %v882_v38 = vrot.slane %v880_v32, 5  ;;  %v787_v26 = vsel %vm5625_vm11, %v782_v16, %v786_v17  ;;  %v5721_v27 = vld [vmem:[%s5557_s19 + $0x40] sm:$0xf]  ;;  %v473_v29 = vshll.u32 %v5670_v51, 16 }
  0x27   : > { %v877_v37 = vor.u32 %v876_v34, %v872_v33  ;;  %208 = vst.msk [vmem:[#allocation2 + $0x5c] sm:$0x1] %vm186_vm2, %v5508_v2  ;;  %v1150_v30 = vunpack.c.l.b16 %v777_v25  ;;  %v1151_v31 = vunpack.c.l.b16 %v787_v26  ;;  %v354_v32 = vshll.u32 %v5690_v4, 16  ;;  %v744_v51 = vld [vmem:[%s6944_s1] sm:$0xf] }
  0x28   : > { %v868_v39 = vrot.slane %v867_v35, 4  ;;  %209 = vst.msk [vmem:[#allocation2 + $0x60] sm:$0xf] %vm183_vm1, %v5508_v2  ;;  %v345_v34 = vrot.slane %v343_v14, 7  ;;  %v5730_v35 = vrot.slane %v351_v18, 7  ;;  %v475_v48 = vor.u32 %v473_v29, %v5714_v24 }
  0x29   : > { %v878_v40 = vrot.slane %v877_v37, 4  ;;  %210 = vst.msk [vmem:[#allocation2 + $0x64] sm:$0xf] %vm183_vm1, %v5508_v2  ;;  %v5733_v37 = vld [vmem:[%s5557_s19 + $0x44] sm:$0xf]  ;;  %v1469_v54 = vsel %vm1247_vm0, %v744_v51, 0 }
  0x2a   : > { %v873_v41 = vsel %vm5625_vm11, %v868_v39, %v872_v33  ;;  %211 = vst.msk [vmem:[#allocation2 + $0x68] sm:$0x1] %vm186_vm2, %v5508_v2  ;;  %v399_v33 = vor.u32 %v397_v11, %v5679_v59  ;;  %v477_v39 = vrot.slane %v5714_v24, 4  ;;  %v419_v52 = vshrl.u32 %v5733_v37, 16  ;;  %1478 = vmatpush.bf16.msrb.mxu1 %v1469_v54  ;;  %v628_v60 = vld [vmem:[#allocation2 + $0x3c] sm:$0xf] }
  0x2b   : > { %v883_v42 = vsel %vm5625_vm11, %v878_v40, %v882_v38  ;;  %v1158_v43 = vunpack.c.l.b16 %v873_v41  ;;  %212 = vst.msk [vmem:[#allocation2 + $0x6c] sm:$0xf] %vm183_vm1, %v5508_v2  ;;  %v5006_v40 = vld [vmem:[%s6944_s1 + $0x8] sm:$0xf]  ;;  %v1182_v41 = vpack.c.b16 %v1151_v31, %v1150_v30  ;;  %v349_v56 = vrot.slane %v345_v34, 4 }
  0x2c   : > { %v1159_v44 = vunpack.c.l.b16 %v883_v42  ;;  %213 = vst.msk [vmem:[#allocation2 + $0x70] sm:$0xf] %vm183_vm1, %v5508_v2  ;;  %v411_v42 = vshrl.u32 %v5721_v27, 16  ;;  %v356_v57 = vor.u32 %v354_v32, %v5730_v35  ;;  %v2762_v59 = vsel %vm1247_vm0, %v5104_v55, 0  ;;  %v263_v4 = vld [vmem:[%s5557_s19 + $0x60] sm:$0xf] }
  0x2d   : > { %214 = vst.msk [vmem:[#allocation2 + $0x74] sm:$0x1] %vm186_vm2, %v5508_v2  ;;  %4894 = vmatmul.msk.bf16.vlgmr.msra.gmra.mxu0 %vm1198_vm12, %v1182_v41  ;;  %v414_v62 = vshll.u32 %v5721_v27, 16  ;;  %v422_v63 = vshll.u32 %v5733_v37, 16  ;;  %v348_v3 = vor.u32 %v346_v46, %v345_v34  ;;  %v421_v7 = vrot.slane %v419_v52, 7 }
  0x2e   : > { %v1186_v45 = vpack.c.b16 %v1159_v44, %v1158_v43  ;;  %215 = vst.msk [vmem:[#allocation2 + $0x78] sm:$0xf] %vm183_vm1, %v5508_v2  ;;  %v407_v43 = vor.u32 %v405_v20, %v5699_v12  ;;  %v1822_v44 = vsel %vm1247_vm0, %v5006_v40, 0  ;;  %v413_v61 = vrot.slane %v411_v42, 7  ;;  %2771 = vmatpush.bf16.msrb.mxu0 %v2762_v59  ;;  %v632_v16 = vld [vmem:[#allocation2 + $0x44] sm:$0x1] }
  0x2f   : > { %216 = vst.msk [vmem:[#allocation2 + $0x7c] sm:$0xf] %vm183_vm1, %v5508_v2  ;;  %v649_v28 = vld [vmem:[#allocation2 + $0x60] sm:$0xf]  ;;  %1831 = vmatpush.bf16.msrb.mxu2 %v1822_v44  ;;  %v479_v8 = vshrl.u32 %v263_v4, 16  ;;  %v482_v11 = vshll.u32 %v263_v4, 16  ;;  %v357_v18 = vsel %vm5576_vm7, %v349_v56, %v356_v57  ;;  %v629_v25 = vsel %vm5584_vm8, %v348_v3, %v628_v60 }
  0x30   : > { %4898 = vmatmul.msk.bf16.vlgmr.msra.gmra.mxu1 %vm1198_vm12, %v1186_v45  ;;  %217 = vst.msk [vmem:[#allocation2 + $0x80] sm:$0x1] %vm186_vm2, %v5508_v2  ;;  %v5023_v45 = vld [vmem:[%s6944_s1 + $0xc] sm:$0xf]  ;;  %v650_v53 = vsel %vm5584_vm8, %v399_v33, %v649_v28  ;;  %v408_v0 = vsel %vm5576_vm7, %v400_v19, %v407_v43  ;;  %v487_v12 = vshrl.u32 %v264_v6, 16  ;;  %v358_v15 = vrot.slane %v5730_v35, 4 }
  0x31   : > { %218 = vst.msk [vmem:[#allocation2 + $0x84] sm:$0xf] %vm183_vm1, %v5508_v2  ;;  %v653_v38 = vld [vmem:[#allocation2 + $0x68] sm:$0x1]  ;;  %v2108_v50 = vsel %vm1247_vm0, %v5023_v45, 0  ;;  %v490_v17 = vshll.u32 %v264_v6, 16  ;;  %v416_v26 = vor.u32 %v414_v62, %v413_v61 }
  0x32   : > { %219 = vst.msk [vmem:[#allocation2 + $0x88] sm:$0xf] %vm183_vm1, %v5508_v2  ;;  %2117 = vmatpush.bf16.msrb.mxu3 %v2108_v50  ;;  %v654_v1 = vsel %vm5569_vm6, %v409_v21, %v653_v38  ;;  %v656_v19 = vld [vmem:[#allocation2 + $0x6c] sm:$0xf]  ;;  %v481_v20 = vrot.slane %v479_v8, 7  ;;  %v489_v21 = vrot.slane %v487_v12, 7  ;;  %v633_v37 = vsel %vm5569_vm6, %v358_v15, %v632_v16 }
  0x33   : > { %220 = vst.msk [vmem:[#allocation2 + $0x8c] sm:$0x1] %vm186_vm2, %v5508_v2  ;;  %v240_v27 = vld [vmem:[%s5557_s19 + $0x4] sm:$0xf]  ;;  %v275_v5 = vshrl.u32 %v239_v22, 16  ;;  %v417_v28 = vrot.slane %v413_v61, 4  ;;  %v657_v41 = vsel %vm5584_vm8, %v416_v26, %v656_v19 }
  0x34   : > { %221 = vst.msk [vmem:[#allocation2 + $0x90] sm:$0xf] %vm183_vm1, %v5508_v2  ;;  %v426_v29 = vrot.slane %v421_v7, 4  ;;  %v660_v30 = vld [vmem:[#allocation2 + $0x74] sm:$0x1]  ;;  %v5800_v31 = vor.u32 %v482_v11, %v481_v20  ;;  %v485_v32 = vrot.slane %v481_v20, 4  ;;  %v492_v33 = vor.u32 %v490_v17, %v489_v21 }
  0x35   : > { %222 = vst.msk [vmem:[#allocation2 + $0x94] sm:$0xf] %vm183_vm1, %v5508_v2  ;;  %v5803_v34 = vrot.slane %v275_v5, 7  ;;  %v283_v35 = vshrl.u32 %v240_v27, 16  ;;  %v494_v38 = vrot.slane %v489_v21, 4  ;;  %v278_v40 = vshll.u32 %v239_v22, 16 }
  0x36   : > { %223 = vst.msk [vmem:[#allocation2 + $0x98] sm:$0x1] %vm186_vm2, %v5508_v2  ;;  %v286_v44 = vshll.u32 %v240_v27, 16  ;;  %v493_v52 = vsel %vm5576_vm7, %v485_v32, %v492_v33  ;;  %v598_v59 = vld [vmem:[#allocation2 + $0xc] sm:$0xf] }
  0x37   : > { %224 = vst.msk [vmem:[#allocation2 + $0x9c] sm:$0xf] %vm183_vm1, %v5508_v2  ;;  %v5811_v43 = vrot.slane %v283_v35, 7 }
  0x38   : > { %225 = vst.msk [vmem:[#allocation2 + $0xa0] sm:$0xf] %vm183_vm1, %v5508_v2 }
  0x39   : > { %226 = vst.msk [vmem:[#allocation2 + $0xa4] sm:$0x1] %vm186_vm2, %v5508_v2 }
  0x3a   : > { %227 = vst.msk [vmem:[#allocation2 + $0xa8] sm:$0xf] %vm183_vm1, %v5508_v2 }
  0x3b   : > { %228 = vst.msk [vmem:[#allocation2 + $0xac] sm:$0xf] %vm183_vm1, %v5508_v2  ;;  %v677_v49 = vld [vmem:[#allocation2 + $0x90] sm:$0xf] }
  0x3c   : > { %229 = vst.msk [vmem:[#allocation2 + $0xb0] sm:$0x1] %vm186_vm2, %v5508_v2  ;;  %v678_v14 = vsel %vm5584_vm8, %v467_v47, %v677_v49  ;;  %v661_v47 = vsel %vm5569_vm6, %v426_v29, %v660_v30 }
  0x3d   : > { %230 = vst.msk [vmem:[#allocation2 + $0xb4] sm:$0xf] %vm183_vm1, %v5508_v2  ;;  %v681_v58 = vld [vmem:[#allocation2 + $0x98] sm:$0x1] }
  0x3e   : > { %231 = vst.msk [vmem:[#allocation2 + $0xb8] sm:$0xf] %vm183_vm1, %v5508_v2  ;;  %v682_v24 = vsel %vm5569_vm6, %v477_v39, %v681_v58  ;;  %v5807_v39 = vld [vmem:[#allocation2 + $0x9c] sm:$0xf]  ;;  %v280_v58 = vor.u32 %v278_v40, %v5803_v34  ;;  %v5839_v40 = vld [vmem:[%s5557_s19 + $0x28] sm:$0xf] }
  0x3f   : > { %232 = vst.msk [vmem:[#allocation2 + $0xbc] sm:$0x1] %vm186_vm2, %v5508_v2 }
  0x40   : > { %233 = vst.msk [vmem:[#allocation2 + $0xc0] sm:$0xf] %vm183_vm1, %v5508_v2  ;;  %v688_v42 = vld [vmem:[#allocation2 + $0xa4] sm:$0x1] }
  0x41   : > { %234 = vst.msk [vmem:[#allocation2 + $0xc4] sm:$0xf] %vm183_vm1, %v5508_v2  ;;  %v689_v57 = vsel %vm5569_vm6, %v494_v38, %v688_v42 }
  0x42   : > { %235 = vst.msk [vmem:[#allocation2 + $0xc8] sm:$0x1] %vm186_vm2, %v5508_v2 }
  0x43   : > { %236 = vst.msk [vmem:[#allocation2 + $0xcc] sm:$0xf] %vm183_vm1, %v5508_v2 }
  0x44   : > { %237 = vst.msk [vmem:[#allocation2 + $0xd0] sm:$0xf] %vm183_vm1, %v5508_v2 }
  0x45   : > { %238 = vst.msk [vmem:[#allocation2 + $0xd4] sm:$0x1] %vm186_vm2, %v5508_v2  ;;  %v476_v2 = vsel %vm5576_vm7, %v468_v23, %v475_v48  ;;  %v424_v23 = vor.u32 %v422_v63, %v421_v7  ;;  %v281_v48 = vrot.slane %v5803_v34, 4 }
  0x46   : > { %651 = vst [vmem:[#allocation2 + $0x60] sm:$0xf] %v650_v53  ;;  %v685_v53 = vsel %vm5584_vm8, %v5800_v31, %v5807_v39 }
  0x47   : > { %652 = vst.msk [vmem:[#allocation2 + $0x64] sm:$0xf] %vm183_vm1, %v408_v0  ;;  %v425_v46 = vsel %vm5576_vm7, %v417_v28, %v424_v23  ;;  %v5829_v0 = vor.u32 %v286_v44, %v5811_v43 }
  0x48   : > { %655 = vst [vmem:[#allocation2 + $0x68] sm:$0x1] %v654_v1 }
  0x49   : > { %679 = vst [vmem:[#allocation2 + $0x90] sm:$0xf] %v678_v14 }
  0x4a   : > { %680 = vst.msk [vmem:[#allocation2 + $0x94] sm:$0xf] %vm183_vm1, %v476_v2 }
  0x4b   : > { %683 = vst [vmem:[#allocation2 + $0x98] sm:$0x1] %v682_v24 }
  0x4c   : > { %630 = vst [vmem:[#allocation2 + $0x3c] sm:$0xf] %v629_v25  ;;  %v599_v25 = vsel %vm5584_vm8, %v280_v58, %v598_v59 }
  0x4d   : > { %v728_v45 = vld [vmem:[#allocation2 + $0x60] sm:$0xf]  ;;  %631 = vst.msk [vmem:[#allocation2 + $0x40] sm:$0xf] %vm183_vm1, %v357_v18 }
  0x4e   : > { %v729_v49 = vld [vmem:[#allocation2 + $0x64] sm:$0xf]  ;;  %v957_v50 = vshrl.u32 %v728_v45, 16  ;;  %v960_v51 = vshll.u32 %v728_v45, 16  ;;  %634 = vst [vmem:[#allocation2 + $0x44] sm:$0x1] %v633_v37 }
  0x4f   : > { %v753_v54 = vld [vmem:[#allocation2 + $0x68] sm:$0x1]  ;;  %v966_v55 = vshll.u32 %v729_v49, 16  ;;  %v970_v56 = vshrl.u32 %v729_v49, 16  ;;  %658 = vst [vmem:[#allocation2 + $0x6c] sm:$0xf] %v657_v41 }
  0x50   : > { %v959_v60 = vrot.slane %v957_v50, 4  ;;  %v962_v61 = vrot.slane %v960_v51, 5  ;;  %v976_v62 = vshll.u32 %v753_v54, 16  ;;  %v736_v63 = vld [vmem:[#allocation2 + $0x90] sm:$0xf] }
  0x51   : > { %v968_v1 = vrot.slane %v966_v55, 5  ;;  %v972_v3 = vrot.slane %v970_v56, 4  ;;  %v737_v4 = vld [vmem:[#allocation2 + $0x94] sm:$0xf]  ;;  %v1053_v6 = vshrl.u32 %v736_v63, 16  ;;  %v1056_v7 = vshll.u32 %v736_v63, 16 }
  0x52   : > { %v963_v8 = vor.u32 %v962_v61, %v959_v60  ;;  %v978_v11 = vrot.slane %v976_v62, 5  ;;  %v757_v12 = vld [vmem:[#allocation2 + $0x98] sm:$0x1]  ;;  %v1062_v14 = vshll.u32 %v737_v4, 16  ;;  %v1066_v15 = vshrl.u32 %v737_v4, 16 }
  0x53   : > { %v973_v16 = vor.u32 %v972_v3, %v968_v1  ;;  %v1055_v17 = vrot.slane %v1053_v6, 4  ;;  %v1058_v2 = vrot.slane %v1056_v7, 5  ;;  %v1072_v18 = vshll.u32 %v757_v12, 16  ;;  %v722_v19 = vld [vmem:[#allocation2 + $0x3c] sm:$0xf] }
  0x54   : > { %v964_v20 = vrot.slane %v963_v8, 4  ;;  %v1064_v21 = vrot.slane %v1062_v14, 5  ;;  %v1068_v22 = vrot.slane %v1066_v15, 4  ;;  %v723_v24 = vld [vmem:[#allocation2 + $0x40] sm:$0xf]  ;;  %v885_v23 = vshrl.u32 %v722_v19, 16 }
  0x55   : > { %v974_v26 = vrot.slane %v973_v16, 4  ;;  %v1059_v27 = vor.u32 %v1058_v2, %v1055_v17  ;;  %v1074_v5 = vrot.slane %v1072_v18, 5  ;;  %v750_v28 = vld [vmem:[#allocation2 + $0x44] sm:$0x1]  ;;  %v888_v31 = vshll.u32 %v722_v19, 16 }
  0x56   : > { %v969_v29 = vsel %vm5625_vm11, %v964_v20, %v968_v1  ;;  %v1069_v30 = vor.u32 %v1068_v22, %v1064_v21  ;;  %v894_v32 = vshll.u32 %v723_v24, 16  ;;  %659 = vst.msk [vmem:[#allocation2 + $0x70] sm:$0xf] %vm183_vm1, %v425_v46  ;;  %v730_v33 = vld [vmem:[#allocation2 + $0x6c] sm:$0xf]  ;;  %v887_v39 = vrot.slane %v885_v23, 4 }
  0x57   : > { %v979_v35 = vsel %vm5625_vm11, %v974_v26, %v978_v11  ;;  %v1166_v37 = vunpack.c.l.b16 %v969_v29  ;;  %v1060_v38 = vrot.slane %v1059_v27, 4  ;;  %662 = vst [vmem:[#allocation2 + $0x74] sm:$0x1] %v661_v47  ;;  %v890_v44 = vrot.slane %v888_v31, 5  ;;  %v5860_v16 = vld [vmem:[%s5557_s19 + $0x2c] sm:$0xf] }
  0x58   : > { %v1167_v41 = vunpack.c.l.b16 %v979_v35  ;;  %v1070_v42 = vrot.slane %v1069_v30, 4  ;;  %v896_v45 = vrot.slane %v894_v32, 5  ;;  %686 = vst [vmem:[#allocation2 + $0x9c] sm:$0xf] %v685_v53  ;;  %v898_v50 = vshrl.u32 %v723_v24, 16 }
  0x59   : > { %v1065_v49 = vsel %vm5625_vm11, %v1060_v38, %v1064_v21  ;;  %v904_v46 = vshll.u32 %v750_v28, 16  ;;  %v981_v51 = vshrl.u32 %v730_v33, 16  ;;  %687 = vst.msk [vmem:[#allocation2 + $0xa0] sm:$0xf] %vm183_vm1, %v493_v52  ;;  %v891_v56 = vor.u32 %v890_v44, %v887_v39  ;;  %v604_v29 = vld [vmem:[#allocation2 + $0x14] sm:$0x1] }
  0x5a   : > { %v1190_v54 = vpack.c.b16 %v1167_v41, %v1166_v37  ;;  %v1075_v55 = vsel %vm5625_vm11, %v1070_v42, %v1074_v5  ;;  %v1174_v47 = vunpack.c.l.b16 %v1065_v49  ;;  %690 = vst [vmem:[#allocation2 + $0xa4] sm:$0x1] %v689_v57  ;;  %v900_v59 = vrot.slane %v898_v50, 4 }
  0x5b   : > { %v1175_v58 = vunpack.c.l.b16 %v1075_v55  ;;  %600 = vst [vmem:[#allocation2 + $0xc] sm:$0xf] %v599_v25  ;;  %v360_v53 = vshrl.u32 %v5839_v40, 16  ;;  %v363_v60 = vshll.u32 %v5839_v40, 16  ;;  %v892_v61 = vrot.slane %v891_v56, 4 }
  0x5c   : > { %4902 = vmatmul.msk.bf16.vlgmr.msra.gmra.mxu2 %vm1198_vm12, %v1190_v54  ;;  %v983_v62 = vrot.slane %v981_v51, 4  ;;  %v984_v63 = vshll.u32 %v730_v33, 16  ;;  %v289_v52 = vsel %vm5576_vm7, %v281_v48, %v5829_v0  ;;  %v901_v57 = vor.u32 %v900_v59, %v896_v45 }
  0x5d   : > { %v1194_v1 = vpack.c.b16 %v1175_v58, %v1174_v47  ;;  %v906_v3 = vrot.slane %v904_v46, 5  ;;  %v731_v4 = vld [vmem:[#allocation2 + $0x70] sm:$0xf]  ;;  %v290_v6 = vrot.slane %v5811_v43, 4  ;;  %601 = vst.msk [vmem:[#allocation2 + $0x10] sm:$0xf] %vm183_vm1, %v289_v52  ;;  %v897_v7 = vsel %vm5625_vm11, %v892_v61, %v896_v45 }
  0x5e   : > { %v754_v8 = vld [vmem:[#allocation2 + $0x74] sm:$0x1]  ;;  %v986_v11 = vrot.slane %v984_v63, 5  ;;  %v990_v12 = vshll.u32 %v731_v4, 16  ;;  %v994_v14 = vshrl.u32 %v731_v4, 16  ;;  %v902_v34 = vrot.slane %v901_v57, 4 }
  0x5f   : > { %4906 = vmatmul.msk.bf16.vlgmr.msra.gmra.mxu3 %vm1198_vm12, %v1194_v1  ;;  %v1160_v48 = vunpack.c.l.b16 %v897_v7  ;;  %v1000_v0 = vshll.u32 %v754_v8, 16  ;;  %v738_v15 = vld [vmem:[#allocation2 + $0x9c] sm:$0xf]  ;;  %v5862_v17 = vrot.slane %v360_v53, 7  ;;  %v368_v42 = vshrl.u32 %v5860_v16, 16 }
  0x60   : > { %v987_v43 = vor.u32 %v986_v11, %v983_v62  ;;  %v992_v2 = vrot.slane %v990_v12, 5  ;;  %v996_v18 = vrot.slane %v994_v14, 4  ;;  %v739_v19 = vld [vmem:[#allocation2 + $0xa0] sm:$0xf]  ;;  %v1077_v20 = vshrl.u32 %v738_v15, 16 }
  0x61   : > { %v907_v21 = vsel %vm5625_vm11, %v902_v34, %v906_v3  ;;  %v1002_v22 = vrot.slane %v1000_v0, 5  ;;  %v758_v24 = vld [vmem:[#allocation2 + $0xa4] sm:$0x1]  ;;  %v1080_v25 = vshll.u32 %v738_v15, 16  ;;  %v1086_v26 = vshll.u32 %v739_v19, 16 }
  0x62   : > { %v1161_v27 = vunpack.c.l.b16 %v907_v21  ;;  %v988_v5 = vrot.slane %v987_v43, 4  ;;  %v997_v28 = vor.u32 %v996_v18, %v992_v2  ;;  %v1079_v23 = vrot.slane %v1077_v20, 4  ;;  %v714_v35 = vld [vmem:[#allocation2 + $0xc] sm:$0xf]  ;;  %v635_v52 = vld [vmem:[#allocation2 + $0x48] sm:$0xf] }
  0x63   : > { %v1082_v30 = vrot.slane %v1080_v25, 5  ;;  %v1088_v31 = vrot.slane %v1086_v26, 5  ;;  %v1090_v32 = vshrl.u32 %v739_v19, 16  ;;  %v1096_v33 = vshll.u32 %v758_v24, 16  ;;  %v258_v14 = vld [vmem:[%s5557_s19 + $0x4c] sm:$0xf] }
  0x64   : > { %v1187_v37 = vpack.c.b16 %v1161_v27, %v1160_v48  ;;  %v993_v38 = vsel %vm5625_vm11, %v988_v5, %v992_v2  ;;  %v998_v39 = vrot.slane %v997_v28, 4  ;;  %v5868_v41 = vld [vmem:[#allocation2 + $0x10] sm:$0xf]  ;;  %v605_v51 = vsel %vm5569_vm6, %v290_v6, %v604_v29  ;;  %v257_v6 = vld [vmem:[%s5557_s19 + $0x48] sm:$0xf] }
  0x65   : > { %v1168_v44 = vunpack.c.l.b16 %v993_v38  ;;  %v1083_v45 = vor.u32 %v1082_v30, %v1079_v23  ;;  %v1092_v49 = vrot.slane %v1090_v32, 4  ;;  %v1098_v50 = vrot.slane %v1096_v33, 5  ;;  %606 = vst [vmem:[#allocation2 + $0x14] sm:$0x1] %v605_v51  ;;  %v639_v2 = vld [vmem:[#allocation2 + $0x50] sm:$0x1] }
  0x66   : > { %4899 = vmatmul.msk.bf16.gmra.mxu1 %vm1198_vm12, %v1187_v37  ;;  %v1003_v46 = vsel %vm5625_vm11, %v998_v39, %v1002_v22  ;;  %v789_v54 = vshrl.u32 %v714_v35, 16  ;;  %v792_v55 = vshll.u32 %v714_v35, 16  ;;  %v798_v59 = vshll.u32 %v5868_v41, 16  ;;  %v265_v22 = vld [vmem:[%s5557_s19 + $0x68] sm:$0xf] }
  0x67   : > { %v1169_v47 = vunpack.c.l.b16 %v1003_v46  ;;  %v1084_v56 = vrot.slane %v1083_v45, 4  ;;  %v1093_v58 = vor.u32 %v1092_v49, %v1088_v31  ;;  %v802_v62 = vshrl.u32 %v5868_v41, 16  ;;  %v266_v5 = vld [vmem:[%s5557_s19 + $0x6c] sm:$0xf]  ;;  %v667_v46 = vld [vmem:[#allocation2 + $0x80] sm:$0x1] }
  0x68   : > { %v791_v53 = vrot.slane %v789_v54, 4  ;;  %v794_v61 = vrot.slane %v792_v55, 5  ;;  %v365_v63 = vor.u32 %v363_v60, %v5862_v17  ;;  %v800_v4 = vrot.slane %v798_v59, 5  ;;  %v691_v54 = vld [vmem:[#allocation2 + $0xa8] sm:$0xf] }
  0x69   : > { %v1191_v1 = vpack.c.b16 %v1169_v47, %v1168_v44  ;;  %v1089_v57 = vsel %vm5625_vm11, %v1084_v56, %v1088_v31  ;;  %v1094_v3 = vrot.slane %v1093_v58, 4  ;;  %v804_v11 = vrot.slane %v802_v62, 4  ;;  %v663_v31 = vld [vmem:[#allocation2 + $0x78] sm:$0xf] }
  0x6a   : > { %v1176_v7 = vunpack.c.l.b16 %v1089_v57  ;;  %v795_v8 = vor.u32 %v794_v61, %v791_v53  ;;  %v366_v12 = vrot.slane %v5862_v17, 4  ;;  %v370_v40 = vrot.slane %v368_v42, 7 }
  0x6b   : > { %v1099_v34 = vsel %vm5625_vm11, %v1094_v3, %v1098_v50  ;;  %v371_v60 = vshll.u32 %v5860_v16, 16  ;;  %v636_v48 = vsel %vm5584_vm8, %v365_v63, %v635_v52  ;;  %v805_v43 = vor.u32 %v804_v11, %v800_v4  ;;  %v695_v63 = vld [vmem:[#allocation2 + $0xb0] sm:$0x1]  ;;  %v241_v52 = vld [vmem:[%s5557_s19 + $0x8] sm:$0xf] }
  0x6c   : > { %4903 = vmatmul.msk.bf16.gmra.mxu2 %vm1198_vm12, %v1191_v1  ;;  %v1177_v0 = vunpack.c.l.b16 %v1099_v34  ;;  %v796_v15 = vrot.slane %v795_v8, 4  ;;  %637 = vst [vmem:[#allocation2 + $0x48] sm:$0xf] %v636_v48  ;;  %v428_v17 = vshrl.u32 %v257_v6, 16  ;;  %v375_v19 = vrot.slane %v370_v40, 4 }
  0x6d   : > { %v373_v18 = vor.u32 %v371_v60, %v370_v40  ;;  %v431_v20 = vshll.u32 %v257_v6, 16  ;;  %v436_v21 = vshrl.u32 %v258_v14, 16  ;;  %v5893_v25 = vld [vmem:[#allocation2 + $0x14] sm:$0x1]  ;;  %v806_v26 = vrot.slane %v805_v43, 4 }
  0x6e   : > { %v1195_v24 = vpack.c.b16 %v1177_v0, %v1176_v7  ;;  %v801_v16 = vsel %vm5625_vm11, %v796_v15, %v800_v4  ;;  %v430_v27 = vrot.slane %v428_v17, 7  ;;  %v808_v28 = vshll.u32 %v5893_v25, 16  ;;  %v242_v6 = vld [vmem:[%s5557_s19 + $0xc] sm:$0xf]  ;;  %v5921_v0 = vld [vmem:[%s5557_s19 + $0x30] sm:$0xf] }
  0x6f   : > { %v1152_v23 = vunpack.c.l.b16 %v801_v16  ;;  %v374_v29 = vsel %vm5576_vm7, %v366_v12, %v373_v18  ;;  %v640_v30 = vsel %vm5569_vm6, %v375_v19, %v639_v2  ;;  %v438_v35 = vrot.slane %v436_v21, 7 }
  0x70   : > { %4907 = vmatmul.msk.bf16.gmra.mxu3 %vm1198_vm12, %v1195_v24  ;;  %638 = vst.msk [vmem:[#allocation2 + $0x4c] sm:$0xf] %vm183_vm1, %v374_v29  ;;  %v433_v32 = vor.u32 %v431_v20, %v430_v27  ;;  %v434_v33 = vrot.slane %v430_v27, 4  ;;  %v439_v37 = vshll.u32 %v258_v14, 16  ;;  %v810_v38 = vrot.slane %v808_v28, 5 }
  0x71   : > { %641 = vst [vmem:[#allocation2 + $0x50] sm:$0x1] %v640_v30  ;;  %v496_v39 = vshrl.u32 %v265_v22, 16  ;;  %v499_v42 = vshll.u32 %v265_v22, 16  ;;  %v504_v44 = vshrl.u32 %v266_v5, 16  ;;  %v443_v49 = vrot.slane %v438_v35, 4 }
  0x72   : > { %v441_v45 = vor.u32 %v439_v37, %v438_v35  ;;  %v664_v50 = vsel %vm5584_vm8, %v433_v32, %v663_v31  ;;  %v507_v51 = vshll.u32 %v266_v5, 16  ;;  %v811_v55 = vsel %vm5625_vm11, %v806_v26, %v810_v38 }
  0x73   : > { %v724_v47 = vld [vmem:[#allocation2 + $0x48] sm:$0xf]  ;;  %665 = vst [vmem:[#allocation2 + $0x78] sm:$0xf] %v664_v50  ;;  %v498_v56 = vrot.slane %v496_v39, 7  ;;  %v506_v58 = vrot.slane %v504_v44, 7  ;;  %v1153_v59 = vunpack.c.l.b16 %v811_v55  ;;  %v668_v1 = vsel %vm5569_vm6, %v443_v49, %v667_v46 }
  0x74   : > { %v909_v53 = vshrl.u32 %v724_v47, 16  ;;  %v912_v61 = vshll.u32 %v724_v47, 16  ;;  %v442_v62 = vsel %vm5576_vm7, %v434_v33, %v441_v45  ;;  %669 = vst [vmem:[#allocation2 + $0x80] sm:$0x1] %v668_v1  ;;  %v292_v60 = vshrl.u32 %v241_v52, 16 }
  0x75   : > { %666 = vst.msk [vmem:[#allocation2 + $0x7c] sm:$0xf] %vm183_vm1, %v442_v62  ;;  %v501_v57 = vor.u32 %v499_v42, %v498_v56  ;;  %v502_v3 = vrot.slane %v498_v56, 4  ;;  %v509_v4 = vor.u32 %v507_v51, %v506_v58  ;;  %v1183_v7 = vpack.c.b16 %v1153_v59, %v1152_v23 }
  0x76   : > { %v911_v8 = vrot.slane %v909_v53, 4  ;;  %v914_v11 = vrot.slane %v912_v61, 5  ;;  %v511_v12 = vrot.slane %v506_v58, 4  ;;  %v295_v48 = vshll.u32 %v241_v52, 16 }
  0x77   : > { %v725_v14 = vld [vmem:[#allocation2 + $0x4c] sm:$0xf]  ;;  %v510_v34 = vsel %vm5576_vm7, %v502_v3, %v509_v4  ;;  %v692_v40 = vsel %vm5584_vm8, %v501_v57, %v691_v54  ;;  %4895 = vmatmul.msk.bf16.gmra.mxu0 %vm1198_vm12, %v1183_v7  ;;  %v294_v20 = vrot.slane %v292_v60, 7  ;;  %v300_v21 = vshrl.u32 %v242_v6, 16  ;;  %v607_v3 = vld [vmem:[#allocation2 + $0x18] sm:$0xf] }
  0x78   : > { %v751_v15 = vld [vmem:[#allocation2 + $0x50] sm:$0x1]  ;;  %v915_v43 = vor.u32 %v914_v11, %v911_v8  ;;  %v918_v2 = vshll.u32 %v725_v14, 16  ;;  %v922_v17 = vshrl.u32 %v725_v14, 16  ;;  %693 = vst [vmem:[#allocation2 + $0xa8] sm:$0xf] %v692_v40  ;;  %v696_v18 = vsel %vm5569_vm6, %v511_v12, %v695_v63 }
  0x79   : > { %v928_v19 = vshll.u32 %v751_v15, 16  ;;  %694 = vst.msk [vmem:[#allocation2 + $0xac] sm:$0xf] %vm183_vm1, %v510_v34  ;;  %v303_v27 = vshll.u32 %v242_v6, 16  ;;  %v377_v29 = vshrl.u32 %v5921_v0, 16  ;;  %v297_v33 = vor.u32 %v295_v48, %v294_v20 }
  0x7a   : > { %v916_v22 = vrot.slane %v915_v43, 4  ;;  %v920_v24 = vrot.slane %v918_v2, 5  ;;  %v924_v16 = vrot.slane %v922_v17, 4  ;;  %v732_v26 = vld [vmem:[#allocation2 + $0x78] sm:$0xf]  ;;  %v302_v35 = vrot.slane %v300_v21, 7 }
  0x7b   : > { %v930_v5 = vrot.slane %v928_v19, 5  ;;  %v1005_v28 = vshrl.u32 %v732_v26, 16  ;;  %v1008_v23 = vshll.u32 %v732_v26, 16  ;;  %697 = vst [vmem:[#allocation2 + $0xb0] sm:$0x1] %v696_v18  ;;  %v298_v44 = vrot.slane %v294_v20, 4 }
  0x7c   : > { %v921_v30 = vsel %vm5625_vm11, %v916_v22, %v920_v24  ;;  %v925_v31 = vor.u32 %v924_v16, %v920_v24  ;;  %v733_v32 = vld [vmem:[#allocation2 + $0x7c] sm:$0xf]  ;;  %v755_v37 = vld [vmem:[#allocation2 + $0x80] sm:$0x1]  ;;  %v305_v47 = vor.u32 %v303_v27, %v302_v35  ;;  %v307_v56 = vrot.slane %v302_v35, 4 }
  0x7d   : > { %v1007_v38 = vrot.slane %v1005_v28, 4  ;;  %v1010_v39 = vrot.slane %v1008_v23, 5  ;;  %v1014_v42 = vshll.u32 %v733_v32, 16  ;;  %v1162_v49 = vunpack.c.l.b16 %v921_v30  ;;  %v611_v12 = vld [vmem:[#allocation2 + $0x20] sm:$0x1] }
  0x7e   : > { %v926_v45 = vrot.slane %v925_v31, 4  ;;  %v1018_v50 = vshrl.u32 %v733_v32, 16  ;;  %v1024_v46 = vshll.u32 %v755_v37, 16  ;;  %v306_v11 = vsel %vm5576_vm7, %v298_v44, %v305_v47  ;;  %v252_v2 = vld [vmem:[%s5557_s19 + $0x34] sm:$0xf] }
  0x7f   : > { %v1011_v51 = vor.u32 %v1010_v39, %v1007_v38  ;;  %v1016_v54 = vrot.slane %v1014_v42, 5  ;;  %v740_v55 = vld [vmem:[#allocation2 + $0xa8] sm:$0xf]  ;;  %610 = vst.msk [vmem:[#allocation2 + $0x1c] sm:$0xf] %vm183_vm1, %v306_v11  ;;  %v608_v19 = vsel %vm5584_vm8, %v297_v33, %v607_v3  ;;  %v612_v20 = vsel %vm5569_vm6, %v307_v56, %v611_v12 }
  0x80   : > { %v931_v58 = vsel %vm5625_vm11, %v926_v45, %v930_v5  ;;  %v1020_v59 = vrot.slane %v1018_v50, 4  ;;  %v1026_v53 = vrot.slane %v1024_v46, 5  ;;  %v741_v61 = vld [vmem:[#allocation2 + $0xac] sm:$0xf]  ;;  %v1101_v62 = vshrl.u32 %v740_v55, 16 }
  0x81   : > { %v1163_v63 = vunpack.c.l.b16 %v931_v58  ;;  %v1012_v52 = vrot.slane %v1011_v51, 4  ;;  %v1104_v1 = vshll.u32 %v740_v55, 16  ;;  %v1110_v57 = vshll.u32 %v741_v61, 16  ;;  %v259_v21 = vld [vmem:[%s5557_s19 + $0x50] sm:$0xf] }
  0x82   : > { %v1021_v4 = vor.u32 %v1020_v59, %v1016_v54  ;;  %v759_v6 = vld [vmem:[#allocation2 + $0xb0] sm:$0x1]  ;;  %v1103_v7 = vrot.slane %v1101_v62, 4  ;;  %v1114_v8 = vshrl.u32 %v741_v61, 16  ;;  %609 = vst [vmem:[#allocation2 + $0x18] sm:$0xf] %v608_v19 }
  0x83   : > { %v1188_v14 = vpack.c.b16 %v1163_v63, %v1162_v49  ;;  %v1017_v34 = vsel %vm5625_vm11, %v1012_v52, %v1016_v54  ;;  %v1106_v40 = vrot.slane %v1104_v1, 5  ;;  %v1112_v60 = vrot.slane %v1110_v57, 5  ;;  %613 = vst [vmem:[#allocation2 + $0x20] sm:$0x1] %v612_v20  ;;  %v642_v42 = vld [vmem:[#allocation2 + $0x54] sm:$0xf] }
  0x84   : > { %v1022_v48 = vrot.slane %v1021_v4, 4  ;;  %v1116_v15 = vrot.slane %v1114_v8, 4  ;;  %v1120_v43 = vshll.u32 %v759_v6, 16  ;;  %v1170_v17 = vunpack.c.l.b16 %v1017_v34  ;;  %v646_v47 = vld [vmem:[#allocation2 + $0x5c] sm:$0x1] }
  0x85   : > { %4900 = vmatmul.msk.bf16.gmra.mxu1 %vm1198_vm12, %v1188_v14  ;;  %v1107_v18 = vor.u32 %v1106_v40, %v1103_v7  ;;  %v379_v26 = vrot.slane %v377_v29, 7  ;;  %v380_v28 = vshll.u32 %v5921_v0, 16  ;;  %v385_v23 = vshrl.u32 %v252_v2, 16  ;;  %v260_v0 = vld [vmem:[%s5557_s19 + $0x54] sm:$0xf] }
  0x86   : > { %v1027_v22 = vsel %vm5625_vm11, %v1022_v48, %v1026_v53  ;;  %v1117_v24 = vor.u32 %v1116_v15, %v1112_v60  ;;  %v1122_v16 = vrot.slane %v1120_v43, 5  ;;  %v388_v32 = vshll.u32 %v252_v2, 16  ;;  %v5951_v45 = vld [vmem:[#allocation2 + $0x1c] sm:$0xf]  ;;  %v670_v56 = vld [vmem:[#allocation2 + $0x84] sm:$0xf] }
  0x87   : > { %v1171_v27 = vunpack.c.l.b16 %v1027_v22  ;;  %v1108_v5 = vrot.slane %v1107_v18, 4  ;;  %v383_v31 = vrot.slane %v379_v26, 4  ;;  %v445_v33 = vshrl.u32 %v259_v21, 16  ;;  %v267_v62 = vld [vmem:[%s5557_s19 + $0x70] sm:$0xf] }
  0x88   : > { %v1118_v30 = vrot.slane %v1117_v24, 4  ;;  %v382_v38 = vor.u32 %v380_v28, %v379_v26  ;;  %v387_v39 = vrot.slane %v385_v23, 7  ;;  %v448_v50 = vshll.u32 %v259_v21, 16  ;;  %v268_v63 = vld [vmem:[%s5557_s19 + $0x74] sm:$0xf] }
  0x89   : > { %v1192_v35 = vpack.c.b16 %v1171_v27, %v1170_v17  ;;  %v1113_v37 = vsel %vm5625_vm11, %v1108_v5, %v1112_v60  ;;  %v447_v49 = vrot.slane %v445_v33, 7  ;;  %v822_v51 = vshll.u32 %v5951_v45, 16  ;;  %v716_v1 = vld [vmem:[#allocation2 + $0x18] sm:$0xf]  ;;  %v5964_v6 = vld [vmem:[%s5557_s19 + $0x10] sm:$0xf] }
  0x8a   : > { %v1123_v29 = vsel %vm5625_vm11, %v1118_v30, %v1122_v16  ;;  %v1178_v44 = vunpack.c.l.b16 %v1113_v37  ;;  %v826_v54 = vshrl.u32 %v5951_v45, 16  ;;  %v390_v55 = vor.u32 %v388_v32, %v387_v39  ;;  %v5966_v7 = vld [vmem:[#allocation2 + $0x20] sm:$0x1]  ;;  %v674_v24 = vld [vmem:[#allocation2 + $0x8c] sm:$0x1] }
  0x8b   : > { %4904 = vmatmul.msk.bf16.gmra.mxu2 %vm1198_vm12, %v1192_v35  ;;  %v1179_v46 = vunpack.c.l.b16 %v1123_v29  ;;  %v392_v58 = vrot.slane %v387_v39, 4  ;;  %v643_v59 = vsel %vm5584_vm8, %v382_v38, %v642_v42  ;;  %v450_v53 = vor.u32 %v448_v50, %v447_v49  ;;  %v5465_v9 = vld [vmem:[#allocation2 + $0xb0] sm:$0x1] }
  0x8c   : > { %v451_v61 = vrot.slane %v447_v49, 4  ;;  %v824_v57 = vrot.slane %v822_v51, 5  ;;  %v828_v3 = vrot.slane %v826_v54, 4  ;;  %v391_v4 = vsel %vm5576_vm7, %v383_v31, %v390_v55  ;;  %644 = vst [vmem:[#allocation2 + $0x54] sm:$0xf] %v643_v59 }
  0x8d   : > { %v1196_v52 = vpack.c.b16 %v1179_v46, %v1178_v44  ;;  %v813_v8 = vshrl.u32 %v716_v1, 16  ;;  %v816_v11 = vshll.u32 %v716_v1, 16  ;;  %645 = vst.msk [vmem:[#allocation2 + $0x58] sm:$0xf] %vm183_vm1, %v391_v4  ;;  %v647_v12 = vsel %vm5569_vm6, %v392_v58, %v646_v47  ;;  %v702_v49 = vld [vmem:[#allocation2 + $0xbc] sm:$0x1] }
  0x8e   : > { %v671_v14 = vsel %vm5584_vm8, %v450_v53, %v670_v56  ;;  %v829_v34 = vor.u32 %v828_v3, %v824_v57  ;;  %v832_v40 = vshll.u32 %v5966_v7, 16  ;;  %648 = vst [vmem:[#allocation2 + $0x5c] sm:$0x1] %v647_v12  ;;  %v453_v60 = vshrl.u32 %v260_v0, 16 }
  0x8f   : > { %4908 = vmatmul.msk.bf16.gmra.mxu3 %vm1198_vm12, %v1196_v52  ;;  %v456_v48 = vshll.u32 %v260_v0, 16  ;;  %v815_v15 = vrot.slane %v813_v8, 4  ;;  %v818_v43 = vrot.slane %v816_v11, 5  ;;  %672 = vst [vmem:[#allocation2 + $0x84] sm:$0xf] %v671_v14  ;;  %v513_v2 = vshrl.u32 %v267_v62, 16 }
  0x90   : > { %v516_v17 = vshll.u32 %v267_v62, 16  ;;  %v830_v18 = vrot.slane %v829_v34, 4  ;;  %v834_v19 = vrot.slane %v832_v40, 5  ;;  %v455_v20 = vrot.slane %v453_v60, 7  ;;  %v698_v0 = vld [vmem:[#allocation2 + $0xb4] sm:$0xf] }
  0x91   : > { %v521_v21 = vshrl.u32 %v268_v63, 16  ;;  %v819_v22 = vor.u32 %v818_v43, %v815_v15  ;;  %v515_v16 = vrot.slane %v513_v2, 7  ;;  %v524_v26 = vshll.u32 %v268_v63, 16  ;;  %v244_v8 = vld [vmem:[%s5557_s19 + $0x14] sm:$0xf] }
  0x92   : > { %v309_v27 = vshrl.u32 %v5964_v6, 16  ;;  %v835_v5 = vsel %vm5625_vm11, %v830_v18, %v834_v19  ;;  %v458_v28 = vor.u32 %v456_v48, %v455_v20  ;;  %v460_v23 = vrot.slane %v455_v20, 4 }
  0x93   : > { %v523_v30 = vrot.slane %v521_v21, 7  ;;  %v820_v31 = vrot.slane %v819_v22, 4  ;;  %v1155_v32 = vunpack.c.l.b16 %v835_v5  ;;  %v726_v33 = vld [vmem:[#allocation2 + $0x54] sm:$0xf]  ;;  %v518_v35 = vor.u32 %v516_v17, %v515_v16  ;;  %v614_v22 = vld [vmem:[#allocation2 + $0x24] sm:$0xf] }
  0x94   : > { %v519_v37 = vrot.slane %v515_v16, 4  ;;  %v5978_v38 = vld [vmem:[#allocation2 + $0x58] sm:$0xf]  ;;  %v933_v39 = vshrl.u32 %v726_v33, 16  ;;  %v936_v42 = vshll.u32 %v726_v33, 16  ;;  %v459_v29 = vsel %vm5576_vm7, %v451_v61, %v458_v28 }
  0x95   : > { %v675_v44 = vsel %vm5569_vm6, %v460_v23, %v674_v24  ;;  %v825_v50 = vsel %vm5625_vm11, %v820_v31, %v824_v57  ;;  %v5986_v46 = vld [vmem:[#allocation2 + $0x5c] sm:$0x1]  ;;  %v942_v51 = vshll.u32 %v5978_v38, 16  ;;  %v946_v54 = vshrl.u32 %v5978_v38, 16  ;;  %673 = vst.msk [vmem:[#allocation2 + $0x88] sm:$0xf] %vm183_vm1, %v459_v29 }
  0x96   : > { %v526_v55 = vor.u32 %v524_v26, %v523_v30  ;;  %v1154_v47 = vunpack.c.l.b16 %v825_v50  ;;  %v935_v56 = vrot.slane %v933_v39, 4  ;;  %v938_v58 = vrot.slane %v936_v42, 5  ;;  %676 = vst [vmem:[#allocation2 + $0x8c] sm:$0x1] %v675_v44  ;;  %v734_v62 = vld [vmem:[#allocation2 + $0x84] sm:$0xf] }
  0x97   : > { %v952_v59 = vshll.u32 %v5986_v46, 16  ;;  %v944_v53 = vrot.slane %v942_v51, 5  ;;  %v948_v61 = vrot.slane %v946_v54, 4  ;;  %v528_v52 = vrot.slane %v523_v30, 4 }
  0x98   : > { %v527_v63 = vsel %vm5576_vm7, %v519_v37, %v526_v55  ;;  %v1184_v1 = vpack.c.b16 %v1155_v32, %v1154_v47  ;;  %v939_v57 = vor.u32 %v938_v58, %v935_v56  ;;  %v1029_v4 = vshrl.u32 %v734_v62, 16 }
  0x99   : > { %v954_v3 = vrot.slane %v952_v59, 5  ;;  %701 = vst.msk [vmem:[#allocation2 + $0xb8] sm:$0xf] %vm183_vm1, %v527_v63  ;;  %v949_v11 = vor.u32 %v948_v61, %v944_v53  ;;  %v1032_v12 = vshll.u32 %v734_v62, 16  ;;  %v699_v14 = vsel %vm5584_vm8, %v518_v35, %v698_v0  ;;  %v618_v59 = vld [vmem:[#allocation2 + $0x2c] sm:$0x1] }
  0x9a   : > { %v703_v34 = vsel %vm5569_vm6, %v528_v52, %v702_v49  ;;  %4896 = vmatmul.msk.bf16.gmra.mxu0 %vm1198_vm12, %v1184_v1  ;;  %v940_v40 = vrot.slane %v939_v57, 4  ;;  %v1031_v60 = vrot.slane %v1029_v4, 4  ;;  %700 = vst [vmem:[#allocation2 + $0xb4] sm:$0xf] %v699_v14  ;;  %v311_v48 = vrot.slane %v309_v27, 7 }
  0x9b   : > { %v312_v15 = vshll.u32 %v5964_v6, 16  ;;  %v950_v43 = vrot.slane %v949_v11, 4  ;;  %v1034_v2 = vrot.slane %v1032_v12, 5  ;;  %704 = vst [vmem:[#allocation2 + $0xbc] sm:$0x1] %v703_v34  ;;  %v317_v17 = vshrl.u32 %v244_v8, 16 }
  0x9c   : > { %v945_v18 = vsel %vm5625_vm11, %v940_v40, %v944_v53  ;;  %v735_v19 = vld [vmem:[#allocation2 + $0x88] sm:$0xf]  ;;  %v320_v21 = vshll.u32 %v244_v8, 16  ;;  %v315_v29 = vrot.slane %v311_v48, 4  ;;  %v1560_v40 = vld [vmem:[#allocation2] sm:$0xe] }
  0x9d   : > { %v314_v20 = vor.u32 %v312_v15, %v311_v48  ;;  %v955_v24 = vsel %vm5625_vm11, %v950_v43, %v954_v3  ;;  %v1164_v16 = vunpack.c.l.b16 %v945_v18  ;;  %v756_v26 = vld [vmem:[#allocation2 + $0x8c] sm:$0x1]  ;;  %v1035_v5 = vor.u32 %v1034_v2, %v1031_v60  ;;  %v5154_v3 = vld [vmem:[%s6944_s1 + $0x18] sm:$0xf]  ;;  %v5444_v43 = vld [vmem:[#allocation2 + $0x4] sm:$0xf] }
  0x9e   : > { %v1038_v27 = vshll.u32 %v735_v19, 16  ;;  %v1165_v28 = vunpack.c.l.b16 %v955_v24  ;;  %v1042_v6 = vshrl.u32 %v735_v19, 16  ;;  %v1048_v23 = vshll.u32 %v756_v26, 16 }
  0x9f   : > { %v1036_v30 = vrot.slane %v1035_v5, 4  ;;  %v319_v33 = vrot.slane %v317_v17, 7  ;;  %v615_v35 = vsel %vm5584_vm8, %v314_v20, %v614_v22  ;;  %v1613_v2 = vrot.slane %v5444_v43, 5 }
  0xa0   : > { %v1040_v31 = vrot.slane %v1038_v27, 5  ;;  %v743_v32 = vld [vmem:[#allocation2 + $0xb8] sm:$0xf]  ;;  %v1189_v37 = vpack.c.b16 %v1165_v28, %v1164_v16  ;;  %v1044_v39 = vrot.slane %v1042_v6, 4  ;;  %616 = vst [vmem:[#allocation2 + $0x24] sm:$0xf] %v615_v35 }
  0xa1   : > { %v1134_v42 = vshll.u32 %v743_v32, 16  ;;  %v1050_v44 = vrot.slane %v1048_v23, 5  ;;  %v742_v0 = vld [vmem:[#allocation2 + $0xb4] sm:$0xf]  ;;  %v1138_v49 = vshrl.u32 %v743_v32, 16  ;;  %v322_v50 = vor.u32 %v320_v21, %v319_v33 }
  0xa2   : > { %v324_v51 = vrot.slane %v319_v33, 4  ;;  %4901 = vmatmul.msk.bf16.gmra.mxu1 %vm1198_vm12, %v1189_v37  ;;  %v1041_v54 = vsel %vm5625_vm11, %v1036_v30, %v1040_v31  ;;  %v1045_v55 = vor.u32 %v1044_v39, %v1040_v31  ;;  %v760_v47 = vld [vmem:[#allocation2 + $0xbc] sm:$0x1]  ;;  %v1125_v56 = vshrl.u32 %v742_v0, 16  ;;  %v2231_v16 = vld [vmem:[#allocation2 + $0xc] sm:$0xf] }
  0xa3   : > { %v1128_v58 = vshll.u32 %v742_v0, 16  ;;  %v1136_v53 = vrot.slane %v1134_v42, 5  ;;  %v1140_v61 = vrot.slane %v1138_v49, 4  ;;  %v1144_v62 = vshll.u32 %v760_v47, 16  ;;  %v5445_v23 = vld [vmem:[#allocation2 + $0x8] sm:$0x1] }
  0xa4   : > { %v1046_v63 = vrot.slane %v1045_v55, 4  ;;  %v1127_v52 = vrot.slane %v1125_v56, 4  ;;  %v323_v57 = vsel %vm5576_vm7, %v315_v29, %v322_v50  ;;  %v1172_v4 = vunpack.c.l.b16 %v1041_v54  ;;  %v2232_v33 = vld [vmem:[#allocation2 + $0x10] sm:$0xf]  ;;  %v5289_v54 = vld [vmem:[#allocation2] sm:$0xff] }
  0xa5   : > { %v1130_v1 = vrot.slane %v1128_v58, 5  ;;  %v1141_v8 = vor.u32 %v1140_v61, %v1136_v53  ;;  %v1146_v11 = vrot.slane %v1144_v62, 5  ;;  %617 = vst.msk [vmem:[#allocation2 + $0x28] sm:$0xf] %vm183_vm1, %v323_v57  ;;  %v619_v12 = vsel %vm5569_vm6, %v324_v51, %v618_v59  ;;  %v5235_v61 = vld [vmem:[%s6944_s1 + $0x1c] sm:$0xf] }
  0xa6   : > { %v1051_v14 = vsel %vm5625_vm11, %v1046_v63, %v1050_v44  ;;  %620 = vst [vmem:[#allocation2 + $0x2c] sm:$0x1] %v619_v12  ;;  %v3447_v17 = vsel %vm1247_vm0, %v5154_v3, 0  ;;  %v4990_v24 = vrot.slane %v1560_v40, 9  ;;  %v1616_v30 = vrot.slane %v5445_v23, 5 }
  0xa7   : > { %v1131_v34 = vor.u32 %v1130_v1, %v1127_v52  ;;  %v1173_v60 = vunpack.c.l.b16 %v1051_v14  ;;  %v1142_v48 = vrot.slane %v1141_v8, 4  ;;  %v718_v15 = vld [vmem:[#allocation2 + $0x24] sm:$0xf]  ;;  %3456 = vmatpush.bf16.msra.mxu2 %v3447_v17  ;;  %v1615_v32 = vrot.slane %v1613_v2, 4  ;;  %v5137_v62 = vld [vmem:[%s6944_s1 + $0x14] sm:$0xf] }
  0xa8   : > { %v837_v19 = vshrl.u32 %v718_v15, 16  ;;  %v840_v20 = vshll.u32 %v718_v15, 16  ;;  %v2280_v39 = vshrl.u32 %v2231_v16, 16  ;;  %v1614_v49 = vsel %vm6028_vm15, %v4990_v24, %v1613_v2  ;;  %v5268_v3 = vld [vmem:[%s6944_s1 + $0x20] sm:$0xf] }
  0xa9   : > { %v1132_v18 = vrot.slane %v1131_v34, 4  ;;  %v1193_v21 = vpack.c.b16 %v1173_v60, %v1172_v4  ;;  %v1147_v22 = vsel %vm5625_vm11, %v1142_v48, %v1146_v11  ;;  %v2283_v55 = vshll.u32 %v2231_v16, 16  ;;  %v2233_v15 = vld [vmem:[#allocation2 + $0x14] sm:$0x1]  ;;  %v1561_v16 = vld [vmem:[#allocation2 + $0xc] sm:$0xe] }
  0xaa   : > { %v1181_v5 = vunpack.c.l.b16 %v1147_v22  ;;  %v839_v27 = vrot.slane %v837_v19, 4  ;;  %v842_v28 = vrot.slane %v840_v20, 5  ;;  %v2289_v47 = vshll.u32 %v2232_v33, 16 }
  0xab   : > { %v1137_v26 = vsel %vm5625_vm11, %v1132_v18, %v1136_v53  ;;  %4905 = vmatmul.msk.bf16.gmra.mxu2 %vm1198_vm12, %v1193_v21  ;;  %v1617_v59 = vsel %vm6028_vm15, %v1615_v32, %v1616_v30  ;;  %v2293_v53 = vshrl.u32 %v2232_v33, 16  ;;  %v1725_v57 = vunpack.c.l.b16 %v1614_v49  ;;  %v2234_v30 = vld [vmem:[#allocation2 + $0x18] sm:$0xf] }
  0xac   : > { %v1180_v31 = vunpack.c.l.b16 %v1137_v26  ;;  %v6033_v35 = vld [vmem:[#allocation2 + $0x28] sm:$0xf]  ;;  %v843_v37 = vor.u32 %v842_v28, %v839_v27  ;;  %v1726_v4 = vunpack.c.l.b16 %v1617_v59  ;;  %v2282_v8 = vrot.slane %v2280_v39, 4  ;;  %v5305_v26 = vld [vmem:[#allocation2 + $0xc] sm:$0xff]  ;;  %v1562_v27 = vld [vmem:[#allocation2 + $0x18] sm:$0xe] }
  0xad   : > { %v6035_v29 = vld [vmem:[#allocation2 + $0x2c] sm:$0x1]  ;;  %v846_v44 = vshll.u32 %v6033_v35, 16  ;;  %v850_v0 = vshrl.u32 %v6033_v35, 16  ;;  %v2285_v11 = vrot.slane %v2283_v55, 5  ;;  %v2291_v12 = vrot.slane %v2289_v47, 5 }
  0xae   : > { %v1197_v42 = vpack.c.b16 %v1181_v5, %v1180_v31  ;;  %v844_v50 = vrot.slane %v843_v37, 4  ;;  %v856_v51 = vshll.u32 %v6035_v29, 16  ;;  %v2295_v34 = vrot.slane %v2293_v53, 4 }
  0xaf   : > { %v848_v56 = vrot.slane %v846_v44, 5  ;;  %v852_v58 = vrot.slane %v850_v0, 4  ;;  %v4101_v40 = vsel %vm1247_vm0, %v5235_v61, 0  ;;  %v3160_v60 = vsel %vm1247_vm0, %v5137_v62, 0 }
  0xb0   : > { %4909 = vmatmul.msk.bf16.gmra.mxu3 %vm1198_vm12, %v1197_v42  ;;  %v858_v1 = vrot.slane %v856_v51, 5  ;;  %3169 = vmatpush.bf16.msra.mxu1 %v3160_v60  ;;  %v4499_v43 = vsel %vm1247_vm0, %v5268_v3, 0  ;;  %v2286_v18 = vor.u32 %v2285_v11, %v2282_v8  ;;  %v1757_v19 = vpack.c.b16 %v1726_v4, %v1725_v57  ;;  %v2235_v42 = vld [vmem:[#allocation2 + $0x1c] sm:$0xf]  ;;  %v2236_v8 = vld [vmem:[#allocation2 + $0x20] sm:$0x1] }
  0xb1   : > { %v849_v63 = vsel %vm5625_vm11, %v844_v50, %v848_v56  ;;  %v853_v52 = vor.u32 %v852_v58, %v848_v56  ;;  %4110 = vmatpush.bf16.msra.mxu3 %v4101_v40  ;;  %4508 = vmatpush.bf16.msra.mxu0 %v4499_v43  ;;  %v2296_v20 = vor.u32 %v2295_v34, %v2291_v12  ;;  %v2299_v21 = vshll.u32 %v2233_v15, 16  ;;  %v5290_v50 = vld [vmem:[#allocation2 + $0xc] sm:$0xff]  ;;  %v5306_v15 = vld [vmem:[#allocation2 + $0x18] sm:$0xff] }
  0xb2   : > { %4974 = vmatmul.msk.bf16.vlgmr.msrb.gmra.mxu1 %vm1198_vm12, %v5289_v54  ;;  %v1156_v48 = vunpack.c.l.b16 %v849_v63  ;;  %v1620_v24 = vrot.slane %v5868_v41, 5  ;;  %v2287_v5 = vrot.slane %v2286_v18, 4  ;;  %v4992_v31 = vrot.slane %v1562_v27, 9 }
  0xb3   : > { %v854_v14 = vrot.slane %v853_v52, 4  ;;  %v2297_v28 = vrot.slane %v2296_v20, 4  ;;  %v2301_v23 = vrot.slane %v2299_v21, 5  ;;  %v1627_v32 = vrot.slane %v5951_v45, 5  ;;  %v5291_v20 = vld [vmem:[#allocation2 + $0x18] sm:$0xff] }
  0xb4   : > { %v4991_v33 = vrot.slane %v1561_v16, 9  ;;  %v1622_v37 = vrot.slane %v1620_v24, 4  ;;  %v1623_v39 = vrot.slane %v5893_v25, 5  ;;  %v1630_v41 = vrot.slane %v5966_v7, 5 }
  0xb5   : > { %v859_v2 = vsel %vm5625_vm11, %v854_v14, %v858_v1  ;;  %v1628_v44 = vsel %vm6028_vm15, %v4992_v31, %v1627_v32  ;;  %v1629_v0 = vrot.slane %v1627_v32, 4  ;;  %v2292_v49 = vsel %vm5625_vm11, %v2287_v5, %v2291_v12  ;;  %v2239_v31 = vld [vmem:[#allocation2 + $0x2c] sm:$0x1] }
  0xb6   : > { %v1157_v17 = vunpack.c.l.b16 %v859_v2  ;;  %v2304_v51 = vshrl.u32 %v2234_v30, 16  ;;  %v2307_v54 = vshll.u32 %v2234_v30, 16  ;;  %v1729_v55 = vunpack.c.l.b16 %v1628_v44 }
  0xb7   : > { %v2302_v45 = vsel %vm5625_vm11, %v2297_v28, %v2301_v23  ;;  %v2313_v25 = vshll.u32 %v2235_v42, 16  ;;  %v2317_v47 = vshrl.u32 %v2235_v42, 16  ;;  %v1631_v7 = vsel %vm6028_vm15, %v1629_v0, %v1630_v41  ;;  %v1563_v42 = vld [vmem:[#allocation2 + $0x24] sm:$0xe] }
  0xb8   : > { %v1185_v22 = vpack.c.b16 %v1157_v17, %v1156_v48  ;;  %v1621_v56 = vsel %vm6028_vm15, %v4991_v33, %v1620_v24  ;;  %v1624_v58 = vsel %vm6028_vm15, %v1622_v37, %v1623_v39  ;;  %v1730_v59 = vunpack.c.l.b16 %v1631_v7  ;;  %v2237_v48 = vld [vmem:[#allocation2 + $0x24] sm:$0xf]  ;;  %v2238_v17 = vld [vmem:[#allocation2 + $0x28] sm:$0xf] }
  0xb9   : > { %v2665_v53 = vunpack.c.l.b16 %v2292_v49  ;;  %v2666_v61 = vunpack.c.l.b16 %v2302_v45  ;;  %v2306_v62 = vrot.slane %v2304_v51, 4  ;;  %v2309_v63 = vrot.slane %v2307_v54, 5  ;;  %v5307_v51 = vld [vmem:[#allocation2 + $0x24] sm:$0xff]  ;;  %v2240_v45 = vld [vmem:[#allocation2 + $0x30] sm:$0xf] }
  0xba   : > { %4897 = vmatmul.msk.bf16.gmra.mxu0 %vm1198_vm12, %v1185_v22  ;;  %v1759_v52 = vpack.c.b16 %v1730_v59, %v1729_v55  ;;  %v1727_v1 = vunpack.c.l.b16 %v1621_v56  ;;  %v1728_v57 = vunpack.c.l.b16 %v1624_v58  ;;  %v2315_v3 = vrot.slane %v2313_v25, 5  ;;  %v2241_v25 = vld [vmem:[#allocation2 + $0x34] sm:$0xf]  ;;  %v5292_v7 = vld [vmem:[#allocation2 + $0x24] sm:$0xff] }
  0xbb   : > { %5007 = vmatmul.msk.bf16.vlgmr.msrb.gmra.mxu2 %vm1198_vm12, %v1757_v19  ;;  %v2319_v4 = vrot.slane %v2317_v47, 4  ;;  %v2697_v11 = vpack.c.b16 %v2666_v61, %v2665_v53  ;;  %v2310_v12 = vor.u32 %v2309_v63, %v2306_v62  ;;  %v2323_v40 = vshll.u32 %v2236_v8, 16 }
  0xbc   : > { %v1758_v14 = vpack.c.b16 %v1728_v57, %v1727_v1  ;;  %v2328_v18 = vshrl.u32 %v2237_v48, 16  ;;  %v2331_v21 = vshll.u32 %v2237_v48, 16  ;;  %v2337_v22 = vshll.u32 %v2238_v17, 16 }
  0xbd   : > { %v2320_v34 = vor.u32 %v2319_v4, %v2315_v3  ;;  %v2311_v60 = vrot.slane %v2310_v12, 4  ;;  %v2325_v2 = vrot.slane %v2323_v40, 5  ;;  %v2341_v24 = vshrl.u32 %v2238_v17, 16  ;;  %v2242_v12 = vld [vmem:[#allocation2 + $0x38] sm:$0x1] }
  0xbe   : > { %v2330_v5 = vrot.slane %v2328_v18, 4  ;;  %v2333_v28 = vrot.slane %v2331_v21, 5  ;;  %v2339_v23 = vrot.slane %v2337_v22, 5  ;;  %v2347_v39 = vshll.u32 %v2239_v31, 16  ;;  %v2243_v17 = vld [vmem:[#allocation2 + $0x3c] sm:$0xf] }
  0xbf   : > { %v2321_v43 = vrot.slane %v2320_v34, 4  ;;  %v2316_v19 = vsel %vm5625_vm11, %v2311_v60, %v2315_v3  ;;  %v2343_v30 = vrot.slane %v2341_v24, 4  ;;  %v1634_v41 = vrot.slane %v6033_v35, 5  ;;  %v2244_v18 = vld [vmem:[#allocation2 + $0x40] sm:$0xf] }
  0xc0   : > { %5088 = vmatmul.msk.bf16.vlgmr.msrb.gmra.mxu3 %vm1198_vm12, %v5305_v26  ;;  %v2667_v26 = vunpack.c.l.b16 %v2316_v19  ;;  %v2334_v33 = vor.u32 %v2333_v28, %v2330_v5  ;;  %v2349_v49 = vrot.slane %v2347_v39, 5  ;;  %v1637_v55 = vrot.slane %v6035_v29, 5  ;;  %v5308_v19 = vld [vmem:[#allocation2 + $0x30] sm:$0xff] }
  0xc1   : > { %v2326_v16 = vsel %vm5625_vm11, %v2321_v43, %v2325_v2  ;;  %v2344_v37 = vor.u32 %v2343_v30, %v2339_v23  ;;  %v1636_v54 = vrot.slane %v1634_v41, 4  ;;  %v2352_v58 = vshrl.u32 %v2240_v45, 16  ;;  %v1564_v2 = vld [vmem:[#allocation2 + $0x30] sm:$0xe] }
  0xc2   : > { %4975 = vmatmul.msk.bf16.gmra.mxu1 %vm1198_vm12, %v5290_v50  ;;  %v2668_v27 = vunpack.c.l.b16 %v2326_v16  ;;  %v2335_v44 = vrot.slane %v2334_v33, 4  ;;  %v4993_v50 = vrot.slane %v1563_v42, 9  ;;  %v2355_v53 = vshll.u32 %v2240_v45, 16 }
  0xc3   : > { %v2345_v0 = vrot.slane %v2344_v37, 4  ;;  %v1638_v59 = vsel %vm6028_vm15, %v1636_v54, %v1637_v55  ;;  %v2361_v29 = vshll.u32 %v2241_v25, 16  ;;  %v2365_v61 = vshrl.u32 %v2241_v25, 16  ;;  %v2245_v54 = vld [vmem:[#allocation2 + $0x44] sm:$0x1] }
  0xc4   : > { %v2698_v32 = vpack.c.b16 %v2668_v27, %v2667_v26  ;;  %v2340_v47 = vsel %vm5625_vm11, %v2335_v44, %v2339_v23  ;;  %v1635_v56 = vsel %vm6028_vm15, %v4993_v50, %v1634_v41  ;;  %v1732_v1 = vunpack.c.l.b16 %v1638_v59  ;;  %v5447_v26 = vld [vmem:[#allocation2 + $0x38] sm:$0x1] }
  0xc5   : > { %v2350_v35 = vsel %vm5625_vm11, %v2345_v0, %v2349_v49  ;;  %v2669_v62 = vunpack.c.l.b16 %v2340_v47  ;;  %v2354_v57 = vrot.slane %v2352_v58, 4  ;;  %v2357_v3 = vrot.slane %v2355_v53, 5 }
  0xc6   : > { %v2670_v63 = vunpack.c.l.b16 %v2350_v35  ;;  %v2363_v4 = vrot.slane %v2361_v29, 5  ;;  %v2367_v8 = vrot.slane %v2365_v61, 4  ;;  %v2371_v48 = vshll.u32 %v2242_v12, 16  ;;  %v5448_v29 = vld [vmem:[#allocation2 + $0x40] sm:$0xf] }
  0xc7   : > { %v2358_v40 = vor.u32 %v2357_v3, %v2354_v57  ;;  %v4994_v24 = vrot.slane %v1564_v2, 9  ;;  %v1644_v5 = vrot.slane %v5447_v26, 5  ;;  %v2376_v27 = vshrl.u32 %v2243_v17, 16  ;;  %v6127_v57 = vpop.f32.mrf.mxu0  ;;  %v5309_v3 = vld [vmem:[#allocation2 + $0x3c] sm:$0xff] }
  0xc8   : > { %v2368_v60 = vor.u32 %v2367_v8, %v2363_v4  ;;  %v2373_v22 = vrot.slane %v2371_v48, 5  ;;  %v2379_v28 = vshll.u32 %v2243_v17, 16  ;;  %v2385_v23 = vshll.u32 %v2244_v18, 16  ;;  %v2247_v8 = vld [vmem:[#allocation2 + $0x4c] sm:$0xf] }
  0xc9   : > { %v2389_v30 = vshrl.u32 %v2244_v18, 16  ;;  %v2378_v41 = vrot.slane %v2376_v27, 4  ;;  %v1648_v61 = vrot.slane %v5448_v29, 5  ;;  %v2409_v18 = vshll.u32 %v2247_v8, 16 }
  0xca   : > { %5105 = vmatmul.msk.bf16.vlgmr.msrb.gmra.mxu0 %vm1198_vm12, %v2697_v11  ;;  %v6104_v11 = vpop.f32.mrf.mxu1  ;;  %v2369_v21 = vrot.slane %v2368_v60, 4  ;;  %v2381_v44 = vrot.slane %v2379_v28, 5  ;;  %v2387_v0 = vrot.slane %v2385_v23, 5  ;;  %vm4792_vm0 = vcmask 1040384  }
  0xcb   : > { %5008 = vmatmul.msk.bf16.gmra.mxu2 %vm1198_vm12, %v1758_v14  ;;  %v2699_v14 = vpack.c.b16 %v2670_v63, %v2669_v62  ;;  %v2391_v49 = vrot.slane %v2389_v30, 4  ;;  %v2411_v28 = vrot.slane %v2409_v18, 5 }
  0xcc   : > { %v2374_v37 = vsel %vm5625_vm11, %v2369_v21, %v2373_v22  ;;  %v2382_v47 = vor.u32 %v2381_v44, %v2378_v41 }
  0xcd   : > { %v2392_v35 = vor.u32 %v2391_v49, %v2387_v0 }
  0xce   : > { %v2383_v62 = vrot.slane %v2382_v47, 4 }
  0xcf   : > { %v2393_v63 = vrot.slane %v2392_v35, 4 }
  0xd0   : > { %5089 = vmatmul.msk.bf16.gmra.mxu3 %vm1198_vm12, %v5306_v15  ;;  %v5446_v15 = vld [vmem:[#allocation2 + $0x34] sm:$0xf]  ;;  %v2388_v48 = vsel %vm5625_vm11, %v2383_v62, %v2387_v0 }
  0xd1   : > { %v1641_v43 = vrot.slane %v5446_v15, 5 }
  0xd2   : > { %4976 = vmatmul.msk.bf16.gmra.mxu1 %vm1198_vm12, %v5291_v20  ;;  %v2359_v20 = vrot.slane %v2358_v40, 4  ;;  %v6108_v31 = vpop.f32.mrf.mxu1  ;;  %v5449_v40 = vld [vmem:[#allocation2 + $0x44] sm:$0x1] }
  0xd3   : > { %v1643_v16 = vrot.slane %v1641_v43, 4  ;;  %v1642_v39 = vsel %vm6028_vm15, %v4994_v24, %v1641_v43  ;;  %v1651_v60 = vrot.slane %v5449_v40, 5  ;;  %v5294_v43 = vld [vmem:[#allocation2 + $0x3c] sm:$0xff]  ;;  %v2673_v24 = vunpack.c.l.b16 %v2388_v48 }
  0xd4   : > { %v2364_v33 = vsel %vm5625_vm11, %v2359_v20, %v2363_v4  ;;  %v1733_v45 = vunpack.c.l.b16 %v1642_v39  ;;  %v2246_v4 = vld [vmem:[#allocation2 + $0x48] sm:$0xf] }
  0xd5   : > { %v1645_v42 = vsel %vm6028_vm15, %v1643_v16, %v1644_v5  ;;  %v2671_v50 = vunpack.c.l.b16 %v2364_v33  ;;  %v2400_v2 = vshrl.u32 %v2246_v4, 16  ;;  %v2403_v17 = vshll.u32 %v2246_v4, 16  ;;  %v2248_v33 = vld [vmem:[#allocation2 + $0x50] sm:$0x1]  ;;  %v5295_v4 = vld [vmem:[#allocation2 + $0x48] sm:$0xff] }
  0xd6   : > { %v1734_v25 = vunpack.c.l.b16 %v1645_v42  ;;  %v2419_v44 = vshll.u32 %v2248_v33, 16 }
  0xd7   : > { %v2402_v5 = vrot.slane %v2400_v2, 4  ;;  %v2405_v27 = vrot.slane %v2403_v17, 5 }
  0xd8   : > { %v1761_v59 = vpack.c.b16 %v1734_v25, %v1733_v45  ;;  %v2421_v47 = vrot.slane %v2419_v44, 5  ;;  %v1567_v44 = vld [vmem:[#allocation2 + $0x54] sm:$0xe] }
  0xd9   : > { %v2406_v42 = vor.u32 %v2405_v27, %v2402_v5  ;;  %v2251_v27 = vld [vmem:[#allocation2 + $0x5c] sm:$0x1] }
  0xda   : > { %5106 = vmatmul.msk.bf16.gmra.mxu0 %vm1198_vm12, %v2698_v32  ;;  %v5293_v32 = vld [vmem:[#allocation2 + $0x30] sm:$0xff] }
  0xdb   : > { %5009 = vmatmul.msk.bf16.gmra.mxu2 %vm1198_vm12, %v1759_v52  ;;  %v1731_v52 = vunpack.c.l.b16 %v1635_v56  ;;  %v2407_v45 = vrot.slane %v2406_v42, 4  ;;  %v1662_v42 = vrot.slane %v5978_v38, 5 }
  0xdd   : > { %v1760_v34 = vpack.c.b16 %v1732_v1, %v1731_v52  ;;  %v1565_v1 = vld [vmem:[#allocation2 + $0x3c] sm:$0xe] }
  0xdf   : > { %v6120_v55 = vpop.f32.mrf.mxu2 }
  0xe0   : > { %5090 = vmatmul.msk.bf16.gmra.mxu3 %vm1198_vm12, %v5307_v51  ;;  %v2672_v51 = vunpack.c.l.b16 %v2374_v37  ;;  %v6146_v37 = vpop.f32.mrf.mxu0 }
  0xe2   : > { %4977 = vmatmul.msk.bf16.gmra.mxu1 %vm1198_vm12, %v5292_v7  ;;  %v2395_v7 = vshll.u32 %v2245_v54, 16  ;;  %v2700_v56 = vpack.c.b16 %v2672_v51, %v2671_v50  ;;  %v6122_v58 = vpop.f32.mrf.mxu3  ;;  %v1566_v50 = vld [vmem:[#allocation2 + $0x48] sm:$0xe]  ;;  %v5450_v51 = vld [vmem:[#allocation2 + $0x4c] sm:$0xf] }
  0xe3   : > { %v6124_v53 = vpop.f32.mrf.mxu1  ;;  %v1655_v54 = vrot.slane %v5450_v51, 5 }
  0xe4   : > { %v2397_v52 = vrot.slane %v2395_v7, 5  ;;  %v4996_v7 = vrot.slane %v1566_v50, 9  ;;  %v5311_v50 = vld [vmem:[#allocation2 + $0x54] sm:$0xff] }
  0xe5   : > { %v1657_v29 = vrot.slane %v1655_v54, 4 }
  0xe6   : > { %v2398_v15 = vsel %vm5625_vm11, %v2393_v63, %v2397_v52  ;;  %v2249_v63 = vld [vmem:[#allocation2 + $0x54] sm:$0xf]  ;;  %v2250_v52 = vld [vmem:[#allocation2 + $0x58] sm:$0xf] }
  0xe7   : > { %v6130_v12 = vpop.f32.mrf.mxu2  ;;  %v2674_v16 = vunpack.c.l.b16 %v2398_v15  ;;  %v2433_v48 = vshll.u32 %v2250_v52, 16  ;;  %v2437_v15 = vshrl.u32 %v2250_v52, 16 }
  0xe9   : > { %v2701_v39 = vpack.c.b16 %v2674_v16, %v2673_v24  ;;  %v2435_v24 = vrot.slane %v2433_v48, 5  ;;  %v2439_v16 = vrot.slane %v2437_v15, 4 }
  0xea   : > { %5107 = vmatmul.msk.bf16.gmra.mxu0 %vm1198_vm12, %v2699_v14  ;;  %v4995_v14 = vrot.slane %v1565_v1, 9  ;;  %v6137_v20 = vpop.f32.mrf.mxu3  ;;  %v2412_v1 = vsel %vm5625_vm11, %v2407_v45, %v2411_v28 }
  0xeb   : > { %5010 = vmatmul.msk.bf16.gmra.mxu2 %vm1198_vm12, %v1760_v34  ;;  %v1650_v34 = vrot.slane %v1648_v61, 4  ;;  %v6143_v26 = vpop.f32.mrf.mxu1  ;;  %v2675_v2 = vunpack.c.l.b16 %v2412_v1  ;;  %v2440_v33 = vor.u32 %v2439_v16, %v2435_v24 }
  0xec   : > { %v1649_v21 = vsel %vm6028_vm15, %v4995_v14, %v1648_v61  ;;  %v5451_v61 = vld [vmem:[#allocation2 + $0x50] sm:$0x1]  ;;  %v2424_v14 = vshrl.u32 %v2249_v63, 16 }
  0xed   : > { %v1652_v22 = vsel %vm6028_vm15, %v1650_v34, %v1651_v60  ;;  %v1735_v30 = vunpack.c.l.b16 %v1649_v21  ;;  %v1658_v62 = vrot.slane %v5451_v61, 5  ;;  %v2427_v60 = vshll.u32 %v2249_v63, 16  ;;  %v5296_v61 = vld [vmem:[#allocation2 + $0x54] sm:$0xff] }
  0xee   : > { %v2426_v21 = vrot.slane %v2424_v14, 4 }
  0xef   : > { %v6148_v0 = vpop.f32.mrf.mxu2  ;;  %v1659_v40 = vsel %vm6028_vm15, %v1657_v29, %v1658_v62  ;;  %v2253_v29 = vld [vmem:[#allocation2 + $0x64] sm:$0xf] }
  0xf0   : > { %5091 = vmatmul.msk.bf16.gmra.mxu3 %vm1198_vm12, %v5308_v19  ;;  %v2413_v19 = vshrl.u32 %v2247_v8, 16  ;;  %v1656_v8 = vsel %vm6028_vm15, %v4996_v7, %v1655_v54  ;;  %v2441_v54 = vrot.slane %v2440_v33, 4  ;;  %v1664_v7 = vrot.slane %v1662_v42, 4 }
  0xf1   : > { %v1737_v18 = vunpack.c.l.b16 %v1656_v8  ;;  %v2461_v8 = vshrl.u32 %v2253_v29, 16 }
  0xf2   : > { %4978 = vmatmul.msk.bf16.gmra.mxu1 %vm1198_vm12, %v5293_v32  ;;  %v2415_v23 = vrot.slane %v2413_v19, 4  ;;  %v1736_v32 = vunpack.c.l.b16 %v1652_v22  ;;  %v1738_v19 = vunpack.c.l.b16 %v1659_v40  ;;  %v2429_v22 = vrot.slane %v2427_v60, 5 }
  0xf3   : > { %v6151_v35 = vpop.f32.mrf.mxu3 }
  0xf4   : > { %v2416_v41 = vor.u32 %v2415_v23, %v2411_v28  ;;  %v1762_v49 = vpack.c.b16 %v1736_v32, %v1735_v30  ;;  %v6162_v34 = vpop.f32.mrf.mxu0  ;;  %v1763_v30 = vpack.c.b16 %v1738_v19, %v1737_v18  ;;  %v2430_v32 = vor.u32 %v2429_v22, %v2426_v21 }
  0xf5   : > { %v2463_v21 = vrot.slane %v2461_v8, 4 }
  0xf6   : > { %v2417_v25 = vrot.slane %v2416_v41, 4  ;;  %v2431_v51 = vrot.slane %v2430_v32, 4 }
  0xf8   : > { %v2436_v52 = vsel %vm5625_vm11, %v2431_v51, %v2435_v24  ;;  %v2254_v24 = vld [vmem:[#allocation2 + $0x68] sm:$0x1]  ;;  %v5312_v51 = vld [vmem:[#allocation2 + $0x60] sm:$0xff] }
  0xf9   : > { %v2677_v40 = vunpack.c.l.b16 %v2436_v52  ;;  %v2467_v32 = vshll.u32 %v2254_v24, 16 }
  0xfa   : > { %5108 = vmatmul.msk.bf16.gmra.mxu0 %vm1198_vm12, %v2700_v56  ;;  %v5310_v56 = vld [vmem:[#allocation2 + $0x48] sm:$0xff] }
  0xfb   : > { %5011 = vmatmul.msk.bf16.gmra.mxu2 %vm1198_vm12, %v1761_v59  ;;  %v6170_v5 = vpop.f32.mrf.mxu3 }
  0xfc   : > { %v6175_v41 = vpop.f32.mrf.mxu0 }
 0x100   : > { %5092 = vmatmul.msk.bf16.gmra.mxu3 %vm1198_vm12, %v5309_v3  ;;  %v2422_v3 = vsel %vm5625_vm11, %v2417_v25, %v2421_v47  ;;  %v2252_v25 = vld [vmem:[#allocation2 + $0x60] sm:$0xf]  ;;  %v4997_v47 = vrot.slane %v1567_v44, 9 }
 0x101   : > { %v2676_v17 = vunpack.c.l.b16 %v2422_v3  ;;  %v2448_v62 = vshrl.u32 %v2252_v25, 16  ;;  %v2451_v63 = vshll.u32 %v2252_v25, 16  ;;  %v2469_v25 = vrot.slane %v2467_v32, 5 }
 0x102   : > { %4979 = vmatmul.msk.bf16.gmra.mxu1 %vm1198_vm12, %v5294_v43  ;;  %v6154_v59 = vpop.f32.mrf.mxu1  ;;  %v6167_v43 = vpop.f32.mrf.mxu2 }
 0x103   : > { %v2702_v23 = vpack.c.b16 %v2676_v17, %v2675_v2  ;;  %v2450_v48 = vrot.slane %v2448_v62, 4  ;;  %v2453_v15 = vrot.slane %v2451_v63, 5  ;;  %v2256_v62 = vld [vmem:[#allocation2 + $0x70] sm:$0xf] }
 0x10a   : > { %5109 = vmatmul.msk.bf16.gmra.mxu0 %vm1198_vm12, %v2701_v39  ;;  %v6172_v28 = vpop.f32.mrf.mxu1  ;;  %v2443_v39 = vshll.u32 %v2251_v27, 16 }
 0x10b   : > { %5012 = vmatmul.msk.bf16.gmra.mxu2 %vm1198_vm12, %v1762_v49 }
 0x10c   : > { %v2445_v45 = vrot.slane %v2443_v39, 5 }
 0x10e   : > { %v6178_v49 = vpop.f32.mrf.mxu2  ;;  %v2446_v1 = vsel %vm5625_vm11, %v2441_v54, %v2445_v45 }
 0x10f   : > { %v2678_v60 = vunpack.c.l.b16 %v2446_v1  ;;  %v5297_v1 = vld [vmem:[#allocation2 + $0x60] sm:$0xff] }
 0x110   : > { %5093 = vmatmul.msk.bf16.gmra.mxu3 %vm1198_vm12, %v5310_v56  ;;  %v1665_v56 = vrot.slane %v5986_v46, 5  ;;  %v1663_v46 = vsel %vm6028_vm15, %v4997_v47, %v1662_v42  ;;  %v5452_v42 = vld [vmem:[#allocation2 + $0x64] sm:$0xf]  ;;  %v2255_v47 = vld [vmem:[#allocation2 + $0x6c] sm:$0xf] }
 0x111   : > { %v1739_v17 = vunpack.c.l.b16 %v1663_v46  ;;  %v2703_v16 = vpack.c.b16 %v2678_v60, %v2677_v40  ;;  %v1669_v44 = vrot.slane %v5452_v42, 5  ;;  %v2475_v8 = vshll.u32 %v2255_v47, 16 }
 0x112   : > { %4980 = vmatmul.msk.bf16.gmra.mxu1 %vm1198_vm12, %v5295_v4  ;;  %v6182_v38 = vpop.f32.mrf.mxu3  ;;  %v2457_v4 = vshll.u32 %v2253_v29, 16  ;;  %v1666_v14 = vsel %vm6028_vm15, %v1664_v7, %v1665_v56  ;;  %v5453_v7 = vld [vmem:[#allocation2 + $0x68] sm:$0x1]  ;;  %v2481_v60 = vshll.u32 %v2256_v62, 16 }
 0x113   : > { %v1740_v18 = vunpack.c.l.b16 %v1666_v14  ;;  %v1672_v56 = vrot.slane %v5453_v7, 5 }
 0x114   : > { %v2459_v19 = vrot.slane %v2457_v4, 5  ;;  %v2472_v4 = vshrl.u32 %v2255_v47, 16  ;;  %v2483_v32 = vrot.slane %v2481_v60, 5  ;;  %v2259_v60 = vld [vmem:[#allocation2 + $0x7c] sm:$0xf] }
 0x115   : > { %v1764_v27 = vpack.c.b16 %v1740_v18, %v1739_v17 }
 0x116   : > { %v6198_v22 = vpop.f32.mrf.mxu2 }
 0x117   : > { %v6196_v2 = vpop.f32.mrf.mxu0 }
 0x11a   : > { %5110 = vmatmul.msk.bf16.gmra.mxu0 %vm1198_vm12, %v2702_v23  ;;  %v2454_v23 = vor.u32 %v2453_v15, %v2450_v48  ;;  %v6202_v39 = vpop.f32.mrf.mxu3  ;;  %v2485_v48 = vshrl.u32 %v2256_v62, 16 }
 0x11b   : > { %5013 = vmatmul.msk.bf16.gmra.mxu2 %vm1198_vm12, %v1763_v30  ;;  %v2464_v30 = vor.u32 %v2463_v21, %v2459_v19  ;;  %6957 = vst [vmem:[#allocation3_spill] sm:$0xff] %v6202_v39 }
 0x11c   : > { %v2455_v54 = vrot.slane %v2454_v23, 4  ;;  %v2487_v42 = vrot.slane %v2485_v48, 4  ;;  %v5455_v48 = vld [vmem:[#allocation2 + $0x74] sm:$0x1] }
 0x11d   : > { %v2465_v45 = vrot.slane %v2464_v30, 4  ;;  %v2257_v30 = vld [vmem:[#allocation2 + $0x74] sm:$0x1] }
 0x11e   : > { %v2460_v46 = vsel %vm5625_vm11, %v2455_v54, %v2459_v19  ;;  %v2477_v19 = vrot.slane %v2475_v8, 5  ;;  %v2491_v54 = vshll.u32 %v2257_v30, 16  ;;  %v2488_v47 = vor.u32 %v2487_v42, %v2483_v32  ;;  %v5313_v8 = vld [vmem:[#allocation2 + $0x6c] sm:$0xff] }
 0x11f   : > { %v6189_v3 = vpop.f32.mrf.mxu1  ;;  %v6206_v63 = vpop.f32.mrf.mxu0  ;;  %v2470_v14 = vsel %vm5625_vm11, %v2465_v45, %v2469_v25  ;;  %v2679_v18 = vunpack.c.l.b16 %v2460_v46  ;;  %v2505_v42 = vshll.u32 %v2259_v60, 16 }
 0x120   : > { %5094 = vmatmul.msk.bf16.gmra.mxu3 %vm1198_vm12, %v5311_v50  ;;  %v1568_v50 = vld [vmem:[#allocation2 + $0x60] sm:$0xe]  ;;  %v2680_v21 = vunpack.c.l.b16 %v2470_v14  ;;  %v2489_v46 = vrot.slane %v2488_v47, 4  ;;  %v2258_v14 = vld [vmem:[#allocation2 + $0x78] sm:$0xf]  ;;  %v2509_v47 = vshrl.u32 %v2259_v60, 16 }
 0x121   : > { %v4998_v29 = vrot.slane %v1568_v50, 9  ;;  %v2499_v30 = vshll.u32 %v2258_v14, 16 }
 0x122   : > { %4981 = vmatmul.msk.bf16.gmra.mxu1 %vm1198_vm12, %v5296_v61  ;;  %v1671_v61 = vrot.slane %v1669_v44, 4  ;;  %v2704_v50 = vpack.c.b16 %v2680_v21, %v2679_v18 }
 0x123   : > { %v1670_v15 = vsel %vm6028_vm15, %v4998_v29, %v1669_v44 }
 0x124   : > { %v1673_v17 = vsel %vm6028_vm15, %v1671_v61, %v1672_v56  ;;  %v5454_v56 = vld [vmem:[#allocation2 + $0x70] sm:$0xf]  ;;  %v1569_v61 = vld [vmem:[#allocation2 + $0x6c] sm:$0xe] }
 0x125   : > { %v1742_v23 = vunpack.c.l.b16 %v1673_v17  ;;  %v1676_v29 = vrot.slane %v5454_v56, 5  ;;  %v4999_v17 = vrot.slane %v1569_v61, 9 }
 0x127   : > { %v6200_v33 = vpop.f32.mrf.mxu1  ;;  %v1678_v18 = vrot.slane %v1676_v29, 4 }
 0x12a   : > { %5111 = vmatmul.msk.bf16.gmra.mxu0 %vm1198_vm12, %v2703_v16  ;;  %v2474_v16 = vrot.slane %v2472_v4, 4  ;;  %v2493_v4 = vrot.slane %v2491_v54, 5 }
 0x12b   : > { %5014 = vmatmul.msk.bf16.gmra.mxu2 %vm1198_vm12, %v1764_v27  ;;  %v1741_v27 = vunpack.c.l.b16 %v1670_v15  ;;  %v1679_v15 = vrot.slane %v5455_v48, 5 }
 0x12c   : > { %v2478_v44 = vor.u32 %v2477_v19, %v2474_v16 }
 0x12d   : > { %v1765_v25 = vpack.c.b16 %v1742_v23, %v1741_v27  ;;  %v5298_v27 = vld [vmem:[#allocation2 + $0x6c] sm:$0xff]  ;;  %v2496_v23 = vshrl.u32 %v2258_v14, 16  ;;  %v2501_v14 = vrot.slane %v2499_v30, 5 }
 0x12e   : > { %v6208_v52 = vpop.f32.mrf.mxu2 }
 0x12f   : > { %v1480_v40 = vpop.f32.mrf.mxu1 }
 0x130   : > { %5095 = vmatmul.msk.bf16.gmra.mxu3 %vm1198_vm12, %v5312_v51  ;;  %v1481_v21 = vadd.f32 %v1480_v40, %v6127_v57  ;;  %v1677_v57 = vsel %vm6028_vm15, %v4999_v17, %v1676_v29  ;;  %v1680_v40 = vsel %vm6028_vm15, %v1678_v18, %v1679_v15 }
 0x132   : > { %4982 = vmatmul.msk.bf16.gmra.mxu1 %vm1198_vm12, %v5297_v1  ;;  %v2479_v1 = vrot.slane %v2478_v44, 4  ;;  %v2494_v44 = vsel %vm5625_vm11, %v2489_v46, %v2493_v4  ;;  %v1744_v4 = vunpack.c.l.b16 %v1680_v40  ;;  %v2511_v46 = vrot.slane %v2509_v47, 4 }
 0x133   : > { %v6219_v24 = vpop.f32.mrf.mxu3  ;;  %v2682_v56 = vunpack.c.l.b16 %v2494_v44 }
 0x134   : > { %6958 = vst [vmem:[#allocation4_spill] sm:$0xff] %v6219_v24  ;;  %v2484_v16 = vsel %vm5625_vm11, %v2479_v1, %v2483_v32  ;;  %v2498_v1 = vrot.slane %v2496_v23, 4 }
 0x135   : > { %v2681_v32 = vunpack.c.l.b16 %v2484_v16 }
 0x136   : > { %v6222_v51 = vpop.f32.mrf.mxu2  ;;  %v2502_v17 = vor.u32 %v2501_v14, %v2498_v1 }
 0x137   : > { %v6224_v45 = vpop.f32.mrf.mxu0  ;;  %v1482_v7 = vpop.f32.mrf.mxu1 }
 0x138   : > { %v1483_v60 = vadd.f32 %v1482_v7, %v6146_v37  ;;  %v5314_v7 = vld [vmem:[#allocation2 + $0x78] sm:$0xff]  ;;  %v2503_v40 = vrot.slane %v2502_v17, 4 }
 0x13a   : > { %5112 = vmatmul.msk.bf16.gmra.mxu0 %vm1198_vm12, %v2704_v50 }
 0x13b   : > { %v6227_v62 = vpop.f32.mrf.mxu3  ;;  %5015 = vmatmul.msk.bf16.gmra.mxu2 %vm1198_vm12, %v1765_v25 }
 0x13c   : > { %6959 = vst [vmem:[#allocation5_spill] sm:$0xff] %v6227_v62  ;;  %v1743_v62 = vunpack.c.l.b16 %v1677_v57  ;;  %v2262_v57 = vld [vmem:[#allocation2 + $0x88] sm:$0xf] }
 0x13e   : > { %v1833_v19 = vpop.f32.mrf.mxu2  ;;  %v1766_v18 = vpack.c.b16 %v1744_v4, %v1743_v62 }
 0x13f   : > { %v6233_v50 = vpop.f32.mrf.mxu0  ;;  %v1913_v54 = vadd.f32 %v1833_v19, %v1481_v21  ;;  %v1485_v25 = vpop.f32.mrf.mxu1  ;;  %v2260_v21 = vld [vmem:[#allocation2 + $0x80] sm:$0x1]  ;;  %v2705_v19 = vpack.c.b16 %v2682_v56, %v2681_v32 }
 0x140   : > { %5096 = vmatmul.msk.bf16.gmra.mxu3 %vm1198_vm12, %v5313_v8  ;;  %v2507_v8 = vrot.slane %v2505_v42, 5  ;;  %v2515_v44 = vshll.u32 %v2260_v21, 16  ;;  %v1570_v42 = vld [vmem:[#allocation2 + $0x78] sm:$0xe]  ;;  %v5457_v56 = vld [vmem:[#allocation2 + $0x80] sm:$0x1] }
 0x141   : > { %v5000_v1 = vrot.slane %v1570_v42, 9  ;;  %v2533_v21 = vshrl.u32 %v2262_v57, 16 }
 0x142   : > { %4983 = vmatmul.msk.bf16.gmra.mxu1 %vm1198_vm12, %v5298_v27  ;;  %v2512_v16 = vor.u32 %v2511_v46, %v2507_v8  ;;  %v5456_v27 = vld [vmem:[#allocation2 + $0x7c] sm:$0xf]  ;;  %v2517_v62 = vrot.slane %v2515_v44, 5  ;;  %v2529_v46 = vshll.u32 %v2262_v57, 16  ;;  %v2508_v17 = vsel %vm5625_vm11, %v2503_v40, %v2507_v8 }
 0x143   : > { %v2119_v61 = vpop.f32.mrf.mxu3  ;;  %v1683_v23 = vrot.slane %v5456_v27, 5  ;;  %v2535_v57 = vrot.slane %v2533_v21, 4  ;;  %v2683_v8 = vunpack.c.l.b16 %v2508_v17 }
 0x144   : > { %v2199_v48 = vadd.f32 %v2119_v61, %v1913_v54  ;;  %v2261_v54 = vld [vmem:[#allocation2 + $0x84] sm:$0xf]  ;;  %v2513_v32 = vrot.slane %v2512_v16, 4  ;;  %v1686_v61 = vrot.slane %v5457_v56, 5 }
 0x145   : > { %v1685_v14 = vrot.slane %v1683_v23, 4  ;;  %v2520_v4 = vshrl.u32 %v2261_v54, 16 }
 0x146   : > { %v1835_v29 = vpop.f32.mrf.mxu2 }
 0x147   : > { %v2773_v24 = vpop.f32.mrf.mxu0  ;;  %v1914_v15 = vadd.f32 %v1835_v29, %v1483_v60  ;;  %v1487_v39 = vpop.f32.mrf.mxu1  ;;  %v2522_v42 = vrot.slane %v2520_v4, 4 }
 0x148   : > { %v6244_v30 = vadd.f32 %v2773_v24, %v2199_v48  ;;  %v1486_v24 = vadd.f32 %v1485_v25, %v6162_v34  ;;  %v2523_v48 = vshll.u32 %v2261_v54, 16  ;;  %v1684_v34 = vsel %vm6028_vm15, %v5000_v1, %v1683_v23 }
 0x149   : > { %v1687_v25 = vsel %vm6028_vm15, %v1685_v14, %v1686_v61  ;;  %v1488_v23 = vadd.f32 %v1487_v39, %v6175_v41 }
 0x14a   : > { %5113 = vmatmul.msk.bf16.gmra.mxu0 %vm1198_vm12, %v2705_v19  ;;  %v5299_v19 = vld [vmem:[#allocation2 + $0x78] sm:$0xff]  ;;  %v2525_v54 = vrot.slane %v2523_v48, 5  ;;  %v1746_v56 = vunpack.c.l.b16 %v1687_v25  ;;  %v5315_v25 = vld [vmem:[#allocation2 + $0x84] sm:$0xff] }
 0x14b   : > { %v2121_v47 = vpop.f32.mrf.mxu3  ;;  %5016 = vmatmul.msk.bf16.gmra.mxu2 %vm1198_vm12, %v1766_v18 }
 0x14c   : > { %v2200_v37 = vadd.f32 %v2121_v47, %v1914_v15  ;;  %v2518_v15 = vsel %vm5625_vm11, %v2513_v32, %v2517_v62  ;;  %v2531_v47 = vrot.slane %v2529_v46, 5  ;;  %v2263_v32 = vld [vmem:[#allocation2 + $0x8c] sm:$0x1]  ;;  %v2526_v1 = vor.u32 %v2525_v54, %v2522_v42  ;;  %v2264_v42 = vld [vmem:[#allocation2 + $0x90] sm:$0xf] }
 0x14d   : > { %v2539_v61 = vshll.u32 %v2263_v32, 16  ;;  %v2265_v54 = vld [vmem:[#allocation2 + $0x94] sm:$0xf] }
 0x14e   : > { %v1838_v60 = vpop.f32.mrf.mxu2 }
 0x14f   : > { %v2775_v29 = vpop.f32.mrf.mxu0  ;;  %v1915_v18 = vadd.f32 %v1838_v60, %v1486_v24  ;;  %v1490_v16 = vpop.f32.mrf.mxu1  ;;  %v2536_v24 = vor.u32 %v2535_v57, %v2531_v47  ;;  %v5459_v57 = vld [vmem:[#allocation2 + $0x8c] sm:$0x1] }
 0x150   : > { %5097 = vmatmul.msk.bf16.gmra.mxu3 %vm1198_vm12, %v5314_v7  ;;  %v1491_v44 = vadd.f32 %v1490_v16, %v6196_v2  ;;  %v6259_v27 = vadd.f32 %v2775_v29, %v2200_v37  ;;  %v2684_v7 = vunpack.c.l.b16 %v2518_v15  ;;  %v1745_v2 = vunpack.c.l.b16 %v1684_v34  ;;  %v5458_v29 = vld [vmem:[#allocation2 + $0x88] sm:$0xf]  ;;  %v1571_v34 = vld [vmem:[#allocation2 + $0x84] sm:$0xe] }
 0x151   : > { %v1690_v17 = vrot.slane %v5458_v29, 5  ;;  %v2527_v15 = vrot.slane %v2526_v1, 4  ;;  %v2541_v16 = vrot.slane %v2539_v61, 5  ;;  %v2553_v1 = vshll.u32 %v2265_v54, 16 }
 0x152   : > { %4984 = vmatmul.msk.bf16.gmra.mxu1 %vm1198_vm12, %v5299_v19  ;;  %v2706_v37 = vpack.c.b16 %v2684_v7, %v2683_v8  ;;  %v1767_v46 = vpack.c.b16 %v1746_v56, %v1745_v2  ;;  %v1693_v8 = vrot.slane %v5459_v57, 5  ;;  %v5300_v2 = vld [vmem:[#allocation2 + $0x84] sm:$0xff]  ;;  %v2544_v56 = vshrl.u32 %v2264_v42, 16 }
 0x153   : > { %v2124_v40 = vpop.f32.mrf.mxu3  ;;  %v1692_v7 = vrot.slane %v1690_v17, 4 }
 0x154   : > { %v2201_v62 = vadd.f32 %v2124_v40, %v1915_v18  ;;  %v2537_v18 = vrot.slane %v2536_v24, 4  ;;  %v2532_v40 = vsel %vm5625_vm11, %v2527_v15, %v2531_v47  ;;  %v2557_v24 = vshrl.u32 %v2265_v54, 16 }
 0x155   : > { %v1694_v47 = vsel %vm6028_vm15, %v1692_v7, %v1693_v8 }
 0x156   : > { %v1840_v14 = vpop.f32.mrf.mxu2  ;;  %v2542_v32 = vsel %vm5625_vm11, %v2537_v18, %v2541_v16  ;;  %v2546_v18 = vrot.slane %v2544_v56, 4 }
 0x157   : > { %v2778_v4 = vpop.f32.mrf.mxu0  ;;  %v1916_v48 = vadd.f32 %v1840_v14, %v1488_v23  ;;  %v1492_v21 = vpop.f32.mrf.mxu1  ;;  %v2547_v23 = vshll.u32 %v2264_v42, 16  ;;  %v2686_v29 = vunpack.c.l.b16 %v2542_v32  ;;  %v2266_v42 = vld [vmem:[#allocation2 + $0x98] sm:$0x1] }
 0x158   : > { %v1493_v60 = vadd.f32 %v1492_v21, %v6206_v63  ;;  %v6264_v19 = vadd.f32 %v2778_v4, %v2201_v62  ;;  %v5001_v63 = vrot.slane %v1571_v34, 9  ;;  %v2685_v21 = vunpack.c.l.b16 %v2532_v40 }
 0x159   : > { %v2549_v16 = vrot.slane %v2547_v23, 5  ;;  %v2555_v34 = vrot.slane %v2553_v1, 5  ;;  %v2563_v8 = vshll.u32 %v2266_v42, 16  ;;  %v2267_v23 = vld [vmem:[#allocation2 + $0x9c] sm:$0xf] }
 0x15a   : > { %5114 = vmatmul.msk.bf16.gmra.mxu0 %vm1198_vm12, %v2706_v37  ;;  %v2707_v54 = vpack.c.b16 %v2686_v29, %v2685_v21  ;;  %v2268_v1 = vld [vmem:[#allocation2 + $0xa0] sm:$0xf]  ;;  %v2568_v29 = vshrl.u32 %v2267_v23, 16 }
 0x15b   : > { %v2126_v41 = vpop.f32.mrf.mxu3  ;;  %5017 = vmatmul.msk.bf16.gmra.mxu2 %vm1198_vm12, %v1767_v46  ;;  %v2550_v57 = vor.u32 %v2549_v16, %v2546_v18  ;;  %v5461_v18 = vld [vmem:[#allocation2 + $0x98] sm:$0x1] }
 0x15c   : > { %v2202_v39 = vadd.f32 %v2126_v41, %v1916_v48  ;;  %v1691_v48 = vsel %vm6028_vm15, %v5001_v63, %v1690_v17  ;;  %v1700_v16 = vrot.slane %v5461_v18, 5 }
 0x15e   : > { %v1843_v62 = vpop.f32.mrf.mxu2 }
 0x15f   : > { %v2780_v61 = vpop.f32.mrf.mxu0  ;;  %v1917_v37 = vadd.f32 %v1843_v62, %v1491_v44  ;;  %v1495_v14 = vpop.f32.mrf.mxu1  ;;  %v2559_v44 = vrot.slane %v2557_v24, 4 }
 0x160   : > { %5098 = vmatmul.msk.bf16.gmra.mxu3 %vm1198_vm12, %v5315_v25  ;;  %v1496_v4 = vadd.f32 %v1495_v14, %v6224_v45  ;;  %v6278_v46 = vadd.f32 %v2780_v61, %v2202_v39  ;;  %v1747_v25 = vunpack.c.l.b16 %v1691_v48  ;;  %v1748_v45 = vunpack.c.l.b16 %v1694_v47  ;;  %v1572_v61 = vld [vmem:[#allocation2 + $0x90] sm:$0xe] }
 0x161   : > { %v2560_v63 = vor.u32 %v2559_v44, %v2555_v34  ;;  %v2551_v14 = vrot.slane %v2550_v57, 4  ;;  %v2565_v47 = vrot.slane %v2563_v8, 5  ;;  %v5002_v44 = vrot.slane %v1572_v61, 9 }
 0x162   : > { %4985 = vmatmul.msk.bf16.gmra.mxu1 %vm1198_vm12, %v5300_v2  ;;  %v1768_v40 = vpack.c.b16 %v1748_v45, %v1747_v25  ;;  %v5460_v2 = vld [vmem:[#allocation2 + $0x94] sm:$0xf] }
 0x163   : > { %v2129_v15 = vpop.f32.mrf.mxu3  ;;  %v1697_v56 = vrot.slane %v5460_v2, 5  ;;  %v2561_v48 = vrot.slane %v2560_v63, 4  ;;  %v2556_v45 = vsel %vm5625_vm11, %v2551_v14, %v2555_v34 }
 0x164   : > { %v2203_v41 = vadd.f32 %v2129_v15, %v1917_v37  ;;  %v2571_v15 = vshll.u32 %v2267_v23, 16  ;;  %v2687_v61 = vunpack.c.l.b16 %v2556_v45  ;;  %v5462_v45 = vld [vmem:[#allocation2 + $0xa0] sm:$0xf] }
 0x165   : > { %v1699_v25 = vrot.slane %v1697_v56, 4  ;;  %v2566_v42 = vsel %vm5625_vm11, %v2561_v48, %v2565_v47 }
 0x166   : > { %v1845_v17 = vpop.f32.mrf.mxu2 }
 0x167   : > { %v2783_v39 = vpop.f32.mrf.mxu0  ;;  %v1918_v7 = vadd.f32 %v1845_v17, %v1493_v60  ;;  %v1497_v32 = vpop.f32.mrf.mxu1  ;;  %v5316_v60 = vld [vmem:[#allocation2 + $0x90] sm:$0xff]  ;;  %v1701_v2 = vsel %vm6028_vm15, %v1699_v25, %v1700_v16 }
 0x168   : > { %v1498_v62 = vadd.f32 %v1497_v32, %v6233_v50  ;;  %v6282_v24 = vadd.f32 %v2783_v39, %v2203_v41  ;;  %v2577_v50 = vshll.u32 %v2268_v1, 16  ;;  %v2581_v41 = vshrl.u32 %v2268_v1, 16  ;;  %v5301_v17 = vld [vmem:[#allocation2 + $0x90] sm:$0xff]  ;;  %v2269_v1 = vld [vmem:[#allocation2 + $0xa4] sm:$0x1] }
 0x169   : > { %v2570_v39 = vrot.slane %v2568_v29, 4  ;;  %v1698_v32 = vsel %vm6028_vm15, %v5002_v44, %v1697_v56  ;;  %v1750_v47 = vunpack.c.l.b16 %v1701_v2 }
 0x16a   : > { %5115 = vmatmul.msk.bf16.gmra.mxu0 %vm1198_vm12, %v2707_v54  ;;  %v2583_v34 = vrot.slane %v2581_v41, 4  ;;  %v1749_v48 = vunpack.c.l.b16 %v1698_v32  ;;  %v5463_v32 = vld [vmem:[#allocation2 + $0xa4] sm:$0x1] }
 0x16b   : > { %v2131_v37 = vpop.f32.mrf.mxu3  ;;  %5018 = vmatmul.msk.bf16.gmra.mxu2 %vm1198_vm12, %v1768_v40  ;;  %v2579_v40 = vrot.slane %v2577_v50, 5  ;;  %v1707_v2 = vrot.slane %v5463_v32, 5 }
 0x16c   : > { %v2204_v21 = vadd.f32 %v2131_v37, %v1918_v7  ;;  %v2573_v7 = vrot.slane %v2571_v15, 5  ;;  %v2688_v37 = vunpack.c.l.b16 %v2566_v42  ;;  %v2587_v15 = vshll.u32 %v2269_v1, 16 }
 0x16d   : > { %v2584_v29 = vor.u32 %v2583_v34, %v2579_v40  ;;  %v1769_v16 = vpack.c.b16 %v1750_v47, %v1749_v48  ;;  %v1704_v42 = vrot.slane %v5462_v45, 5 }
 0x16e   : > { %v1848_v54 = vpop.f32.mrf.mxu2  ;;  %v2708_v50 = vpack.c.b16 %v2688_v37, %v2687_v61 }
 0x16f   : > { %v2785_v57 = vpop.f32.mrf.mxu0  ;;  %v1919_v63 = vadd.f32 %v1848_v54, %v1496_v4  ;;  %v1500_v8 = vpop.f32.mrf.mxu1  ;;  %v2585_v41 = vrot.slane %v2584_v29, 4  ;;  %v2589_v54 = vrot.slane %v2587_v15, 5  ;;  %v269_v29 = vld [vmem:[%s5557_s19 + $0x78] sm:$0xf] }
 0x170   : > { %5099 = vmatmul.msk.bf16.gmra.mxu3 %vm1198_vm12, %v5316_v60  ;;  %v6295_v23 = vadd.f32 %v2785_v57, %v2204_v21  ;;  %v2574_v60 = vor.u32 %v2573_v7, %v2570_v39  ;;  %v2270_v39 = vld [vmem:[#allocation2 + $0xa8] sm:$0xf]  ;;  %v2271_v7 = vld [vmem:[#allocation2 + $0xac] sm:$0xf] }
 0x171   : > { %v2590_v61 = vsel %vm5625_vm11, %v2585_v41, %v2589_v54  ;;  %v2592_v48 = vshrl.u32 %v2270_v39, 16  ;;  %v2595_v47 = vshll.u32 %v2270_v39, 16  ;;  %v270_v41 = vld [vmem:[%s5557_s19 + $0x7c] sm:$0xf] }
 0x172   : > { %6960 = vst [vmem:[#allocation6_spill] sm:$0xff] %v6295_v23  ;;  %4986 = vmatmul.msk.bf16.gmra.mxu1 %vm1198_vm12, %v5301_v17  ;;  %v2575_v25 = vrot.slane %v2574_v60, 4  ;;  %v1573_v17 = vld [vmem:[#allocation2 + $0x9c] sm:$0xe]  ;;  %v2601_v60 = vshll.u32 %v2271_v7, 16  ;;  %v2690_v54 = vunpack.c.l.b16 %v2590_v61 }
 0x173   : > { %v2134_v14 = vpop.f32.mrf.mxu3  ;;  %v5003_v37 = vrot.slane %v1573_v17, 9  ;;  %v2594_v17 = vrot.slane %v2592_v48, 4  ;;  %v705_v23 = vld [vmem:[#allocation2 + $0xc0] sm:$0xf] }
 0x174   : > { %v2205_v4 = vadd.f32 %v2134_v14, %v1919_v63  ;;  %v2580_v1 = vsel %vm5625_vm11, %v2575_v25, %v2579_v40  ;;  %v1706_v14 = vrot.slane %v1704_v42, 4  ;;  %v6318_v39 = vrot.slane %v2601_v60, 5 }
 0x175   : > { %v2689_v40 = vunpack.c.l.b16 %v2580_v1  ;;  %v533_v1 = vshll.u32 %v269_v29, 16 }
 0x176   : > { %v1850_v56 = vpop.f32.mrf.mxu2 }
 0x177   : > { %v2788_v18 = vpop.f32.mrf.mxu0  ;;  %v1920_v44 = vadd.f32 %v1850_v56, %v1498_v62  ;;  %v1502_v21 = vpop.f32.mrf.mxu1  ;;  %v5317_v62 = vld [vmem:[#allocation2 + $0x9c] sm:$0xff]  ;;  %v2605_v56 = vshrl.u32 %v2271_v7, 16 }
 0x178   : > { %v6298_v57 = vadd.f32 %v2788_v18, %v2205_v4  ;;  %v1501_v4 = vadd.f32 %v1500_v8, %v6104_v11  ;;  %v530_v18 = vshrl.u32 %v269_v29, 16  ;;  %v1705_v11 = vsel %vm6028_vm15, %v5003_v37, %v1704_v42  ;;  %v2272_v42 = vld [vmem:[#allocation2 + $0xb0] sm:$0x1] }
 0x179   : > { %v1708_v8 = vsel %vm6028_vm15, %v1706_v14, %v1707_v2  ;;  %v2607_v32 = vrot.slane %v2605_v56, 4  ;;  %v2709_v37 = vpack.c.b16 %v2690_v54, %v2689_v40  ;;  %v1503_v2 = vadd.f32 %v1502_v21, %v6108_v31  ;;  %v709_v54 = vld [vmem:[#allocation2 + $0xc8] sm:$0x1]  ;;  %v2273_v21 = vld [vmem:[#allocation2 + $0xb4] sm:$0xf] }
 0x17a   : > { %6961 = vst [vmem:[#allocation7_spill] sm:$0xff] %v6298_v57  ;;  %5116 = vmatmul.msk.bf16.gmra.mxu0 %vm1198_vm12, %v2708_v50  ;;  %v5302_v50 = vld [vmem:[#allocation2 + $0x9c] sm:$0xff]  ;;  %v1752_v57 = vunpack.c.l.b16 %v1708_v8  ;;  %v541_v56 = vshll.u32 %v270_v41, 16  ;;  %v5464_v8 = vld [vmem:[#allocation2 + $0xac] sm:$0xf] }
 0x17b   : > { %v2136_v63 = vpop.f32.mrf.mxu3  ;;  %5019 = vmatmul.msk.bf16.gmra.mxu2 %vm1198_vm12, %v1769_v16  ;;  %v2608_v60 = vor.u32 %v2607_v32, %v6318_v39  ;;  %v1711_v31 = vrot.slane %v5464_v8, 5 }
 0x17c   : > { %v2206_v34 = vadd.f32 %v2136_v63, %v1920_v44  ;;  %v2597_v63 = vrot.slane %v2595_v47, 5 }
 0x17e   : > { %v1853_v15 = vpop.f32.mrf.mxu2 }
 0x17f   : > { %v2790_v44 = vpop.f32.mrf.mxu0  ;;  %v1921_v16 = vadd.f32 %v1853_v15, %v1501_v4  ;;  %v6309_v25 = vpop.f32.mrf.mxu1  ;;  %v538_v4 = vshrl.u32 %v270_v41, 16  ;;  %v1751_v15 = vunpack.c.l.b16 %v1705_v11 }
 0x180   : > { %5100 = vmatmul.msk.bf16.gmra.mxu3 %vm1198_vm12, %v5317_v62  ;;  %v6316_v45 = vadd.f32 %v2790_v44, %v2206_v34  ;;  %v532_v62 = vrot.slane %v530_v18, 7  ;;  %v2598_v34 = vor.u32 %v2597_v63, %v2594_v17  ;;  %v2611_v44 = vshll.u32 %v2272_v42, 16 }
 0x181   : > { %v540_v48 = vrot.slane %v538_v4, 7  ;;  %v2609_v4 = vrot.slane %v2608_v60, 4  ;;  %v1714_v42 = vrot.slane %v5465_v9, 5 }
 0x182   : > { %6962 = vst [vmem:[#allocation8_spill] sm:$0xff] %v6316_v45  ;;  %4987 = vmatmul.msk.bf16.gmra.mxu1 %vm1198_vm12, %v5302_v50  ;;  %v535_v14 = vor.u32 %v533_v1, %v532_v62  ;;  %v536_v50 = vrot.slane %v532_v62, 4  ;;  %v1770_v45 = vpack.c.b16 %v1752_v57, %v1751_v15  ;;  %v2599_v32 = vrot.slane %v2598_v34, 4  ;;  %v2274_v62 = vld [vmem:[#allocation2 + $0xb8] sm:$0xf]  ;;  %v5318_v1 = vld [vmem:[#allocation2 + $0xa8] sm:$0xff] }
 0x183   : > { %v2139_v7 = vpop.f32.mrf.mxu3  ;;  %v545_v11 = vrot.slane %v540_v48, 4  ;;  %v543_v17 = vor.u32 %v541_v56, %v540_v48  ;;  %v2616_v15 = vshrl.u32 %v2273_v21, 16  ;;  %v1506_v34 = vadd.f32 %v6309_v25, %v6124_v53 }
 0x184   : > { %v2207_v61 = vadd.f32 %v2139_v7, %v1921_v16  ;;  %v706_v40 = vsel %vm5584_vm8, %v535_v14, %v705_v23  ;;  %v1574_v7 = vld [vmem:[#allocation2 + $0xa8] sm:$0xe]  ;;  %v2619_v14 = vshll.u32 %v2273_v21, 16  ;;  %v2625_v10 = vshll.u32 %v2274_v62, 16 }
 0x185   : > { %707 = vst [vmem:[#allocation2 + $0xc0] sm:$0xf] %v706_v40  ;;  %v710_v41 = vsel %vm5569_vm6, %v545_v11, %v709_v54  ;;  %v544_v13 = vsel %vm5576_vm7, %v536_v50, %v543_v17  ;;  %v2629_v48 = vshrl.u32 %v2274_v62, 16  ;;  %v5303_v50 = vld [vmem:[#allocation2 + $0xa8] sm:$0xff] }
 0x186   : > { %v1855_v47 = vpop.f32.mrf.mxu2  ;;  %711 = vst [vmem:[#allocation2 + $0xc8] sm:$0x1] %v710_v41  ;;  %v2621_v11 = vrot.slane %v2619_v14, 5  ;;  %v2627_v54 = vrot.slane %v2625_v10, 5 }
 0x187   : > { %v2793_v18 = vpop.f32.mrf.mxu0  ;;  %v1922_v29 = vadd.f32 %v1855_v47, %v1503_v2  ;;  %v1507_v16 = vpop.f32.mrf.mxu1  ;;  %708 = vst.msk [vmem:[#allocation2 + $0xc4] sm:$0xf] %vm183_vm1, %v544_v13  ;;  %v5004_v2 = vrot.slane %v1574_v7, 9  ;;  %v2631_v8 = vrot.slane %v2629_v48, 4  ;;  %v2275_v7 = vld [vmem:[#allocation2 + $0xbc] sm:$0x1] }
 0x188   : > { %v6325_v63 = vadd.f32 %v2793_v18, %v2207_v61  ;;  %v2613_v61 = vrot.slane %v2611_v44, 5  ;;  %vm4794_vm1 = vcmask 1041408  }
 0x189   : > { %v1712_v53 = vsel %vm6028_vm15, %v5004_v2, %v1711_v31  ;;  %v2632_v13 = vor.u32 %v2631_v8, %v2627_v54  ;;  %v1575_v2 = vld [vmem:[#allocation2 + $0xb4] sm:$0xe] }
 0x18a   : > { %5117 = vmatmul.msk.bf16.gmra.mxu0 %vm1198_vm12, %v2709_v37  ;;  %v1713_v37 = vrot.slane %v1711_v31, 4  ;;  %v2614_v60 = vsel %vm5625_vm11, %v2609_v4, %v2613_v61  ;;  %v1508_v31 = vadd.f32 %v1507_v16, %v6143_v26  ;;  %v5005_v16 = vrot.slane %v1575_v2, 9  ;;  %v2885_v2 = vld [vmem:[#allocation2 + $0xc] sm:$0xe] }
 0x18b   : > { %v2141_v57 = vpop.f32.mrf.mxu3  ;;  %5020 = vmatmul.msk.bf16.gmra.mxu2 %vm1198_vm12, %v1770_v45  ;;  %v2604_v45 = vsel %vm5625_vm11, %v2599_v32, %v6318_v39  ;;  %v2692_v17 = vunpack.c.l.b16 %v2614_v60  ;;  %v2633_v48 = vrot.slane %v2632_v13, 4  ;;  %v5468_v60 = vld [vmem:[#allocation2 + $0x10] sm:$0xf] }
 0x18c   : > { %v2208_v23 = vadd.f32 %v2141_v57, %v1922_v29  ;;  %v2618_v29 = vrot.slane %v2616_v15, 4  ;;  %v1715_v25 = vsel %vm6028_vm15, %v1713_v37, %v1714_v42  ;;  %v2691_v21 = vunpack.c.l.b16 %v2604_v45  ;;  %v5466_v37 = vld [vmem:[#allocation2 + $0xb8] sm:$0xf] }
 0x18d   : > { %v1753_v57 = vunpack.c.l.b16 %v1712_v53  ;;  %v1754_v32 = vunpack.c.l.b16 %v1715_v25  ;;  %v1718_v14 = vrot.slane %v5466_v37, 5  ;;  %v5319_v53 = vld [vmem:[#allocation2 + $0xb4] sm:$0xff] }
 0x18e   : > { %v1858_v47 = vpop.f32.mrf.mxu2  ;;  %v2622_v62 = vor.u32 %v2621_v11, %v2618_v29  ;;  %v2710_v4 = vpack.c.b16 %v2692_v17, %v2691_v21  ;;  %v2277_v11 = vld [vmem:[#allocation2 + $0xc4] sm:$0xf] }
 0x18f   : > { %v2795_v56 = vpop.f32.mrf.mxu0  ;;  %v1923_v44 = vadd.f32 %v1858_v47, %v1506_v34  ;;  %v1510_v18 = vpop.f32.mrf.mxu1  ;;  %v1771_v9 = vpack.c.b16 %v1754_v32, %v1753_v57  ;;  %v1720_v25 = vrot.slane %v1718_v14, 4  ;;  %v5304_v57 = vld [vmem:[#allocation2 + $0xb4] sm:$0xff]  ;;  %v1719_v32 = vsel %vm6028_vm15, %v5005_v16, %v1718_v14 }
 0x190   : > { %5101 = vmatmul.msk.bf16.gmra.mxu3 %vm1198_vm12, %v5318_v1  ;;  %v6346_v40 = vadd.f32 %v2795_v56, %v2208_v23  ;;  %v2635_v1 = vshll.u32 %v2275_v7, 16  ;;  %v2623_v34 = vrot.slane %v2622_v62, 4  ;;  %v5467_v56 = vld [vmem:[#allocation2 + $0xbc] sm:$0x1]  ;;  %v1511_v21 = vadd.f32 %v1510_v18, %v6154_v59 }
 0x191   : > { %v1721_v45 = vrot.slane %v5467_v56, 5  ;;  %v2649_v62 = vshll.u32 %v2277_v11, 16  ;;  %v1755_v14 = vunpack.c.l.b16 %v1719_v32 }
 0x192   : > { %4988 = vmatmul.msk.bf16.gmra.mxu1 %vm1198_vm12, %v5303_v50  ;;  %v2637_v47 = vrot.slane %v2635_v1, 5  ;;  %v2276_v50 = vld [vmem:[#allocation2 + $0xc0] sm:$0xf]  ;;  %v2628_v8 = vsel %vm5625_vm11, %v2623_v34, %v2627_v54  ;;  %v5469_v1 = vld [vmem:[#allocation2 + $0x14] sm:$0x1] }
 0x193   : > { %v2144_v39 = vpop.f32.mrf.mxu3  ;;  %v2643_v7 = vshll.u32 %v2276_v50, 16  ;;  %v1722_v18 = vsel %vm6028_vm15, %v1720_v25, %v1721_v45  ;;  %v2651_v56 = vrot.slane %v2649_v62, 5  ;;  %v2278_v25 = vld [vmem:[#allocation2 + $0xc8] sm:$0x1] }
 0x194   : > { %v2209_v41 = vadd.f32 %v2144_v39, %v1923_v44  ;;  %v2951_v44 = vrot.slane %v5468_v60, 5  ;;  %v2638_v17 = vsel %vm5625_vm11, %v2633_v48, %v2637_v47  ;;  %v2640_v39 = vshrl.u32 %v2276_v50, 16 }
 0x195   : > { %v2645_v48 = vrot.slane %v2643_v7, 5  ;;  %v5121_v47 = vrot.slane %v2885_v2, 9  ;;  %v1756_v50 = vunpack.c.l.b16 %v1722_v18 }
 0x196   : > { %v1860_v61 = vpop.f32.mrf.mxu2  ;;  %v2953_v13 = vrot.slane %v2951_v44, 4  ;;  %v2642_v34 = vrot.slane %v2640_v39, 4 }
 0x197   : > { %v2798_v23 = vpop.f32.mrf.mxu0  ;;  %v1924_v15 = vadd.f32 %v1860_v61, %v1508_v31  ;;  %v6350_v42 = vpop.f32.mrf.mxu1  ;;  %v2653_v31 = vshrl.u32 %v2277_v11, 16  ;;  %v2952_v11 = vsel %vm6028_vm15, %v5121_v47, %v2951_v44  ;;  %v1772_v62 = vpack.c.b16 %v1756_v50, %v1755_v14 }
 0x198   : > { %v6352_v10 = vadd.f32 %v2798_v23, %v2209_v41  ;;  %v3570_v23 = vld [vmem:[#allocation2 + $0x18] sm:$0xf] }
 0x199   : > { %v2655_v60 = vrot.slane %v2653_v31, 4  ;;  %v2646_v31 = vor.u32 %v2645_v48, %v2642_v34 }
 0x19a   : > { %5118 = vmatmul.msk.bf16.gmra.mxu0 %vm1198_vm12, %v2710_v4  ;;  %v2954_v4 = vrot.slane %v5469_v1, 5  ;;  %v2659_v1 = vshll.u32 %v2278_v25, 16 }
 0x19b   : > { %v2146_v26 = vpop.f32.mrf.mxu3  ;;  %5021 = vmatmul.msk.bf16.gmra.mxu2 %vm1198_vm12, %v1771_v9  ;;  %v2694_v9 = vunpack.c.l.b16 %v2638_v17  ;;  %v2656_v18 = vor.u32 %v2655_v60, %v2651_v56 }
 0x19c   : > { %v2210_v29 = vadd.f32 %v2146_v26, %v1924_v15  ;;  %v2693_v15 = vunpack.c.l.b16 %v2628_v8  ;;  %v6368_v26 = vld [vmem:[#allocation2 + $0x1c] sm:$0xf]  ;;  %v3622_v8 = vshll.u32 %v3570_v23, 16  ;;  %v2661_v34 = vrot.slane %v2659_v1, 5 }
 0x19d   : > { %v3628_v39 = vshll.u32 %v6368_v26, 16  ;;  %v3632_v7 = vshrl.u32 %v6368_v26, 16  ;;  %v2657_v14 = vrot.slane %v2656_v18, 4 }
 0x19e   : > { %v1863_v41 = vpop.f32.mrf.mxu2 }
 0x19f   : > { %v2800_v61 = vpop.f32.mrf.mxu0  ;;  %v1925_v54 = vadd.f32 %v1863_v41, %v1511_v21  ;;  %v1515_v59 = vpop.f32.mrf.mxu1  ;;  %v3063_v21 = vunpack.c.l.b16 %v2952_v11  ;;  %v2711_v41 = vpack.c.b16 %v2694_v9, %v2693_v15  ;;  %v3630_v2 = vrot.slane %v3628_v39, 5  ;;  %v6381_v11 = vld [vmem:[#allocation2 + $0x20] sm:$0x1] }
 0x1a0   : > { %5102 = vmatmul.msk.bf16.gmra.mxu3 %vm1198_vm12, %v5319_v53  ;;  %v6366_v37 = vadd.f32 %v2800_v61, %v2210_v29  ;;  %v3619_v53 = vshrl.u32 %v3570_v23, 16  ;;  %v2955_v29 = vsel %vm6028_vm15, %v2953_v13, %v2954_v4  ;;  %v3624_v23 = vrot.slane %v3622_v8, 5  ;;  %v5320_v9 = vld [vmem:[#allocation2 + $0xc0] sm:$0xff] }
 0x1a1   : > { %v3064_v17 = vunpack.c.l.b16 %v2955_v29  ;;  %v3634_v47 = vrot.slane %v3632_v7, 4  ;;  %v3638_v60 = vshll.u32 %v6381_v11, 16  ;;  %v3573_v29 = vld [vmem:[#allocation2 + $0x24] sm:$0xf] }
 0x1a2   : > { %4989 = vmatmul.msk.bf16.gmra.mxu1 %vm1198_vm12, %v5304_v57  ;;  %v1513_v57 = vadd.f32 %v6350_v42, %v6172_v28  ;;  %v3621_v4 = vrot.slane %v3619_v53, 4  ;;  %v2647_v42 = vrot.slane %v2646_v31, 4  ;;  %v1516_v53 = vadd.f32 %v1515_v59, %v6189_v3  ;;  %v2886_v59 = vld [vmem:[#allocation2 + $0x18] sm:$0xe] }
 0x1a3   : > { %v2149_v16 = vpop.f32.mrf.mxu3  ;;  %v3095_v61 = vpack.c.b16 %v3064_v17, %v3063_v21  ;;  %v3635_v50 = vor.u32 %v3634_v47, %v3630_v2  ;;  %v2662_v21 = vsel %vm5625_vm11, %v2657_v14, %v2661_v34  ;;  %v3640_v3 = vrot.slane %v3638_v60, 5 }
 0x1a4   : > { %v2211_v45 = vadd.f32 %v2149_v16, %v1925_v54  ;;  %v3625_v48 = vor.u32 %v3624_v23, %v3621_v4  ;;  %v2696_v4 = vunpack.c.l.b16 %v2662_v21  ;;  %v5122_v14 = vrot.slane %v2886_v59, 9 }
 0x1a6   : > { %v1865_v32 = vpop.f32.mrf.mxu2  ;;  %v3626_v7 = vrot.slane %v3625_v48, 4 }
 0x1a7   : > { %v2803_v44 = vpop.f32.mrf.mxu0  ;;  %v1926_v54 = vadd.f32 %v1865_v32, %v1513_v57  ;;  %v1517_v13 = vpop.f32.mrf.mxu1  ;;  %v6392_v32 = vld [vmem:[#allocation2 + $0x28] sm:$0xf] }
 0x1a8   : > { %v6379_v16 = vadd.f32 %v2803_v44, %v2211_v45  ;;  %v2652_v45 = vsel %vm5625_vm11, %v2647_v42, %v2651_v56  ;;  %v5471_v56 = vld [vmem:[#allocation2 + $0x20] sm:$0x1]  ;;  %v3643_v44 = vshrl.u32 %v3573_v29, 16  ;;  %v3652_v47 = vshll.u32 %v6392_v32, 16 }
 0x1a9   : > { %v2961_v1 = vrot.slane %v5471_v56, 5  ;;  %v2695_v18 = vunpack.c.l.b16 %v2652_v45  ;;  %v1518_v48 = vadd.f32 %v1517_v13, %v6200_v33 }
 0x1aa   : > { %5119 = vmatmul.msk.bf16.gmra.mxu0 %vm1198_vm12, %v2711_v41  ;;  %v5470_v41 = vld [vmem:[#allocation2 + $0x1c] sm:$0xf]  ;;  %v3645_v60 = vrot.slane %v3643_v44, 4  ;;  %v4293_v44 = vrot.slane %v6381_v11, 5 }
 0x1ab   : > { %v2151_v28 = vpop.f32.mrf.mxu3  ;;  %5022 = vmatmul.msk.bf16.gmra.mxu2 %vm1198_vm12, %v1772_v62  ;;  %v2958_v57 = vrot.slane %v5470_v41, 5  ;;  %v3636_v62 = vrot.slane %v3635_v50, 4  ;;  %v4290_v50 = vrot.slane %v6368_v26, 5  ;;  %v6409_v26 = vld [vmem:[#allocation2 + $0x2c] sm:$0x1] }
 0x1ac   : > { %v2212_v15 = vadd.f32 %v2151_v28, %v1926_v54  ;;  %v3646_v54 = vshll.u32 %v3573_v29, 16  ;;  %v3656_v28 = vshrl.u32 %v6392_v32, 16  ;;  %v4224_v29 = vld [vmem:[#allocation2 + $0x18] sm:$0xe] }
 0x1ad   : > { %v3641_v34 = vsel %vm5625_vm11, %v3636_v62, %v3640_v3  ;;  %v2959_v62 = vsel %vm6028_vm15, %v5122_v14, %v2958_v57  ;;  %v5252_v3 = vrot.slane %v4224_v29, 9  ;;  %v4292_v56 = vrot.slane %v4290_v50, 4  ;;  %v5472_v29 = vld [vmem:[#allocation2 + $0x28] sm:$0xf] }
 0x1ae   : > { %v1868_v25 = vpop.f32.mrf.mxu2  ;;  %v3658_v21 = vrot.slane %v3656_v28, 4 }
 0x1af   : > { %v2805_v8 = vpop.f32.mrf.mxu0  ;;  %v1927_v17 = vadd.f32 %v1868_v25, %v1516_v53  ;;  %v1520_v39 = vpop.f32.mrf.mxu1  ;;  %v3648_v53 = vrot.slane %v3646_v54, 5  ;;  %v4294_v11 = vsel %vm6028_vm15, %v4292_v56, %v4293_v44 }
 0x1b0   : > { %5103 = vmatmul.msk.bf16.gmra.mxu3 %vm1198_vm12, %v5320_v9  ;;  %v6394_v31 = vadd.f32 %v2805_v8, %v2212_v15  ;;  %v3631_v9 = vsel %vm5625_vm11, %v3626_v7, %v3630_v2  ;;  %v2960_v15 = vrot.slane %v2958_v57, 4  ;;  %v3654_v8 = vrot.slane %v3652_v47, 5  ;;  %v5321_v2 = vld [vmem:[#allocation2 + $0x18] sm:$0xff] }
 0x1b1   : > { %v4004_v25 = vunpack.c.l.b16 %v3631_v9  ;;  %v4005_v7 = vunpack.c.l.b16 %v3641_v34  ;;  %v3649_v54 = vor.u32 %v3648_v53, %v3645_v60  ;;  %v3662_v57 = vshll.u32 %v6409_v26, 16 }
 0x1b2   : > { %5138 = vmatmul.msk.bf16.vlgmr.msra.gmra.mxu1 %vm1198_vm12, %v3095_v61  ;;  %v2712_v61 = vpack.c.b16 %v2696_v4, %v2695_v18  ;;  %v2962_v33 = vsel %vm6028_vm15, %v2960_v15, %v2961_v1  ;;  %v3065_v4 = vunpack.c.l.b16 %v2959_v62  ;;  %v3659_v47 = vor.u32 %v3658_v21, %v3654_v8  ;;  %v3576_v21 = vld [vmem:[#allocation2 + $0x30] sm:$0xf] }
 0x1b3   : > { %v2154_v23 = vpop.f32.mrf.mxu3  ;;  %v4036_v1 = vpack.c.b16 %v4005_v7, %v4004_v25  ;;  %v4291_v9 = vsel %vm6028_vm15, %v5252_v3, %v4290_v50  ;;  %v3650_v34 = vrot.slane %v3649_v54, 4  ;;  %v3664_v60 = vrot.slane %v3662_v57, 5 }
 0x1b4   : > { %v2213_v42 = vadd.f32 %v2154_v23, %v1927_v17  ;;  %v3066_v23 = vunpack.c.l.b16 %v2962_v33  ;;  %v2965_v25 = vrot.slane %v5472_v29, 5  ;;  %v4402_v50 = vunpack.c.l.b16 %v4291_v9 }
 0x1b5   : > { %v3655_v33 = vsel %vm5625_vm11, %v3650_v34, %v3654_v8  ;;  %v3667_v56 = vshrl.u32 %v3576_v21, 16  ;;  %v4297_v8 = vrot.slane %v6392_v32, 5  ;;  %v5322_v34 = vld [vmem:[#allocation2 + $0x24] sm:$0xff] }
 0x1b6   : > { %v1870_v45 = vpop.f32.mrf.mxu2  ;;  %v3096_v15 = vpack.c.b16 %v3066_v23, %v3065_v4  ;;  %v3670_v4 = vshll.u32 %v3576_v21, 16 }
 0x1b7   : > { %v2808_v17 = vpop.f32.mrf.mxu0  ;;  %v1928_v41 = vadd.f32 %v1870_v45, %v1518_v48  ;;  %v1522_v59 = vpop.f32.mrf.mxu1  ;;  %v3660_v48 = vrot.slane %v3659_v47, 4 }
 0x1b8   : > { %v6411_v13 = vadd.f32 %v2808_v17, %v2213_v42  ;;  %v1521_v42 = vadd.f32 %v1520_v39, %v6120_v55  ;;  %v2887_v55 = vld [vmem:[#allocation2 + $0x24] sm:$0xe]  ;;  %v4403_v17 = vunpack.c.l.b16 %v4294_v11  ;;  %v3669_v11 = vrot.slane %v3667_v56, 4 }
 0x1b9   : > { %v3665_v3 = vsel %vm5625_vm11, %v3660_v48, %v3664_v60  ;;  %v5123_v54 = vrot.slane %v2887_v55, 9  ;;  %v4225_v48 = vld [vmem:[#allocation2 + $0x24] sm:$0xe]  ;;  %v3672_v29 = vrot.slane %v3670_v4, 5  ;;  %v6442_v55 = vld [vmem:[#allocation2 + $0x38] sm:$0x1] }
 0x1ba   : > { %5120 = vmatmul.msk.bf16.gmra.mxu0 %vm1198_vm12, %v2712_v61  ;;  %v4434_v57 = vpack.c.b16 %v4403_v17, %v4402_v50  ;;  %v4007_v9 = vunpack.c.l.b16 %v3665_v3  ;;  %v5253_v50 = vrot.slane %v4225_v48, 9  ;;  %v4299_v17 = vrot.slane %v4297_v8, 4 }
 0x1bb   : > { %v2156_v18 = vpop.f32.mrf.mxu3  ;;  %5219 = vmatmul.msk.bf16.vlgmr.msra.gmra.mxu2 %vm1198_vm12, %v5321_v2  ;;  %v5473_v2 = vld [vmem:[#allocation2 + $0x2c] sm:$0x1]  ;;  %v3673_v3 = vor.u32 %v3672_v29, %v3669_v11 }
 0x1bc   : > { %v2214_v28 = vadd.f32 %v2156_v18, %v1928_v41  ;;  %v6425_v41 = vld [vmem:[#allocation2 + $0x34] sm:$0xf]  ;;  %v2968_v7 = vrot.slane %v5473_v2, 5  ;;  %v2967_v18 = vrot.slane %v2965_v25, 4 }
 0x1bd   : > { %v3676_v23 = vshll.u32 %v6425_v41, 16  ;;  %v3680_v47 = vshrl.u32 %v6425_v41, 16 }
 0x1be   : > { %v1873_v14 = vpop.f32.mrf.mxu2 }
 0x1bf   : > { %v2810_v53 = vpop.f32.mrf.mxu0  ;;  %v1929_v61 = vadd.f32 %v1873_v14, %v1521_v42  ;;  %v1525_v45 = vpop.f32.mrf.mxu1  ;;  %v4006_v42 = vunpack.c.l.b16 %v3655_v33  ;;  %v3678_v21 = vrot.slane %v3676_v23, 5 }
 0x1c0   : > { %5236 = vmatmul.msk.bf16.vlgmr.msra.gmra.mxu3 %vm1198_vm12, %v4036_v1  ;;  %v6423_v39 = vadd.f32 %v2810_v53, %v2214_v28  ;;  %v1523_v28 = vadd.f32 %v1522_v59, %v6130_v12  ;;  %v2966_v53 = vsel %vm6028_vm15, %v5123_v54, %v2965_v25  ;;  %v3682_v12 = vrot.slane %v3680_v47, 4  ;;  %v3579_v47 = vld [vmem:[#allocation2 + $0x3c] sm:$0xf] }
 0x1c1   : > { %v3067_v2 = vunpack.c.l.b16 %v2966_v53  ;;  %v4037_v25 = vpack.c.b16 %v4007_v9, %v4006_v42  ;;  %v1526_v54 = vadd.f32 %v1525_v45, %v6148_v0  ;;  %v3674_v42 = vrot.slane %v3673_v3, 4  ;;  %v5474_v9 = vld [vmem:[#allocation2 + $0x34] sm:$0xf] }
 0x1c2   : > { %5139 = vmatmul.msk.bf16.gmra.mxu1 %vm1198_vm12, %v3096_v15  ;;  %v3683_v56 = vor.u32 %v3682_v12, %v3678_v21  ;;  %v2972_v11 = vrot.slane %v5474_v9, 5  ;;  %v3691_v53 = vshrl.u32 %v3579_v47, 16 }
 0x1c3   : > { %v2159_v62 = vpop.f32.mrf.mxu3 }
 0x1c4   : > { %v2215_v44 = vadd.f32 %v2159_v62, %v1929_v61  ;;  %v2969_v61 = vsel %vm6028_vm15, %v2967_v18, %v2968_v7  ;;  %v4300_v7 = vrot.slane %v6409_v26, 5  ;;  %v4298_v18 = vsel %vm6028_vm15, %v5253_v50, %v4297_v8 }
 0x1c5   : > { %v3068_v62 = vunpack.c.l.b16 %v2969_v61  ;;  %v3684_v0 = vrot.slane %v3683_v56, 4  ;;  %v3694_v61 = vshll.u32 %v3579_v47, 16  ;;  %v4404_v29 = vunpack.c.l.b16 %v4298_v18  ;;  %v4226_v47 = vld [vmem:[#allocation2 + $0x30] sm:$0xe] }
 0x1c6   : > { %v1875_v1 = vpop.f32.mrf.mxu2  ;;  %v4304_v56 = vrot.slane %v6425_v41, 5  ;;  %v6471_v41 = vld [vmem:[#allocation2 + $0x44] sm:$0x1] }
 0x1c7   : > { %v2813_v14 = vpop.f32.mrf.mxu0  ;;  %v1930_v15 = vadd.f32 %v1875_v1, %v1523_v28  ;;  %v1527_v60 = vpop.f32.mrf.mxu1  ;;  %v3097_v23 = vpack.c.b16 %v3068_v62, %v3067_v2  ;;  %v4301_v28 = vsel %vm6028_vm15, %v4299_v17, %v4300_v7  ;;  %v3679_v62 = vsel %vm5625_vm11, %v3674_v42, %v3678_v21  ;;  %v5323_v21 = vld [vmem:[#allocation2 + $0x30] sm:$0xff] }
 0x1c8   : > { %v6440_v59 = vadd.f32 %v2813_v14, %v2215_v44  ;;  %v3686_v44 = vshll.u32 %v6442_v55, 16  ;;  %v6454_v14 = vld [vmem:[#allocation2 + $0x40] sm:$0xf]  ;;  %v4405_v12 = vunpack.c.l.b16 %v4301_v28  ;;  %v1528_v3 = vadd.f32 %v1527_v60, %v6167_v43 }
 0x1c9   : > { %v3700_v50 = vshll.u32 %v6454_v14, 16  ;;  %v3704_v17 = vshrl.u32 %v6454_v14, 16 }
 0x1ca   : > { %5269 = vmatmul.msk.bf16.vlgmr.msra.gmra.mxu0 %vm1198_vm12, %v4434_v57  ;;  %v3688_v45 = vrot.slane %v3686_v44, 5  ;;  %v3693_v44 = vrot.slane %v3691_v53, 4  ;;  %v4435_v18 = vpack.c.b16 %v4405_v12, %v4404_v29  ;;  %v4307_v53 = vrot.slane %v6442_v55, 5 }
 0x1cb   : > { %v2161_v32 = vpop.f32.mrf.mxu3  ;;  %5220 = vmatmul.msk.bf16.gmra.mxu2 %vm1198_vm12, %v5322_v34  ;;  %v5475_v34 = vld [vmem:[#allocation2 + $0x38] sm:$0x1]  ;;  %v3706_v28 = vrot.slane %v3704_v17, 4 }
 0x1cc   : > { %v2216_v33 = vadd.f32 %v2161_v32, %v1930_v15  ;;  %v2888_v15 = vld [vmem:[#allocation2 + $0x30] sm:$0xe]  ;;  %v2975_v48 = vrot.slane %v5475_v34, 5  ;;  %v3689_v7 = vsel %vm5625_vm11, %v3684_v0, %v3688_v45  ;;  %v5254_v45 = vrot.slane %v4226_v47, 9  ;;  %v5476_v47 = vld [vmem:[#allocation2 + $0x40] sm:$0xf] }
 0x1cd   : > { %v4009_v42 = vunpack.c.l.b16 %v3689_v7  ;;  %v4306_v34 = vrot.slane %v4304_v56, 4 }
 0x1ce   : > { %v1878_v4 = vpop.f32.mrf.mxu2 }
 0x1cf   : > { %v2815_v57 = vpop.f32.mrf.mxu0  ;;  %v1931_v1 = vadd.f32 %v1878_v4, %v1526_v54  ;;  %v1530_v26 = vpop.f32.mrf.mxu1  ;;  %v3696_v54 = vrot.slane %v3694_v61, 5  ;;  %v4308_v55 = vsel %vm6028_vm15, %v4306_v34, %v4307_v53 }
 0x1d0   : > { %5237 = vmatmul.msk.bf16.gmra.mxu3 %vm1198_vm12, %v4037_v25  ;;  %v6456_v8 = vadd.f32 %v2815_v57, %v2216_v33  ;;  %v5124_v25 = vrot.slane %v2888_v15, 9  ;;  %v2974_v33 = vrot.slane %v2972_v11, 4  ;;  %v3702_v57 = vrot.slane %v3700_v50, 5 }
 0x1d1   : > { %v3697_v61 = vor.u32 %v3696_v54, %v3693_v44 }
 0x1d2   : > { %5140 = vmatmul.msk.bf16.gmra.mxu1 %vm1198_vm12, %v3097_v23  ;;  %v4008_v23 = vunpack.c.l.b16 %v3679_v62  ;;  %v2973_v0 = vsel %vm6028_vm15, %v5124_v25, %v2972_v11  ;;  %v2976_v43 = vsel %vm6028_vm15, %v2974_v33, %v2975_v48  ;;  %v3707_v50 = vor.u32 %v3706_v28, %v3702_v57  ;;  %v3582_v28 = vld [vmem:[#allocation2 + $0x48] sm:$0xf] }
 0x1d3   : > { %v2164_v32 = vpop.f32.mrf.mxu3  ;;  %v3069_v12 = vunpack.c.l.b16 %v2973_v0  ;;  %v3710_v11 = vshll.u32 %v6471_v41, 16  ;;  %v4305_v62 = vsel %vm6028_vm15, %v5254_v45, %v4304_v56  ;;  %v3698_v7 = vrot.slane %v3697_v61, 4 }
 0x1d4   : > { %v2217_v2 = vadd.f32 %v2164_v32, %v1931_v1  ;;  %v3070_v32 = vunpack.c.l.b16 %v2976_v43  ;;  %v4038_v48 = vpack.c.b16 %v4009_v42, %v4008_v23  ;;  %v2979_v23 = vrot.slane %v5476_v47, 5 }
 0x1d5   : > { %v3712_v44 = vrot.slane %v3710_v11, 5  ;;  %v4406_v56 = vunpack.c.l.b16 %v4305_v62  ;;  %v3703_v43 = vsel %vm5625_vm11, %v3698_v7, %v3702_v57  ;;  %v3715_v34 = vshrl.u32 %v3582_v28, 16  ;;  %v5324_v7 = vld [vmem:[#allocation2 + $0x3c] sm:$0xff] }
 0x1d6   : > { %v1880_v4 = vpop.f32.mrf.mxu2  ;;  %v3098_v33 = vpack.c.b16 %v3070_v32, %v3069_v12  ;;  %v3718_v12 = vshll.u32 %v3582_v28, 16  ;;  %v4311_v57 = vrot.slane %v6454_v14, 5 }
 0x1d7   : > { %v2818_v1 = vpop.f32.mrf.mxu0  ;;  %v1932_v9 = vadd.f32 %v1880_v4, %v1528_v3  ;;  %v1532_v15 = vpop.f32.mrf.mxu1  ;;  %v3708_v3 = vrot.slane %v3707_v50, 4 }
 0x1d8   : > { %v6473_v60 = vadd.f32 %v2818_v1, %v2217_v2  ;;  %v1531_v2 = vadd.f32 %v1530_v26, %v6178_v49  ;;  %v2889_v49 = vld [vmem:[#allocation2 + $0x3c] sm:$0xe]  ;;  %v4407_v1 = vunpack.c.l.b16 %v4308_v55  ;;  %v3717_v55 = vrot.slane %v3715_v34, 4 }
 0x1d9   : > { %v3713_v45 = vsel %vm5625_vm11, %v3708_v3, %v3712_v44  ;;  %v5125_v61 = vrot.slane %v2889_v49, 9  ;;  %v4227_v3 = vld [vmem:[#allocation2 + $0x3c] sm:$0xe]  ;;  %v3720_v47 = vrot.slane %v3718_v12, 5  ;;  %v6504_v49 = vld [vmem:[#allocation2 + $0x50] sm:$0x1] }
 0x1da   : > { %5270 = vmatmul.msk.bf16.gmra.mxu0 %vm1198_vm12, %v4435_v18  ;;  %v4436_v11 = vpack.c.b16 %v4407_v1, %v4406_v56  ;;  %v4011_v62 = vunpack.c.l.b16 %v3713_v45  ;;  %v5255_v56 = vrot.slane %v4227_v3, 9  ;;  %v4313_v1 = vrot.slane %v4311_v57, 4 }
 0x1db   : > { %v2166_v29 = vpop.f32.mrf.mxu3  ;;  %5221 = vmatmul.msk.bf16.gmra.mxu2 %vm1198_vm12, %v5323_v21  ;;  %v5477_v21 = vld [vmem:[#allocation2 + $0x44] sm:$0x1]  ;;  %v3721_v45 = vor.u32 %v3720_v47, %v3717_v55 }
 0x1dc   : > { %v2218_v17 = vadd.f32 %v2166_v29, %v1932_v9  ;;  %v6487_v9 = vld [vmem:[#allocation2 + $0x4c] sm:$0xf]  ;;  %v2982_v42 = vrot.slane %v5477_v21, 5  ;;  %v2981_v29 = vrot.slane %v2979_v23, 4 }
 0x1dd   : > { %v3724_v32 = vshll.u32 %v6487_v9, 16  ;;  %v3728_v50 = vshrl.u32 %v6487_v9, 16 }
 0x1de   : > { %v1883_v25 = vpop.f32.mrf.mxu2 }
 0x1df   : > { %v2820_v54 = vpop.f32.mrf.mxu0  ;;  %v1933_v18 = vadd.f32 %v1883_v25, %v1531_v2  ;;  %v1535_v4 = vpop.f32.mrf.mxu1  ;;  %v4010_v2 = vunpack.c.l.b16 %v3703_v43  ;;  %v3726_v28 = vrot.slane %v3724_v32, 5 }
 0x1e0   : > { %5238 = vmatmul.msk.bf16.gmra.mxu3 %vm1198_vm12, %v4038_v48  ;;  %v6485_v26 = vadd.f32 %v2820_v54, %v2218_v17  ;;  %v1533_v17 = vadd.f32 %v1532_v15, %v6198_v22  ;;  %v2980_v54 = vsel %vm6028_vm15, %v5125_v61, %v2979_v23  ;;  %v3730_v22 = vrot.slane %v3728_v50, 4  ;;  %v3585_v50 = vld [vmem:[#allocation2 + $0x54] sm:$0xf] }
 0x1e1   : > { %v3071_v21 = vunpack.c.l.b16 %v2980_v54  ;;  %v4039_v23 = vpack.c.b16 %v4011_v62, %v4010_v2  ;;  %v1536_v61 = vadd.f32 %v1535_v4, %v6208_v52  ;;  %v3722_v2 = vrot.slane %v3721_v45, 4  ;;  %v5478_v62 = vld [vmem:[#allocation2 + $0x4c] sm:$0xf] }
 0x1e2   : > { %5141 = vmatmul.msk.bf16.gmra.mxu1 %vm1198_vm12, %v3098_v33  ;;  %v3731_v34 = vor.u32 %v3730_v22, %v3726_v28  ;;  %v2986_v55 = vrot.slane %v5478_v62, 5  ;;  %v3739_v54 = vshrl.u32 %v3585_v50, 16 }
 0x1e3   : > { %v2169_v0 = vpop.f32.mrf.mxu3 }
 0x1e4   : > { %v2219_v53 = vadd.f32 %v2169_v0, %v1933_v18  ;;  %v2983_v18 = vsel %vm6028_vm15, %v2981_v29, %v2982_v42  ;;  %v4314_v42 = vrot.slane %v6471_v41, 5  ;;  %v4312_v29 = vsel %vm6028_vm15, %v5255_v56, %v4311_v57 }
 0x1e5   : > { %v3072_v0 = vunpack.c.l.b16 %v2983_v18  ;;  %v3732_v52 = vrot.slane %v3731_v34, 4  ;;  %v3742_v18 = vshll.u32 %v3585_v50, 16  ;;  %v4408_v47 = vunpack.c.l.b16 %v4312_v29  ;;  %v4228_v50 = vld [vmem:[#allocation2 + $0x48] sm:$0xe] }
 0x1e6   : > { %v1885_v48 = vpop.f32.mrf.mxu2  ;;  %v4318_v34 = vrot.slane %v6487_v9, 5  ;;  %v6533_v9 = vld [vmem:[#allocation2 + $0x5c] sm:$0x1] }
 0x1e7   : > { %v2823_v25 = vpop.f32.mrf.mxu0  ;;  %v1934_v33 = vadd.f32 %v1885_v48, %v1533_v17  ;;  %v1537_v44 = vpop.f32.mrf.mxu1  ;;  %v3099_v32 = vpack.c.b16 %v3072_v0, %v3071_v21  ;;  %v4315_v17 = vsel %vm6028_vm15, %v4313_v1, %v4314_v42  ;;  %v3727_v0 = vsel %vm5625_vm11, %v3722_v2, %v3726_v28  ;;  %v5325_v28 = vld [vmem:[#allocation2 + $0x48] sm:$0xff] }
 0x1e8   : > { %v6502_v15 = vadd.f32 %v2823_v25, %v2219_v53  ;;  %v3734_v53 = vshll.u32 %v6504_v49, 16  ;;  %v6516_v25 = vld [vmem:[#allocation2 + $0x58] sm:$0xf]  ;;  %v4409_v22 = vunpack.c.l.b16 %v4315_v17  ;;  %v1538_v45 = vadd.f32 %v1537_v44, %v6222_v51 }
 0x1e9   : > { %v3748_v56 = vshll.u32 %v6516_v25, 16  ;;  %v3752_v1 = vshrl.u32 %v6516_v25, 16 }
 0x1ea   : > { %5271 = vmatmul.msk.bf16.gmra.mxu0 %vm1198_vm12, %v4436_v11  ;;  %v3736_v4 = vrot.slane %v3734_v53, 5  ;;  %v3741_v53 = vrot.slane %v3739_v54, 4  ;;  %v4437_v29 = vpack.c.b16 %v4409_v22, %v4408_v47  ;;  %v4321_v54 = vrot.slane %v6504_v49, 5 }
 0x1eb   : > { %v2171_v14 = vpop.f32.mrf.mxu3  ;;  %5222 = vmatmul.msk.bf16.gmra.mxu2 %vm1198_vm12, %v5324_v7  ;;  %v5479_v7 = vld [vmem:[#allocation2 + $0x50] sm:$0x1]  ;;  %v3754_v17 = vrot.slane %v3752_v1, 4 }
 0x1ec   : > { %v2220_v43 = vadd.f32 %v2171_v14, %v1934_v33  ;;  %v2890_v33 = vld [vmem:[#allocation2 + $0x48] sm:$0xe]  ;;  %v2989_v3 = vrot.slane %v5479_v7, 5  ;;  %v3737_v42 = vsel %vm5625_vm11, %v3732_v52, %v3736_v4  ;;  %v5256_v4 = vrot.slane %v4228_v50, 9  ;;  %v5480_v50 = vld [vmem:[#allocation2 + $0x58] sm:$0xf] }
 0x1ed   : > { %v4013_v2 = vunpack.c.l.b16 %v3737_v42  ;;  %v4320_v7 = vrot.slane %v4318_v34, 4 }
 0x1ee   : > { %v1888_v12 = vpop.f32.mrf.mxu2 }
 0x1ef   : > { %v2825_v11 = vpop.f32.mrf.mxu0  ;;  %v1935_v48 = vadd.f32 %v1888_v12, %v1536_v61  ;;  %v1540_v41 = vpop.f32.mrf.mxu1  ;;  %v3744_v61 = vrot.slane %v3742_v18, 5  ;;  %v4322_v49 = vsel %vm6028_vm15, %v4320_v7, %v4321_v54 }
 0x1f0   : > { %5239 = vmatmul.msk.bf16.gmra.mxu3 %vm1198_vm12, %v4039_v23  ;;  %v6518_v57 = vadd.f32 %v2825_v11, %v2220_v43  ;;  %v5126_v23 = vrot.slane %v2890_v33, 9  ;;  %v2988_v43 = vrot.slane %v2986_v55, 4  ;;  %v3750_v11 = vrot.slane %v3748_v56, 5 }
 0x1f1   : > { %v3745_v18 = vor.u32 %v3744_v61, %v3741_v53 }
 0x1f2   : > { %5142 = vmatmul.msk.bf16.gmra.mxu1 %vm1198_vm12, %v3099_v32  ;;  %v4012_v32 = vunpack.c.l.b16 %v3727_v0  ;;  %v2987_v52 = vsel %vm6028_vm15, %v5126_v23, %v2986_v55  ;;  %v2990_v51 = vsel %vm6028_vm15, %v2988_v43, %v2989_v3  ;;  %v3755_v56 = vor.u32 %v3754_v17, %v3750_v11  ;;  %v3588_v17 = vld [vmem:[#allocation2 + $0x60] sm:$0xf] }
 0x1f3   : > { %v2174_v14 = vpop.f32.mrf.mxu3  ;;  %v3073_v22 = vunpack.c.l.b16 %v2987_v52  ;;  %v3758_v55 = vshll.u32 %v6533_v9, 16  ;;  %v4319_v0 = vsel %vm6028_vm15, %v5256_v4, %v4318_v34  ;;  %v3746_v42 = vrot.slane %v3745_v18, 4 }
 0x1f4   : > { %v2221_v21 = vadd.f32 %v2174_v14, %v1935_v48  ;;  %v3074_v14 = vunpack.c.l.b16 %v2990_v51  ;;  %v4040_v3 = vpack.c.b16 %v4013_v2, %v4012_v32  ;;  %v2993_v32 = vrot.slane %v5480_v50, 5 }
 0x1f5   : > { %v3760_v53 = vrot.slane %v3758_v55, 5  ;;  %v4410_v34 = vunpack.c.l.b16 %v4319_v0  ;;  %v3751_v51 = vsel %vm5625_vm11, %v3746_v42, %v3750_v11  ;;  %v3763_v7 = vshrl.u32 %v3588_v17, 16 }
 0x1f6   : > { %v1890_v12 = vpop.f32.mrf.mxu2  ;;  %v3100_v43 = vpack.c.b16 %v3074_v14, %v3073_v22  ;;  %v3766_v22 = vshll.u32 %v3588_v17, 16  ;;  %v4325_v11 = vrot.slane %v6516_v25, 5 }
 0x1f7   : > { %v2828_v48 = vpop.f32.mrf.mxu0  ;;  %v1936_v62 = vadd.f32 %v1890_v12, %v1538_v45  ;;  %v1542_v33 = vpop.f32.mrf.mxu1  ;;  %v3756_v45 = vrot.slane %v3755_v56, 4 }
 0x1f8   : > { %v6535_v44 = vadd.f32 %v2828_v48, %v2221_v21  ;;  %v1541_v21 = vadd.f32 %v1540_v41, %v6122_v58  ;;  %v2891_v58 = vld [vmem:[#allocation2 + $0x54] sm:$0xe]  ;;  %v4411_v48 = vunpack.c.l.b16 %v4322_v49  ;;  %v3768_v50 = vrot.slane %v3766_v22, 5 }
 0x1f9   : > { %v3761_v4 = vsel %vm5625_vm11, %v3756_v45, %v3760_v53  ;;  %v5127_v18 = vrot.slane %v2891_v58, 9  ;;  %v4229_v49 = vld [vmem:[#allocation2 + $0x54] sm:$0xe] }
 0x1fa   : > { %5272 = vmatmul.msk.bf16.gmra.mxu0 %vm1198_vm12, %v4437_v29  ;;  %v4438_v55 = vpack.c.b16 %v4411_v48, %v4410_v34  ;;  %v4015_v0 = vunpack.c.l.b16 %v3761_v4  ;;  %v5326_v45 = vld [vmem:[#allocation2 + $0x54] sm:$0xff]  ;;  %v5257_v58 = vrot.slane %v4229_v49, 9  ;;  %v6566_v34 = vld [vmem:[#allocation2 + $0x68] sm:$0x1]  ;;  %v4327_v48 = vrot.slane %v4325_v11, 4 }
 0x1fb   : > { %v2176_v47 = vpop.f32.mrf.mxu3  ;;  %5223 = vmatmul.msk.bf16.gmra.mxu2 %vm1198_vm12, %v5325_v28  ;;  %v5481_v28 = vld [vmem:[#allocation2 + $0x5c] sm:$0x1]  ;;  %v3591_v49 = vld [vmem:[#allocation2 + $0x6c] sm:$0xf] }
 0x1fc   : > { %v2222_v1 = vadd.f32 %v2176_v47, %v1936_v62  ;;  %v6549_v62 = vld [vmem:[#allocation2 + $0x64] sm:$0xf]  ;;  %v2996_v2 = vrot.slane %v5481_v28, 5  ;;  %v2995_v47 = vrot.slane %v2993_v32, 4  ;;  %v4328_v28 = vrot.slane %v6533_v9, 5 }
 0x1fd   : > { %v3772_v14 = vshll.u32 %v6549_v62, 16  ;;  %v3776_v56 = vshrl.u32 %v6549_v62, 16 }
 0x1fe   : > { %v1893_v23 = vpop.f32.mrf.mxu2  ;;  %v4329_v22 = vsel %vm6028_vm15, %v4327_v48, %v4328_v28 }
 0x1ff   : > { %v2830_v61 = vpop.f32.mrf.mxu0  ;;  %v1937_v29 = vadd.f32 %v1893_v23, %v1541_v21  ;;  %v1545_v12 = vpop.f32.mrf.mxu1  ;;  %v4014_v21 = vunpack.c.l.b16 %v3751_v51  ;;  %v3765_v23 = vrot.slane %v3763_v7, 4  ;;  %v3774_v17 = vrot.slane %v3772_v14, 5 }
 0x200   : > { %5240 = vmatmul.msk.bf16.gmra.mxu3 %vm1198_vm12, %v4040_v3  ;;  %v6547_v41 = vadd.f32 %v2830_v61, %v2222_v1  ;;  %v1543_v1 = vadd.f32 %v1542_v33, %v6137_v20  ;;  %v2994_v61 = vsel %vm6028_vm15, %v5127_v18, %v2993_v32  ;;  %v3778_v20 = vrot.slane %v3776_v56, 4 }
 0x201   : > { %v3769_v4 = vor.u32 %v3768_v50, %v3765_v23  ;;  %v1546_v18 = vadd.f32 %v1545_v12, %v6151_v35  ;;  %v2892_v35 = vld [vmem:[#allocation2 + $0x60] sm:$0xe] }
 0x202   : > { %5143 = vmatmul.msk.bf16.gmra.mxu1 %vm1198_vm12, %v3100_v43  ;;  %v3779_v7 = vor.u32 %v3778_v20, %v3774_v17  ;;  %v3787_v20 = vshrl.u32 %v3591_v49, 16  ;;  %v5128_v28 = vrot.slane %v2892_v35, 9  ;;  %v6597_v35 = vld [vmem:[#allocation2 + $0x74] sm:$0x1] }
 0x203   : > { %v2179_v52 = vpop.f32.mrf.mxu3 }
 0x204   : > { %v2223_v54 = vadd.f32 %v2179_v52, %v1937_v29  ;;  %v2997_v29 = vsel %vm6028_vm15, %v2995_v47, %v2996_v2  ;;  %v3075_v52 = vunpack.c.l.b16 %v2994_v61  ;;  %v4041_v2 = vpack.c.b16 %v4015_v0, %v4014_v21  ;;  %v5482_v21 = vld [vmem:[#allocation2 + $0x64] sm:$0xf]  ;;  %v5483_v61 = vld [vmem:[#allocation2 + $0x68] sm:$0x1] }
 0x205   : > { %v3076_v51 = vunpack.c.l.b16 %v2997_v29  ;;  %v4326_v47 = vsel %vm6028_vm15, %v5257_v58, %v4325_v11  ;;  %v3000_v0 = vrot.slane %v5482_v21, 5  ;;  %v3780_v23 = vrot.slane %v3779_v7, 4 }
 0x206   : > { %v1895_v3 = vpop.f32.mrf.mxu2  ;;  %v4412_v11 = vunpack.c.l.b16 %v4326_v47  ;;  %v3003_v29 = vrot.slane %v5483_v61, 5  ;;  %v3790_v58 = vshll.u32 %v3591_v49, 16  ;;  %v4332_v47 = vrot.slane %v6549_v62, 5 }
 0x207   : > { %v2833_v43 = vpop.f32.mrf.mxu0  ;;  %v1938_v42 = vadd.f32 %v1895_v3, %v1543_v1  ;;  %v1547_v53 = vpop.f32.mrf.mxu1  ;;  %v3101_v9 = vpack.c.b16 %v3076_v51, %v3075_v52  ;;  %v3770_v3 = vrot.slane %v3769_v4, 4  ;;  %v3002_v52 = vrot.slane %v3000_v0, 4 }
 0x208   : > { %v6564_v33 = vadd.f32 %v2833_v43, %v2223_v54  ;;  %v3782_v54 = vshll.u32 %v6566_v34, 16  ;;  %v1548_v7 = vadd.f32 %v1547_v53, %v6170_v5  ;;  %v3001_v49 = vsel %vm6028_vm15, %v5128_v28, %v3000_v0 }
 0x209   : > { %v3775_v48 = vsel %vm5625_vm11, %v3770_v3, %v3774_v17  ;;  %v4230_v3 = vld [vmem:[#allocation2 + $0x60] sm:$0xe] }
 0x20a   : > { %5273 = vmatmul.msk.bf16.gmra.mxu0 %vm1198_vm12, %v4438_v55  ;;  %v3784_v43 = vrot.slane %v3782_v54, 5 }
 0x20b   : > { %v2181_v25 = vpop.f32.mrf.mxu3  ;;  %5224 = vmatmul.msk.bf16.gmra.mxu2 %vm1198_vm12, %v5326_v45  ;;  %v6580_v45 = vld [vmem:[#allocation2 + $0x70] sm:$0xf] }
 0x20c   : > { %v2224_v32 = vadd.f32 %v2181_v25, %v1938_v42  ;;  %v4413_v42 = vunpack.c.l.b16 %v4329_v22  ;;  %v3785_v51 = vsel %vm5625_vm11, %v3780_v23, %v3784_v43  ;;  %v3789_v22 = vrot.slane %v3787_v20, 4 }
 0x20d   : > { %v3004_v23 = vsel %vm6028_vm15, %v3002_v52, %v3003_v29  ;;  %v4335_v29 = vrot.slane %v6566_v34, 5 }
 0x20e   : > { %v1898_v14 = vpop.f32.mrf.mxu2  ;;  %v4439_v4 = vpack.c.b16 %v4413_v42, %v4412_v11  ;;  %v5258_v11 = vrot.slane %v4230_v3, 9  ;;  %v3077_v42 = vunpack.c.l.b16 %v3001_v49  ;;  %v3078_v61 = vunpack.c.l.b16 %v3004_v23 }
 0x20f   : > { %v2835_v56 = vpop.f32.mrf.mxu0  ;;  %v1939_v55 = vadd.f32 %v1898_v14, %v1546_v18  ;;  %v1550_v1 = vpop.f32.mrf.mxu1  ;;  %v4016_v18 = vunpack.c.l.b16 %v3775_v48  ;;  %v3792_v14 = vrot.slane %v3790_v58, 5  ;;  %v4334_v58 = vrot.slane %v4332_v47, 4 }
 0x210   : > { %5241 = vmatmul.msk.bf16.gmra.mxu3 %vm1198_vm12, %v4041_v2  ;;  %v6578_v12 = vadd.f32 %v2835_v56, %v2224_v32  ;;  %v3796_v32 = vshll.u32 %v6580_v45, 16  ;;  %v3800_v2 = vshrl.u32 %v6580_v45, 16  ;;  %v5327_v56 = vld [vmem:[#allocation2 + $0x60] sm:$0xff]  ;;  %v1551_v28 = vadd.f32 %v1550_v1, %v6182_v38 }
 0x211   : > { %v4333_v52 = vsel %vm6028_vm15, %v5258_v11, %v4332_v47 }
 0x212   : > { %5144 = vmatmul.msk.bf16.gmra.mxu1 %vm1198_vm12, %v3101_v9  ;;  %v3798_v43 = vrot.slane %v3796_v32, 5  ;;  %v3802_v5 = vrot.slane %v3800_v2, 4  ;;  %v3102_v32 = vpack.c.b16 %v3078_v61, %v3077_v42 }
 0x213   : > { %v2184_v50 = vpop.f32.mrf.mxu3 }
 0x214   : > { %v2225_v25 = vadd.f32 %v2184_v50, %v1939_v55  ;;  %v4017_v55 = vunpack.c.l.b16 %v3785_v51  ;;  %v3793_v50 = vor.u32 %v3792_v14, %v3789_v22  ;;  %v3803_v48 = vor.u32 %v3802_v5, %v3798_v43  ;;  %v5484_v22 = vld [vmem:[#allocation2 + $0x70] sm:$0xf] }
 0x215   : > { %v3007_v14 = vrot.slane %v5484_v22, 5  ;;  %v5328_v22 = vld [vmem:[#allocation2 + $0x6c] sm:$0xff] }
 0x216   : > { %v1900_v54 = vpop.f32.mrf.mxu2  ;;  %v4042_v0 = vpack.c.b16 %v4017_v55, %v4016_v18  ;;  %v3794_v2 = vrot.slane %v3793_v50, 4  ;;  %v3804_v38 = vrot.slane %v3803_v48, 4 }
 0x217   : > { %v2838_v9 = vpop.f32.mrf.mxu0  ;;  %v1940_v17 = vadd.f32 %v1900_v54, %v1548_v7  ;;  %v1552_v21 = vpop.f32.mrf.mxu1  ;;  %v4336_v54 = vsel %vm6028_vm15, %v4334_v58, %v4335_v29  ;;  %v3009_v50 = vrot.slane %v3007_v14, 4  ;;  %v6963_v29 = vld [vmem:[#allocation3_spill] sm:$0xff] }
 0x218   : > { %v6595_v53 = vadd.f32 %v2838_v9, %v2225_v25  ;;  %v3806_v25 = vshll.u32 %v6597_v35, 16  ;;  %v6609_v9 = vld [vmem:[#allocation2 + $0x7c] sm:$0xf]  ;;  %v4415_v49 = vunpack.c.l.b16 %v4336_v54  ;;  %v3799_v5 = vsel %vm5625_vm11, %v3794_v2, %v3798_v43  ;;  %v4231_v2 = vld [vmem:[#allocation2 + $0x6c] sm:$0xe] }
 0x219   : > { %v3824_v11 = vshrl.u32 %v6609_v9, 16  ;;  %v1553_v48 = vadd.f32 %v1552_v21, %v6963_v29 }
 0x21a   : > { %5274 = vmatmul.msk.bf16.gmra.mxu0 %vm1198_vm12, %v4439_v4  ;;  %v3594_v4 = vld [vmem:[#allocation2 + $0x78] sm:$0xf]  ;;  %v3808_v1 = vrot.slane %v3806_v25, 5  ;;  %v4339_v25 = vrot.slane %v6580_v45, 5  ;;  %v6626_v45 = vld [vmem:[#allocation2 + $0x80] sm:$0x1] }
 0x21b   : > { %v2186_v62 = vpop.f32.mrf.mxu3  ;;  %5225 = vmatmul.msk.bf16.gmra.mxu2 %vm1198_vm12, %v5327_v56  ;;  %v4414_v56 = vunpack.c.l.b16 %v4333_v52  ;;  %v3811_v55 = vshrl.u32 %v3594_v4, 16  ;;  %v3814_v3 = vshll.u32 %v3594_v4, 16 }
 0x21c   : > { %v2226_v20 = vadd.f32 %v2186_v62, %v1940_v17  ;;  %v2893_v17 = vld [vmem:[#allocation2 + $0x6c] sm:$0xe]  ;;  %v3820_v62 = vshll.u32 %v6609_v9, 16  ;;  %v3809_v58 = vsel %vm5625_vm11, %v3804_v38, %v3808_v1 }
 0x21d   : > { %v5129_v61 = vrot.slane %v2893_v17, 9  ;;  %v3816_v52 = vrot.slane %v3814_v3, 5  ;;  %v4019_v17 = vunpack.c.l.b16 %v3809_v58  ;;  %v4342_v3 = vrot.slane %v6597_v35, 5 }
 0x21e   : > { %v1903_v51 = vpop.f32.mrf.mxu2  ;;  %v3822_v4 = vrot.slane %v3820_v62, 5 }
 0x21f   : > { %v2840_v7 = vpop.f32.mrf.mxu0  ;;  %v1941_v18 = vadd.f32 %v1903_v51, %v1551_v28  ;;  %v1555_v34 = vpop.f32.mrf.mxu1  ;;  %v3813_v28 = vrot.slane %v3811_v55, 4  ;;  %v4440_v51 = vpack.c.b16 %v4415_v49, %v4414_v56  ;;  %v3008_v38 = vsel %vm6028_vm15, %v5129_v61, %v3007_v14 }
 0x220   : > { %5242 = vmatmul.msk.bf16.gmra.mxu3 %vm1198_vm12, %v4042_v0  ;;  %v6611_v47 = vadd.f32 %v2840_v7, %v2226_v20  ;;  %v5485_v0 = vld [vmem:[#allocation2 + $0x74] sm:$0x1]  ;;  %v3826_v7 = vrot.slane %v3824_v11, 4  ;;  %v5259_v56 = vrot.slane %v4231_v2, 9  ;;  %v4341_v55 = vrot.slane %v4339_v25, 4 }
 0x221   : > { %v3010_v20 = vrot.slane %v5485_v0, 5  ;;  %v3817_v49 = vor.u32 %v3816_v52, %v3813_v28  ;;  %v3079_v62 = vunpack.c.l.b16 %v3008_v38  ;;  %v3830_v14 = vshll.u32 %v6626_v45, 16  ;;  %v6644_v38 = vld [vmem:[#allocation2 + $0x88] sm:$0xf] }
 0x222   : > { %5145 = vmatmul.msk.bf16.gmra.mxu1 %vm1198_vm12, %v3102_v32  ;;  %v4018_v32 = vunpack.c.l.b16 %v3799_v5  ;;  %v3827_v0 = vor.u32 %v3826_v7, %v3822_v4  ;;  %v4340_v58 = vsel %vm6028_vm15, %v5259_v56, %v4339_v25  ;;  %v4343_v35 = vsel %vm6028_vm15, %v4341_v55, %v4342_v3 }
 0x223   : > { %v2189_v23 = vpop.f32.mrf.mxu3  ;;  %v3011_v21 = vsel %vm6028_vm15, %v3009_v50, %v3010_v20  ;;  %v6964_v20 = vld [vmem:[#allocation4_spill] sm:$0xff]  ;;  %v3818_v28 = vrot.slane %v3817_v49, 4  ;;  %v4416_v25 = vunpack.c.l.b16 %v4340_v58 }
 0x224   : > { %v2227_v42 = vadd.f32 %v2189_v23, %v1941_v18  ;;  %v3080_v11 = vunpack.c.l.b16 %v3011_v21  ;;  %v4043_v50 = vpack.c.b16 %v4019_v17, %v4018_v32  ;;  %v3828_v52 = vrot.slane %v3827_v0, 4  ;;  %v5486_v32 = vld [vmem:[#allocation2 + $0x7c] sm:$0xf]  ;;  %v5487_v0 = vld [vmem:[#allocation2 + $0x80] sm:$0x1] }
 0x225   : > { %v4417_v17 = vunpack.c.l.b16 %v4343_v35  ;;  %v3823_v56 = vsel %vm5625_vm11, %v3818_v28, %v3822_v4 }
 0x226   : > { %v1905_v43 = vpop.f32.mrf.mxu2 }
 0x227   : > { %v2843_v54 = vpop.f32.mrf.mxu0  ;;  %v1942_v18 = vadd.f32 %v1905_v43, %v1553_v48  ;;  %v1557_v23 = vpop.f32.mrf.mxu1  ;;  %v3103_v48 = vpack.c.b16 %v3080_v11, %v3079_v62 }
 0x228   : > { %v6628_v1 = vadd.f32 %v2843_v54, %v2227_v42  ;;  %v1556_v42 = vadd.f32 %v1555_v34, %v6964_v20  ;;  %v3014_v54 = vrot.slane %v5486_v32, 5  ;;  %v3597_v34 = vld [vmem:[#allocation2 + $0x84] sm:$0xf]  ;;  %v4441_v20 = vpack.c.b16 %v4417_v17, %v4416_v25 }
 0x229   : > { %v3835_v3 = vshrl.u32 %v3597_v34, 16  ;;  %v3838_v49 = vshll.u32 %v3597_v34, 16 }
 0x22a   : > { %5275 = vmatmul.msk.bf16.gmra.mxu0 %vm1198_vm12, %v4440_v51  ;;  %v3832_v51 = vrot.slane %v3830_v14, 5  ;;  %v3016_v11 = vrot.slane %v3014_v54, 4  ;;  %v3017_v14 = vrot.slane %v5487_v0, 5 }
 0x22b   : > { %v2191_v5 = vpop.f32.mrf.mxu3  ;;  %5226 = vmatmul.msk.bf16.gmra.mxu2 %vm1198_vm12, %v5328_v22  ;;  %v3837_v28 = vrot.slane %v3835_v3, 4  ;;  %v3840_v25 = vrot.slane %v3838_v49, 5 }
 0x22c   : > { %v2228_v61 = vadd.f32 %v2191_v5, %v1942_v18  ;;  %v2894_v18 = vld [vmem:[#allocation2 + $0x78] sm:$0xe]  ;;  %v3833_v55 = vsel %vm5625_vm11, %v3828_v52, %v3832_v51 }
 0x22d   : > { %v5130_v62 = vrot.slane %v2894_v18, 9  ;;  %v4021_v4 = vunpack.c.l.b16 %v3833_v55  ;;  %v3018_v18 = vsel %vm6028_vm15, %v3016_v11, %v3017_v14  ;;  %v3841_v49 = vor.u32 %v3840_v25, %v3837_v28  ;;  %v3600_v14 = vld [vmem:[#allocation2 + $0x90] sm:$0xf]  ;;  %v5488_v28 = vld [vmem:[#allocation2 + $0x88] sm:$0xf] }
 0x22e   : > { %v1908_v29 = vpop.f32.mrf.mxu2 }
 0x22f   : > { %v2845_v43 = vpop.f32.mrf.mxu0  ;;  %v1943_v2 = vadd.f32 %v1908_v29, %v1556_v42  ;;  %v6640_v7 = vpop.f32.mrf.mxu1  ;;  %v6966_v42 = vld [vmem:[#allocation5_spill] sm:$0xff]  ;;  %v4020_v29 = vunpack.c.l.b16 %v3823_v56  ;;  %v3015_v34 = vsel %vm6028_vm15, %v5130_v62, %v3014_v54  ;;  %v4349_v62 = vrot.slane %v6626_v45, 5 }
 0x230   : > { %5243 = vmatmul.msk.bf16.gmra.mxu3 %vm1198_vm12, %v4043_v50  ;;  %v6642_v22 = vadd.f32 %v2845_v43, %v2228_v61  ;;  %v3844_v61 = vshll.u32 %v6644_v38, 16  ;;  %v3848_v50 = vshrl.u32 %v6644_v38, 16  ;;  %v1558_v58 = vadd.f32 %v1557_v23, %v6966_v42  ;;  %v5329_v43 = vld [vmem:[#allocation2 + $0x78] sm:$0xff]  ;;  %v6661_v56 = vld [vmem:[#allocation2 + $0x8c] sm:$0x1] }
 0x231   : > { %v3081_v0 = vunpack.c.l.b16 %v3015_v34  ;;  %v3082_v42 = vunpack.c.l.b16 %v3018_v18  ;;  %v4044_v54 = vpack.c.b16 %v4021_v4, %v4020_v29  ;;  %v3842_v45 = vrot.slane %v3841_v49, 4  ;;  %v2895_v34 = vld [vmem:[#allocation2 + $0x84] sm:$0xe]  ;;  %v5489_v49 = vld [vmem:[#allocation2 + $0x8c] sm:$0x1] }
 0x232   : > { %6965 = vst [vmem:[#allocation3_spill] sm:$0xff] %v6642_v22  ;;  %5146 = vmatmul.msk.bf16.gmra.mxu1 %vm1198_vm12, %v3103_v48  ;;  %v4346_v48 = vrot.slane %v6609_v9, 5  ;;  %v3846_v17 = vrot.slane %v3844_v61, 5  ;;  %v3850_v23 = vrot.slane %v3848_v50, 4  ;;  %v3859_v18 = vshrl.u32 %v3600_v14, 16 }
 0x233   : > { %v2194_v21 = vpop.f32.mrf.mxu3  ;;  %v3104_v50 = vpack.c.b16 %v3082_v42, %v3081_v0 }
 0x234   : > { %v2229_v5 = vadd.f32 %v2194_v21, %v1943_v2  ;;  %v4232_v2 = vld [vmem:[#allocation2 + $0x78] sm:$0xe]  ;;  %v4348_v3 = vrot.slane %v4346_v48, 4  ;;  %v3851_v11 = vor.u32 %v3850_v23, %v3846_v17  ;;  %v3862_v23 = vshll.u32 %v3600_v14, 16 }
 0x235   : > { %v5260_v55 = vrot.slane %v4232_v2, 9  ;;  %v3861_v14 = vrot.slane %v3859_v18, 4 }
 0x236   : > { %v1910_v35 = vpop.f32.mrf.mxu2  ;;  %v4350_v29 = vsel %vm6028_vm15, %v4348_v3, %v4349_v62  ;;  %v3251_v3 = vadd.f32 %v6640_v7, %v6244_v30 }
 0x237   : > { %v2848_v52 = vpop.f32.mrf.mxu0  ;;  %v1944_v51 = vadd.f32 %v1910_v35, %v1558_v58  ;;  %v3173_v32 = vpop.f32.mrf.mxu1  ;;  %v6667_v35 = vld [vmem:[#allocation2 + $0x94] sm:$0xf] }
 0x238   : > { %v6659_v21 = vadd.f32 %v2848_v52, %v2229_v5  ;;  %v3854_v5 = vshll.u32 %v6661_v56, 16  ;;  %v4347_v52 = vsel %vm6028_vm15, %v5260_v55, %v4346_v48  ;;  %v3872_v0 = vshrl.u32 %v6667_v35, 16 }
 0x239   : > { %v4418_v42 = vunpack.c.l.b16 %v4347_v52  ;;  %v4419_v48 = vunpack.c.l.b16 %v4350_v29  ;;  %v4233_v52 = vld [vmem:[#allocation2 + $0x84] sm:$0xe]  ;;  %v3864_v29 = vrot.slane %v3862_v23, 5  ;;  %v3252_v30 = vadd.f32 %v3173_v32, %v6259_v27 }
 0x23a   : > { %6967 = vst [vmem:[#allocation4_spill] sm:$0xff] %v6659_v21  ;;  %5276 = vmatmul.msk.bf16.gmra.mxu0 %vm1198_vm12, %v4441_v20  ;;  %v3856_v2 = vrot.slane %v3854_v5, 5  ;;  %v5261_v23 = vrot.slane %v4233_v52, 9 }
 0x23b   : > { %v2196_v9 = vpop.f32.mrf.mxu3  ;;  %5227 = vmatmul.msk.bf16.gmra.mxu2 %vm1198_vm12, %v5329_v43  ;;  %v3852_v43 = vrot.slane %v3851_v11, 4  ;;  %v3024_v11 = vrot.slane %v5489_v49, 5  ;;  %v6689_v49 = vld [vmem:[#allocation2 + $0x98] sm:$0x1]  ;;  %v3865_v27 = vor.u32 %v3864_v29, %v3861_v14 }
 0x23c   : > { %v2230_v58 = vadd.f32 %v2196_v9, %v1944_v51  ;;  %v3021_v51 = vrot.slane %v5488_v28, 5  ;;  %v3868_v9 = vshll.u32 %v6667_v35, 16 }
 0x23d   : > { %v3857_v5 = vsel %vm5625_vm11, %v3852_v43, %v3856_v2 }
 0x23e   : > { %v3458_v61 = vpop.f32.mrf.mxu2  ;;  %v3023_v62 = vrot.slane %v3021_v51, 4  ;;  %v6685_v28 = vrot.slane %v3868_v9, 5  ;;  %v4023_v22 = vunpack.c.l.b16 %v3857_v5 }
 0x23f   : > { %v2850_v20 = vpop.f32.mrf.mxu0  ;;  %v3176_v4 = vpop.f32.mrf.mxu1 }
 0x240   : > { %5244 = vmatmul.msk.bf16.gmra.mxu3 %vm1198_vm12, %v4044_v54  ;;  %v6674_v25 = vadd.f32 %v2850_v20, %v2230_v58  ;;  %v5131_v54 = vrot.slane %v2895_v34, 9  ;;  %v3847_v58 = vsel %vm5625_vm11, %v3842_v45, %v3846_v17  ;;  %v3538_v20 = vadd.f32 %v3458_v61, %v3251_v3  ;;  %v5330_v17 = vld [vmem:[#allocation2 + $0x84] sm:$0xff] }
 0x241   : > { %v4353_v34 = vrot.slane %v6644_v38, 5  ;;  %v4022_v45 = vunpack.c.l.b16 %v3847_v58  ;;  %v3025_v2 = vsel %vm6028_vm15, %v3023_v62, %v3024_v11  ;;  %v3878_v38 = vshll.u32 %v6689_v49, 16 }
 0x242   : > { %6968 = vst [vmem:[#allocation5_spill] sm:$0xff] %v6674_v25  ;;  %5147 = vmatmul.msk.bf16.gmra.mxu1 %vm1198_vm12, %v3104_v50  ;;  %v3874_v50 = vrot.slane %v3872_v0, 4  ;;  %v4442_v25 = vpack.c.b16 %v4419_v48, %v4418_v42  ;;  %v3022_v61 = vsel %vm6028_vm15, %v5131_v54, %v3021_v51  ;;  %v4356_v48 = vrot.slane %v6661_v56, 5 }
 0x243   : > { %v4112_v55 = vpop.f32.mrf.mxu3  ;;  %v4355_v42 = vrot.slane %v4353_v34, 4  ;;  %v3083_v3 = vunpack.c.l.b16 %v3022_v61  ;;  %v3084_v58 = vunpack.c.l.b16 %v3025_v2  ;;  %v4045_v51 = vpack.c.b16 %v4023_v22, %v4022_v45  ;;  %v2896_v45 = vld [vmem:[#allocation2 + $0x90] sm:$0xe] }
 0x244   : > { %v4192_v9 = vadd.f32 %v4112_v55, %v3538_v20  ;;  %v3875_v32 = vor.u32 %v3874_v50, %v6685_v28  ;;  %v4354_v55 = vsel %vm6028_vm15, %v5261_v23, %v4353_v34  ;;  %v3866_v11 = vrot.slane %v3865_v27, 4  ;;  %v5490_v50 = vld [vmem:[#allocation2 + $0x94] sm:$0xf] }
 0x245   : > { %v3880_v14 = vrot.slane %v3878_v38, 5  ;;  %v4357_v20 = vsel %vm6028_vm15, %v4355_v42, %v4356_v48  ;;  %v3105_v52 = vpack.c.b16 %v3084_v58, %v3083_v3  ;;  %v4420_v34 = vunpack.c.l.b16 %v4354_v55  ;;  %v5491_v3 = vld [vmem:[#allocation2 + $0x98] sm:$0x1] }
 0x246   : > { %v3460_v7 = vpop.f32.mrf.mxu2  ;;  %v3876_v5 = vrot.slane %v3875_v32, 4  ;;  %v5132_v42 = vrot.slane %v2896_v45, 9  ;;  %v3031_v58 = vrot.slane %v5491_v3, 5 }
 0x247   : > { %v4510_v21 = vpop.f32.mrf.mxu0  ;;  %v3178_v43 = vpop.f32.mrf.mxu1  ;;  %v3539_v18 = vadd.f32 %v3460_v7, %v3252_v30  ;;  %v3028_v30 = vrot.slane %v5490_v50, 5  ;;  %v3603_v7 = vld [vmem:[#allocation2 + $0x9c] sm:$0xf]  ;;  %v5331_v50 = vld [vmem:[#allocation2 + $0x90] sm:$0xff] }
 0x248   : > { %v4590_v62 = vadd.f32 %v4510_v21, %v4192_v9  ;;  %v3881_v2 = vsel %vm5625_vm11, %v3876_v5, %v3880_v14  ;;  %v3883_v38 = vshrl.u32 %v3603_v7, 16  ;;  %v3254_v14 = vadd.f32 %v3178_v43, %v6278_v46 }
 0x249   : > { %v3030_v48 = vrot.slane %v3028_v30, 4 }
 0x24a   : > { %5277 = vmatmul.msk.bf16.gmra.mxu0 %vm1198_vm12, %v4442_v25  ;;  %v3253_v25 = vadd.f32 %v3176_v4, %v6264_v19  ;;  %v4723_v61 = vmul.f32 %v4590_v62, %v4590_v62  ;;  %v4421_v19 = vunpack.c.l.b16 %v4357_v20  ;;  %v3871_v4 = vsel %vm5625_vm11, %v3866_v11, %v6685_v28 }
 0x24b   : > { %v4114_v0 = vpop.f32.mrf.mxu3  ;;  %5228 = vmatmul.msk.bf16.gmra.mxu2 %vm1198_vm12, %v5330_v17  ;;  %v4024_v20 = vunpack.c.l.b16 %v3871_v4  ;;  %v3885_v45 = vrot.slane %v3883_v38, 4  ;;  %v6736_v4 = vld [vmem:[#allocation2 + $0xa4] sm:$0x1] }
 0x24c   : > { %v4193_v54 = vadd.f32 %v4114_v0, %v3539_v18  ;;  %v6720_v18 = vld [vmem:[#allocation2 + $0xa0] sm:$0xf]  ;;  %v4234_v0 = vld [vmem:[#allocation2 + $0x90] sm:$0xe]  ;;  %v4443_v5 = vpack.c.b16 %v4421_v19, %v4420_v34 }
 0x24d   : > { %v3892_v55 = vshll.u32 %v6720_v18, 16  ;;  %v3896_v11 = vshrl.u32 %v6720_v18, 16 }
 0x24e   : > { %v3463_v56 = vpop.f32.mrf.mxu2 }
 0x24f   : > { %v4512_v29 = vpop.f32.mrf.mxu0  ;;  %v6706_v22 = vpop.f32.mrf.mxu1  ;;  %v3540_v17 = vadd.f32 %v3463_v56, %v3253_v25  ;;  %v4025_v56 = vunpack.c.l.b16 %v3881_v2  ;;  %v6734_v19 = vrot.slane %v3892_v55, 5  ;;  %v3898_v46 = vrot.slane %v3896_v11, 4 }
 0x250   : > { %5245 = vmatmul.msk.bf16.gmra.mxu3 %vm1198_vm12, %v4045_v51  ;;  %v4591_v21 = vadd.f32 %v4512_v29, %v4193_v54  ;;  %v3886_v51 = vshll.u32 %v3603_v7, 16  ;;  %v3029_v7 = vsel %vm6028_vm15, %v5132_v42, %v3028_v30  ;;  %v4363_v42 = vrot.slane %v6689_v49, 5 }
 0x252   : > { %v5340_v23 = vpack.c.bf16 %v4591_v21, %v4590_v62  ;;  %v4686_v9 = vadd.f32 %v4591_v21, %v4590_v62  ;;  %v4724_v27 = vmul.f32 %v4591_v21, %v4591_v21  ;;  %5148 = vmatmul.msk.bf16.gmra.mxu1 %vm1198_vm12, %v3105_v52  ;;  %v4360_v62 = vrot.slane %v6667_v35, 5 }
 0x253   : > { %v4117_v32 = vpop.f32.mrf.mxu3  ;;  %v5262_v52 = vrot.slane %v4234_v0, 9  ;;  %v3888_v34 = vrot.slane %v3886_v51, 5  ;;  %v4046_v0 = vpack.c.b16 %v4025_v56, %v4024_v20  ;;  %v3899_v51 = vor.u32 %v3898_v46, %v6734_v19  ;;  %v5492_v56 = vld [vmem:[#allocation2 + $0xa0] sm:$0xf] }
 0x254   : > { %5341 = vst [vmem:[%s6713_s11] sm:$0xff] %v5340_v23   ;;  %v4755_v28 = vadd.f32 %v4724_v27, %v4723_v61  ;;  %v4194_v54 = vadd.f32 %v4117_v32, %v3540_v17  ;;  %v3032_v17 = vsel %vm6028_vm15, %v3030_v48, %v3031_v58  ;;  %v4362_v43 = vrot.slane %v4360_v62, 4 }
 0x255   : > { %v3085_v32 = vunpack.c.l.b16 %v3029_v7  ;;  %v3086_v30 = vunpack.c.l.b16 %v3032_v17  ;;  %v4361_v38 = vsel %vm6028_vm15, %v5262_v52, %v4360_v62  ;;  %v3889_v48 = vor.u32 %v3888_v34, %v3885_v45  ;;  %v2897_v7 = vld [vmem:[#allocation2 + $0x9c] sm:$0xe] }
 0x256   : > { %v3465_v25 = vpop.f32.mrf.mxu2  ;;  %v4364_v49 = vsel %vm6028_vm15, %v4362_v43, %v4363_v42  ;;  %v3035_v52 = vrot.slane %v5492_v56, 5  ;;  %v5493_v42 = vld [vmem:[#allocation2 + $0xa4] sm:$0x1]  ;;  %v6768_v56 = vld [vmem:[#allocation2 + $0xb0] sm:$0x1] }
 0x257   : > { %v4515_v29 = vpop.f32.mrf.mxu0  ;;  %v6728_v21 = vpop.f32.mrf.mxu1  ;;  %v3541_v35 = vadd.f32 %v3465_v25, %v3254_v14  ;;  %v3106_v11 = vpack.c.b16 %v3086_v30, %v3085_v32  ;;  %v6747_v14 = vld [vmem:[#allocation2 + $0xac] sm:$0xf]  ;;  %v3890_v20 = vrot.slane %v3889_v48, 4  ;;  %v3038_v48 = vrot.slane %v5493_v42, 5 }
 0x258   : > { %v4592_v61 = vadd.f32 %v4515_v29, %v4194_v54  ;;  %v3902_v54 = vshll.u32 %v6736_v4, 16  ;;  %v3916_v34 = vshll.u32 %v6747_v14, 16 }
 0x259   : > { %v3895_v30 = vsel %vm5625_vm11, %v3890_v20, %v6734_v19  ;;  %v6969_v19 = vld [vmem:[#allocation6_spill] sm:$0xff] }
 0x25a   : > { %5278 = vmatmul.msk.bf16.gmra.mxu0 %vm1198_vm12, %v4443_v5  ;;  %v4687_v2 = vadd.f32 %v4686_v9, %v4592_v61  ;;  %v4725_v23 = vmul.f32 %v4592_v61, %v4592_v61  ;;  %v3255_v9 = vadd.f32 %v6706_v22, %v6282_v24  ;;  %v3606_v5 = vld [vmem:[#allocation2 + $0xa8] sm:$0xf]  ;;  %v3900_v24 = vrot.slane %v3899_v51, 4 }
 0x25b   : > { %v4119_v27 = vpop.f32.mrf.mxu3  ;;  %5229 = vmatmul.msk.bf16.gmra.mxu2 %vm1198_vm12, %v5331_v50  ;;  %v3904_v22 = vrot.slane %v3902_v54, 5  ;;  %v3907_v17 = vshrl.u32 %v3606_v5, 16  ;;  %v3910_v45 = vshll.u32 %v3606_v5, 16  ;;  %v4235_v54 = vld [vmem:[#allocation2 + $0x9c] sm:$0xe] }
 0x25c   : > { %v4756_v3 = vadd.f32 %v4755_v28, %v4725_v23  ;;  %v4195_v58 = vadd.f32 %v4119_v27, %v3541_v35  ;;  %v4422_v28 = vunpack.c.l.b16 %v4361_v38  ;;  %v3920_v35 = vshrl.u32 %v6747_v14, 16 }
 0x25d   : > { %v4423_v27 = vunpack.c.l.b16 %v4364_v49  ;;  %v3037_v38 = vrot.slane %v3035_v52, 4  ;;  %v3256_v49 = vadd.f32 %v6728_v21, %v6969_v19 }
 0x25e   : > { %v3468_v55 = vpop.f32.mrf.mxu2  ;;  %v3922_v5 = vrot.slane %v3920_v35, 4 }
 0x25f   : > { %v4517_v25 = vpop.f32.mrf.mxu0  ;;  %v6752_v62 = vpop.f32.mrf.mxu1  ;;  %v3542_v50 = vadd.f32 %v3468_v55, %v3255_v9  ;;  %v3909_v9 = vrot.slane %v3907_v17, 4  ;;  %v3912_v55 = vrot.slane %v3910_v45, 5 }
 0x260   : > { %5246 = vmatmul.msk.bf16.gmra.mxu3 %vm1198_vm12, %v4046_v0  ;;  %v4593_v29 = vadd.f32 %v4517_v25, %v4195_v58  ;;  %v5133_v0 = vrot.slane %v2897_v7, 9  ;;  %v4444_v25 = vpack.c.b16 %v4423_v27, %v4422_v28  ;;  %v5263_v28 = vrot.slane %v4235_v54, 9  ;;  %v6970_v54 = vld [vmem:[#allocation7_spill] sm:$0xff] }
 0x261   : > { %v3913_v35 = vor.u32 %v3912_v55, %v3909_v9  ;;  %v3257_v9 = vadd.f32 %v6752_v62, %v6970_v54 }
 0x262   : > { %v5345_v46 = vpack.c.bf16 %v4593_v29, %v4592_v61  ;;  %v4688_v43 = vadd.f32 %v4687_v2, %v4593_v29  ;;  %v4726_v23 = vmul.f32 %v4593_v29, %v4593_v29  ;;  %5149 = vmatmul.msk.bf16.gmra.mxu1 %vm1198_vm12, %v3106_v11  ;;  %v3905_v61 = vsel %vm5625_vm11, %v3900_v24, %v3904_v22  ;;  %v5332_v29 = vld [vmem:[#allocation2 + $0x9c] sm:$0xff] }
 0x263   : > { %v4122_v32 = vpop.f32.mrf.mxu3  ;;  %v4367_v2 = vrot.slane %v6720_v18, 5  ;;  %v6764_v11 = vrot.slane %v3916_v34, 5  ;;  %v4027_v7 = vunpack.c.l.b16 %v3905_v61  ;;  %v3036_v18 = vsel %vm6028_vm15, %v5133_v0, %v3035_v52 }
 0x264   : > { %5417 = vst [vmem:[%s6713_s11 + $0x8] sm:$0xff] %v5345_v46   ;;  %v4757_v58 = vadd.f32 %v4756_v3, %v4726_v23  ;;  %v4196_v51 = vadd.f32 %v4122_v32, %v3542_v50  ;;  %v4026_v50 = vunpack.c.l.b16 %v3895_v30  ;;  %v3039_v22 = vsel %vm6028_vm15, %v3037_v38, %v3038_v48 }
 0x265   : > { %v4370_v34 = vrot.slane %v6736_v4, 5  ;;  %v4369_v21 = vrot.slane %v4367_v2, 4  ;;  %v3923_v46 = vor.u32 %v3922_v5, %v6764_v11  ;;  %v3926_v23 = vshll.u32 %v6768_v56, 16 }
 0x266   : > { %v3470_v20 = vpop.f32.mrf.mxu2  ;;  %v3087_v52 = vunpack.c.l.b16 %v3036_v18  ;;  %v3088_v0 = vunpack.c.l.b16 %v3039_v22  ;;  %v4047_v38 = vpack.c.b16 %v4027_v7, %v4026_v50  ;;  %v4368_v55 = vsel %vm6028_vm15, %v5263_v28, %v4367_v2  ;;  %v2898_v7 = vld [vmem:[#allocation2 + $0xa8] sm:$0xe] }
 0x267   : > { %v4520_v3 = vpop.f32.mrf.mxu0  ;;  %v3188_v24 = vpop.f32.mrf.mxu1  ;;  %v3543_v45 = vadd.f32 %v3470_v20, %v3256_v49  ;;  %v3924_v4 = vrot.slane %v3923_v46, 4  ;;  %v3928_v61 = vrot.slane %v3926_v23, 5  ;;  %v4424_v62 = vunpack.c.l.b16 %v4368_v55  ;;  %v4236_v23 = vld [vmem:[#allocation2 + $0xa8] sm:$0xe] }
 0x268   : > { %v4594_v17 = vadd.f32 %v4520_v3, %v4196_v51  ;;  %v3914_v51 = vrot.slane %v3913_v35, 4  ;;  %v3609_v3 = vld [vmem:[#allocation2 + $0xb4] sm:$0xf] }
 0x269   : > { %v3929_v22 = vsel %vm5625_vm11, %v3924_v4, %v3928_v61  ;;  %v3931_v46 = vshrl.u32 %v3609_v3, 16  ;;  %v6971_v61 = vld [vmem:[#allocation8_spill] sm:$0xff] }
 0x26a   : > { %5279 = vmatmul.msk.bf16.gmra.mxu0 %vm1198_vm12, %v4444_v25  ;;  %v4689_v27 = vadd.f32 %v4688_v43, %v4594_v17  ;;  %v4727_v32 = vmul.f32 %v4594_v17, %v4594_v17  ;;  %v4371_v43 = vsel %vm6028_vm15, %v4369_v21, %v4370_v34  ;;  %v3107_v25 = vpack.c.b16 %v3088_v0, %v3087_v52  ;;  %v5495_v52 = vld [vmem:[#allocation2 + $0xb0] sm:$0x1] }
 0x26b   : > { %v4124_v30 = vpop.f32.mrf.mxu3  ;;  %5230 = vmatmul.msk.bf16.gmra.mxu2 %vm1198_vm12, %v5332_v29  ;;  %v4425_v18 = vunpack.c.l.b16 %v4371_v43  ;;  %v3919_v2 = vsel %vm5625_vm11, %v3914_v51, %v6764_v11  ;;  %v3045_v0 = vrot.slane %v5495_v52, 5  ;;  %v3258_v54 = vadd.f32 %v3188_v24, %v6971_v61 }
 0x26c   : > { %v4758_v42 = vadd.f32 %v4757_v58, %v4727_v32  ;;  %v4197_v48 = vadd.f32 %v4124_v30, %v3543_v45  ;;  %v5494_v58 = vld [vmem:[#allocation2 + $0xac] sm:$0xf]  ;;  %v6793_v45 = vld [vmem:[#allocation2 + $0xb8] sm:$0xf]  ;;  %v5134_v32 = vrot.slane %v2898_v7, 9  ;;  %v4029_v55 = vunpack.c.l.b16 %v3929_v22 }
 0x26d   : > { %v3042_v20 = vrot.slane %v5494_v58, 5  ;;  %v3940_v51 = vshll.u32 %v6793_v45, 16  ;;  %v3944_v4 = vshrl.u32 %v6793_v45, 16  ;;  %v5264_v43 = vrot.slane %v4236_v23, 9 }
 0x26e   : > { %v3473_v5 = vpop.f32.mrf.mxu2 }
 0x26f   : > { %v4522_v19 = vpop.f32.mrf.mxu0  ;;  %v6786_v49 = vpop.f32.mrf.mxu1  ;;  %v3544_v50 = vadd.f32 %v3473_v5, %v3257_v9  ;;  %v3044_v30 = vrot.slane %v3042_v20, 4  ;;  %v4374_v5 = vrot.slane %v6747_v14, 5  ;;  %v6807_v24 = vrot.slane %v3940_v51, 5  ;;  %v6810_v14 = vld [vmem:[#allocation2 + $0xbc] sm:$0x1] }
 0x270   : > { %5247 = vmatmul.msk.bf16.gmra.mxu3 %vm1198_vm12, %v4047_v38  ;;  %v4595_v29 = vadd.f32 %v4522_v19, %v4197_v48  ;;  %v3934_v38 = vshll.u32 %v3609_v3, 16  ;;  %v5333_v19 = vld [vmem:[#allocation2 + $0xa8] sm:$0xff] }
 0x271   : > { %v3046_v3 = vsel %vm6028_vm15, %v3044_v30, %v3045_v0  ;;  %v4375_v23 = vsel %vm6028_vm15, %v5264_v43, %v4374_v5 }
 0x272   : > { %v5350_v28 = vpack.c.bf16 %v4595_v29, %v4594_v17  ;;  %v4690_v34 = vadd.f32 %v4689_v27, %v4595_v29  ;;  %v4728_v21 = vmul.f32 %v4595_v29, %v4595_v29  ;;  %5150 = vmatmul.msk.bf16.gmra.mxu1 %vm1198_vm12, %v3107_v25  ;;  %v4445_v17 = vpack.c.b16 %v4425_v18, %v4424_v62 }
 0x273   : > { %v4127_v35 = vpop.f32.mrf.mxu3  ;;  %v4028_v27 = vunpack.c.l.b16 %v3919_v2  ;;  %v3933_v29 = vrot.slane %v3931_v46, 4  ;;  %v3946_v18 = vrot.slane %v3944_v4, 4  ;;  %v4377_v2 = vrot.slane %v6768_v56, 5  ;;  %v3612_v4 = vld [vmem:[#allocation2 + $0xc0] sm:$0xf] }
 0x274   : > { %5418 = vst [vmem:[%s6713_s11 + $0x10] sm:$0xff] %v5350_v28   ;;  %v4759_v11 = vadd.f32 %v4758_v42, %v4728_v21  ;;  %v4198_v48 = vadd.f32 %v4127_v35, %v3544_v50  ;;  %v3043_v42 = vsel %vm6028_vm15, %v5134_v32, %v3042_v20  ;;  %v3936_v50 = vrot.slane %v3934_v38, 5 }
 0x275   : > { %v3089_v20 = vunpack.c.l.b16 %v3043_v42  ;;  %v3090_v35 = vunpack.c.l.b16 %v3046_v3  ;;  %v4048_v46 = vpack.c.b16 %v4029_v55, %v4028_v27  ;;  %v4376_v32 = vrot.slane %v4374_v5, 4  ;;  %v5496_v55 = vld [vmem:[#allocation2 + $0xb8] sm:$0xf] }
 0x276   : > { %v3475_v9 = vpop.f32.mrf.mxu2  ;;  %v3937_v30 = vor.u32 %v3936_v50, %v3933_v29  ;;  %v3947_v56 = vor.u32 %v3946_v18, %v6807_v24  ;;  %v3950_v38 = vshll.u32 %v6810_v14, 16  ;;  %v3049_v43 = vrot.slane %v5496_v55, 5 }
 0x277   : > { %v4525_v25 = vpop.f32.mrf.mxu0  ;;  %v6801_v58 = vpop.f32.mrf.mxu1  ;;  %v3545_v62 = vadd.f32 %v3475_v9, %v3258_v54  ;;  %v3108_v51 = vpack.c.b16 %v3090_v35, %v3089_v20  ;;  %v4378_v61 = vsel %vm6028_vm15, %v4376_v32, %v4377_v2  ;;  %v3955_v42 = vshrl.u32 %v3612_v4, 16 }
 0x278   : > { %v4596_v7 = vadd.f32 %v4525_v25, %v4198_v48  ;;  %v3938_v9 = vrot.slane %v3937_v30, 4  ;;  %v3958_v3 = vshll.u32 %v3612_v4, 16 }
 0x27a   : > { %5280 = vmatmul.msk.bf16.gmra.mxu0 %vm1198_vm12, %v4445_v17  ;;  %v4691_v22 = vadd.f32 %v4690_v34, %v4596_v7  ;;  %v4729_v28 = vmul.f32 %v4596_v7, %v4596_v7  ;;  %v3259_v34 = vadd.f32 %v6786_v49, %v6325_v63  ;;  %v6820_v17 = vld [vmem:[#allocation2 + $0xc4] sm:$0xf]  ;;  %v3948_v63 = vrot.slane %v3947_v56, 4  ;;  %v4237_v56 = vld [vmem:[#allocation2 + $0xb4] sm:$0xe] }
 0x27b   : > { %v4129_v21 = vpop.f32.mrf.mxu3  ;;  %5231 = vmatmul.msk.bf16.gmra.mxu2 %vm1198_vm12, %v5333_v19  ;;  %v3952_v49 = vrot.slane %v3950_v38, 5  ;;  %v2899_v19 = vld [vmem:[#allocation2 + $0xb4] sm:$0xe]  ;;  %v3964_v29 = vshll.u32 %v6820_v17, 16  ;;  %v3968_v50 = vshrl.u32 %v6820_v17, 16  ;;  %v3943_v20 = vsel %vm5625_vm11, %v3938_v9, %v6807_v24 }
 0x27c   : > { %v4760_v52 = vadd.f32 %v4759_v11, %v4729_v28  ;;  %v4199_v0 = vadd.f32 %v4129_v21, %v3545_v62  ;;  %v4426_v11 = vunpack.c.l.b16 %v4375_v23  ;;  %v4427_v28 = vunpack.c.l.b16 %v4378_v61  ;;  %v5497_v23 = vld [vmem:[#allocation2 + $0xbc] sm:$0x1]  ;;  %v6841_v61 = vld [vmem:[#allocation2 + $0xc8] sm:$0x1]  ;;  %v5334_v9 = vld [vmem:[#allocation2 + $0xb4] sm:$0xff] }
 0x27d   : > { %v5135_v35 = vrot.slane %v2899_v19, 9  ;;  %v3052_v32 = vrot.slane %v5497_v23, 5  ;;  %v3957_v38 = vrot.slane %v3955_v42, 4  ;;  %v3260_v24 = vadd.f32 %v6801_v58, %v6346_v40 }
 0x27e   : > { %v3478_v48 = vpop.f32.mrf.mxu2  ;;  %v4446_v4 = vpack.c.b16 %v4427_v28, %v4426_v11  ;;  %v4030_v55 = vunpack.c.l.b16 %v3943_v20  ;;  %v5265_v11 = vrot.slane %v4237_v56, 9  ;;  %v4384_v42 = vrot.slane %v6810_v14, 5 }
 0x27f   : > { %v4527_v27 = vpop.f32.mrf.mxu0  ;;  %v6825_v54 = vpop.f32.mrf.mxu1  ;;  %v3546_v25 = vadd.f32 %v3478_v48, %v3259_v34  ;;  %v3960_v34 = vrot.slane %v3958_v3, 5  ;;  %v6837_v48 = vrot.slane %v3964_v29, 5  ;;  %v3974_v29 = vshll.u32 %v6841_v61, 16 }
 0x280   : > { %5248 = vmatmul.msk.bf16.gmra.mxu3 %vm1198_vm12, %v4048_v46  ;;  %v4597_v5 = vadd.f32 %v4527_v27, %v4199_v0  ;;  %v3051_v46 = vrot.slane %v3049_v43, 4 }
 0x281   : > { %v3961_v58 = vor.u32 %v3960_v34, %v3957_v38  ;;  %v3976_v23 = vrot.slane %v3974_v29, 5 }
 0x282   : > { %v5355_v62 = vpack.c.bf16 %v4597_v5, %v4596_v7  ;;  %v4692_v18 = vadd.f32 %v4691_v22, %v4597_v5  ;;  %v4730_v2 = vmul.f32 %v4597_v5, %v4597_v5  ;;  %5151 = vmatmul.msk.bf16.gmra.mxu1 %vm1198_vm12, %v3108_v51  ;;  %v3953_v7 = vsel %vm5625_vm11, %v3948_v63, %v3952_v49 }
 0x283   : > { %v4132_v21 = vpop.f32.mrf.mxu3  ;;  %v4381_v22 = vrot.slane %v6793_v45, 5  ;;  %v3970_v51 = vrot.slane %v3968_v50, 4  ;;  %v4031_v5 = vunpack.c.l.b16 %v3953_v7  ;;  %v3050_v45 = vsel %vm6028_vm15, %v5135_v35, %v3049_v43 }
 0x284   : > { %5419 = vst [vmem:[%s6713_s11 + $0x18] sm:$0xff] %v5355_v62   ;;  %v4761_v30 = vadd.f32 %v4760_v52, %v4730_v2  ;;  %v4200_v0 = vadd.f32 %v4132_v21, %v3546_v25  ;;  %v3053_v63 = vsel %vm6028_vm15, %v3051_v46, %v3052_v32  ;;  %v3091_v43 = vunpack.c.l.b16 %v3050_v45 }
 0x285   : > { %v4383_v40 = vrot.slane %v4381_v22, 4  ;;  %v3971_v3 = vor.u32 %v3970_v51, %v6837_v48  ;;  %v3092_v28 = vunpack.c.l.b16 %v3053_v63  ;;  %v4049_v21 = vpack.c.b16 %v4031_v5, %v4030_v55  ;;  %v6866_v55 = vld [vmem:[#allocation2 + $0xd0] sm:$0xf] }
 0x286   : > { %v3480_v27 = vpop.f32.mrf.mxu2  ;;  %v3962_v46 = vrot.slane %v3961_v58, 4  ;;  %v3261_v32 = vadd.f32 %v6825_v54, %v6352_v10  ;;  %v5499_v58 = vld [vmem:[#allocation2 + $0xc8] sm:$0x1] }
 0x287   : > { %v4530_v52 = vpop.f32.mrf.mxu0  ;;  %v3198_v25 = vpop.f32.mrf.mxu1  ;;  %v3547_v19 = vadd.f32 %v3480_v27, %v3260_v24  ;;  %v3972_v14 = vrot.slane %v3971_v3, 4  ;;  %v3109_v56 = vpack.c.b16 %v3092_v28, %v3091_v43  ;;  %v3059_v3 = vrot.slane %v5499_v58, 5 }
 0x288   : > { %v4598_v49 = vadd.f32 %v4530_v52, %v4200_v0  ;;  %v4382_v0 = vsel %vm6028_vm15, %v5265_v11, %v4381_v22  ;;  %v2900_v52 = vld [vmem:[#allocation2 + $0xc0] sm:$0xe]  ;;  %v3967_v22 = vsel %vm5625_vm11, %v3962_v46, %v6837_v48  ;;  %v3992_v43 = vshrl.u32 %v6866_v55, 16 }
 0x289   : > { %v4428_v10 = vunpack.c.l.b16 %v4382_v0  ;;  %v4238_v46 = vld [vmem:[#allocation2 + $0xc0] sm:$0xe] }
 0x28a   : > { %5281 = vmatmul.msk.bf16.gmra.mxu0 %vm1198_vm12, %v4446_v4  ;;  %v4693_v50 = vadd.f32 %v4692_v18, %v4598_v49  ;;  %v4731_v62 = vmul.f32 %v4598_v49, %v4598_v49  ;;  %v4385_v18 = vsel %vm6028_vm15, %v4383_v40, %v4384_v42  ;;  %v3615_v4 = vld [vmem:[#allocation2 + $0xcc] sm:$0xf]  ;;  %v5136_v42 = vrot.slane %v2900_v52, 9 }
 0x28b   : > { %v4134_v2 = vpop.f32.mrf.mxu3  ;;  %5232 = vmatmul.msk.bf16.gmra.mxu2 %vm1198_vm12, %v5334_v9  ;;  %v4429_v54 = vunpack.c.l.b16 %v4385_v18  ;;  %v3977_v9 = vsel %vm5625_vm11, %v3972_v14, %v3976_v23  ;;  %v3979_v11 = vshrl.u32 %v3615_v4, 16  ;;  %v3982_v29 = vshll.u32 %v3615_v4, 16 }
 0x28c   : > { %v4762_v20 = vadd.f32 %v4761_v30, %v4731_v62  ;;  %v4201_v35 = vadd.f32 %v4134_v2, %v3547_v19  ;;  %v5498_v30 = vld [vmem:[#allocation2 + $0xc4] sm:$0xf]  ;;  %v3988_v2 = vshll.u32 %v6866_v55, 16  ;;  %v4388_v14 = vrot.slane %v6820_v17, 5 }
 0x28d   : > { %v3056_v51 = vrot.slane %v5498_v30, 5  ;;  %v4447_v28 = vpack.c.b16 %v4429_v54, %v4428_v10  ;;  %v5266_v4 = vrot.slane %v4238_v46, 9 }
 0x28e   : > { %v3483_v7 = vpop.f32.mrf.mxu2 }
 0x28f   : > { %v4532_v38 = vpop.f32.mrf.mxu0  ;;  %v6859_v34 = vpop.f32.mrf.mxu1  ;;  %v3548_v27 = vadd.f32 %v3483_v7, %v3261_v32  ;;  %v3058_v40 = vrot.slane %v3056_v51, 4  ;;  %v5335_v32 = vld [vmem:[#allocation2 + $0xc0] sm:$0xff]  ;;  %v3981_v7 = vrot.slane %v3979_v11, 4 }
 0x290   : > { %5249 = vmatmul.msk.bf16.gmra.mxu3 %vm1198_vm12, %v4049_v21  ;;  %v4599_v24 = vadd.f32 %v4532_v38, %v4201_v35  ;;  %v4032_v21 = vunpack.c.l.b16 %v3967_v22  ;;  %v4033_v35 = vunpack.c.l.b16 %v3977_v9  ;;  %v4390_v22 = vrot.slane %v4388_v14, 4 }
 0x291   : > { %v3060_v18 = vsel %vm6028_vm15, %v3058_v40, %v3059_v3  ;;  %v4391_v9 = vrot.slane %v6841_v61, 5  ;;  %v3263_v40 = vadd.f32 %v6859_v34, %v6379_v16 }
 0x292   : > { %v5360_v5 = vpack.c.bf16 %v4599_v24, %v4598_v49  ;;  %v4694_v45 = vadd.f32 %v4693_v50, %v4599_v24  ;;  %v4732_v63 = vmul.f32 %v4599_v24, %v4599_v24  ;;  %5152 = vmatmul.msk.bf16.gmra.mxu1 %vm1198_vm12, %v3109_v56  ;;  %v3262_v49 = vadd.f32 %v3198_v25, %v6366_v37  ;;  %v6878_v24 = vld [vmem:[#allocation2 + $0xd4] sm:$0x1] }
 0x293   : > { %v4137_v19 = vpop.f32.mrf.mxu3  ;;  %v3984_v56 = vrot.slane %v3982_v29, 5  ;;  %v3990_v37 = vrot.slane %v3988_v2, 5  ;;  %v3994_v25 = vrot.slane %v3992_v43, 4  ;;  %v3094_v54 = vunpack.c.l.b16 %v3060_v18 }
 0x294   : > { %5420 = vst [vmem:[%s6713_s11 + $0x20] sm:$0xff] %v5360_v5   ;;  %v4763_v62 = vadd.f32 %v4762_v20, %v4732_v63  ;;  %v4202_v48 = vadd.f32 %v4137_v19, %v3548_v27  ;;  %v3057_v20 = vsel %vm6028_vm15, %v5136_v42, %v3056_v51  ;;  %v4050_v51 = vpack.c.b16 %v4033_v35, %v4032_v21 }
 0x295   : > { %v3093_v10 = vunpack.c.l.b16 %v3057_v20  ;;  %v3985_v5 = vor.u32 %v3984_v56, %v3981_v7  ;;  %v3995_v11 = vor.u32 %v3994_v25, %v3990_v37  ;;  %v3998_v42 = vshll.u32 %v6878_v24, 16 }
 0x296   : > { %v3485_v50 = vpop.f32.mrf.mxu2  ;;  %v4392_v61 = vsel %vm6028_vm15, %v4390_v22, %v4391_v9  ;;  %v4398_v9 = vrot.slane %v6878_v24, 5 }
 0x297   : > { %v4535_v23 = vpop.f32.mrf.mxu0  ;;  %v3203_v0 = vpop.f32.mrf.mxu1  ;;  %v3549_v30 = vadd.f32 %v3485_v50, %v3262_v49  ;;  %v3110_v3 = vpack.c.b16 %v3094_v54, %v3093_v10  ;;  %v4000_v49 = vrot.slane %v3998_v42, 5  ;;  %v4431_v35 = vunpack.c.l.b16 %v4392_v61 }
 0x298   : > { %v4600_v38 = vadd.f32 %v4535_v23, %v4202_v48  ;;  %v3986_v48 = vrot.slane %v3985_v5, 4  ;;  %v3264_v7 = vadd.f32 %v3203_v0, %v6394_v31 }
 0x29a   : > { %5282 = vmatmul.msk.bf16.gmra.mxu0 %vm1198_vm12, %v4447_v28  ;;  %v4695_v17 = vadd.f32 %v4694_v45, %v4600_v38  ;;  %v4733_v27 = vmul.f32 %v4600_v38, %v4600_v38  ;;  %v4389_v45 = vsel %vm6028_vm15, %v5266_v4, %v4388_v14  ;;  %v3996_v28 = vrot.slane %v3995_v11, 4 }
 0x29b   : > { %v4139_v52 = vpop.f32.mrf.mxu3  ;;  %5233 = vmatmul.msk.bf16.gmra.mxu2 %vm1198_vm12, %v5335_v32  ;;  %v4430_v50 = vunpack.c.l.b16 %v4389_v45  ;;  %v3991_v32 = vsel %vm5625_vm11, %v3986_v48, %v3990_v37 }
 0x29c   : > { %v4764_v63 = vadd.f32 %v4763_v62, %v4733_v27  ;;  %v4203_v19 = vadd.f32 %v4139_v52, %v3549_v30  ;;  %v4001_v20 = vsel %vm5625_vm11, %v3996_v28, %v4000_v49  ;;  %v5336_v30 = vld [vmem:[#allocation2 + $0xcc] sm:$0xff]  ;;  %v4034_v25 = vunpack.c.l.b16 %v3991_v32 }
 0x29d   : > { %v4448_v18 = vpack.c.b16 %v4431_v35, %v4430_v50  ;;  %v4035_v4 = vunpack.c.l.b16 %v4001_v20  ;;  %v4395_v27 = vrot.slane %v6866_v55, 5 }
 0x29e   : > { %v3488_v58 = vpop.f32.mrf.mxu2 }
 0x29f   : > { %v4537_v29 = vpop.f32.mrf.mxu0  ;;  %v3206_v62 = vpop.f32.mrf.mxu1  ;;  %v3550_v43 = vadd.f32 %v3488_v58, %v3263_v40  ;;  %v4051_v31 = vpack.c.b16 %v4035_v4, %v4034_v25  ;;  %v4397_v0 = vrot.slane %v4395_v27, 4 }
 0x2a0   : > { %5250 = vmatmul.msk.bf16.gmra.mxu3 %vm1198_vm12, %v4050_v51  ;;  %v4601_v2 = vadd.f32 %v4537_v29, %v4203_v19  ;;  %v3265_v55 = vadd.f32 %v3206_v62, %v6411_v13 }
 0x2a1   : > { %v4399_v40 = vsel %vm6028_vm15, %v4397_v0, %v4398_v9 }
 0x2a2   : > { %v5365_v16 = vpack.c.bf16 %v4601_v2, %v4600_v38  ;;  %v4696_v34 = vadd.f32 %v4695_v17, %v4601_v2  ;;  %v4734_v21 = vmul.f32 %v4601_v2, %v4601_v2  ;;  %5153 = vmatmul.msk.bf16.gmra.mxu1 %vm1198_vm12, %v3110_v3  ;;  %v4239_v17 = vld [vmem:[#allocation2 + $0xcc] sm:$0xe]  ;;  %v4433_v2 = vunpack.c.l.b16 %v4399_v40 }
 0x2a3   : > { %v4142_v46 = vpop.f32.mrf.mxu3  ;;  %v5267_v22 = vrot.slane %v4239_v17, 9 }
 0x2a4   : > { %5421 = vst [vmem:[%s6713_s11 + $0x28] sm:$0xff] %v5365_v16   ;;  %v4765_v14 = vadd.f32 %v4764_v63, %v4734_v21  ;;  %v4204_v23 = vadd.f32 %v4142_v46, %v3550_v43 }
 0x2a5   : > { %v4396_v19 = vsel %vm6028_vm15, %v5267_v22, %v4395_v27 }
 0x2a6   : > { %v3490_v56 = vpop.f32.mrf.mxu2  ;;  %v4432_v29 = vunpack.c.l.b16 %v4396_v19 }
 0x2a7   : > { %v4540_v38 = vpop.f32.mrf.mxu0  ;;  %v3208_v52 = vpop.f32.mrf.mxu1  ;;  %v3551_v54 = vadd.f32 %v3490_v56, %v3264_v7 }
 0x2a8   : > { %v4602_v10 = vadd.f32 %v4540_v38, %v4204_v23  ;;  %v4449_v28 = vpack.c.b16 %v4433_v2, %v4432_v29  ;;  %v3266_v49 = vadd.f32 %v3208_v52, %v6423_v39 }
 0x2aa   : > { %5283 = vmatmul.msk.bf16.gmra.mxu0 %vm1198_vm12, %v4448_v18  ;;  %v4697_v37 = vadd.f32 %v4696_v34, %v4602_v10  ;;  %v4735_v51 = vmul.f32 %v4602_v10, %v4602_v10 }
 0x2ab   : > { %v4144_v36 = vpop.f32.mrf.mxu3  ;;  %5234 = vmatmul.msk.bf16.gmra.mxu2 %vm1198_vm12, %v5336_v30 }
 0x2ac   : > { %v4766_v5 = vadd.f32 %v4765_v14, %v4735_v51  ;;  %v4205_v63 = vadd.f32 %v4144_v36, %v3551_v54 }
 0x2ae   : > { %v3493_v11 = vpop.f32.mrf.mxu2 }
 0x2af   : > { %v4542_v42 = vpop.f32.mrf.mxu0  ;;  %v3211_v45 = vpop.f32.mrf.mxu1  ;;  %v3552_v3 = vadd.f32 %v3493_v11, %v3265_v55 }
 0x2b0   : > { %5251 = vmatmul.msk.bf16.gmra.mxu3 %vm1198_vm12, %v4051_v31  ;;  %v4603_v58 = vadd.f32 %v4542_v42, %v4205_v63  ;;  %v3267_v20 = vadd.f32 %v3211_v45, %v6440_v59 }
 0x2b2   : > { %v5370_v24 = vpack.c.bf16 %v4603_v58, %v4602_v10  ;;  %v4698_v61 = vadd.f32 %v4697_v37, %v4603_v58  ;;  %v4736_v48 = vmul.f32 %v4603_v58, %v4603_v58 }
 0x2b3   : > { %v4147_v43 = vpop.f32.mrf.mxu3 }
 0x2b4   : > { %5422 = vst [vmem:[%s6713_s11 + $0x30] sm:$0xff] %v5370_v24   ;;  %v4767_v13 = vadd.f32 %v4766_v5, %v4736_v48  ;;  %v4206_v62 = vadd.f32 %v4147_v43, %v3552_v3 }
 0x2b6   : > { %v3495_v50 = vpop.f32.mrf.mxu2 }
 0x2b7   : > { %v4545_v16 = vpop.f32.mrf.mxu0  ;;  %v3213_v34 = vpop.f32.mrf.mxu1  ;;  %v3553_v21 = vadd.f32 %v3495_v50, %v3266_v49 }
 0x2b8   : > { %v4604_v6 = vadd.f32 %v4545_v16, %v4206_v62  ;;  %v3268_v10 = vadd.f32 %v3213_v34, %v6456_v8 }
 0x2ba   : > { %5284 = vmatmul.msk.bf16.gmra.mxu0 %vm1198_vm12, %v4449_v28  ;;  %v4699_v35 = vadd.f32 %v4698_v61, %v4604_v6  ;;  %v4737_v46 = vmul.f32 %v4604_v6, %v4604_v6 }
 0x2bb   : > { %v4149_v14 = vpop.f32.mrf.mxu3 }
 0x2bc   : > { %v4768_v23 = vadd.f32 %v4767_v13, %v4737_v46  ;;  %v4207_v32 = vadd.f32 %v4149_v14, %v3553_v21 }
 0x2be   : > { %v3498_v18 = vpop.f32.mrf.mxu2 }
 0x2bf   : > { %v4547_v7 = vpop.f32.mrf.mxu0  ;;  %v3216_v56 = vpop.f32.mrf.mxu1  ;;  %v3554_v39 = vadd.f32 %v3498_v18, %v3267_v20 }
 0x2c0   : > { %v4605_v38 = vadd.f32 %v4547_v7, %v4207_v32  ;;  %v3269_v63 = vadd.f32 %v3216_v56, %v6473_v60 }
 0x2c2   : > { %v5375_v30 = vpack.c.bf16 %v4605_v38, %v4604_v6  ;;  %v4700_v25 = vadd.f32 %v4699_v35, %v4605_v38  ;;  %v4738_v4 = vmul.f32 %v4605_v38, %v4605_v38 }
 0x2c3   : > { %v4152_v17 = vpop.f32.mrf.mxu3 }
 0x2c4   : > { %5423 = vst [vmem:[%s6713_s11 + $0x38] sm:$0xff] %v5375_v30   ;;  %v4769_v27 = vadd.f32 %v4768_v23, %v4738_v4  ;;  %v4208_v52 = vadd.f32 %v4152_v17, %v3554_v39 }
 0x2c6   : > { %v3500_v54 = vpop.f32.mrf.mxu2 }
 0x2c7   : > { %v4550_v37 = vpop.f32.mrf.mxu0  ;;  %v3218_v51 = vpop.f32.mrf.mxu1  ;;  %v3555_v22 = vadd.f32 %v3500_v54, %v3268_v10 }
 0x2c8   : > { %v4606_v36 = vadd.f32 %v4550_v37, %v4208_v52  ;;  %v3270_v61 = vadd.f32 %v3218_v51, %v6485_v26 }
 0x2ca   : > { %v4701_v59 = vadd.f32 %v4700_v25, %v4606_v36  ;;  %v4739_v31 = vmul.f32 %v4606_v36, %v4606_v36 }
 0x2cb   : > { %v4154_v0 = vpop.f32.mrf.mxu3 }
 0x2cc   : > { %v4770_v9 = vadd.f32 %v4769_v27, %v4739_v31  ;;  %v4209_v5 = vadd.f32 %v4154_v0, %v3555_v22 }
 0x2ce   : > { %v3503_v55 = vpop.f32.mrf.mxu2 }
 0x2cf   : > { %v4552_v19 = vpop.f32.mrf.mxu0  ;;  %v3221_v11 = vpop.f32.mrf.mxu1  ;;  %v3556_v40 = vadd.f32 %v3503_v55, %v3269_v63 }
 0x2d0   : > { %v4607_v42 = vadd.f32 %v4552_v19, %v4209_v5  ;;  %v3271_v34 = vadd.f32 %v3221_v11, %v6502_v15 }
 0x2d2   : > { %v5380_v45 = vpack.c.bf16 %v4607_v42, %v4606_v36  ;;  %v4702_v8 = vadd.f32 %v4701_v59, %v4607_v42  ;;  %v4740_v58 = vmul.f32 %v4607_v42, %v4607_v42 }
 0x2d3   : > { %v4157_v3 = vpop.f32.mrf.mxu3 }
 0x2d4   : > { %5424 = vst [vmem:[%s6713_s11 + $0x40] sm:$0xff] %v5380_v45   ;;  %v4771_v29 = vadd.f32 %v4770_v9, %v4740_v58  ;;  %v4210_v24 = vadd.f32 %v4157_v3, %v3556_v40 }
 0x2d6   : > { %v3505_v48 = vpop.f32.mrf.mxu2 }
 0x2d7   : > { %v4555_v2 = vpop.f32.mrf.mxu0  ;;  %v3223_v43 = vpop.f32.mrf.mxu1  ;;  %v3557_v62 = vadd.f32 %v3505_v48, %v3270_v61 }
 0x2d8   : > { %v4608_v13 = vadd.f32 %v4555_v2, %v4210_v24  ;;  %v3272_v56 = vadd.f32 %v3223_v43, %v6518_v57 }
 0x2da   : > { %v4703_v60 = vadd.f32 %v4702_v8, %v4608_v13  ;;  %v4741_v28 = vmul.f32 %v4608_v13, %v4608_v13 }
 0x2db   : > { %v4159_v49 = vpop.f32.mrf.mxu3 }
 0x2dc   : > { %v4772_v50 = vadd.f32 %v4771_v29, %v4741_v28  ;;  %v4211_v16 = vadd.f32 %v4159_v49, %v3557_v62 }
 0x2de   : > { %v3508_v6 = vpop.f32.mrf.mxu2 }
 0x2df   : > { %v4557_v21 = vpop.f32.mrf.mxu0  ;;  %v3226_v35 = vpop.f32.mrf.mxu1  ;;  %v3558_v14 = vadd.f32 %v3508_v6, %v3271_v34 }
 0x2e0   : > { %v4609_v46 = vadd.f32 %v4557_v21, %v4211_v16  ;;  %v3273_v54 = vadd.f32 %v3226_v35, %v6535_v44 }
 0x2e2   : > { %v5385_v23 = vpack.c.bf16 %v4609_v46, %v4608_v13  ;;  %v4704_v26 = vadd.f32 %v4703_v60, %v4609_v46  ;;  %v4742_v32 = vmul.f32 %v4609_v46, %v4609_v46 }
 0x2e3   : > { %v4162_v20 = vpop.f32.mrf.mxu3 }
 0x2e4   : > { %5425 = vst [vmem:[%s6713_s11 + $0x48] sm:$0xff] %v5385_v23   ;;  %v4773_v18 = vadd.f32 %v4772_v50, %v4742_v32  ;;  %v4212_v7 = vadd.f32 %v4162_v20, %v3558_v14 }
 0x2e6   : > { %v3510_v38 = vpop.f32.mrf.mxu2 }
 0x2e7   : > { %v4560_v39 = vpop.f32.mrf.mxu0  ;;  %v3228_v30 = vpop.f32.mrf.mxu1  ;;  %v3559_v4 = vadd.f32 %v3510_v38, %v3272_v56 }
 0x2e8   : > { %v4610_v25 = vadd.f32 %v4560_v39, %v4212_v7  ;;  %v3274_v55 = vadd.f32 %v3228_v30, %v6547_v41 }
 0x2ea   : > { %v4705_v15 = vadd.f32 %v4704_v26, %v4610_v25  ;;  %v4743_v17 = vmul.f32 %v4610_v25, %v4610_v25 }
 0x2eb   : > { %v4164_v27 = vpop.f32.mrf.mxu3 }
 0x2ec   : > { %v4774_v52 = vadd.f32 %v4773_v18, %v4743_v17  ;;  %v4213_v10 = vadd.f32 %v4164_v27, %v3559_v4 }
 0x2ee   : > { %v3513_v37 = vpop.f32.mrf.mxu2 }
 0x2ef   : > { %v4562_v51 = vpop.f32.mrf.mxu0  ;;  %v3231_v36 = vpop.f32.mrf.mxu1  ;;  %v3560_v59 = vadd.f32 %v3513_v37, %v3273_v54 }
 0x2f0   : > { %v4611_v22 = vadd.f32 %v4562_v51, %v4213_v10  ;;  %v3275_v24 = vadd.f32 %v3231_v36, %v6564_v33 }
 0x2f2   : > { %v5390_v31 = vpack.c.bf16 %v4611_v22, %v4610_v25  ;;  %v4706_v57 = vadd.f32 %v4705_v15, %v4611_v22  ;;  %v4744_v0 = vmul.f32 %v4611_v22, %v4611_v22 }
 0x2f3   : > { %v4167_v9 = vpop.f32.mrf.mxu3 }
 0x2f4   : > { %5426 = vst [vmem:[%s6713_s11 + $0x50] sm:$0xff] %v5390_v31   ;;  %v4775_v5 = vadd.f32 %v4774_v52, %v4744_v0  ;;  %v4214_v63 = vadd.f32 %v4167_v9, %v3560_v59 }
 0x2f6   : > { %v3515_v19 = vpop.f32.mrf.mxu2 }
 0x2f7   : > { %v4565_v11 = vpop.f32.mrf.mxu0  ;;  %v3233_v42 = vpop.f32.mrf.mxu1  ;;  %v3561_v45 = vadd.f32 %v3515_v19, %v3274_v55 }
 0x2f8   : > { %v4612_v40 = vadd.f32 %v4565_v11, %v4214_v63  ;;  %v3276_v16 = vadd.f32 %v3233_v42, %v6578_v12 }
 0x2fa   : > { %v4707_v44 = vadd.f32 %v4706_v57, %v4612_v40  ;;  %v4745_v8 = vmul.f32 %v4612_v40, %v4612_v40 }
 0x2fb   : > { %v4169_v58 = vpop.f32.mrf.mxu3 }
 0x2fc   : > { %v4776_v3 = vadd.f32 %v4775_v5, %v4745_v8  ;;  %v4215_v29 = vadd.f32 %v4169_v58, %v3561_v45  ;;  %v6972_v45 = vld [vmem:[#allocation3_spill] sm:$0xff] }
 0x2fe   : > { %v3518_v61 = vpop.f32.mrf.mxu2 }
 0x2ff   : > { %v4567_v48 = vpop.f32.mrf.mxu0  ;;  %v3562_v43 = vadd.f32 %v3518_v61, %v3275_v24  ;;  %v3236_v13 = vpop.f32.mrf.mxu1 }
 0x300   : > { %v4613_v2 = vadd.f32 %v4567_v48, %v4215_v29  ;;  %v3277_v20 = vadd.f32 %v3236_v13, %v6595_v53  ;;  %v6973_v13 = vld [vmem:[#allocation4_spill] sm:$0xff] }
 0x302   : > { %v5395_v62 = vpack.c.bf16 %v4613_v2, %v4612_v40  ;;  %v4708_v41 = vadd.f32 %v4707_v44, %v4613_v2  ;;  %v4746_v60 = vmul.f32 %v4613_v2, %v4613_v2 }
 0x303   : > { %v4172_v28 = vpop.f32.mrf.mxu3 }
 0x304   : > { %5427 = vst [vmem:[%s6713_s11 + $0x58] sm:$0xff] %v5395_v62   ;;  %v4777_v49 = vadd.f32 %v4776_v3, %v4746_v60  ;;  %v4216_v50 = vadd.f32 %v4172_v28, %v3562_v43 }
 0x306   : > { %v3520_v34 = vpop.f32.mrf.mxu2 }
 0x307   : > { %v4570_v6 = vpop.f32.mrf.mxu0  ;;  %v3563_v35 = vadd.f32 %v3520_v34, %v3276_v16  ;;  %v3238_v23 = vpop.f32.mrf.mxu1 }
 0x308   : > { %v4614_v21 = vadd.f32 %v4570_v6, %v4216_v50  ;;  %v3278_v27 = vadd.f32 %v3238_v23, %v6611_v47 }
 0x30a   : > { %v4709_v33 = vadd.f32 %v4708_v41, %v4614_v21  ;;  %v4747_v46 = vmul.f32 %v4614_v21, %v4614_v21 }
 0x30b   : > { %v4174_v14 = vpop.f32.mrf.mxu3 }
 0x30c   : > { %v4778_v26 = vadd.f32 %v4777_v49, %v4747_v46  ;;  %v4217_v32 = vadd.f32 %v4174_v14, %v3563_v35  ;;  %v6974_v46 = vld [vmem:[#allocation5_spill] sm:$0xff] }
 0x30e   : > { %v3523_v18 = vpop.f32.mrf.mxu2 }
 0x30f   : > { %v4572_v7 = vpop.f32.mrf.mxu0  ;;  %v3564_v38 = vadd.f32 %v3523_v18, %v3277_v20  ;;  %v3241_v17 = vpop.f32.mrf.mxu1 }
 0x310   : > { %v4615_v56 = vadd.f32 %v4572_v7, %v4217_v32  ;;  %v3279_v31 = vadd.f32 %v3241_v17, %v6628_v1 }
 0x312   : > { %v5400_v39 = vpack.c.bf16 %v4615_v56, %v4614_v21  ;;  %v4710_v30 = vadd.f32 %v4709_v33, %v4615_v56  ;;  %v4748_v12 = vmul.f32 %v4615_v56, %v4615_v56 }
 0x313   : > { %v4177_v25 = vpop.f32.mrf.mxu3 }
 0x314   : > { %5428 = vst [vmem:[%s6713_s11 + $0x60] sm:$0xff] %v5400_v39   ;;  %v4779_v4 = vadd.f32 %v4778_v26, %v4748_v12  ;;  %v4218_v15 = vadd.f32 %v4177_v25, %v3564_v38 }
 0x316   : > { %v3525_v52 = vpop.f32.mrf.mxu2 }
 0x317   : > { %v4575_v10 = vpop.f32.mrf.mxu0  ;;  %v3565_v37 = vadd.f32 %v3525_v52, %v3278_v27  ;;  %v3243_v9 = vpop.f32.mrf.mxu1 }
 0x318   : > { %v4616_v54 = vadd.f32 %v4575_v10, %v4218_v15  ;;  %v3280_v44 = vadd.f32 %v3243_v9, %v6972_v45 }
 0x31a   : > { %v4711_v53 = vadd.f32 %v4710_v30, %v4616_v54  ;;  %v4749_v51 = vmul.f32 %v4616_v54, %v4616_v54 }
 0x31b   : > { %v4179_v36 = vpop.f32.mrf.mxu3 }
 0x31c   : > { %v4780_v22 = vadd.f32 %v4779_v4, %v4749_v51  ;;  %v4219_v59 = vadd.f32 %v4179_v36, %v3565_v37 }
 0x31e   : > { %v3528_v57 = vpop.f32.mrf.mxu2 }
 0x31f   : > { %v4577_v0 = vpop.f32.mrf.mxu0  ;;  %v3566_v63 = vadd.f32 %v3528_v57, %v3279_v31  ;;  %v3246_v24 = vpop.f32.mrf.mxu1 }
 0x320   : > { %v4617_v5 = vadd.f32 %v4577_v0, %v4219_v59  ;;  %v3281_v62 = vadd.f32 %v3246_v24, %v6973_v13 }
 0x322   : > { %v5405_v55 = vpack.c.bf16 %v4617_v5, %v4616_v54  ;;  %v4712_v19 = vadd.f32 %v4711_v53, %v4617_v5  ;;  %v4750_v47 = vmul.f32 %v4617_v5, %v4617_v5 }
 0x323   : > { %v4182_v11 = vpop.f32.mrf.mxu3 }
 0x324   : > { %5429 = vst [vmem:[%s6713_s11 + $0x68] sm:$0xff] %v5405_v55   ;;  %v4781_v42 = vadd.f32 %v4780_v22, %v4750_v47  ;;  %v4220_v40 = vadd.f32 %v4182_v11, %v3566_v63 }
 0x326   : > { %v3530_v8 = vpop.f32.mrf.mxu2 }
 0x327   : > { %v4580_v58 = vpop.f32.mrf.mxu0  ;;  %v3567_v29 = vadd.f32 %v3530_v8, %v3280_v44  ;;  %v3248_v21 = vpop.f32.mrf.mxu1 }
 0x328   : > { %v4618_v3 = vadd.f32 %v4580_v58, %v4220_v40  ;;  %v3282_v14 = vadd.f32 %v3248_v21, %v6974_v46 }
 0x32a   : > { %v4713_v1 = vadd.f32 %v4712_v19, %v4618_v3  ;;  %v4751_v61 = vmul.f32 %v4618_v3, %v4618_v3 }
 0x32b   : > { %v4184_v48 = vpop.f32.mrf.mxu3 }
 0x32c   : > { %v4782_v2 = vadd.f32 %v4781_v42, %v4751_v61  ;;  %v4221_v43 = vadd.f32 %v4184_v48, %v3567_v29 }
 0x32e   : > { %v3533_v41 = vpop.f32.mrf.mxu2 }
 0x32f   : > { %v4582_v60 = vpop.f32.mrf.mxu0  ;;  %v3568_v49 = vadd.f32 %v3533_v41, %v3281_v62 }
 0x330   : > { %v4619_v28 = vadd.f32 %v4582_v60, %v4221_v43 }
 0x332   : > { %v5410_v50 = vpack.c.bf16 %v4619_v28, %v4618_v3  ;;  %v4714_v16 = vadd.f32 %v4713_v1, %v4619_v28  ;;  %v4752_v34 = vmul.f32 %v4619_v28, %v4619_v28 }
 0x333   : > { %v4187_v6 = vpop.f32.mrf.mxu3 }
 0x334   : > { %5430 = vst [vmem:[%s6713_s11 + $0x70] sm:$0xff] %v5410_v50   ;;  %v4783_v35 = vadd.f32 %v4782_v2, %v4752_v34  ;;  %v4222_v33 = vadd.f32 %v4187_v6, %v3568_v49 }
 0x336   : > { %v3535_v23 = vpop.f32.mrf.mxu2 }
 0x337   : > { %v4585_v26 = vpop.f32.mrf.mxu0  ;;  %v3569_v20 = vadd.f32 %v3535_v23, %v3282_v14 }
 0x338   : > { %v4620_v32 = vadd.f32 %v4585_v26, %v4222_v33 }
 0x33a   : > { %v4715_v18 = vadd.f32 %v4714_v16, %v4620_v32  ;;  %v4753_v7 = vmul.f32 %v4620_v32, %v4620_v32 }
 0x33b   : > { %v4189_v56 = vpop.f32.mrf.mxu3 }
 0x33c   : > { %v4784_v38 = vadd.f32 %v4783_v35, %v4753_v7  ;;  %v4223_v39 = vadd.f32 %v4189_v56, %v3569_v20 }
 0x33f   : > { %v4587_v30 = vpop.f32.mrf.mxu0 }
 0x340   : > { %v4621_v12 = vadd.f32 %v4587_v30, %v4223_v39 }
 0x342   : > { %v5415_v25 = vpack.c.bf16 %v4621_v12, %v4620_v32  ;;  %v4716_v4 = vadd.f32 %v4715_v18, %v4621_v12  ;;  %v4754_v15 = vmul.f32 %v4621_v12, %v4621_v12 }
 0x344   : > { %5431 = vst [vmem:[%s6713_s11 + $0x78] sm:$0xff] %v5415_v25   ;;  %v4717_v17 = vrot.slane %v4716_v4, 4  ;;  %v4785_v27 = vadd.f32 %v4784_v38, %v4754_v15 }
 0x346   : > { %v4718_v52 = vadd.f32 %v4717_v17, %v4716_v4  ;;  %v4786_v10 = vrot.slane %v4785_v27, 4 }
 0x348   : > { %v4719_v54 = vrot.slane %v4718_v52, 2  ;;  %v4787_v37 = vadd.f32 %v4786_v10, %v4785_v27 }
 0x34a   : > { %v4720_v53 = vadd.f32 %v4719_v54, %v4718_v52  ;;  %v4788_v51 = vrot.slane %v4787_v37, 2 }
 0x34c   : > { %v4721_v36 = vrot.slane %v4720_v53, 1  ;;  %v4789_v22 = vadd.f32 %v4788_v51, %v4787_v37 }
 0x34e   : > { %v4790_v59 = vrot.slane %v4789_v22, 1  ;;  %v4722_v31 = vadd.f32 %v4721_v36, %v4720_v53 }
 0x350   : > { %v4791_v57 = vadd.f32 %v4790_v59, %v4789_v22 }
 0x352   : > { %v4793_v0 = vsel %vm4792_vm0, %v4722_v31, %v4791_v57 }
 0x353   : > { %v4795_v9 = vsel %vm4794_vm1, %v4793_v0, 0.0 }
 0x354   : > { %4796 = vst [vmem:[%s181_s17] sm:$0xff] %v4795_v9 }
 0x355 PF: > { %s14_s12 = sadd.s32 1, %s5506_s12  }
 0x356   : > { %p11_p4 = scmp.ge.s32.totalorder %s14_s12, 4  }
 0x358   :  { %13 = sbr.rel (!%p11_p4) target bundleno = 1 (0x1), region = 80 }

// kernel: basic_block_forward.4
= control target key start
LH: loop header
LB: loop body
LE: loop exit
PB: predicated region body
PF: predicated region fallthrough
CT: control target
= control target key end

     0   :  { %s7217_s27 = smov 0   ;;  %s9137_s0 = inlined_call_operand.vmem [shape: bf16[2,16,16,128], index: 0, kind: input, shape index: {}]   ;;  %s9138_s1 = inlined_call_operand.vmem [shape: f32[1,128], index: 1, kind: input, shape index: {}]   ;;  %s9139_s2 = inlined_call_operand.vmem [shape: f32[1,128], index: 2, kind: input, shape index: {}]   ;;  %s9140_s3 = inlined_call_operand.vmem [shape: bf16[2,16,16,8], index: 3, kind: input, shape index: {}]   ;;  %s9141_s4 = inlined_call_operand.vmem [shape: bf16[9,128,128], index: 4, kind: input, shape index: {}]   ;;  %s9142_s5 = inlined_call_operand.vmem [shape: bf16[8,128], index: 5, kind: input, shape index: {}]   ;;  %s9143_s6 = inlined_call_operand.vmem [shape: bf16[2,16,16,128], index: 6, kind: output, shape index: {0}]   ;;  %s9144_s7 = inlined_call_operand.vmem [shape: bf16[2,16,16,128], index: 7, kind: output, shape index: {1}]   ;;  %s9145_s8 = inlined_call_operand.vmem [shape: f32[16,128], index: 8, kind: output, shape index: {2}]  }
   0x1 LB: > { %s5939_s28 = sadd.s32 4294967295, %s7169_s27   ;;  %p5943_p0 = scmp.ge.s32.totalorder %s7169_s27, 1  ;;  %s7169_s27 = sphi %s7217_s27, %s19_s27  }
   0x2   : > { %p277_p1 = scmp.lt.s32.totalorder %s7169_s27, 3 }
   0x4   : > { %p278_p2 = pnand %p5943_p0, %p277_p1 }
   0x6   : > { %281 = sbr.rel (%p278_p2) target bundleno = 896 (0x380), region = 44 }
   0xb   : > { %v6718_v0 = vld [vmem:[%s9141_s4 + $0x38] sm:$0xff]  ;;  %p325_p3 = scmp.lt.s32.totalorder %s5939_s28, 1  ;;  %v7171_v2 = vmov 0   ;;  %v6717_v3 = vld [vmem:[%s9141_s4 + $0x30] sm:$0xff]  ;;  %v6716_v5 = vld [vmem:[%s9141_s4 + $0x28] sm:$0xff]  ;;  %vm928_vm3 = vcmask 1043456  }
   0xc   : > { %v6726_v1 = vld [vmem:[%s9141_s4 + $0x78] sm:$0xff]  ;;  %518 = vst [vmem:[#allocation2] sm:$0xf] %v7171_v2  ;;  %1858 = vmatpush.bf16.msra.mxu1 %v6718_v0  ;;  %7108 = vmatpush.bf16.msra.mxu3 %v6718_v0  ;;  %v6725_v4 = vld [vmem:[%s9141_s4 + $0x70] sm:$0xff]  ;;  %v6724_v7 = vld [vmem:[%s9141_s4 + $0x68] sm:$0xff]  ;;  %vm935_vm8 = vcmask 1040384  }
   0xd   : > { %519 = vst [vmem:[#allocation2 + $0x4] sm:$0xf] %v7171_v2  ;;  %s9213_s28 = smov (!%p325_p3, %s5939_s28), 1  ;;  %7100 = vmatpush.bf16.msra.mxu2 %v6726_v1  ;;  %1625 = vmatpush.bf16.msra.mxu0 %v6726_v1  ;;  %v7267_v9 = vld [vmem:[%s9138_s1] ss:$0 sm:$0xff]  ;;  %v6714_v15 = vld [vmem:[%s9141_s4 + $0x18] sm:$0xff] }
   0xe   : > { %520 = vst [vmem:[#allocation2 + $0x8] sm:$0x1] %v7171_v2  ;;  %s7244_s15 = sshll.u32 %s9213_s28, 7  ;;  %v6715_v10 = vld [vmem:[%s9141_s4 + $0x20] sm:$0xff]  ;;  %v6722_v17 = vld [vmem:[%s9141_s4 + $0x58] sm:$0xff]  ;;  %v6713_v19 = vld [vmem:[%s9141_s4 + $0x10] sm:$0xff] }
   0xf   : > { %521 = vst [vmem:[#allocation2 + $0xc] sm:$0xf] %v7171_v2  ;;  %s7251_s18 = scalar_lea.vmem %s9137_s0, %s7244_s15  ;;  %v6723_v12 = vld [vmem:[%s9141_s4 + $0x60] sm:$0xff]  ;;  %v6721_v21 = vld [vmem:[%s9141_s4 + $0x50] sm:$0xff]  ;;  %v6712_v23 = vld [vmem:[%s9141_s4 + $0x8] sm:$0xff]  ;;  %vm1995_vm11 = vcmask 1042432   ;;  %s8518_s26 = scalar_lea.vmem %s9140_s3, %s7244_s15 }
  0x10   : > { %522 = vst [vmem:[#allocation2 + $0x10] sm:$0xf] %v7171_v2  ;;  %1859 = vmatpush.bf16.msra.mxu1 %v6717_v3  ;;  %7109 = vmatpush.bf16.msra.mxu3 %v6717_v3  ;;  %v7061_v6 = vld [vmem:[%s7251_s18 + $0x38] sm:$0xff]   ;;  %v7283_v14 = vld [vmem:[%s9139_s2] ss:$0 sm:$0xff]  ;;  %v6720_v27 = vld [vmem:[%s9141_s4 + $0x48] sm:$0xff]  ;;  %s8825_s9 = scalar_lea.vmem %s9144_s7, %s7244_s15  ;;  %s8904_s11 = scalar_lea.vmem %s9143_s6, %s7244_s15 }
  0x11   : > { %523 = vst [vmem:[#allocation2 + $0x14] sm:$0x1] %v7171_v2  ;;  %7101 = vmatpush.bf16.msra.mxu2 %v6725_v4  ;;  %1626 = vmatpush.bf16.msra.mxu0 %v6725_v4  ;;  %v6861_v8 = vunpack.c.l.bf16 %v7061_v6  ;;  %v6862_v11 = vunpack.c.h.bf16 %v7061_v6  ;;  %v6832_v25 = vld [vmem:[%s7251_s18] sm:$0xff]   ;;  %vm604_vm0 = vsmask.f32 256  ;;  %vm1996_vm12 = vcmask 1046532  }
  0x12   : > { %524 = vst [vmem:[#allocation2 + $0x18] sm:$0xf] %v7171_v2  ;;  %v7062_v26 = vld [vmem:[%s7251_s18 + $0x40] sm:$0xff]   ;;  %v6833_v28 = vunpack.c.l.bf16 %v6832_v25  ;;  %v6834_v29 = vunpack.c.h.bf16 %v6832_v25  ;;  %vm605_vm1 = vsmask.f32 4368  ;;  %vm7429_vm10 = vmand %vm935_vm8, %vm604_vm0  ;;  %vm5318_vm14 = vcmask 64512  }
  0x13   : > { %525 = vst [vmem:[#allocation2 + $0x1c] sm:$0xf] %v7171_v2  ;;  %v432_v13 = vmul.f32 %v7267_v9, %v6861_v8  ;;  %v433_v16 = vmul.f32 %v7267_v9, %v6862_v11  ;;  %v6865_v30 = vunpack.c.l.bf16 %v7062_v26  ;;  %v6866_v31 = vunpack.c.h.bf16 %v7062_v26  ;;  %v6711_v36 = vld [vmem:[%s9141_s4] sm:$0xff]  ;;  %vm7363_vm4 = vmor %vm604_vm0, %vm605_vm1  ;;  %s5952_s15 = sshll.u32 %s9213_s28, 3 }
  0x14   : > { %526 = vst [vmem:[#allocation2 + $0x20] sm:$0x1] %v7171_v2  ;;  %1860 = vmatpush.bf16.msra.mxu1 %v6716_v5  ;;  %7110 = vmatpush.bf16.msra.mxu3 %v6716_v5  ;;  %v418_v33 = vmul.f32 %v7267_v9, %v6833_v28  ;;  %v419_v34 = vmul.f32 %v7267_v9, %v6834_v29  ;;  %v6695_v41 = vld [vmem:[#allocation2] sm:$0xff]  ;;  %vm929_vm2 = vsmask.f32 7938  ;;  %vm7865_vm13 = vmor %vm1995_vm11, %vm1996_vm12  ;;  %vm5802_vm15 = vcmask 1041408   ;;  %s348_s14 = scalar_lea.vmem %s9145_s8, %s5952_s15 }
  0x15   : > { %527 = vst [vmem:[#allocation2 + $0x24] sm:$0xf] %v7171_v2  ;;  %7102 = vmatpush.bf16.msra.mxu2 %v6724_v7  ;;  %1627 = vmatpush.bf16.msra.mxu0 %v6724_v7  ;;  %v468_v18 = vadd.f32 %v7283_v14, %v432_v13  ;;  %v469_v20 = vadd.f32 %v7283_v14, %v433_v16  ;;  %v6719_v50 = vld [vmem:[%s9141_s4 + $0x40] sm:$0xff]  ;;  %v1093_v1 = vld [vmem:[#allocation2 + $0x8] sm:$0x1]  ;;  %vm7373_vm6 = vmand %vm928_vm3, %vm929_vm2 }
  0x16   : > { %528 = vst [vmem:[#allocation2 + $0x28] sm:$0xf] %v7171_v2  ;;  %v434_v35 = vmul.f32 %v7267_v9, %v6865_v30  ;;  %v435_v38 = vmul.f32 %v7267_v9, %v6866_v31  ;;  %v454_v39 = vadd.f32 %v7283_v14, %v418_v33  ;;  %v455_v40 = vadd.f32 %v7283_v14, %v419_v34  ;;  %v1045_v56 = vld [vmem:[#allocation2] sm:$0xf]  ;;  %v1046_v57 = vld [vmem:[#allocation2 + $0x4] sm:$0xf] }
  0x17   : > { %529 = vst [vmem:[#allocation2 + $0x2c] sm:$0x1] %v7171_v2  ;;  %v500_v22 = vmax.f32 %v468_v18, 0.0  ;;  %v501_v24 = vmax.f32 %v469_v20, 0.0  ;;  %v1113_v59 = vshrl.u32 %v1045_v56, 16  ;;  %v1116_v60 = vshll.u32 %v1045_v56, 16 }
  0x18   : > { %530 = vst [vmem:[#allocation2 + $0x30] sm:$0xf] %v7171_v2  ;;  %1861 = vmatpush.bf16.msra.mxu1 %v6715_v10  ;;  %7111 = vmatpush.bf16.msra.mxu3 %v6715_v10  ;;  %v486_v43 = vmax.f32 %v454_v39, 0.0  ;;  %v470_v44 = vadd.f32 %v7283_v14, %v434_v35  ;;  %v471_v46 = vadd.f32 %v7283_v14, %v435_v38  ;;  %v487_v47 = vmax.f32 %v455_v40, 0.0  ;;  %v7055_v20 = vld [vmem:[%s7251_s18 + $0x8] sm:$0xff]   ;;  %v6734_v38 = vld [vmem:[%s9141_s4 + $0xb8] sm:$0xff] }
  0x19   : > { %531 = vst [vmem:[#allocation2 + $0x34] sm:$0xf] %v7171_v2  ;;  %7103 = vmatpush.bf16.msra.mxu2 %v6723_v12  ;;  %1628 = vmatpush.bf16.msra.mxu0 %v6723_v12  ;;  %v586_v32 = vpack.c.bf16 %v500_v22, %v500_v22  ;;  %v587_v37 = vpack.c.bf16 %v501_v24, %v501_v24  ;;  %v1122_v61 = vshll.u32 %v1046_v57, 16  ;;  %v1126_v62 = vshrl.u32 %v1046_v57, 16  ;;  %v7063_v33 = vld [vmem:[%s7251_s18 + $0x48] sm:$0xff]  }
  0x1a   : > { %532 = vst [vmem:[#allocation2 + $0x38] sm:$0x1] %v7171_v2  ;;  %v7342_v51 = vpack.c.bf16 %v486_v43, %v486_v43  ;;  %v502_v52 = vmax.f32 %v470_v44, 0.0  ;;  %v503_v55 = vmax.f32 %v471_v46, 0.0  ;;  %v7348_v58 = vpack.c.bf16 %v487_v47, %v487_v47 }
  0x1b   : > { %533 = vst [vmem:[#allocation2 + $0x3c] sm:$0xf] %v7171_v2  ;;  %v727_v42 = vshrl.u32 %v586_v32, 16  ;;  %v735_v45 = vshrl.u32 %v587_v37, 16  ;;  %v730_v49 = vshll.u32 %v586_v32, 16  ;;  %v738_v54 = vshll.u32 %v587_v37, 16 }
  0x1c   : > { %534 = vst [vmem:[#allocation2 + $0x40] sm:$0xf] %v7171_v2  ;;  %1862 = vmatpush.bf16.msra.mxu1 %v6714_v15  ;;  %7112 = vmatpush.bf16.msra.mxu3 %v6714_v15  ;;  %v608_v3 = vshrl.u32 %v7342_v51, 16  ;;  %v7355_v4 = vpack.c.bf16 %v502_v52, %v502_v52  ;;  %v1115_v6 = vrot.slane %v1113_v59, 4  ;;  %v1118_v7 = vrot.slane %v1116_v60, 5 }
  0x1d   : > { %535 = vst [vmem:[#allocation2 + $0x44] sm:$0x1] %v7171_v2  ;;  %7104 = vmatpush.bf16.msra.mxu2 %v6722_v17  ;;  %1629 = vmatpush.bf16.msra.mxu0 %v6722_v17  ;;  %v729_v48 = vrot.slane %v727_v42, 7  ;;  %v7345_v53 = vrot.slane %v735_v45, 7  ;;  %v1124_v8 = vrot.slane %v1122_v61, 5  ;;  %v1128_v10 = vrot.slane %v1126_v62, 4 }
  0x1e   : > { %536 = vst [vmem:[#allocation2 + $0x48] sm:$0xf] %v7171_v2  ;;  %vm1109_vm5 = vsmask.f32 3328  ;;  %v1132_v13 = vshll.u32 %v1093_v1, 16  ;;  %v7368_v15 = vpack.c.bf16 %v503_v55, %v503_v55  ;;  %v1119_v17 = vor.u32 %v1118_v7, %v1115_v6  ;;  %v6766_v62 = vld [vmem:[%s9141_s4 + $0x138] sm:$0xff] }
  0x1f   : > { %537 = vst [vmem:[#allocation2 + $0x4c] sm:$0xf] %v7171_v2  ;;  %v7352_v63 = vor.u32 %v730_v49, %v729_v48  ;;  %v733_v0 = vrot.slane %v729_v48, 4  ;;  %v740_v12 = vor.u32 %v738_v54, %v7345_v53  ;;  %vm1110_vm7 = vsmask.f32 7440 }
  0x20   : > { %538 = vst [vmem:[#allocation2 + $0x50] sm:$0x1] %v7171_v2  ;;  %1863 = vmatpush.bf16.msra.mxu1 %v6713_v19  ;;  %7113 = vmatpush.bf16.msra.mxu3 %v6713_v19  ;;  %v1129_v18 = vor.u32 %v1128_v10, %v1124_v8  ;;  %v616_v19 = vshrl.u32 %v7348_v58, 16  ;;  %v1134_v22 = vrot.slane %v1132_v13, 5  ;;  %v1120_v24 = vrot.slane %v1119_v17, 4  ;;  %vm7397_vm9 = vmor %vm1109_vm5, %vm1110_vm7 }
  0x21   : > { %539 = vst [vmem:[#allocation2 + $0x54] sm:$0xf] %v7171_v2  ;;  %7105 = vmatpush.bf16.msra.mxu2 %v6721_v21  ;;  %1630 = vmatpush.bf16.msra.mxu0 %v6721_v21  ;;  %v742_v21 = vrot.slane %v7345_v53, 4  ;;  %v7383_v26 = vrot.slane %v608_v3, 7  ;;  %v7389_v28 = vsel %vm7363_vm4, %v733_v0, %v740_v12  ;;  %v752_v31 = vshrl.u32 %v7368_v15, 16  ;;  %v6774_v0 = vld [vmem:[%s9141_s4 + $0x178] sm:$0xff] }
  0x22   : > { %540 = vst [vmem:[#allocation2 + $0x58] sm:$0xf] %v7171_v2  ;;  %v1130_v25 = vrot.slane %v1129_v18, 4  ;;  %v6837_v32 = vunpack.c.l.bf16 %v7055_v20  ;;  %v1125_v34 = vsel %vm7397_vm9, %v1120_v24, %v1124_v8  ;;  %v619_v37 = vshll.u32 %v7348_v58, 16  ;;  %v931_v60 = vld [vmem:[#allocation2 + $0xc] sm:$0xf] }
  0x23   : > { %541 = vst [vmem:[#allocation2 + $0x5c] sm:$0x1] %v7171_v2  ;;  %v1513_v39 = vunpack.c.l.b16 %v1125_v34  ;;  %v747_v43 = vshll.u32 %v7355_v4, 16  ;;  %v6838_v45 = vunpack.c.h.bf16 %v7055_v20  ;;  %v6869_v47 = vunpack.c.l.bf16 %v7063_v33 }
  0x24   : > { %542 = vst [vmem:[#allocation2 + $0x60] sm:$0xf] %v7171_v2  ;;  %1864 = vmatpush.bf16.msra.mxu1 %v6712_v23  ;;  %7114 = vmatpush.bf16.msra.mxu3 %v6712_v23  ;;  %v744_v23 = vshrl.u32 %v7355_v4, 16  ;;  %v1135_v35 = vsel %vm7397_vm9, %v1130_v25, %v1134_v22  ;;  %v420_v46 = vmul.f32 %v7267_v9, %v6837_v32  ;;  %v754_v49 = vrot.slane %v752_v31, 7 }
  0x25   : > { %543 = vst [vmem:[#allocation2 + $0x64] sm:$0xf] %v7171_v2  ;;  %7106 = vmatpush.bf16.msra.mxu2 %v6720_v27  ;;  %1631 = vmatpush.bf16.msra.mxu0 %v6720_v27  ;;  %v611_v27 = vshll.u32 %v7342_v51, 16  ;;  %v1514_v40 = vunpack.c.l.b16 %v1135_v35  ;;  %v6870_v51 = vunpack.c.h.bf16 %v7063_v33  ;;  %v614_v55 = vrot.slane %v7383_v26, 4 }
  0x26   : > { %544 = vst [vmem:[#allocation2 + $0x68] sm:$0x1] %v7171_v2  ;;  %v746_v42 = vrot.slane %v744_v23, 7  ;;  %v421_v56 = vmul.f32 %v7267_v9, %v6838_v45  ;;  %v456_v57 = vadd.f32 %v7283_v14, %v420_v46  ;;  %v436_v58 = vmul.f32 %v7267_v9, %v6869_v47 }
  0x27   : > { %545 = vst [vmem:[#allocation2 + $0x6c] sm:$0xf] %v7171_v2  ;;  %v7421_v44 = vor.u32 %v611_v27, %v7383_v26  ;;  %v1545_v48 = vpack.c.b16 %v1514_v40, %v1513_v39  ;;  %v437_v1 = vmul.f32 %v7267_v9, %v6870_v51  ;;  %v759_v13 = vrot.slane %v754_v49, 4 }
  0x28   : > { %546 = vst [vmem:[#allocation2 + $0x70] sm:$0xf] %v7171_v2  ;;  %1865 = vmatpush.bf16.msra.mxu1 %v6711_v36  ;;  %7115 = vmatpush.bf16.msra.mxu3 %v6711_v36  ;;  %v7408_v36 = vrot.slane %v616_v19, 7  ;;  %v7439_v61 = vor.u32 %v747_v43, %v746_v42  ;;  %v457_v6 = vadd.f32 %v7283_v14, %v421_v56  ;;  %v488_v7 = vmax.f32 %v456_v57, 0.0  ;;  %v937_v19 = vld [vmem:[#allocation2 + $0x14] sm:$0x1] }
  0x29   : > { %547 = vst [vmem:[#allocation2 + $0x74] sm:$0x1] %v7171_v2  ;;  %7107 = vmatpush.bf16.msra.mxu2 %v6719_v50  ;;  %1632 = vmatpush.bf16.msra.mxu0 %v6719_v50  ;;  %v755_v50 = vshll.u32 %v7368_v15, 16  ;;  %v472_v8 = vadd.f32 %v7283_v14, %v436_v58  ;;  %v750_v10 = vrot.slane %v746_v42, 4  ;;  %v473_v17 = vadd.f32 %v7283_v14, %v437_v1 }
  0x2a   : > { %548 = vst [vmem:[#allocation2 + $0x78] sm:$0xf] %v7171_v2  ;;  %v621_v59 = vor.u32 %v619_v37, %v7408_v36  ;;  %v623_v3 = vrot.slane %v7408_v36, 4  ;;  %v489_v20 = vmax.f32 %v457_v6, 0.0  ;;  %v574_v22 = vpack.c.bf16 %v488_v7, %v488_v7  ;;  %v7056_v37 = vld [vmem:[%s7251_s18 + $0x10] sm:$0xff]  }
  0x2b   : > { %549 = vst [vmem:[#allocation2 + $0x7c] sm:$0xf] %v7171_v2  ;;  %1866 = vmatmul.bf16.vlgmr.msra.gmra.mxu1 %v6695_v41  ;;  %v7358_v5 = vld [vmem:[#allocation2 + $0x60] sm:$0xf]  ;;  %v6758_v41 = vld [vmem:[%s9141_s4 + $0xf8] sm:$0xff]  ;;  %v757_v12 = vor.u32 %v755_v50, %v754_v49  ;;  %v504_v23 = vmax.f32 %v472_v8, 0.0  ;;  %v932_v25 = vsel %vm7373_vm6, %v7421_v44, %v931_v60  ;;  %v6841_v44 = vunpack.c.l.bf16 %v7056_v37 }
  0x2c   : > { %550 = vst [vmem:[#allocation2 + $0x80] sm:$0x1] %v7171_v2  ;;  %v983_v29 = vsel %vm7373_vm6, %v7352_v63, %v7358_v5  ;;  %2553 = vmatpush.bf16.msrb.mxu3 %v6758_v41  ;;  %1633 = vmatmul.bf16.vlgmr.msra.gmra.mxu0 %v1545_v48  ;;  %v622_v24 = vsel %vm7363_vm4, %v614_v55, %v621_v59  ;;  %v625_v27 = vshrl.u32 %v574_v22, 16  ;;  %v628_v31 = vshll.u32 %v574_v22, 16  ;;  %v944_v59 = vld [vmem:[#allocation2 + $0x20] sm:$0x1] }
  0x2d   : > { %551 = vst [vmem:[#allocation2 + $0x84] sm:$0xf] %v7171_v2  ;;  %2239 = vmatpush.bf16.msrb.mxu2 %v6734_v38  ;;  %v986_v54 = vld [vmem:[#allocation2 + $0x68] sm:$0x1]  ;;  %3235 = vmatpush.bf16.msrb.mxu0 %v6766_v62  ;;  %v575_v26 = vpack.c.bf16 %v489_v20, %v489_v20  ;;  %v590_v32 = vpack.c.bf16 %v504_v23, %v504_v23  ;;  %v7484_v38 = vld [vmem:[%s7251_s18 + $0x50] sm:$0xff]   ;;  %v6842_v50 = vunpack.c.h.bf16 %v7056_v37 }
  0x2e   : > { %552 = vst [vmem:[#allocation2 + $0x88] sm:$0xf] %v7171_v2  ;;  %v989_v4 = vld [vmem:[#allocation2 + $0x6c] sm:$0xf]  ;;  %3661 = vmatpush.bf16.msrb.mxu1 %v6774_v0  ;;  %v987_v18 = vsel %vm7429_vm10, %v742_v21, %v986_v54  ;;  %v505_v21 = vmax.f32 %v473_v17, 0.0  ;;  %v758_v33 = vsel %vm7363_vm4, %v750_v10, %v757_v12  ;;  %v938_v35 = vsel %vm7429_vm10, %v623_v3, %v937_v19  ;;  %v6733_v60 = vld [vmem:[%s9141_s4 + $0xb0] sm:$0xff] }
  0x2f   : > { %553 = vst [vmem:[#allocation2 + $0x8c] sm:$0x1] %v7171_v2  ;;  %v990_v53 = vsel %vm7373_vm6, %v7439_v61, %v989_v4  ;;  %v627_v39 = vrot.slane %v625_v27, 7  ;;  %v633_v63 = vshrl.u32 %v575_v26, 16  ;;  %v636_v5 = vshll.u32 %v575_v26, 16  ;;  %v6757_v61 = vld [vmem:[%s9141_s4 + $0xf0] sm:$0xff] }
  0x30   : > { %554 = vst [vmem:[#allocation2 + $0x90] sm:$0xf] %v7171_v2  ;;  %v993_v15 = vld [vmem:[#allocation2 + $0x74] sm:$0x1]  ;;  %v591_v36 = vpack.c.bf16 %v505_v21, %v505_v21  ;;  %v764_v40 = vshll.u32 %v590_v32, 16  ;;  %v422_v51 = vmul.f32 %v7267_v9, %v6841_v44  ;;  %v6873_v54 = vunpack.c.l.bf16 %v7484_v38  ;;  %2554 = vmatpush.bf16.msrb.mxu3 %v6757_v61 }
  0x31   : > { %555 = vst [vmem:[#allocation2 + $0x94] sm:$0xf] %v7171_v2  ;;  %v994_v34 = vsel %vm7429_vm10, %v759_v13, %v993_v15  ;;  %v7487_v43 = vld [vmem:[#allocation2 + $0x78] sm:$0xf]  ;;  %v7489_v45 = vor.u32 %v628_v31, %v627_v39  ;;  %v631_v46 = vrot.slane %v627_v39, 4  ;;  %v635_v47 = vrot.slane %v633_v63, 7  ;;  %2240 = vmatpush.bf16.msrb.mxu2 %v6733_v60 }
  0x32   : > { %556 = vst [vmem:[#allocation2 + $0x98] sm:$0x1] %v7171_v2  ;;  %v769_v41 = vshrl.u32 %v591_v36, 16  ;;  %v772_v42 = vshll.u32 %v591_v36, 16  ;;  %v423_v3 = vmul.f32 %v7267_v9, %v6842_v50  ;;  %v7517_v10 = vadd.f32 %v7283_v14, %v422_v51  ;;  %v6765_v31 = vld [vmem:[%s9141_s4 + $0x130] sm:$0xff] }
  0x33   : > { %557 = vst [vmem:[#allocation2 + $0x9c] sm:$0xf] %v7171_v2  ;;  %v638_v55 = vor.u32 %v636_v5, %v635_v47  ;;  %v640_v56 = vrot.slane %v635_v47, 4  ;;  %3236 = vmatpush.bf16.msrb.mxu0 %v6765_v31  ;;  %v6732_v31 = vld [vmem:[%s9141_s4 + $0xa8] sm:$0xff] }
  0x34   : > { %558 = vst [vmem:[#allocation2 + $0xa0] sm:$0xf] %v7171_v2  ;;  %v771_v49 = vrot.slane %v769_v41, 7  ;;  %v6773_v41 = vld [vmem:[%s9141_s4 + $0x170] sm:$0xff] }
  0x35   : > { %559 = vst [vmem:[#allocation2 + $0xa4] sm:$0x1] %v7171_v2  ;;  %v639_v6 = vsel %vm7363_vm4, %v631_v46, %v638_v55  ;;  %v7514_v8 = vsel %vm7429_vm10, %v640_v56, %v944_v59  ;;  %3662 = vmatpush.bf16.msrb.mxu1 %v6773_v41  ;;  %2241 = vmatpush.bf16.msrb.mxu2 %v6732_v31 }
  0x36   : > { %560 = vst [vmem:[#allocation2 + $0xa8] sm:$0xf] %v7171_v2  ;;  %v774_v0 = vor.u32 %v772_v42, %v771_v49  ;;  %v776_v1 = vrot.slane %v771_v49, 4 }
  0x37   : > { %561 = vst [vmem:[#allocation2 + $0xac] sm:$0xf] %v7171_v2 }
  0x38   : > { %562 = vst [vmem:[#allocation2 + $0xb0] sm:$0x1] %v7171_v2 }
  0x39   : > { %563 = vst [vmem:[#allocation2 + $0xb4] sm:$0xf] %v7171_v2 }
  0x3a   : > { %564 = vst [vmem:[#allocation2 + $0xb8] sm:$0xf] %v7171_v2 }
  0x3b   : > { %565 = vst [vmem:[#allocation2 + $0xbc] sm:$0x1] %v7171_v2 }
  0x3c   : > { %566 = vst [vmem:[#allocation2 + $0xc0] sm:$0xf] %v7171_v2 }
  0x3d   : > { %567 = vst [vmem:[#allocation2 + $0xc4] sm:$0xf] %v7171_v2 }
  0x3e   : > { %568 = vst [vmem:[#allocation2 + $0xc8] sm:$0x1] %v7171_v2 }
  0x3f   : > { %569 = vst [vmem:[#allocation2 + $0xcc] sm:$0xf] %v7171_v2 }
  0x40   : > { %570 = vst [vmem:[#allocation2 + $0xd0] sm:$0xf] %v7171_v2 }
  0x41   : > { %571 = vst [vmem:[#allocation2 + $0xd4] sm:$0x1] %v7171_v2  ;;  %v7480_v2 = vld [vmem:[#allocation2 + $0x18] sm:$0xf] }
  0x42   : > { %984 = vst [vmem:[#allocation2 + $0x60] sm:$0xf] %v983_v29  ;;  %v761_v29 = vshrl.u32 %v590_v32, 16  ;;  %v941_v57 = vsel %vm7373_vm6, %v7489_v45, %v7480_v2  ;;  %v7531_v32 = vmul.f32 %v7267_v9, %v6873_v54 }
  0x43   : > { %985 = vst [vmem:[#allocation2 + $0x64] sm:$0xf] %v7389_v28  ;;  %v1000_v28 = vld [vmem:[#allocation2 + $0x80] sm:$0x1] }
  0x44   : > { %988 = vst [vmem:[#allocation2 + $0x68] sm:$0x1] %v987_v18  ;;  %v763_v48 = vrot.slane %v761_v29, 7  ;;  %v1001_v19 = vsel %vm7429_vm10, %v776_v1, %v1000_v28 }
  0x45   : > { %933 = vst [vmem:[#allocation2 + $0xc] sm:$0xf] %v932_v25  ;;  %v6874_v25 = vunpack.c.h.bf16 %v7484_v38 }
  0x46   : > { %934 = vst [vmem:[#allocation2 + $0x10] sm:$0xf] %v622_v24  ;;  %v7497_v58 = vor.u32 %v764_v40, %v763_v48  ;;  %v767_v62 = vrot.slane %v763_v48, 4  ;;  %v7524_v24 = vadd.f32 %v7283_v14, %v423_v3 }
  0x47   : > { %991 = vst [vmem:[#allocation2 + $0x6c] sm:$0xf] %v990_v53  ;;  %v7534_v39 = vmul.f32 %v7267_v9, %v6874_v25 }
  0x48   : > { %992 = vst [vmem:[#allocation2 + $0x70] sm:$0xf] %v758_v33  ;;  %v997_v7 = vsel %vm7373_vm6, %v7497_v58, %v7487_v43  ;;  %v775_v18 = vsel %vm7363_vm4, %v767_v62, %v774_v0  ;;  %v491_v43 = vmax.f32 %v7524_v24, 0.0  ;;  %v6756_v24 = vld [vmem:[%s9141_s4 + $0xe8] sm:$0xff] }
  0x49   : > { %v1061_v4 = vld [vmem:[#allocation2 + $0x60] sm:$0xf]  ;;  %995 = vst [vmem:[#allocation2 + $0x74] sm:$0x1] %v994_v34  ;;  %2555 = vmatpush.bf16.msrb.mxu3 %v6756_v24 }
  0x4a   : > { %v6703_v12 = vld [vmem:[#allocation2 + $0x60] sm:$0xff]  ;;  %v1305_v15 = vshrl.u32 %v1061_v4, 16  ;;  %v1308_v17 = vshll.u32 %v1061_v4, 16  ;;  %939 = vst [vmem:[#allocation2 + $0x14] sm:$0x1] %v938_v35 }
  0x4b   : > { %v1062_v13 = vld [vmem:[#allocation2 + $0x64] sm:$0xf]  ;;  %v1101_v20 = vld [vmem:[#allocation2 + $0x68] sm:$0x1]  ;;  %1906 = vmatmul.bf16.vlgmr.msra.gmra.mxu3 %v6703_v12  ;;  %942 = vst [vmem:[#allocation2 + $0x18] sm:$0xf] %v941_v57 }
  0x4c   : > { %v1314_v22 = vshll.u32 %v1062_v13, 16  ;;  %v1318_v23 = vshrl.u32 %v1062_v13, 16  ;;  %v1307_v53 = vrot.slane %v1305_v15, 4  ;;  %v1310_v21 = vrot.slane %v1308_v17, 5  ;;  %v1047_v27 = vld [vmem:[#allocation2 + $0xc] sm:$0xf] }
  0x4d   : > { %v1324_v26 = vshll.u32 %v1101_v20, 16  ;;  %v6696_v35 = vld [vmem:[#allocation2 + $0xc] sm:$0xff]  ;;  %v1137_v37 = vshrl.u32 %v1047_v27, 16  ;;  %v1140_v29 = vshll.u32 %v1047_v27, 16  ;;  %943 = vst [vmem:[#allocation2 + $0x1c] sm:$0xf] %v639_v6 }
  0x4e   : > { %v1316_v33 = vrot.slane %v1314_v22, 5  ;;  %v1320_v34 = vrot.slane %v1318_v23, 4  ;;  %v1048_v36 = vld [vmem:[#allocation2 + $0x10] sm:$0xf]  ;;  %v1311_v38 = vor.u32 %v1310_v21, %v1307_v53  ;;  %v1063_v5 = vld [vmem:[#allocation2 + $0x6c] sm:$0xf]  ;;  %1871 = vmatmul.bf16.gmra.mxu1 %v6696_v35 }
  0x4f   : > { %v1326_v63 = vrot.slane %v1324_v26, 5  ;;  %v1146_v40 = vshll.u32 %v1048_v36, 16  ;;  %v1064_v44 = vld [vmem:[#allocation2 + $0x70] sm:$0xf]  ;;  %v1329_v46 = vshrl.u32 %v1063_v5, 16  ;;  %v1332_v47 = vshll.u32 %v1063_v5, 16 }
  0x50   : > { %v1321_v42 = vor.u32 %v1320_v34, %v1316_v33  ;;  %v1139_v48 = vrot.slane %v1137_v37, 4  ;;  %v1312_v49 = vrot.slane %v1311_v38, 4  ;;  %v1102_v28 = vld [vmem:[#allocation2 + $0x74] sm:$0x1]  ;;  %v1338_v50 = vshll.u32 %v1064_v44, 16  ;;  %v6704_v58 = vld [vmem:[#allocation2 + $0x6c] sm:$0xff] }
  0x51   : > { %v1342_v51 = vshrl.u32 %v1064_v44, 16  ;;  %v1142_v54 = vrot.slane %v1140_v29, 5  ;;  %v1331_v56 = vrot.slane %v1329_v46, 4  ;;  %v1334_v59 = vrot.slane %v1332_v47, 5  ;;  %v1094_v1 = vld [vmem:[#allocation2 + $0x14] sm:$0x1] }
  0x52   : > { %v1322_v55 = vrot.slane %v1321_v42, 4  ;;  %v1348_v60 = vshll.u32 %v1102_v28, 16  ;;  %v1317_v61 = vsel %vm7397_vm9, %v1312_v49, %v1316_v33  ;;  %v1340_v62 = vrot.slane %v1338_v50, 5  ;;  %998 = vst [vmem:[#allocation2 + $0x78] sm:$0xf] %v997_v7 }
  0x53   : > { %v1344_v0 = vrot.slane %v1342_v51, 4  ;;  %v1143_v3 = vor.u32 %v1142_v54, %v1139_v48  ;;  %v1529_v12 = vunpack.c.l.b16 %v1317_v61  ;;  %v1335_v13 = vor.u32 %v1334_v59, %v1331_v56  ;;  %999 = vst [vmem:[#allocation2 + $0x7c] sm:$0xf] %v775_v18 }
  0x54   : > { %v1327_v4 = vsel %vm7397_vm9, %v1322_v55, %v1326_v63  ;;  %v1350_v15 = vrot.slane %v1348_v60, 5  ;;  %v1148_v17 = vrot.slane %v1146_v40, 5  ;;  %v1150_v22 = vshrl.u32 %v1048_v36, 16  ;;  %1002 = vst [vmem:[#allocation2 + $0x80] sm:$0x1] %v1001_v19  ;;  %v6697_v47 = vld [vmem:[#allocation2 + $0x18] sm:$0xff] }
  0x55   : > { %v1530_v2 = vunpack.c.l.b16 %v1327_v4  ;;  %v1345_v45 = vor.u32 %v1344_v0, %v1340_v62  ;;  %v1144_v57 = vrot.slane %v1143_v3, 4  ;;  %v1336_v20 = vrot.slane %v1335_v13, 4  ;;  %946 = vst [vmem:[#allocation2 + $0x20] sm:$0x1] %v7514_v8  ;;  %v1049_v8 = vld [vmem:[#allocation2 + $0x18] sm:$0xf] }
  0x56   : > { %v1156_v6 = vshll.u32 %v1094_v1, 16  ;;  %v490_v23 = vmax.f32 %v7517_v10, 0.0  ;;  %v1152_v18 = vrot.slane %v1150_v22, 4  ;;  %v7570_v34 = vpack.c.bf16 %v491_v43, %v491_v43  ;;  %v1050_v37 = vld [vmem:[#allocation2 + $0x1c] sm:$0xf]  ;;  %v6764_v1 = vld [vmem:[%s9141_s4 + $0x128] sm:$0xff] }
  0x57   : > { %v1553_v25 = vpack.c.b16 %v1530_v2, %v1529_v12  ;;  %v1346_v53 = vrot.slane %v1345_v45, 4  ;;  %v1149_v21 = vsel %vm7397_vm9, %v1144_v57, %v1148_v17  ;;  %v1341_v7 = vsel %vm7397_vm9, %v1336_v20, %v1340_v62  ;;  %3237 = vmatpush.bf16.msrb.mxu0 %v6764_v1 }
  0x58   : > { %v1158_v26 = vrot.slane %v1156_v6, 5  ;;  %v1515_v27 = vunpack.c.l.b16 %v1149_v21  ;;  %v7562_v19 = vunpack.c.l.b16 %v1341_v7  ;;  %v576_v33 = vpack.c.bf16 %v490_v23, %v490_v23 }
  0x59   : > { %1673 = vmatmul.bf16.vlgmr.msra.gmra.mxu2 %v1553_v25  ;;  %v1351_v10 = vsel %vm7397_vm9, %v1346_v53, %v1350_v15  ;;  %v1153_v36 = vor.u32 %v1152_v18, %v1148_v17  ;;  %v1161_v38 = vshrl.u32 %v1049_v8, 16  ;;  %v1164_v63 = vshll.u32 %v1049_v8, 16  ;;  %v1065_v5 = vld [vmem:[#allocation2 + $0x78] sm:$0xf]  ;;  %v6772_v15 = vld [vmem:[%s9141_s4 + $0x168] sm:$0xff] }
  0x5a   : > { %v7572_v35 = vunpack.c.l.b16 %v1351_v10  ;;  %v1170_v29 = vshll.u32 %v1050_v37, 16  ;;  %v1174_v40 = vshrl.u32 %v1050_v37, 16  ;;  %v642_v41 = vshrl.u32 %v576_v33, 16  ;;  %v1066_v48 = vld [vmem:[#allocation2 + $0x7c] sm:$0xf]  ;;  %3663 = vmatpush.bf16.msrb.mxu1 %v6772_v15 }
  0x5b   : > { %v645_v42 = vshll.u32 %v576_v33, 16  ;;  %v1154_v46 = vrot.slane %v1153_v36, 4  ;;  %v1353_v49 = vshrl.u32 %v1065_v5, 16  ;;  %v1356_v28 = vshll.u32 %v1065_v5, 16  ;;  %1911 = vmatmul.bf16.gmra.mxu3 %v6704_v58  ;;  %v1103_v50 = vld [vmem:[#allocation2 + $0x80] sm:$0x1] }
  0x5c   : > { %v1554_v44 = vpack.c.b16 %v7572_v35, %v7562_v19  ;;  %v1362_v51 = vshll.u32 %v1066_v48, 16  ;;  %v1366_v54 = vshrl.u32 %v1066_v48, 16  ;;  %v1163_v55 = vrot.slane %v1161_v38, 4  ;;  %v1095_v0 = vld [vmem:[#allocation2 + $0x20] sm:$0x1] }
  0x5d   : > { %v1166_v56 = vrot.slane %v1164_v63, 5  ;;  %v1159_v59 = vsel %vm7397_vm9, %v1154_v46, %v1158_v26  ;;  %v1355_v60 = vrot.slane %v1353_v49, 4  ;;  %v1358_v61 = vrot.slane %v1356_v28, 5  ;;  %v947_v10 = vld [vmem:[#allocation2 + $0x24] sm:$0xf]  ;;  %v7057_v63 = vld [vmem:[%s7251_s18 + $0x18] sm:$0xff]  }
  0x5e   : > { %v1372_v62 = vshll.u32 %v1103_v50, 16  ;;  %v1516_v3 = vunpack.c.l.b16 %v1159_v59  ;;  %v1364_v4 = vrot.slane %v1362_v51, 5  ;;  %v1368_v12 = vrot.slane %v1366_v54, 4  ;;  %1876 = vmatmul.bf16.gmra.mxu1 %v6697_v47  ;;  %v7065_v49 = vld [vmem:[%s7251_s18 + $0x58] sm:$0xff]   ;;  %v6755_v19 = vld [vmem:[%s9141_s4 + $0xe0] sm:$0xff] }
  0x5f   : > { %v1167_v13 = vor.u32 %v1166_v56, %v1163_v55  ;;  %v1359_v2 = vor.u32 %v1358_v61, %v1355_v60  ;;  %v1172_v57 = vrot.slane %v1170_v29, 5  ;;  %v1176_v17 = vrot.slane %v1174_v40, 4  ;;  %v7613_v55 = vld [vmem:[%s7251_s18 + $0x20] sm:$0xff]   ;;  %2556 = vmatpush.bf16.msrb.mxu3 %v6755_v19 }
  0x60   : > { %v1374_v45 = vrot.slane %v1372_v62, 5  ;;  %v1546_v20 = vpack.c.b16 %v1516_v3, %v1515_v27  ;;  %v1369_v22 = vor.u32 %v1368_v12, %v1364_v4  ;;  %v1180_v23 = vshll.u32 %v1095_v0, 16  ;;  %v6731_v60 = vld [vmem:[%s9141_s4 + $0xa0] sm:$0xff] }
  0x61   : > { %v1168_v6 = vrot.slane %v1167_v13, 4  ;;  %v1360_v25 = vrot.slane %v1359_v2, 4  ;;  %v1177_v53 = vor.u32 %v1176_v17, %v1172_v57  ;;  %v644_v21 = vrot.slane %v642_v41, 7  ;;  %v951_v41 = vld [vmem:[#allocation2 + $0x2c] sm:$0x1]  ;;  %2242 = vmatpush.bf16.msrb.mxu2 %v6731_v60 }
  0x62   : > { %v650_v43 = vshrl.u32 %v7570_v34, 16  ;;  %1638 = vmatmul.bf16.gmra.mxu0 %v1546_v20  ;;  %v1370_v58 = vrot.slane %v1369_v22, 4  ;;  %v1182_v18 = vrot.slane %v1180_v23, 5  ;;  %v653_v26 = vshll.u32 %v7570_v34, 16  ;;  %v1003_v20 = vld [vmem:[#allocation2 + $0x84] sm:$0xf] }
  0x63   : > { %v1173_v7 = vsel %vm7397_vm9, %v1168_v6, %v1172_v57  ;;  %v1365_v27 = vsel %vm7397_vm9, %v1360_v25, %v1364_v4  ;;  %v1178_v31 = vrot.slane %v1177_v53, 4  ;;  %v647_v24 = vor.u32 %v645_v42, %v644_v21 }
  0x64   : > { %v7590_v8 = vunpack.c.l.b16 %v1173_v7  ;;  %v1375_v33 = vsel %vm7397_vm9, %v1370_v58, %v1374_v45  ;;  %v7594_v36 = vunpack.c.l.b16 %v1365_v27  ;;  %v648_v37 = vrot.slane %v644_v21, 4  ;;  %v6771_v27 = vld [vmem:[%s9141_s4 + $0x160] sm:$0xff] }
  0x65   : > { %v652_v38 = vrot.slane %v650_v43, 7  ;;  %v7597_v5 = vunpack.c.l.b16 %v1375_v33  ;;  %v1183_v34 = vsel %vm7397_vm9, %v1178_v31, %v1182_v18  ;;  %v948_v29 = vsel %vm7373_vm6, %v647_v24, %v947_v10  ;;  %v6763_v10 = vld [vmem:[%s9141_s4 + $0x120] sm:$0xff]  ;;  %v1007_v24 = vld [vmem:[#allocation2 + $0x8c] sm:$0x1]  ;;  %3664 = vmatpush.bf16.msrb.mxu1 %v6771_v27 }
  0x66   : > { %v474_v40 = vadd.f32 %v7283_v14, %v7531_v32  ;;  %v7605_v42 = vunpack.c.l.b16 %v1183_v34  ;;  %949 = vst [vmem:[#allocation2 + $0x24] sm:$0xf] %v948_v29  ;;  %v475_v48 = vadd.f32 %v7283_v14, %v7534_v39  ;;  %v6845_v51 = vunpack.c.l.bf16 %v7057_v63  ;;  %v6705_v32 = vld [vmem:[#allocation2 + $0x78] sm:$0xff]  ;;  %3238 = vmatpush.bf16.msrb.mxu0 %v6763_v10 }
  0x67   : > { %v655_v46 = vor.u32 %v653_v26, %v652_v38  ;;  %v657_v47 = vrot.slane %v652_v38, 4  ;;  %v1555_v28 = vpack.c.b16 %v7597_v5, %v7594_v36  ;;  %v6846_v54 = vunpack.c.h.bf16 %v7057_v63  ;;  %v7680_v36 = vld [vmem:[%s9139_s2] ss:$0 sm:$0xff] }
  0x68   : > { %v506_v50 = vmax.f32 %v474_v40, 0.0  ;;  %v1547_v56 = vpack.c.b16 %v7605_v42, %v7590_v8  ;;  %v507_v59 = vmax.f32 %v475_v48, 0.0  ;;  %v6877_v0 = vunpack.c.l.bf16 %v7065_v49 }
  0x69   : > { %1678 = vmatmul.bf16.gmra.mxu2 %v1554_v44  ;;  %v656_v39 = vsel %vm7363_vm4, %v648_v37, %v655_v46  ;;  %v952_v61 = vsel %vm7429_vm10, %v657_v47, %v951_v41  ;;  %v424_v44 = vmul.f32 %v7267_v9, %v6845_v51  ;;  %v425_v62 = vmul.f32 %v7267_v9, %v6846_v54 }
  0x6a   : > { %950 = vst [vmem:[#allocation2 + $0x28] sm:$0xf] %v656_v39  ;;  %v592_v35 = vpack.c.bf16 %v506_v50, %v506_v50  ;;  %v593_v1 = vpack.c.bf16 %v507_v59, %v507_v59  ;;  %v6878_v3 = vunpack.c.h.bf16 %v7065_v49  ;;  %v6849_v4 = vunpack.c.l.bf16 %v7613_v55 }
  0x6b   : > { %953 = vst [vmem:[#allocation2 + $0x2c] sm:$0x1] %v952_v61  ;;  %v6850_v12 = vunpack.c.h.bf16 %v7613_v55  ;;  %v460_v2 = vadd.f32 %v7283_v14, %v424_v44  ;;  %v461_v45 = vadd.f32 %v7283_v14, %v425_v62  ;;  %1916 = vmatmul.bf16.gmra.mxu3 %v6705_v32  ;;  %v440_v22 = vmul.f32 %v7267_v9, %v6877_v0  ;;  %v954_v0 = vld [vmem:[#allocation2 + $0x30] sm:$0xf] }
  0x6c   : > { %v778_v13 = vshrl.u32 %v592_v35, 16  ;;  %v781_v15 = vshll.u32 %v592_v35, 16  ;;  %v786_v57 = vshrl.u32 %v593_v1, 16  ;;  %v789_v17 = vshll.u32 %v593_v1, 16 }
  0x6d   : > { %v441_v6 = vmul.f32 %v7267_v9, %v6878_v3  ;;  %v1051_v25 = vld [vmem:[#allocation2 + $0x24] sm:$0xf]  ;;  %v492_v53 = vmax.f32 %v460_v2, 0.0  ;;  %v493_v21 = vmax.f32 %v461_v45, 0.0  ;;  %v7639_v43 = vmul.f32 %v7267_v9, %v6849_v4 }
  0x6e   : > { %v780_v23 = vrot.slane %v778_v13, 7  ;;  %v788_v58 = vrot.slane %v786_v57, 7  ;;  %v1185_v7 = vshrl.u32 %v1051_v25, 16  ;;  %v1188_v18 = vshll.u32 %v1051_v25, 16  ;;  %v958_v25 = vld [vmem:[#allocation2 + $0x38] sm:$0x1] }
  0x6f   : > { %v476_v26 = vadd.f32 %v7283_v14, %v440_v22  ;;  %v578_v33 = vpack.c.bf16 %v492_v53, %v492_v53  ;;  %v579_v37 = vpack.c.bf16 %v493_v21, %v493_v21  ;;  %v477_v1 = vadd.f32 %v7283_v14, %v441_v6  ;;  %v7673_v53 = vld [vmem:[%s7251_s18 + $0x60] sm:$0xff]  }
  0x70   : > { %v783_v31 = vor.u32 %v781_v15, %v780_v23  ;;  %v784_v8 = vrot.slane %v780_v23, 4  ;;  %v791_v38 = vor.u32 %v789_v17, %v788_v58  ;;  %v793_v63 = vrot.slane %v788_v58, 4  ;;  %v7662_v17 = vld [vmem:[%s9138_s1] ss:$0 sm:$0xff] }
  0x71   : > { %v6698_v9 = vld [vmem:[#allocation2 + $0x24] sm:$0xff]  ;;  %v1187_v29 = vrot.slane %v1185_v7, 4  ;;  %v1190_v40 = vrot.slane %v1188_v18, 5  ;;  %v659_v48 = vshrl.u32 %v578_v33, 16  ;;  %v662_v61 = vshll.u32 %v578_v33, 16 }
  0x72   : > { %v1052_v34 = vld [vmem:[#allocation2 + $0x28] sm:$0xf]  ;;  %v1004_v41 = vsel %vm7373_vm6, %v783_v31, %v1003_v20  ;;  %v1096_v42 = vld [vmem:[#allocation2 + $0x2c] sm:$0x1]  ;;  %1643 = vmatmul.bf16.gmra.mxu0 %v1547_v56  ;;  %1881 = vmatmul.bf16.gmra.mxu1 %v6698_v9  ;;  %v792_v49 = vsel %vm7363_vm4, %v784_v8, %v791_v38  ;;  %v1008_v50 = vsel %vm7429_vm10, %v793_v63, %v1007_v24  ;;  %v667_v19 = vshrl.u32 %v579_v37, 16  ;;  %v6730_v31 = vld [vmem:[%s9141_s4 + $0x98] sm:$0xff] }
  0x73   : > { %v1194_v46 = vshll.u32 %v1052_v34, 16  ;;  %v1198_v47 = vshrl.u32 %v1052_v34, 16  ;;  %1005 = vst [vmem:[#allocation2 + $0x84] sm:$0xf] %v1004_v41  ;;  %v1191_v51 = vor.u32 %v1190_v40, %v1187_v29  ;;  %v1204_v39 = vshll.u32 %v1096_v42, 16  ;;  %2243 = vmatpush.bf16.msrb.mxu2 %v6730_v31  ;;  %v6754_v29 = vld [vmem:[%s9141_s4 + $0xd8] sm:$0xff] }
  0x74   : > { %1006 = vst [vmem:[#allocation2 + $0x88] sm:$0xf] %v792_v49  ;;  %v661_v59 = vrot.slane %v659_v48, 7  ;;  %v670_v35 = vshll.u32 %v579_v37, 16  ;;  %v669_v13 = vrot.slane %v667_v19, 7  ;;  %v508_v15 = vmax.f32 %v476_v26, 0.0  ;;  %2557 = vmatpush.bf16.msrb.mxu3 %v6754_v29 }
  0x75   : > { %v1196_v54 = vrot.slane %v1194_v46, 5  ;;  %v1200_v32 = vrot.slane %v1198_v47, 4  ;;  %1009 = vst [vmem:[#allocation2 + $0x8c] sm:$0x1] %v1008_v50  ;;  %v1192_v60 = vrot.slane %v1191_v51, 4  ;;  %v1206_v44 = vrot.slane %v1204_v39, 5 }
  0x76   : > { %v665_v62 = vrot.slane %v661_v59, 4  ;;  %v664_v4 = vor.u32 %v662_v61, %v661_v59  ;;  %v509_v57 = vmax.f32 %v477_v1, 0.0  ;;  %v427_v14 = vmul.f32 %v7662_v17, %v6850_v12  ;;  %v1010_v61 = vld [vmem:[#allocation2 + $0x90] sm:$0xf]  ;;  %v1014_v1 = vld [vmem:[#allocation2 + $0x98] sm:$0x1] }
  0x77   : > { %v1201_v56 = vor.u32 %v1200_v32, %v1196_v54  ;;  %v1197_v3 = vsel %vm7397_vm9, %v1192_v60, %v1196_v54  ;;  %v672_v20 = vor.u32 %v670_v35, %v669_v13  ;;  %v674_v22 = vrot.slane %v669_v13, 4 }
  0x78   : > { %v7657_v45 = vunpack.c.l.b16 %v1197_v3  ;;  %v955_v6 = vsel %vm7373_vm6, %v664_v4, %v954_v0  ;;  %v594_v23 = vpack.c.bf16 %v508_v15, %v508_v15  ;;  %v595_v55 = vpack.c.bf16 %v509_v57, %v509_v57 }
  0x79   : > { %v1202_v2 = vrot.slane %v1201_v56, 4  ;;  %1683 = vmatmul.bf16.gmra.mxu2 %v1555_v28  ;;  %956 = vst [vmem:[#allocation2 + $0x30] sm:$0xf] %v955_v6  ;;  %v7684_v5 = vadd.f32 %v7680_v36, %v7639_v43  ;;  %v7687_v28 = vadd.f32 %v7680_v36, %v427_v14  ;;  %v673_v27 = vsel %vm7363_vm4, %v665_v62, %v672_v20 }
  0x7a   : > { %v1067_v21 = vld [vmem:[#allocation2 + $0x84] sm:$0xf]  ;;  %957 = vst [vmem:[#allocation2 + $0x34] sm:$0xf] %v673_v27  ;;  %v959_v43 = vsel %vm7429_vm10, %v674_v22, %v958_v25  ;;  %v6881_v37 = vunpack.c.l.bf16 %v7673_v53  ;;  %v795_v42 = vshrl.u32 %v594_v23, 16  ;;  %v798_v46 = vshll.u32 %v594_v23, 16 }
  0x7b   : > { %v1207_v58 = vsel %vm7397_vm9, %v1202_v2, %v1206_v44  ;;  %v6706_v12 = vld [vmem:[#allocation2 + $0x84] sm:$0xff]  ;;  %v1377_v18 = vshrl.u32 %v1067_v21, 16  ;;  %v1380_v26 = vshll.u32 %v1067_v21, 16  ;;  %960 = vst [vmem:[#allocation2 + $0x38] sm:$0x1] %v959_v43  ;;  %v803_v49 = vshrl.u32 %v595_v55, 16 }
  0x7c   : > { %v1068_v7 = vld [vmem:[#allocation2 + $0x88] sm:$0xf]  ;;  %v1520_v10 = vunpack.c.l.b16 %v1207_v58  ;;  %v1104_v8 = vld [vmem:[#allocation2 + $0x8c] sm:$0x1]  ;;  %1921 = vmatmul.bf16.gmra.mxu3 %v6706_v12  ;;  %v806_v50 = vshll.u32 %v595_v55, 16  ;;  %v797_v54 = vrot.slane %v795_v42, 7  ;;  %v6882_v35 = vunpack.c.h.bf16 %v7673_v53 }
  0x7d   : > { %v1386_v24 = vshll.u32 %v1068_v7, 16  ;;  %v1390_v33 = vshrl.u32 %v1068_v7, 16  ;;  %v1379_v9 = vrot.slane %v1377_v18, 4  ;;  %v1382_v38 = vrot.slane %v1380_v26, 5  ;;  %v6762_v55 = vld [vmem:[%s9141_s4 + $0x118] sm:$0xff] }
  0x7e   : > { %v1396_v63 = vshll.u32 %v1104_v8, 16  ;;  %v1548_v34 = vpack.c.b16 %v1520_v10, %v7657_v45  ;;  %v494_v32 = vmax.f32 %v7684_v5, 0.0  ;;  %v495_v39 = vmax.f32 %v7687_v28, 0.0  ;;  %v6770_v5 = vld [vmem:[%s9141_s4 + $0x158] sm:$0xff]  ;;  %3239 = vmatpush.bf16.msrb.mxu0 %v6762_v55  ;;  %v6729_v55 = vld [vmem:[%s9141_s4 + $0x90] sm:$0xff] }
  0x7f   : > { %v1388_v40 = vrot.slane %v1386_v24, 5  ;;  %v1392_v41 = vrot.slane %v1390_v33, 4  ;;  %v1383_v47 = vor.u32 %v1382_v38, %v1379_v9  ;;  %v805_v60 = vrot.slane %v803_v49, 7  ;;  %3665 = vmatpush.bf16.msrb.mxu1 %v6770_v5  ;;  %v6753_v5 = vld [vmem:[%s9141_s4 + $0xd0] sm:$0xff]  ;;  %2244 = vmatpush.bf16.msrb.mxu2 %v6729_v55 }
  0x80   : > { %v1398_v48 = vrot.slane %v1396_v63, 5  ;;  %v1053_v19 = vld [vmem:[#allocation2 + $0x30] sm:$0xf]  ;;  %v442_v56 = vmul.f32 %v7662_v17, %v6881_v37  ;;  %v800_v62 = vor.u32 %v798_v46, %v797_v54  ;;  %v801_v0 = vrot.slane %v797_v54, 4  ;;  %v7059_v37 = vld [vmem:[%s7251_s18 + $0x28] sm:$0xff]   ;;  %2558 = vmatpush.bf16.msrb.mxu3 %v6753_v5 }
  0x81   : > { %v1393_v51 = vor.u32 %v1392_v41, %v1388_v40  ;;  %v1384_v59 = vrot.slane %v1383_v47, 4  ;;  %v1209_v3 = vshrl.u32 %v1053_v19, 16  ;;  %v6699_v13 = vld [vmem:[#allocation2 + $0x30] sm:$0xff]  ;;  %v808_v15 = vor.u32 %v806_v50, %v805_v60 }
  0x82   : > { %1648 = vmatmul.bf16.gmra.mxu0 %v1548_v34  ;;  %v810_v2 = vrot.slane %v805_v60, 4  ;;  %v1054_v45 = vld [vmem:[#allocation2 + $0x34] sm:$0xf]  ;;  %v1212_v57 = vshll.u32 %v1053_v19, 16  ;;  %v1011_v22 = vsel %vm7373_vm6, %v800_v62, %v1010_v61  ;;  %v1097_v6 = vld [vmem:[#allocation2 + $0x38] sm:$0x1]  ;;  %1886 = vmatmul.bf16.gmra.mxu1 %v6699_v13  ;;  %v580_v18 = vpack.c.bf16 %v494_v32, %v494_v32 }
  0x83   : > { %v1394_v44 = vrot.slane %v1393_v51, 4  ;;  %v1389_v4 = vsel %vm7397_vm9, %v1384_v59, %v1388_v40  ;;  %v1211_v23 = vrot.slane %v1209_v3, 4  ;;  %v809_v53 = vsel %vm7363_vm4, %v801_v0, %v808_v15  ;;  %1012 = vst [vmem:[#allocation2 + $0x90] sm:$0xf] %v1011_v22  ;;  %v965_v13 = vld [vmem:[#allocation2 + $0x44] sm:$0x1] }
  0x84   : > { %v1535_v20 = vunpack.c.l.b16 %v1389_v4  ;;  %v1015_v21 = vsel %vm7429_vm10, %v810_v2, %v1014_v1  ;;  %v1214_v58 = vrot.slane %v1212_v57, 5  ;;  %1013 = vst [vmem:[#allocation2 + $0x94] sm:$0xf] %v809_v53  ;;  %v1218_v28 = vshll.u32 %v1054_v45, 16 }
  0x85   : > { %v1399_v14 = vsel %vm7397_vm9, %v1394_v44, %v1398_v48  ;;  %v1222_v12 = vshrl.u32 %v1054_v45, 16  ;;  %v1228_v7 = vshll.u32 %v1097_v6, 16  ;;  %1016 = vst [vmem:[#allocation2 + $0x98] sm:$0x1] %v1015_v21  ;;  %v581_v27 = vpack.c.bf16 %v495_v39, %v495_v39  ;;  %v961_v48 = vld [vmem:[#allocation2 + $0x3c] sm:$0xf] }
  0x86   : > { %v1536_v25 = vunpack.c.l.b16 %v1399_v14  ;;  %v1215_v10 = vor.u32 %v1214_v58, %v1211_v23  ;;  %v443_v31 = vmul.f32 %v7662_v17, %v6882_v35  ;;  %v1220_v8 = vrot.slane %v1218_v28, 5  ;;  %v7734_v23 = vld [vmem:[%s7251_s18 + $0x68] sm:$0xff]  }
  0x87   : > { %v1224_v24 = vrot.slane %v1222_v12, 4  ;;  %v1230_v33 = vrot.slane %v1228_v7, 5  ;;  %v676_v43 = vshrl.u32 %v580_v18, 16  ;;  %v679_v38 = vshll.u32 %v580_v18, 16 }
  0x88   : > { %v1556_v26 = vpack.c.b16 %v1536_v25, %v1535_v20  ;;  %v1216_v9 = vrot.slane %v1215_v10, 4  ;;  %v684_v63 = vshrl.u32 %v581_v27, 16  ;;  %v687_v34 = vshll.u32 %v581_v27, 16 }
  0x89   : > { %v1225_v29 = vor.u32 %v1224_v24, %v1220_v8  ;;  %v678_v40 = vrot.slane %v676_v43, 7  ;;  %v478_v41 = vadd.f32 %v7680_v36, %v442_v56  ;;  %v479_v42 = vadd.f32 %v7680_v36, %v443_v31 }
  0x8a   : > { %1688 = vmatmul.bf16.gmra.mxu2 %v1556_v26  ;;  %v1221_v46 = vsel %vm7397_vm9, %v1216_v9, %v1220_v8  ;;  %v686_v47 = vrot.slane %v684_v63, 7  ;;  %v6853_v49 = vunpack.c.l.bf16 %v7059_v37  ;;  %v6854_v50 = vunpack.c.h.bf16 %v7059_v37  ;;  %v1069_v51 = vld [vmem:[#allocation2 + $0x90] sm:$0xf] }
  0x8b   : > { %v1226_v54 = vrot.slane %v1225_v29, 4  ;;  %v1521_v32 = vunpack.c.l.b16 %v1221_v46  ;;  %v681_v39 = vor.u32 %v679_v38, %v678_v40  ;;  %v682_v59 = vrot.slane %v678_v40, 4  ;;  %v6707_v60 = vld [vmem:[#allocation2 + $0x90] sm:$0xff] }
  0x8c   : > { %v1070_v61 = vld [vmem:[#allocation2 + $0x94] sm:$0xf]  ;;  %v1401_v19 = vshrl.u32 %v1069_v51, 16  ;;  %v1404_v35 = vshll.u32 %v1069_v51, 16  ;;  %v689_v44 = vor.u32 %v687_v34, %v686_v47  ;;  %v691_v56 = vrot.slane %v686_v47, 4  ;;  %1926 = vmatmul.bf16.gmra.mxu3 %v6707_v60 }
  0x8d   : > { %v1105_v62 = vld [vmem:[#allocation2 + $0x98] sm:$0x1]  ;;  %v1410_v0 = vshll.u32 %v1070_v61, 16  ;;  %v1414_v1 = vshrl.u32 %v1070_v61, 16  ;;  %v1231_v3 = vsel %vm7397_vm9, %v1226_v54, %v1230_v33  ;;  %v962_v4 = vsel %vm7373_vm6, %v681_v39, %v961_v48 }
  0x8e   : > { %v1403_v15 = vrot.slane %v1401_v19, 4  ;;  %v1406_v2 = vrot.slane %v1404_v35, 5  ;;  %v1420_v45 = vshll.u32 %v1105_v62, 16  ;;  %v1522_v57 = vunpack.c.l.b16 %v1231_v3  ;;  %963 = vst [vmem:[#allocation2 + $0x3c] sm:$0xf] %v962_v4 }
  0x8f   : > { %v1412_v14 = vrot.slane %v1410_v0, 5  ;;  %v1416_v20 = vrot.slane %v1414_v1, 4  ;;  %v690_v22 = vsel %vm7363_vm4, %v682_v59, %v689_v44  ;;  %v510_v6 = vmax.f32 %v478_v41, 0.0  ;;  %v1017_v41 = vld [vmem:[#allocation2 + $0x9c] sm:$0xf] }
  0x90   : > { %v1407_v25 = vor.u32 %v1406_v2, %v1403_v15  ;;  %v1422_v53 = vrot.slane %v1420_v45, 5  ;;  %v1549_v21 = vpack.c.b16 %v1522_v57, %v1521_v32  ;;  %964 = vst [vmem:[#allocation2 + $0x40] sm:$0xf] %v690_v22  ;;  %v511_v58 = vmax.f32 %v479_v42, 0.0  ;;  %v6761_v57 = vld [vmem:[%s9141_s4 + $0x110] sm:$0xff] }
  0x91   : > { %v1417_v28 = vor.u32 %v1416_v20, %v1412_v14  ;;  %v596_v12 = vpack.c.bf16 %v510_v6, %v510_v6  ;;  %v966_v7 = vsel %vm7429_vm10, %v691_v56, %v965_v13  ;;  %v428_v18 = vmul.f32 %v7662_v17, %v6853_v49  ;;  %v1021_v49 = vld [vmem:[#allocation2 + $0xa4] sm:$0x1]  ;;  %3240 = vmatpush.bf16.msrb.mxu0 %v6761_v57 }
  0x92   : > { %v1408_v26 = vrot.slane %v1407_v25, 4  ;;  %1653 = vmatmul.bf16.gmra.mxu0 %v1549_v21  ;;  %v597_v10 = vpack.c.bf16 %v511_v58, %v511_v58  ;;  %967 = vst [vmem:[#allocation2 + $0x44] sm:$0x1] %v966_v7  ;;  %v429_v27 = vmul.f32 %v7662_v17, %v6854_v50  ;;  %v6885_v31 = vunpack.c.l.bf16 %v7734_v23 }
  0x93   : > { %v1418_v8 = vrot.slane %v1417_v28, 4  ;;  %v812_v24 = vshrl.u32 %v596_v12, 16  ;;  %v815_v33 = vshll.u32 %v596_v12, 16  ;;  %v464_v43 = vadd.f32 %v7680_v36, %v428_v18 }
  0x94   : > { %v1413_v37 = vsel %vm7397_vm9, %v1408_v26, %v1412_v14  ;;  %v820_v9 = vshrl.u32 %v597_v10, 16  ;;  %v823_v38 = vshll.u32 %v597_v10, 16  ;;  %v465_v63 = vadd.f32 %v7680_v36, %v429_v27  ;;  %v6769_v14 = vld [vmem:[%s9141_s4 + $0x150] sm:$0xff]  ;;  %v968_v10 = vld [vmem:[#allocation2 + $0x48] sm:$0xf] }
  0x95   : > { %v1423_v34 = vsel %vm7397_vm9, %v1418_v8, %v1422_v53  ;;  %v1537_v29 = vunpack.c.l.b16 %v1413_v37  ;;  %v814_v40 = vrot.slane %v812_v24, 7  ;;  %v1055_v42 = vld [vmem:[#allocation2 + $0x3c] sm:$0xf]  ;;  %v496_v46 = vmax.f32 %v464_v43, 0.0  ;;  %v7060_v53 = vld [vmem:[%s7251_s18 + $0x30] sm:$0xff]   ;;  %3666 = vmatpush.bf16.msrb.mxu1 %v6769_v14 }
  0x96   : > { %v1538_v47 = vunpack.c.l.b16 %v1423_v34  ;;  %v822_v48 = vrot.slane %v820_v9, 7  ;;  %v1233_v50 = vshrl.u32 %v1055_v42, 16  ;;  %v1236_v51 = vshll.u32 %v1055_v42, 16 }
  0x97   : > { %v6700_v54 = vld [vmem:[#allocation2 + $0x3c] sm:$0xff]  ;;  %v817_v32 = vor.u32 %v815_v33, %v814_v40  ;;  %v818_v39 = vrot.slane %v814_v40, 4  ;;  %v497_v60 = vmax.f32 %v465_v63, 0.0  ;;  %v582_v61 = vpack.c.bf16 %v496_v46, %v496_v46  ;;  %v972_v40 = vld [vmem:[#allocation2 + $0x50] sm:$0x1] }
  0x98   : > { %v1056_v59 = vld [vmem:[#allocation2 + $0x40] sm:$0xf]  ;;  %v1557_v19 = vpack.c.b16 %v1538_v47, %v1537_v29  ;;  %v825_v35 = vor.u32 %v823_v38, %v822_v48  ;;  %v827_v44 = vrot.slane %v822_v48, 4  ;;  %v1235_v56 = vrot.slane %v1233_v50, 4  ;;  %1891 = vmatmul.bf16.gmra.mxu1 %v6700_v54 }
  0x99   : > { %v1018_v62 = vsel %vm7373_vm6, %v817_v32, %v1017_v41  ;;  %v1098_v0 = vld [vmem:[#allocation2 + $0x44] sm:$0x1]  ;;  %v1238_v1 = vrot.slane %v1236_v51, 5  ;;  %v1242_v3 = vshll.u32 %v1056_v59, 16  ;;  %v1246_v4 = vshrl.u32 %v1056_v59, 16 }
  0x9a   : > { %1693 = vmatmul.bf16.gmra.mxu2 %v1557_v19  ;;  %v826_v13 = vsel %vm7363_vm4, %v818_v39, %v825_v35  ;;  %1019 = vst [vmem:[#allocation2 + $0x9c] sm:$0xf] %v1018_v62  ;;  %v1022_v15 = vsel %vm7429_vm10, %v827_v44, %v1021_v49  ;;  %v1252_v2 = vshll.u32 %v1098_v0, 16  ;;  %v583_v45 = vpack.c.bf16 %v497_v60, %v497_v60  ;;  %v7785_v62 = vld [vmem:[%s7251_s18 + $0x70] sm:$0xff]  }
  0x9b   : > { %1020 = vst [vmem:[#allocation2 + $0xa0] sm:$0xf] %v826_v13  ;;  %v1239_v20 = vor.u32 %v1238_v1, %v1235_v56  ;;  %v1244_v22 = vrot.slane %v1242_v3, 5  ;;  %v1248_v6 = vrot.slane %v1246_v4, 4  ;;  %v693_v25 = vshrl.u32 %v582_v61, 16 }
  0x9c   : > { %1023 = vst [vmem:[#allocation2 + $0xa4] sm:$0x1] %v1022_v15  ;;  %v1254_v21 = vrot.slane %v1252_v2, 5  ;;  %v696_v58 = vshll.u32 %v582_v61, 16  ;;  %v701_v55 = vshrl.u32 %v583_v45, 16  ;;  %v704_v5 = vshll.u32 %v583_v45, 16 }
  0x9d   : > { %v1240_v28 = vrot.slane %v1239_v20, 4  ;;  %v1249_v12 = vor.u32 %v1248_v6, %v1244_v22  ;;  %v695_v7 = vrot.slane %v693_v25, 7  ;;  %v6886_v18 = vunpack.c.h.bf16 %v7734_v23  ;;  %v6728_v2 = vld [vmem:[%s9141_s4 + $0x88] sm:$0xff] }
  0x9e   : > { %v703_v26 = vrot.slane %v701_v55, 7  ;;  %v444_v27 = vmul.f32 %v7662_v17, %v6885_v31  ;;  %v6857_v8 = vunpack.c.l.bf16 %v7060_v53  ;;  %v6858_v24 = vunpack.c.h.bf16 %v7060_v53  ;;  %v6752_v45 = vld [vmem:[%s9141_s4 + $0xc8] sm:$0xff]  ;;  %2245 = vmatpush.bf16.msrb.mxu2 %v6728_v2 }
  0x9f   : > { %v1245_v33 = vsel %vm7397_vm9, %v1240_v28, %v1244_v22  ;;  %v1250_v43 = vrot.slane %v1249_v12, 4  ;;  %v698_v37 = vor.u32 %v696_v58, %v695_v7  ;;  %v699_v9 = vrot.slane %v695_v7, 4  ;;  %2559 = vmatpush.bf16.msrb.mxu3 %v6752_v45 }
  0xa0   : > { %v1523_v38 = vunpack.c.l.b16 %v1245_v33  ;;  %v706_v63 = vor.u32 %v704_v5, %v703_v26  ;;  %v708_v34 = vrot.slane %v703_v26, 4  ;;  %v445_v29 = vmul.f32 %v7662_v17, %v6886_v18 }
  0xa1   : > { %v1071_v41 = vld [vmem:[#allocation2 + $0x9c] sm:$0xf]  ;;  %v1255_v23 = vsel %vm7397_vm9, %v1250_v43, %v1254_v21  ;;  %v969_v31 = vsel %vm7373_vm6, %v698_v37, %v968_v10  ;;  %v480_v42 = vadd.f32 %v7680_v36, %v444_v27  ;;  %v430_v46 = vmul.f32 %v7662_v17, %v6857_v8  ;;  %v1024_v10 = vld [vmem:[#allocation2 + $0xa8] sm:$0xf] }
  0xa2   : > { %v6708_v47 = vld [vmem:[#allocation2 + $0x9c] sm:$0xff]  ;;  %v1425_v49 = vshrl.u32 %v1071_v41, 16  ;;  %v1428_v50 = vshll.u32 %v1071_v41, 16  ;;  %v1524_v51 = vunpack.c.l.b16 %v1255_v23  ;;  %v707_v54 = vsel %vm7363_vm4, %v699_v9, %v706_v63  ;;  %970 = vst [vmem:[#allocation2 + $0x48] sm:$0xf] %v969_v31  ;;  %v6760_v31 = vld [vmem:[%s9141_s4 + $0x108] sm:$0xff] }
  0xa3   : > { %v1072_v48 = vld [vmem:[#allocation2 + $0xa0] sm:$0xf]  ;;  %v1106_v32 = vld [vmem:[#allocation2 + $0xa4] sm:$0x1]  ;;  %v481_v60 = vadd.f32 %v7680_v36, %v445_v29  ;;  %v973_v61 = vsel %vm7429_vm10, %v708_v34, %v972_v40  ;;  %1931 = vmatmul.bf16.gmra.mxu3 %v6708_v47  ;;  %971 = vst [vmem:[#allocation2 + $0x4c] sm:$0xf] %v707_v54  ;;  %v431_v57 = vmul.f32 %v7662_v17, %v6858_v24  ;;  %v6889_v25 = vunpack.c.l.bf16 %v7785_v62 }
  0xa4   : > { %v1434_v39 = vshll.u32 %v1072_v48, 16  ;;  %v1438_v59 = vshrl.u32 %v1072_v48, 16  ;;  %v1427_v19 = vrot.slane %v1425_v49, 4  ;;  %v1430_v35 = vrot.slane %v1428_v50, 5  ;;  %974 = vst [vmem:[#allocation2 + $0x50] sm:$0x1] %v973_v61  ;;  %3241 = vmatpush.bf16.msrb.mxu0 %v6760_v31 }
  0xa5   : > { %v1444_v44 = vshll.u32 %v1106_v32, 16  ;;  %v1550_v56 = vpack.c.b16 %v1524_v51, %v1523_v38  ;;  %v512_v3 = vmax.f32 %v480_v42, 0.0  ;;  %v513_v4 = vmax.f32 %v481_v60, 0.0  ;;  %v1028_v29 = vld [vmem:[#allocation2 + $0xb0] sm:$0x1]  ;;  %v6768_v50 = vld [vmem:[%s9141_s4 + $0x148] sm:$0xff] }
  0xa6   : > { %v1436_v0 = vrot.slane %v1434_v39, 5  ;;  %v1440_v1 = vrot.slane %v1438_v59, 4  ;;  %v1431_v13 = vor.u32 %v1430_v35, %v1427_v19  ;;  %v466_v14 = vadd.f32 %v7680_v36, %v430_v46  ;;  %3667 = vmatpush.bf16.msrb.mxu1 %v6768_v50  ;;  %v7157_v52 = vld [vmem:[#allocation2 + $0xa0] sm:$0xf] }
  0xa7   : > { %v1446_v15 = vrot.slane %v1444_v44, 5  ;;  %1658 = vmatmul.bf16.gmra.mxu0 %v1550_v56  ;;  %v598_v22 = vpack.c.bf16 %v512_v3, %v512_v3  ;;  %v599_v6 = vpack.c.bf16 %v513_v4, %v513_v4  ;;  %v467_v21 = vadd.f32 %v7680_v36, %v431_v57 }
  0xa8   : > { %v1441_v20 = vor.u32 %v1440_v1, %v1436_v0  ;;  %v1432_v53 = vrot.slane %v1431_v13, 4  ;;  %v498_v58 = vmax.f32 %v466_v14, 0.0  ;;  %v6890_v55 = vunpack.c.h.bf16 %v7785_v62 }
  0xa9   : > { %v829_v28 = vshrl.u32 %v598_v22, 16  ;;  %v832_v12 = vshll.u32 %v598_v22, 16  ;;  %v837_v7 = vshrl.u32 %v599_v6, 16  ;;  %v840_v26 = vshll.u32 %v599_v6, 16  ;;  %v1057_v27 = vld [vmem:[#allocation2 + $0x48] sm:$0xf] }
  0xaa   : > { %v1442_v5 = vrot.slane %v1441_v20, 4  ;;  %v1437_v18 = vsel %vm7397_vm9, %v1432_v53, %v1436_v0  ;;  %v499_v8 = vmax.f32 %v467_v21, 0.0  ;;  %v584_v24 = vpack.c.bf16 %v498_v58, %v498_v58  ;;  %v6701_v37 = vld [vmem:[#allocation2 + $0x48] sm:$0xff]  ;;  %v975_v20 = vld [vmem:[#allocation2 + $0x54] sm:$0xf] }
  0xab   : > { %v1539_v43 = vunpack.c.l.b16 %v1437_v18  ;;  %v831_v9 = vrot.slane %v829_v28, 7  ;;  %v839_v38 = vrot.slane %v837_v7, 7  ;;  %v1058_v63 = vld [vmem:[#allocation2 + $0x4c] sm:$0xf]  ;;  %v1257_v40 = vshrl.u32 %v1057_v27, 16  ;;  %1896 = vmatmul.bf16.gmra.mxu1 %v6701_v37 }
  0xac   : > { %v1447_v33 = vsel %vm7397_vm9, %v1442_v5, %v1446_v15  ;;  %v1260_v41 = vshll.u32 %v1057_v27, 16  ;;  %v1266_v23 = vshll.u32 %v1058_v63, 16  ;;  %v1099_v49 = vld [vmem:[#allocation2 + $0x50] sm:$0x1]  ;;  %v1270_v19 = vshrl.u32 %v1058_v63, 16 }
  0xad   : > { %v1540_v34 = vunpack.c.l.b16 %v1447_v33  ;;  %v834_v42 = vor.u32 %v832_v12, %v831_v9  ;;  %v835_v46 = vrot.slane %v831_v9, 4  ;;  %v842_v47 = vor.u32 %v840_v26, %v839_v38  ;;  %v979_v26 = vld [vmem:[#allocation2 + $0x5c] sm:$0x1] }
  0xae   : > { %v844_v48 = vrot.slane %v839_v38, 4  ;;  %v1259_v54 = vrot.slane %v1257_v40, 4  ;;  %v1262_v32 = vrot.slane %v1260_v41, 5  ;;  %v1268_v39 = vrot.slane %v1266_v23, 5  ;;  %v7832_v40 = vld [vmem:[#allocation2 + $0x10] sm:$0xf] }
  0xaf   : > { %v1558_v51 = vpack.c.b16 %v1540_v34, %v1539_v43  ;;  %v843_v59 = vsel %vm7363_vm4, %v835_v46, %v842_v47  ;;  %v1025_v60 = vsel %vm7373_vm6, %v834_v42, %v1024_v10  ;;  %v1276_v44 = vshll.u32 %v1099_v49, 16  ;;  %v6727_v34 = vld [vmem:[%s9141_s4 + $0x80] sm:$0xff]  ;;  %v7834_v41 = vld [vmem:[#allocation2 + $0xc] sm:$0xe] }
  0xb0   : > { %v1029_v61 = vsel %vm7429_vm10, %v844_v48, %v1028_v29  ;;  %1026 = vst [vmem:[#allocation2 + $0xa8] sm:$0xf] %v1025_v60  ;;  %v1263_v35 = vor.u32 %v1262_v32, %v1259_v54  ;;  %v585_v56 = vpack.c.bf16 %v499_v8, %v499_v8  ;;  %v710_v62 = vshrl.u32 %v584_v24, 16  ;;  %v1867_v29 = vpop.f32.mrf.mxu1  ;;  %2246 = vmatpush.bf16.msrb.mxu2 %v6727_v34  ;;  %v7841_v60 = vld [vmem:[#allocation2 + $0x14] sm:$0x1] }
  0xb1   : > { %1698 = vmatmul.bf16.gmra.mxu2 %v1558_v51  ;;  %1027 = vst [vmem:[#allocation2 + $0xac] sm:$0xf] %v843_v59  ;;  %v1272_v0 = vrot.slane %v1270_v19, 4  ;;  %v713_v1 = vshll.u32 %v584_v24, 16  ;;  %v446_v3 = vmul.f32 %v7662_v17, %v6889_v25  ;;  %v447_v4 = vmul.f32 %v7662_v17, %v6890_v55  ;;  %v6767_v24 = vld [vmem:[%s9141_s4 + $0x140] sm:$0xff] }
  0xb2   : > { %1030 = vst [vmem:[#allocation2 + $0xb0] sm:$0x1] %v1029_v61  ;;  %v1264_v13 = vrot.slane %v1263_v35, 4  ;;  %v1278_v15 = vrot.slane %v1276_v44, 5  ;;  %v712_v2 = vrot.slane %v710_v62, 7  ;;  %v718_v45 = vshrl.u32 %v585_v56, 16  ;;  %3668 = vmatpush.bf16.msrb.mxu1 %v6767_v24 }
  0xb3   : > { %v1273_v57 = vor.u32 %v1272_v0, %v1268_v39  ;;  %v721_v14 = vshll.u32 %v585_v56, 16  ;;  %v482_v22 = vadd.f32 %v7680_v36, %v446_v3  ;;  %v483_v6 = vadd.f32 %v7680_v36, %v447_v4  ;;  %v6751_v51 = vld [vmem:[%s9141_s4 + $0xc0] sm:$0xff] }
  0xb4   : > { %v1269_v53 = vsel %vm7397_vm9, %v1264_v13, %v1268_v39  ;;  %v715_v21 = vor.u32 %v713_v1, %v712_v2  ;;  %v716_v58 = vrot.slane %v712_v2, 4  ;;  %v720_v25 = vrot.slane %v718_v45, 7  ;;  %2560 = vmatpush.bf16.msrb.mxu3 %v6751_v51  ;;  %v6759_v56 = vld [vmem:[%s9141_s4 + $0x100] sm:$0xff]  ;;  %v1031_v1 = vld [vmem:[#allocation2 + $0xb4] sm:$0xf]  ;;  %v1634_v13 = vpop.f32.mrf.mxu0 }
  0xb5   : > { %v1274_v5 = vrot.slane %v1273_v57, 4  ;;  %v514_v17 = vmax.f32 %v482_v22, 0.0  ;;  %v515_v55 = vmax.f32 %v483_v6, 0.0  ;;  %v1525_v28 = vunpack.c.l.b16 %v1269_v53  ;;  %3242 = vmatpush.bf16.msrb.mxu0 %v6759_v56  ;;  %v1035_v53 = vld [vmem:[#allocation2 + $0xbc] sm:$0x1] }
  0xb6   : > { %v723_v12 = vor.u32 %v721_v14, %v720_v25  ;;  %v725_v7 = vrot.slane %v720_v25, 4  ;;  %v976_v18 = vsel %vm7373_vm6, %v715_v21, %v975_v20  ;;  %v6321_v3 = vrot.slane %v7834_v41, 9  ;;  %v2674_v41 = vld [vmem:[#allocation2 + $0xc] sm:$0xf] }
  0xb7   : > { %v1073_v10 = vld [vmem:[#allocation2 + $0xa8] sm:$0xf]  ;;  %v1279_v36 = vsel %vm7397_vm9, %v1274_v5, %v1278_v15  ;;  %977 = vst [vmem:[#allocation2 + $0x54] sm:$0xf] %v976_v18  ;;  %v600_v27 = vpack.c.bf16 %v514_v17, %v514_v17  ;;  %v601_v8 = vpack.c.bf16 %v515_v55, %v515_v55  ;;  %v3422_v4 = vrot.slane %v7832_v40, 5 }
  0xb8   : > { %v6709_v33 = vld [vmem:[#allocation2 + $0xa8] sm:$0xff]  ;;  %v1449_v37 = vshrl.u32 %v1073_v10, 16  ;;  %v1452_v9 = vshll.u32 %v1073_v10, 16  ;;  %v1526_v38 = vunpack.c.l.b16 %v1279_v36  ;;  %v724_v63 = vsel %vm7363_vm4, %v716_v58, %v723_v12 }
  0xb9   : > { %v1074_v43 = vld [vmem:[#allocation2 + $0xac] sm:$0xf]  ;;  %v1107_v23 = vld [vmem:[#allocation2 + $0xb0] sm:$0x1]  ;;  %978 = vst [vmem:[#allocation2 + $0x58] sm:$0xf] %v724_v63  ;;  %v980_v46 = vsel %vm7429_vm10, %v725_v7, %v979_v26  ;;  %1936 = vmatmul.bf16.gmra.mxu3 %v6709_v33  ;;  %v7849_v14 = vadd.f32 %v1867_v29, %v1634_v13  ;;  %v7861_v33 = vpop.f32.mrf.mxu1 }
  0xba   : > { %v1458_v31 = vshll.u32 %v1074_v43, 16  ;;  %v1462_v42 = vshrl.u32 %v1074_v43, 16  ;;  %v1451_v47 = vrot.slane %v1449_v37, 4  ;;  %v1454_v48 = vrot.slane %v1452_v9, 5  ;;  %981 = vst [vmem:[#allocation2 + $0x5c] sm:$0x1] %v980_v46 }
  0xbb   : > { %v1468_v49 = vshll.u32 %v1107_v23, 16  ;;  %v1551_v50 = vpack.c.b16 %v1526_v38, %v1525_v28  ;;  %v846_v39 = vshrl.u32 %v600_v27, 16  ;;  %v849_v59 = vshll.u32 %v600_v27, 16 }
  0xbc   : > { %v1460_v54 = vrot.slane %v1458_v31, 5  ;;  %v1464_v32 = vrot.slane %v1462_v42, 4  ;;  %v1455_v61 = vor.u32 %v1454_v48, %v1451_v47  ;;  %v854_v35 = vshrl.u32 %v601_v8, 16 }
  0xbd   : > { %v1470_v19 = vrot.slane %v1468_v49, 5  ;;  %1663 = vmatmul.bf16.gmra.mxu0 %v1551_v50  ;;  %v857_v44 = vshll.u32 %v601_v8, 16  ;;  %v848_v0 = vrot.slane %v846_v39, 7  ;;  %v3425_v57 = vrot.slane %v7841_v60, 5 }
  0xbe   : > { %v1465_v62 = vor.u32 %v1464_v32, %v1460_v54  ;;  %v1456_v15 = vrot.slane %v1455_v61, 4  ;;  %v856_v2 = vrot.slane %v854_v35, 7  ;;  %v1059_v45 = vld [vmem:[#allocation2 + $0x54] sm:$0xf]  ;;  %v3424_v29 = vrot.slane %v3422_v4, 4  ;;  %v6806_v32 = vld [vmem:[%s9141_s4 + $0x1f8] sm:$0xff] }
  0xbf   : > { %v851_v22 = vor.u32 %v849_v59, %v848_v0  ;;  %v852_v6 = vrot.slane %v848_v0, 4  ;;  %v1281_v21 = vshrl.u32 %v1059_v45, 16  ;;  %v1284_v28 = vshll.u32 %v1059_v45, 16  ;;  %4658 = vmatpush.bf16.msra.mxu3 %v6806_v32 }
  0xc0   : > { %v1466_v20 = vrot.slane %v1465_v62, 4  ;;  %v1461_v58 = vsel %vm7397_vm9, %v1456_v15, %v1460_v54  ;;  %v6702_v25 = vld [vmem:[#allocation2 + $0x54] sm:$0xff]  ;;  %v859_v5 = vor.u32 %v857_v44, %v856_v2  ;;  %v861_v17 = vrot.slane %v856_v2, 4 }
  0xc1   : > { %v1060_v55 = vld [vmem:[#allocation2 + $0x58] sm:$0xf]  ;;  %v1541_v7 = vunpack.c.l.b16 %v1461_v58  ;;  %v1032_v18 = vsel %vm7373_vm6, %v851_v22, %v1031_v1  ;;  %v1100_v26 = vld [vmem:[#allocation2 + $0x5c] sm:$0x1]  ;;  %v1283_v10 = vrot.slane %v1281_v21, 4  ;;  %1901 = vmatmul.bf16.gmra.mxu1 %v6702_v25  ;;  %v1286_v24 = vrot.slane %v1284_v28, 5 }
  0xc2   : > { %v1471_v12 = vsel %vm7397_vm9, %v1466_v20, %v1470_v19  ;;  %v860_v27 = vsel %vm7363_vm4, %v852_v6, %v859_v5  ;;  %1033 = vst [vmem:[#allocation2 + $0xb4] sm:$0xf] %v1032_v18  ;;  %v1036_v8 = vsel %vm7429_vm10, %v861_v17, %v1035_v53  ;;  %v1290_v43 = vshll.u32 %v1060_v55, 16  ;;  %v6798_v54 = vld [vmem:[%s9141_s4 + $0x1b8] sm:$0xff] }
  0xc3   : > { %v1542_v36 = vunpack.c.l.b16 %v1471_v12  ;;  %1034 = vst [vmem:[#allocation2 + $0xb8] sm:$0xf] %v860_v27  ;;  %v1294_v37 = vshrl.u32 %v1060_v55, 16  ;;  %v1300_v9 = vshll.u32 %v1100_v26, 16  ;;  %v1287_v34 = vor.u32 %v1286_v24, %v1283_v10  ;;  %3976 = vmatpush.bf16.msra.mxu2 %v6798_v54  ;;  %v6814_v21 = vld [vmem:[%s9141_s4 + $0x238] sm:$0xff] }
  0xc4   : > { %1037 = vst [vmem:[#allocation2 + $0xbc] sm:$0x1] %v1036_v8  ;;  %v1292_v23 = vrot.slane %v1290_v43, 5  ;;  %v3423_v46 = vsel %vm7865_vm13, %v6321_v3, %v3422_v4  ;;  %v3426_v47 = vsel %vm7865_vm13, %v3424_v29, %v3425_v57  ;;  %v2723_v50 = vshrl.u32 %v2674_v41, 16  ;;  %v7889_v55 = vld [vmem:[#allocation2 + $0x1c] sm:$0xf]  ;;  %5084 = vmatpush.bf16.msra.mxu0 %v6814_v21 }
  0xc5   : > { %v1559_v63 = vpack.c.b16 %v1542_v36, %v1541_v7  ;;  %v1296_v31 = vrot.slane %v1294_v37, 4  ;;  %v1288_v42 = vrot.slane %v1287_v34, 4  ;;  %v1302_v49 = vrot.slane %v1300_v9, 5  ;;  %v7893_v24 = vld [vmem:[#allocation2 + $0x20] sm:$0x1] }
  0xc6   : > { %v3549_v61 = vunpack.c.l.b16 %v3423_v46  ;;  %v3550_v19 = vunpack.c.l.b16 %v3426_v47  ;;  %v2726_v35 = vshll.u32 %v2674_v41, 16  ;;  %v2732_v3 = vshll.u32 %v7832_v40, 16  ;;  %v3357_v43 = vld [vmem:[#allocation2 + $0x18] sm:$0xe]  ;;  %v1947_v34 = vld [vmem:[#allocation2] sm:$0xe] }
  0xc7   : > { %1703 = vmatmul.bf16.gmra.mxu2 %v1559_v63  ;;  %v1297_v48 = vor.u32 %v1296_v31, %v1292_v23  ;;  %v1293_v51 = vsel %vm7397_vm9, %v1288_v42, %v1292_v23  ;;  %v2725_v45 = vrot.slane %v2723_v50, 4  ;;  %v2736_v27 = vshrl.u32 %v7832_v40, 16  ;;  %v7129_v29 = vld [vmem:[#allocation2 + $0x4] sm:$0xf]  ;;  %v5237_v47 = vld [vmem:[%s9142_s5] sm:$0xf] }
  0xc8   : > { %v1527_v1 = vunpack.c.l.b16 %v1293_v51  ;;  %v3581_v5 = vpack.c.b16 %v3550_v19, %v3549_v61  ;;  %v2728_v17 = vrot.slane %v2726_v35, 5  ;;  %v2734_v18 = vrot.slane %v2732_v3, 5  ;;  %v2677_v54 = vld [vmem:[#allocation2 + $0x18] sm:$0xf]  ;;  %v7130_v61 = vld [vmem:[#allocation2 + $0x8] sm:$0x1] }
  0xc9   : > { %v1075_v39 = vld [vmem:[#allocation2 + $0xb4] sm:$0xf]  ;;  %v1298_v59 = vrot.slane %v1297_v48, 4  ;;  %v2742_v8 = vshll.u32 %v7841_v60, 16  ;;  %v3429_v9 = vrot.slane %v7889_v55, 5  ;;  %v2000_v41 = vrot.slane %v7129_v29, 5 }
  0xca   : > { %v6710_v44 = vld [vmem:[#allocation2 + $0xb4] sm:$0xff]  ;;  %v1473_v62 = vshrl.u32 %v1075_v39, 16  ;;  %v1476_v0 = vshll.u32 %v1075_v39, 16  ;;  %v2729_v36 = vor.u32 %v2728_v17, %v2725_v45  ;;  %v2738_v31 = vrot.slane %v2736_v27, 4 }
  0xcb   : > { %v1076_v56 = vld [vmem:[#allocation2 + $0xb8] sm:$0xf]  ;;  %v1108_v4 = vld [vmem:[#allocation2 + $0xbc] sm:$0x1]  ;;  %v1303_v2 = vsel %vm7397_vm9, %v1298_v59, %v1302_v49  ;;  %1941 = vmatmul.bf16.gmra.mxu3 %v6710_v44  ;;  %v7884_v53 = vpop.f32.mrf.mxu1  ;;  %v2744_v40 = vrot.slane %v2742_v8, 5  ;;  %v6322_v46 = vrot.slane %v3357_v43, 9 }
  0xcc   : > { %v1482_v13 = vshll.u32 %v1076_v56, 16  ;;  %v1486_v15 = vshrl.u32 %v1076_v56, 16  ;;  %v1475_v57 = vrot.slane %v1473_v62, 4  ;;  %v1478_v20 = vrot.slane %v1476_v0, 5  ;;  %v7908_v56 = vpop.f32.mrf.mxu0 }
  0xcd   : > { %v1492_v22 = vshll.u32 %v1108_v4, 16  ;;  %v1528_v6 = vunpack.c.l.b16 %v1303_v2  ;;  %v2730_v23 = vrot.slane %v2729_v36, 4  ;;  %v3432_v60 = vrot.slane %v7893_v24, 5 }
  0xce   : > { %v1484_v58 = vrot.slane %v1482_v13, 5  ;;  %v1488_v25 = vrot.slane %v1486_v15, 4  ;;  %v1479_v28 = vor.u32 %v1478_v20, %v1475_v57  ;;  %v1907_v10 = vpop.f32.mrf.mxu3  ;;  %v2739_v50 = vor.u32 %v2738_v31, %v2734_v18  ;;  %v6735_v20 = vld [vmem:[#allocation2 + $0xc] sm:$0xff] }
  0xcf   : > { %v1494_v12 = vrot.slane %v1492_v22, 5  ;;  %v1552_v7 = vpack.c.b16 %v1528_v6, %v1527_v1  ;;  %v3431_v51 = vrot.slane %v3429_v9, 4  ;;  %v6097_v39 = vrot.slane %v1947_v34, 9 }
  0xd0   : > { %v1489_v26 = vor.u32 %v1488_v25, %v1484_v58  ;;  %v1480_v37 = vrot.slane %v1479_v28, 4  ;;  %v2003_v19 = vrot.slane %v7130_v61, 5  ;;  %v2735_v35 = vsel %vm7397_vm9, %v2730_v23, %v2734_v18 }
  0xd1   : > { %1668 = vmatmul.bf16.gmra.mxu0 %v1552_v7  ;;  %3669 = vmatmul.bf16.vlgmr.msrb.gmra.mxu1 %v3581_v5  ;;  %v2740_v44 = vrot.slane %v2739_v50, 4  ;;  %v5369_v62 = vsel %vm928_vm3, %v5237_v47, 0  ;;  %v2002_v1 = vrot.slane %v2000_v41, 4  ;;  %v3430_v3 = vsel %vm7865_vm13, %v6322_v46, %v3429_v9  ;;  %v7933_v47 = vld [vmem:[#allocation2 + $0x2c] sm:$0x1] }
  0xd2   : > { %v1490_v63 = vrot.slane %v1489_v26, 4  ;;  %v1485_v42 = vsel %vm7397_vm9, %v1480_v37, %v1484_v58  ;;  %5378 = vmatpush.bf16.msra.mxu1 %v5369_v62  ;;  %v2747_v4 = vshrl.u32 %v2677_v54, 16  ;;  %v3433_v2 = vsel %vm7865_vm13, %v3431_v51, %v3432_v60 }
  0xd3   : > { %v1543_v49 = vunpack.c.l.b16 %v1485_v42  ;;  %v7904_v59 = vpop.f32.mrf.mxu1  ;;  %v2745_v13 = vsel %vm7397_vm9, %v2740_v44, %v2744_v40  ;;  %v2750_v45 = vshll.u32 %v2677_v54, 16  ;;  %v2756_v57 = vshll.u32 %v7889_v55, 16  ;;  %v3358_v42 = vld [vmem:[#allocation2 + $0x24] sm:$0xe] }
  0xd4   : > { %v1495_v48 = vsel %vm7397_vm9, %v1490_v63, %v1494_v12  ;;  %v3123_v22 = vunpack.c.l.b16 %v2735_v35  ;;  %v3124_v6 = vunpack.c.l.b16 %v2745_v13  ;;  %v2749_v21 = vrot.slane %v2747_v4, 4  ;;  %v7132_v4 = vld [vmem:[#allocation2 + $0x14] sm:$0x1] }
  0xd5   : > { %v1544_v32 = vunpack.c.l.b16 %v1495_v48  ;;  %v2752_v58 = vrot.slane %v2750_v45, 5  ;;  %v2758_v25 = vrot.slane %v2756_v57, 5  ;;  %v2760_v5 = vshrl.u32 %v7889_v55, 16  ;;  %v2681_v55 = vld [vmem:[#allocation2 + $0x28] sm:$0xf]  ;;  %v6736_v45 = vld [vmem:[#allocation2 + $0x18] sm:$0xff] }
  0xd6   : > { %v7915_v15 = vpop.f32.mrf.mxu3  ;;  %v3551_v17 = vunpack.c.l.b16 %v3430_v3  ;;  %v3552_v28 = vunpack.c.l.b16 %v3433_v2  ;;  %v2001_v12 = vsel %vm7865_vm13, %v6097_v39, %v2000_v41  ;;  %v2004_v7 = vsel %vm7865_vm13, %v2002_v1, %v2003_v19  ;;  %v2680_v48 = vld [vmem:[#allocation2 + $0x24] sm:$0xf] }
  0xd7   : > { %v1560_v0 = vpack.c.b16 %v1544_v32, %v1543_v49  ;;  %9156 = vst [vmem:[#allocation3_spill] sm:$0xff] %v7915_v15  ;;  %v2753_v26 = vor.u32 %v2752_v58, %v2749_v21  ;;  %v2762_v36 = vrot.slane %v2760_v5, 4  ;;  %v3155_v27 = vpack.c.b16 %v3124_v6, %v3123_v22  ;;  %v7131_v49 = vld [vmem:[#allocation2 + $0x10] sm:$0xf]  ;;  %v1948_v32 = vld [vmem:[#allocation2 + $0xc] sm:$0xe] }
  0xd8   : > { %v2766_v37 = vshll.u32 %v7893_v24, 16  ;;  %v2127_v63 = vunpack.c.l.b16 %v2001_v12  ;;  %v2128_v34 = vunpack.c.l.b16 %v2004_v7  ;;  %v3582_v29 = vpack.c.b16 %v3552_v28, %v3551_v17  ;;  %v6805_v7 = vld [vmem:[%s9141_s4 + $0x1f0] sm:$0xff] }
  0xd9   : > { %1708 = vmatmul.bf16.gmra.mxu2 %v1560_v0  ;;  %v2763_v9 = vor.u32 %v2762_v36, %v2758_v25  ;;  %v2754_v31 = vrot.slane %v2753_v26, 4  ;;  %v3436_v40 = vrot.slane %v2681_v55, 5  ;;  %v2007_v50 = vrot.slane %v7131_v49, 5  ;;  %4659 = vmatpush.bf16.msra.mxu3 %v6805_v7  ;;  %v7134_v7 = vld [vmem:[#allocation2 + $0x20] sm:$0x1] }
  0xda   : > { %v2768_v60 = vrot.slane %v2766_v37, 5  ;;  %v2159_v24 = vpack.c.b16 %v2128_v34, %v2127_v63  ;;  %v6323_v51 = vrot.slane %v3358_v42, 9  ;;  %v2771_v19 = vshrl.u32 %v2680_v48, 16 }
  0xdb   : > { %2561 = vmatmul.bf16.vlgmr.msrb.gmra.mxu3 %v6735_v20  ;;  %v7927_v43 = vpop.f32.mrf.mxu1  ;;  %v2759_v39 = vsel %vm7397_vm9, %v2754_v31, %v2758_v25  ;;  %v3438_v61 = vrot.slane %v3436_v40, 4  ;;  %v2774_v44 = vshll.u32 %v2680_v48, 16  ;;  %v2780_v62 = vshll.u32 %v2681_v55, 16  ;;  %v6797_v25 = vld [vmem:[%s9141_s4 + $0x1b0] sm:$0xff] }
  0xdc   : > { %v1674_v18 = vpop.f32.mrf.mxu2  ;;  %v2784_v0 = vshrl.u32 %v2681_v55, 16  ;;  %v6098_v1 = vrot.slane %v1948_v32, 9  ;;  %v2009_v3 = vrot.slane %v2007_v50, 4  ;;  %v2010_v13 = vrot.slane %v7132_v4, 5  ;;  %3977 = vmatpush.bf16.msra.mxu2 %v6797_v25  ;;  %v6813_v31 = vld [vmem:[%s9141_s4 + $0x230] sm:$0xff] }
  0xdd   : > { %v7925_v8 = vadd.f32 %v1907_v10, %v1674_v18  ;;  %v2764_v10 = vrot.slane %v2763_v9, 4  ;;  %v3125_v57 = vunpack.c.l.b16 %v2759_v39  ;;  %v3437_v6 = vsel %vm7865_vm13, %v6323_v51, %v3436_v40  ;;  %5085 = vmatpush.bf16.msra.mxu0 %v6813_v31  ;;  %v3359_v39 = vld [vmem:[#allocation2 + $0x30] sm:$0xe] }
  0xde   : > { %v1912_v41 = vpop.f32.mrf.mxu3  ;;  %v2773_v5 = vrot.slane %v2771_v19, 4  ;;  %v2776_v17 = vrot.slane %v2774_v44, 5  ;;  %v2782_v28 = vrot.slane %v2780_v62, 5  ;;  %v2786_v12 = vrot.slane %v2784_v0, 4  ;;  %v1949_v0 = vld [vmem:[#allocation2 + $0x18] sm:$0xe] }
  0xdf   : > { %9157 = vst [vmem:[#allocation4_spill] sm:$0xff] %v7925_v8  ;;  %v1639_v23 = vpop.f32.mrf.mxu0  ;;  %v2769_v35 = vsel %vm7397_vm9, %v2764_v10, %v2768_v60  ;;  %v3553_v18 = vunpack.c.l.b16 %v3437_v6  ;;  %v2008_v36 = vsel %vm7865_vm13, %v6098_v1, %v2007_v50  ;;  %v2790_v55 = vshll.u32 %v7933_v47, 16  ;;  %v7133_v1 = vld [vmem:[#allocation2 + $0x1c] sm:$0xf] }
  0xe0   : > { %v7931_v46 = vadd.f32 %v7884_v53, %v1639_v23  ;;  %v3439_v53 = vrot.slane %v7933_v47, 5  ;;  %v3126_v20 = vunpack.c.l.b16 %v2769_v35  ;;  %v2777_v34 = vor.u32 %v2776_v17, %v2773_v5  ;;  %v2684_v23 = vld [vmem:[#allocation2 + $0x34] sm:$0xf] }
  0xe1   : > { %3243 = vmatmul.bf16.vlgmr.msrb.gmra.mxu0 %v3155_v27  ;;  %3674 = vmatmul.bf16.gmra.mxu1 %v3582_v29  ;;  %v2011_v27 = vsel %vm7865_vm13, %v2009_v3, %v2010_v13  ;;  %v2787_v29 = vor.u32 %v2786_v12, %v2782_v28  ;;  %v2129_v40 = vunpack.c.l.b16 %v2008_v36  ;;  %v3443_v47 = vrot.slane %v2684_v23, 5 }
  0xe2   : > { %v3440_v21 = vsel %vm7865_vm13, %v3438_v61, %v3439_v53  ;;  %v3156_v9 = vpack.c.b16 %v3126_v20, %v3125_v57  ;;  %v2130_v10 = vunpack.c.l.b16 %v2011_v27  ;;  %v2778_v50 = vrot.slane %v2777_v34, 4  ;;  %v2683_v61 = vld [vmem:[#allocation2 + $0x30] sm:$0xf] }
  0xe3   : > { %v7942_v2 = vpop.f32.mrf.mxu1  ;;  %v3554_v26 = vunpack.c.l.b16 %v3440_v21  ;;  %v2788_v51 = vrot.slane %v2787_v29, 4  ;;  %v2792_v32 = vrot.slane %v2790_v55, 5  ;;  %v6324_v19 = vrot.slane %v3359_v39, 9 }
  0xe4   : > { %v7935_v54 = vpop.f32.mrf.mxu2  ;;  %v3445_v35 = vrot.slane %v3443_v47, 4  ;;  %v2160_v62 = vpack.c.b16 %v2130_v10, %v2129_v40  ;;  %v2014_v3 = vrot.slane %v7133_v1, 5  ;;  %v2795_v13 = vshrl.u32 %v2683_v61, 16  ;;  %v7999_v1 = vld [vmem:[#allocation2 + $0x44] sm:$0x1] }
  0xe5   : > { %9158 = vst [vmem:[#allocation5_spill] sm:$0xff] %v7935_v54  ;;  %v3583_v42 = vpack.c.b16 %v3554_v26, %v3553_v18  ;;  %v2793_v4 = vsel %vm7397_vm9, %v2788_v51, %v2792_v32  ;;  %v2804_v57 = vshll.u32 %v2684_v23, 16  ;;  %v2808_v20 = vshrl.u32 %v2684_v23, 16 }
  0xe6   : > { %v7944_v22 = vpop.f32.mrf.mxu3  ;;  %v6099_v6 = vrot.slane %v1949_v0, 9  ;;  %v3444_v25 = vsel %vm7865_vm13, %v6324_v19, %v3443_v47  ;;  %v2016_v12 = vrot.slane %v2014_v3, 4  ;;  %v2017_v18 = vrot.slane %v7134_v7, 5  ;;  %v3360_v19 = vld [vmem:[#allocation2 + $0x3c] sm:$0xe] }
  0xe7   : > { %9159 = vst [vmem:[#allocation6_spill] sm:$0xff] %v7944_v22  ;;  %v7950_v58 = vpop.f32.mrf.mxu0  ;;  %v3128_v36 = vunpack.c.l.b16 %v2793_v4  ;;  %v2810_v34 = vrot.slane %v2808_v20, 4  ;;  %v3555_v29 = vunpack.c.l.b16 %v3444_v25  ;;  %v3453_v25 = vrot.slane %v7999_v1, 5 }
  0xe8   : > { %v2018_v47 = vsel %vm7865_vm13, %v2016_v12, %v2017_v18  ;;  %v7135_v18 = vld [vmem:[#allocation2 + $0x28] sm:$0xf] }
  0xe9   : > { %2247 = vmatmul.bf16.vlgmr.msrb.gmra.mxu2 %v2159_v24  ;;  %v7968_v24 = vld [vmem:[#allocation2 + $0x38] sm:$0x1] }
  0xea   : > { %v3446_v44 = vrot.slane %v7968_v24, 5  ;;  %v2814_v32 = vshll.u32 %v7968_v24, 16  ;;  %v1950_v24 = vld [vmem:[#allocation2 + $0x24] sm:$0xe] }
  0xeb   : > { %2566 = vmatmul.bf16.gmra.mxu3 %v6736_v45  ;;  %v2798_v45 = vshll.u32 %v2683_v61, 16 }
  0xec   : > { %v1679_v37 = vpop.f32.mrf.mxu2  ;;  %v3447_v5 = vsel %vm7865_vm13, %v3445_v35, %v3446_v44 }
  0xed   : > { %v7963_v63 = vadd.f32 %v1912_v41, %v1679_v37  ;;  %v2797_v37 = vrot.slane %v2795_v13, 4  ;;  %v2800_v55 = vrot.slane %v2798_v45, 5  ;;  %v3556_v23 = vunpack.c.l.b16 %v3447_v5 }
  0xee   : > { %v1917_v60 = vpop.f32.mrf.mxu3  ;;  %v2816_v13 = vrot.slane %v2814_v32, 5  ;;  %v6325_v45 = vrot.slane %v3360_v19, 9  ;;  %v6804_v32 = vld [vmem:[%s9141_s4 + $0x1e8] sm:$0xff] }
  0xef   : > { %9160 = vst [vmem:[#allocation7_spill] sm:$0xff] %v7963_v63  ;;  %v1644_v48 = vpop.f32.mrf.mxu0  ;;  %v1882_v49 = vpop.f32.mrf.mxu1  ;;  %v3584_v39 = vpack.c.b16 %v3556_v23, %v3555_v29  ;;  %4660 = vmatpush.bf16.msra.mxu3 %v6804_v32 }
  0xf0   : > { %v7971_v41 = vadd.f32 %v7927_v43, %v1644_v48  ;;  %v2783_v43 = vsel %vm7397_vm9, %v2778_v50, %v2782_v28  ;;  %v6737_v28 = vld [vmem:[#allocation2 + $0x24] sm:$0xff]  ;;  %v2687_v48 = vld [vmem:[#allocation2 + $0x40] sm:$0xf]  ;;  %v2801_v50 = vor.u32 %v2800_v55, %v2797_v37  ;;  %v6100_v55 = vrot.slane %v1950_v24, 9 }
  0xf1   : > { %3248 = vmatmul.bf16.gmra.mxu0 %v3156_v9  ;;  %3679 = vmatmul.bf16.gmra.mxu1 %v3583_v42  ;;  %v3127_v26 = vunpack.c.l.b16 %v2783_v43  ;;  %v2806_v9 = vrot.slane %v2804_v57, 5  ;;  %v2015_v42 = vsel %vm7865_vm13, %v6099_v6, %v2014_v3  ;;  %v3450_v35 = vrot.slane %v2687_v48, 5 }
  0xf2   : > { %v2131_v44 = vunpack.c.l.b16 %v2015_v42  ;;  %v2802_v43 = vrot.slane %v2801_v50, 4  ;;  %v2828_v12 = vshll.u32 %v2687_v48, 16  ;;  %v2832_v7 = vshrl.u32 %v2687_v48, 16 }
  0xf3   : > { %v3157_v40 = vpack.c.b16 %v3128_v36, %v3127_v26  ;;  %v2811_v51 = vor.u32 %v2810_v34, %v2806_v9  ;;  %v3452_v6 = vrot.slane %v3450_v35, 4  ;;  %v2021_v26 = vrot.slane %v7135_v18, 5 }
  0xf4   : > { %v7973_v53 = vpop.f32.mrf.mxu2  ;;  %v2807_v36 = vsel %vm7397_vm9, %v2802_v43, %v2806_v9  ;;  %v3451_v34 = vsel %vm7865_vm13, %v6325_v45, %v3450_v35  ;;  %v6796_v9 = vld [vmem:[%s9141_s4 + $0x1a8] sm:$0xff]  ;;  %v2830_v50 = vrot.slane %v2828_v12, 5 }
  0xf5   : > { %9161 = vst [vmem:[#allocation8_spill] sm:$0xff] %v7973_v53  ;;  %v2812_v4 = vrot.slane %v2811_v51, 4  ;;  %v3454_v29 = vsel %vm7865_vm13, %v3452_v6, %v3453_v25  ;;  %v3129_v48 = vunpack.c.l.b16 %v2807_v36  ;;  %v2834_v51 = vrot.slane %v2832_v7, 4  ;;  %3978 = vmatpush.bf16.msra.mxu2 %v6796_v9  ;;  %v2690_v25 = vld [vmem:[#allocation2 + $0x4c] sm:$0xf] }
  0xf6   : > { %v7980_v21 = vpop.f32.mrf.mxu3  ;;  %v3557_v35 = vunpack.c.l.b16 %v3451_v34  ;;  %v2838_v6 = vshll.u32 %v7999_v1, 16  ;;  %v2691_v34 = vld [vmem:[#allocation2 + $0x50] sm:$0x1] }
  0xf7   : > { %9162 = vst [vmem:[#allocation9_spill] sm:$0xff] %v7980_v21  ;;  %v7986_v17 = vpop.f32.mrf.mxu0  ;;  %v7988_v27 = vpop.f32.mrf.mxu1  ;;  %v2817_v37 = vsel %vm7397_vm9, %v2812_v4, %v2816_v13  ;;  %v2835_v24 = vor.u32 %v2834_v51, %v2830_v50  ;;  %v7137_v51 = vld [vmem:[#allocation2 + $0x34] sm:$0xf] }
  0xf8   : > { %v2028_v32 = vrot.slane %v7137_v51, 5 }
  0xf9   : > { %2252 = vmatmul.bf16.gmra.mxu2 %v2160_v62  ;;  %v2132_v62 = vunpack.c.l.b16 %v2018_v47  ;;  %v3130_v47 = vunpack.c.l.b16 %v2817_v37  ;;  %v2836_v1 = vrot.slane %v2835_v24, 4 }
  0xfb   : > { %2571 = vmatmul.bf16.gmra.mxu3 %v6737_v28  ;;  %v3158_v13 = vpack.c.b16 %v3130_v47, %v3129_v48  ;;  %v3460_v47 = vrot.slane %v2691_v34, 5 }
  0xfc   : > { %v1684_v31 = vpop.f32.mrf.mxu2 }
  0xfd   : > { %v7992_v10 = vadd.f32 %v1917_v60, %v1684_v31  ;;  %v2686_v60 = vld [vmem:[#allocation2 + $0x3c] sm:$0xf] }
  0xfe   : > { %v2819_v5 = vshrl.u32 %v2686_v60, 16  ;;  %v2822_v28 = vshll.u32 %v2686_v60, 16 }
  0xff   : > { %9163 = vst [vmem:[#allocation10_spill] sm:$0xff] %v7992_v10  ;;  %v1649_v61 = vpop.f32.mrf.mxu0  ;;  %v1922_v3 = vpop.f32.mrf.mxu3 }
 0x100   : > { %v7997_v0 = vadd.f32 %v1882_v49, %v1649_v61  ;;  %v1887_v20 = vpop.f32.mrf.mxu1  ;;  %v2161_v49 = vpack.c.b16 %v2132_v62, %v2131_v44  ;;  %v2821_v31 = vrot.slane %v2819_v5, 4  ;;  %v2824_v42 = vrot.slane %v2822_v28, 5  ;;  %v7136_v61 = vld [vmem:[#allocation2 + $0x2c] sm:$0x1] }
 0x101   : > { %3253 = vmatmul.bf16.gmra.mxu0 %v3157_v40  ;;  %3684 = vmatmul.bf16.gmra.mxu1 %v3584_v39  ;;  %v6738_v40 = vld [vmem:[#allocation2 + $0x30] sm:$0xff]  ;;  %v2023_v39 = vrot.slane %v2021_v26, 4  ;;  %v2024_v19 = vrot.slane %v7136_v61, 5  ;;  %v3558_v44 = vunpack.c.l.b16 %v3454_v29  ;;  %v2022_v62 = vsel %vm7865_vm13, %v6100_v55, %v2021_v26  ;;  %v6812_v5 = vld [vmem:[%s9141_s4 + $0x228] sm:$0xff] }
 0x102   : > { %v2825_v4 = vor.u32 %v2824_v42, %v2821_v31  ;;  %5086 = vmatpush.bf16.msra.mxu0 %v6812_v5  ;;  %v2133_v7 = vunpack.c.l.b16 %v2022_v62  ;;  %v2840_v55 = vrot.slane %v2838_v6, 5  ;;  %v3361_v29 = vld [vmem:[#allocation2 + $0x48] sm:$0xe]  ;;  %v2852_v62 = vshll.u32 %v2690_v25, 16 }
 0x103   : > { %v2025_v28 = vsel %vm7865_vm13, %v2023_v39, %v2024_v19  ;;  %v3585_v12 = vpack.c.b16 %v3558_v44, %v3557_v35  ;;  %v2689_v31 = vld [vmem:[#allocation2 + $0x48] sm:$0xf]  ;;  %v1951_v19 = vld [vmem:[#allocation2 + $0x30] sm:$0xe] }
 0x104   : > { %v8001_v57 = vpop.f32.mrf.mxu2  ;;  %v2826_v26 = vrot.slane %v2825_v4, 4  ;;  %v2134_v36 = vunpack.c.l.b16 %v2025_v28  ;;  %v2843_v35 = vshrl.u32 %v2689_v31, 16  ;;  %v2846_v44 = vshll.u32 %v2689_v31, 16  ;;  %v7138_v4 = vld [vmem:[#allocation2 + $0x38] sm:$0x1] }
 0x105   : > { %9164 = vst [vmem:[#allocation11_spill] sm:$0xff] %v8001_v57  ;;  %v6101_v28 = vrot.slane %v1951_v19, 9 }
 0x106   : > { %v2162_v9 = vpack.c.b16 %v2134_v36, %v2133_v7  ;;  %v2831_v39 = vsel %vm7397_vm9, %v2826_v26, %v2830_v50  ;;  %v6739_v50 = vld [vmem:[#allocation2 + $0x3c] sm:$0xff]  ;;  %v2845_v36 = vrot.slane %v2843_v35, 4 }
 0x107   : > { %v8012_v23 = vpop.f32.mrf.mxu0  ;;  %v8022_v43 = vpop.f32.mrf.mxu3  ;;  %v3131_v7 = vunpack.c.l.b16 %v2831_v39 }
 0x108   : > { %9165 = vst [vmem:[#allocation12_spill] sm:$0xff] %v8022_v43 }
 0x109   : > { %2257 = vmatmul.bf16.gmra.mxu2 %v2161_v49  ;;  %v8032_v49 = vpop.f32.mrf.mxu1 }
 0x10b   : > { %2576 = vmatmul.bf16.gmra.mxu3 %v6738_v40  ;;  %v6326_v40 = vrot.slane %v3361_v29, 9 }
 0x10d   : > { %v1689_v60 = vpop.f32.mrf.mxu2 }
 0x10e   : > { %v8024_v45 = vadd.f32 %v1922_v3, %v1689_v60  ;;  %v3457_v3 = vrot.slane %v2690_v25, 5  ;;  %v2856_v60 = vshrl.u32 %v2690_v25, 16  ;;  %v2854_v25 = vrot.slane %v2852_v62, 5  ;;  %v3362_v62 = vld [vmem:[#allocation2 + $0x54] sm:$0xe] }
 0x10f   : > { %v1654_v18 = vpop.f32.mrf.mxu0  ;;  %v1927_v61 = vpop.f32.mrf.mxu3 }
 0x110   : > { %9166 = vst [vmem:[#allocation13_spill] sm:$0xff] %v8024_v45  ;;  %v8034_v37 = vadd.f32 %v1887_v20, %v1654_v18  ;;  %v3459_v48 = vrot.slane %v3457_v3, 4  ;;  %v2841_v20 = vsel %vm7397_vm9, %v2836_v1, %v2840_v55  ;;  %v3458_v6 = vsel %vm7865_vm13, %v6326_v40, %v3457_v3 }
 0x111   : > { %3258 = vmatmul.bf16.gmra.mxu0 %v3158_v13  ;;  %3689 = vmatmul.bf16.gmra.mxu1 %v3585_v12  ;;  %v2031_v13 = vrot.slane %v7138_v4, 5  ;;  %v2030_v12 = vrot.slane %v2028_v32, 4  ;;  %v3132_v18 = vunpack.c.l.b16 %v2841_v20  ;;  %v2848_v1 = vrot.slane %v2846_v44, 5 }
 0x112   : > { %v3461_v5 = vsel %vm7865_vm13, %v3459_v48, %v3460_v47  ;;  %v2858_v55 = vrot.slane %v2856_v60, 4  ;;  %v3559_v29 = vunpack.c.l.b16 %v3458_v6  ;;  %v2029_v3 = vsel %vm7865_vm13, %v6101_v28, %v2028_v32  ;;  %v2693_v48 = vld [vmem:[#allocation2 + $0x58] sm:$0xf]  ;;  %v8056_v32 = vld [vmem:[#allocation2 + $0x5c] sm:$0x1] }
 0x113   : > { %v3560_v31 = vunpack.c.l.b16 %v3461_v5  ;;  %v3159_v40 = vpack.c.b16 %v3132_v18, %v3131_v7  ;;  %v2032_v47 = vsel %vm7865_vm13, %v2030_v12, %v2031_v13  ;;  %v2849_v51 = vor.u32 %v2848_v1, %v2845_v36  ;;  %v2692_v5 = vld [vmem:[#allocation2 + $0x54] sm:$0xf]  ;;  %v1952_v36 = vld [vmem:[#allocation2 + $0x3c] sm:$0xe] }
 0x114   : > { %v2859_v39 = vor.u32 %v2858_v55, %v2854_v25  ;;  %v2862_v20 = vshll.u32 %v2691_v34, 16  ;;  %v3464_v60 = vrot.slane %v2693_v48, 5  ;;  %v2135_v4 = vunpack.c.l.b16 %v2029_v3  ;;  %v7139_v34 = vld [vmem:[#allocation2 + $0x40] sm:$0xf] }
 0x115   : > { %v8036_v42 = vpop.f32.mrf.mxu2  ;;  %v1892_v24 = vpop.f32.mrf.mxu1  ;;  %v3586_v35 = vpack.c.b16 %v3560_v31, %v3559_v29  ;;  %v2136_v6 = vunpack.c.l.b16 %v2032_v47  ;;  %v2850_v13 = vrot.slane %v2849_v51, 4  ;;  %v6327_v7 = vrot.slane %v3362_v62, 9  ;;  %v7140_v62 = vld [vmem:[#allocation2 + $0x44] sm:$0x1] }
 0x116   : > { %9167 = vst [vmem:[#allocation14_spill] sm:$0xff] %v8036_v42  ;;  %v2860_v28 = vrot.slane %v2859_v39, 4  ;;  %v2864_v12 = vrot.slane %v2862_v20, 5  ;;  %v3466_v1 = vrot.slane %v3464_v60, 4  ;;  %v3467_v55 = vrot.slane %v8056_v32, 5 }
 0x117   : > { %v8046_v26 = vpop.f32.mrf.mxu0  ;;  %v8054_v44 = vpop.f32.mrf.mxu3  ;;  %v2867_v29 = vshrl.u32 %v2692_v5, 16  ;;  %v2870_v31 = vshll.u32 %v2692_v5, 16  ;;  %v2163_v3 = vpack.c.b16 %v2136_v6, %v2135_v4  ;;  %v2876_v47 = vshll.u32 %v2693_v48, 16 }
 0x118   : > { %9169 = vst [vmem:[#allocation16_spill] sm:$0xff] %v8054_v44  ;;  %v2855_v51 = vsel %vm7397_vm9, %v2850_v13, %v2854_v25  ;;  %v2865_v39 = vsel %vm7397_vm9, %v2860_v28, %v2864_v12  ;;  %v6102_v20 = vrot.slane %v1952_v36, 9  ;;  %v3465_v44 = vsel %vm7865_vm13, %v6327_v7, %v3464_v60  ;;  %v6795_v25 = vld [vmem:[%s9141_s4 + $0x1a0] sm:$0xff] }
 0x119   : > { %2262 = vmatmul.bf16.gmra.mxu2 %v2162_v9  ;;  %v3468_v4 = vsel %vm7865_vm13, %v3466_v1, %v3467_v55  ;;  %v2872_v6 = vrot.slane %v2870_v31, 5  ;;  %v3133_v5 = vunpack.c.l.b16 %v2855_v51  ;;  %v2878_v13 = vrot.slane %v2876_v47, 5  ;;  %v6803_v12 = vld [vmem:[%s9141_s4 + $0x1e0] sm:$0xff] }
 0x11a   : > { %v3561_v36 = vunpack.c.l.b16 %v3465_v44  ;;  %v3562_v1 = vunpack.c.l.b16 %v3468_v4  ;;  %3979 = vmatpush.bf16.msra.mxu2 %v6795_v25  ;;  %4661 = vmatpush.bf16.msra.mxu3 %v6803_v12  ;;  %v2886_v51 = vshll.u32 %v8056_v32, 16  ;;  %v6811_v44 = vld [vmem:[%s9141_s4 + $0x220] sm:$0xff] }
 0x11b   : > { %2581 = vmatmul.bf16.gmra.mxu3 %v6739_v50  ;;  %5087 = vmatpush.bf16.msra.mxu0 %v6811_v44  ;;  %v2695_v32 = vld [vmem:[#allocation2 + $0x60] sm:$0xf] }
 0x11c   : > { %v2891_v44 = vshrl.u32 %v2695_v32, 16 }
 0x11d   : > { %v1694_v9 = vpop.f32.mrf.mxu2  ;;  %v8058_v50 = vpop.f32.mrf.mxu1 }
 0x11e   : > { %v8052_v19 = vadd.f32 %v1927_v61, %v1694_v9  ;;  %v2035_v61 = vrot.slane %v7139_v34, 5  ;;  %v2880_v9 = vshrl.u32 %v2693_v48, 16  ;;  %v2038_v34 = vrot.slane %v7140_v62, 5  ;;  %v6740_v48 = vld [vmem:[#allocation2 + $0x48] sm:$0xff] }
 0x11f   : > { %v3587_v62 = vpack.c.b16 %v3562_v1, %v3561_v36  ;;  %v2893_v43 = vrot.slane %v2891_v44, 4 }
 0x120   : > { %9168 = vst [vmem:[#allocation15_spill] sm:$0xff] %v8052_v19  ;;  %v2882_v28 = vrot.slane %v2880_v9, 4  ;;  %v2036_v55 = vsel %vm7865_vm13, %v6102_v20, %v2035_v61  ;;  %v7142_v19 = vld [vmem:[#allocation2 + $0x50] sm:$0x1] }
 0x121   : > { %3263 = vmatmul.bf16.gmra.mxu0 %v3159_v40  ;;  %3694 = vmatmul.bf16.gmra.mxu1 %v3586_v35  ;;  %v2037_v35 = vrot.slane %v2035_v61, 4  ;;  %v2137_v4 = vunpack.c.l.b16 %v2036_v55  ;;  %v7141_v55 = vld [vmem:[#allocation2 + $0x4c] sm:$0xf] }
 0x122   : > { %v2883_v9 = vor.u32 %v2882_v28, %v2878_v13 }
 0x124   : > { %v1659_v18 = vpop.f32.mrf.mxu0 }
 0x125   : > { %v8061_v40 = vadd.f32 %v1892_v24, %v1659_v18  ;;  %v2869_v24 = vrot.slane %v2867_v29, 4  ;;  %v3134_v18 = vunpack.c.l.b16 %v2865_v39  ;;  %v8077_v60 = vpop.f32.mrf.mxu2  ;;  %v2696_v39 = vld [vmem:[#allocation2 + $0x64] sm:$0xf] }
 0x126   : > { %9170 = vst [vmem:[#allocation17_spill] sm:$0xff] %v8077_v60  ;;  %v1932_v7 = vpop.f32.mrf.mxu3 }
 0x127   : > { %v2873_v31 = vor.u32 %v2872_v6, %v2869_v24  ;;  %v3160_v47 = vpack.c.b16 %v3134_v18, %v3133_v5  ;;  %v3471_v24 = vrot.slane %v2696_v39, 5  ;;  %v2884_v6 = vrot.slane %v2883_v9, 4 }
 0x128   : > { %v1897_v29 = vpop.f32.mrf.mxu1 }
 0x129   : > { %2267 = vmatmul.bf16.gmra.mxu2 %v2163_v3  ;;  %v2039_v3 = vsel %vm7865_vm13, %v2037_v35, %v2038_v34  ;;  %v2874_v20 = vrot.slane %v2873_v31, 4  ;;  %v2888_v35 = vrot.slane %v2886_v51, 5  ;;  %v2697_v34 = vld [vmem:[#allocation2 + $0x68] sm:$0x1]  ;;  %v3473_v60 = vrot.slane %v3471_v24, 4 }
 0x12a   : > { %v2138_v25 = vunpack.c.l.b16 %v2039_v3  ;;  %v3474_v36 = vrot.slane %v2697_v34, 5  ;;  %v2042_v3 = vrot.slane %v7141_v55, 5  ;;  %v1953_v51 = vld [vmem:[#allocation2 + $0x48] sm:$0xe]  ;;  %v6741_v55 = vld [vmem:[#allocation2 + $0x54] sm:$0xff]  ;;  %v2910_v44 = vshll.u32 %v2697_v34, 16 }
 0x12b   : > { %2586 = vmatmul.bf16.gmra.mxu3 %v6740_v48  ;;  %v3363_v48 = vld [vmem:[#allocation2 + $0x60] sm:$0xe]  ;;  %v2879_v31 = vsel %vm7397_vm9, %v2874_v20, %v2878_v13  ;;  %v6103_v13 = vrot.slane %v1953_v51, 9 }
 0x12c   : > { %v8087_v61 = vpop.f32.mrf.mxu0  ;;  %v2164_v5 = vpack.c.b16 %v2138_v25, %v2137_v4  ;;  %v6328_v12 = vrot.slane %v3363_v48, 9  ;;  %v2900_v4 = vshll.u32 %v2696_v39, 16  ;;  %v2904_v25 = vshrl.u32 %v2696_v39, 16 }
 0x12d   : > { %v2045_v48 = vrot.slane %v7142_v19, 5  ;;  %v2044_v20 = vrot.slane %v2042_v3, 4 }
 0x12e   : > { %v1934_v28 = vpop.f32.mrf.mxu3  ;;  %v2906_v45 = vrot.slane %v2904_v25, 4 }
 0x130   : > { %v1899_v9 = vpop.f32.mrf.mxu1 }
 0x131   : > { %3268 = vmatmul.bf16.gmra.mxu0 %v3160_v47  ;;  %3699 = vmatmul.bf16.gmra.mxu1 %v3587_v62  ;;  %v2889_v47 = vsel %vm7397_vm9, %v2884_v6, %v2888_v35  ;;  %v2894_v62 = vshll.u32 %v2695_v32, 16  ;;  %v2902_v32 = vrot.slane %v2900_v4, 5  ;;  %v3364_v4 = vld [vmem:[#allocation2 + $0x6c] sm:$0xe] }
 0x132   : > { %v3136_v6 = vunpack.c.l.b16 %v2889_v47 }
 0x133   : > { %v2896_v42 = vrot.slane %v2894_v62, 5  ;;  %v2907_v51 = vor.u32 %v2906_v45, %v2902_v32 }
 0x134   : > { %v1699_v18 = vpop.f32.mrf.mxu2 }
 0x135   : > { %v8089_v1 = vadd.f32 %v1932_v7, %v1699_v18  ;;  %v3472_v7 = vsel %vm7865_vm13, %v6328_v12, %v3471_v24  ;;  %v3475_v18 = vsel %vm7865_vm13, %v3473_v60, %v3474_v36  ;;  %v2043_v60 = vsel %vm7865_vm13, %v6103_v13, %v2042_v3  ;;  %v2699_v12 = vld [vmem:[#allocation2 + $0x70] sm:$0xf] }
 0x136   : > { %v3563_v19 = vunpack.c.l.b16 %v3472_v7  ;;  %v3564_v21 = vunpack.c.l.b16 %v3475_v18  ;;  %v2897_v47 = vor.u32 %v2896_v42, %v2893_v43  ;;  %v3478_v25 = vrot.slane %v2699_v12, 5 }
 0x137   : > { %9171 = vst [vmem:[#allocation18_spill] sm:$0xff] %v8089_v1  ;;  %v3135_v1 = vunpack.c.l.b16 %v2879_v31  ;;  %v2046_v31 = vsel %vm7865_vm13, %v2044_v20, %v2045_v48  ;;  %v2139_v7 = vunpack.c.l.b16 %v2043_v60  ;;  %v2912_v13 = vrot.slane %v2910_v44, 5  ;;  %v7143_v60 = vld [vmem:[#allocation2 + $0x58] sm:$0xf] }
 0x138   : > { %v2140_v18 = vunpack.c.l.b16 %v2046_v31  ;;  %v6329_v43 = vrot.slane %v3364_v4, 9  ;;  %v3480_v45 = vrot.slane %v3478_v25, 4  ;;  %v2924_v20 = vshll.u32 %v2699_v12, 16 }
 0x139   : > { %2272 = vmatmul.bf16.gmra.mxu2 %v2164_v5  ;;  %v3161_v5 = vpack.c.b16 %v3136_v6, %v3135_v1  ;;  %v2898_v1 = vrot.slane %v2897_v47, 4 }
 0x13a   : > { %v1664_v35 = vpop.f32.mrf.mxu0  ;;  %v2165_v48 = vpack.c.b16 %v2140_v18, %v2139_v7  ;;  %v3479_v44 = vsel %vm7865_vm13, %v6329_v43, %v3478_v25  ;;  %v6742_v7 = vld [vmem:[#allocation2 + $0x60] sm:$0xff]  ;;  %v6802_v25 = vld [vmem:[%s9141_s4 + $0x1d8] sm:$0xff] }
 0x13b   : > { %v8099_v39 = vadd.f32 %v1897_v29, %v1664_v35  ;;  %2591 = vmatmul.bf16.gmra.mxu3 %v6741_v55  ;;  %v3588_v29 = vpack.c.b16 %v3564_v21, %v3563_v19  ;;  %v2908_v55 = vrot.slane %v2907_v51, 4  ;;  %v2928_v35 = vshrl.u32 %v2699_v12, 16 }
 0x13c   : > { %v1701_v57 = vpop.f32.mrf.mxu2  ;;  %v1937_v36 = vpop.f32.mrf.mxu3  ;;  %v2903_v31 = vsel %vm7397_vm9, %v2898_v1, %v2902_v32  ;;  %v6794_v32 = vld [vmem:[%s9141_s4 + $0x198] sm:$0xff]  ;;  %4662 = vmatpush.bf16.msra.mxu3 %v6802_v25 }
 0x13d   : > { %v8101_v24 = vadd.f32 %v1934_v28, %v1701_v57  ;;  %v8107_v57 = vld [vmem:[#allocation2 + $0x74] sm:$0x1]  ;;  %v2698_v28 = vld [vmem:[#allocation2 + $0x6c] sm:$0xf]  ;;  %v2913_v47 = vsel %vm7397_vm9, %v2908_v55, %v2912_v13  ;;  %v3137_v18 = vunpack.c.l.b16 %v2903_v31  ;;  %v2930_v1 = vrot.slane %v2928_v35, 4  ;;  %3980 = vmatpush.bf16.msra.mxu2 %v6794_v32 }
 0x13e   : > { %v1902_v62 = vpop.f32.mrf.mxu1  ;;  %v3481_v21 = vrot.slane %v8107_v57, 5  ;;  %v2915_v42 = vshrl.u32 %v2698_v28, 16  ;;  %v2918_v34 = vshll.u32 %v2698_v28, 16  ;;  %v3138_v28 = vunpack.c.l.b16 %v2913_v47  ;;  %v2702_v47 = vld [vmem:[#allocation2 + $0x7c] sm:$0xf] }
 0x13f   : > { %9172 = vst [vmem:[#allocation19_spill] sm:$0xff] %v8101_v24  ;;  %v2934_v31 = vshll.u32 %v8107_v57, 16  ;;  %v3485_v57 = vrot.slane %v2702_v47, 5  ;;  %v3365_v25 = vld [vmem:[#allocation2 + $0x78] sm:$0xe] }
 0x140   : > { %v2917_v4 = vrot.slane %v2915_v42, 4  ;;  %v2920_v12 = vrot.slane %v2918_v34, 5  ;;  %v3565_v34 = vunpack.c.l.b16 %v3479_v44 }
 0x141   : > { %3273 = vmatmul.bf16.gmra.mxu0 %v3161_v5  ;;  %3704 = vmatmul.bf16.gmra.mxu1 %v3588_v29  ;;  %v2049_v5 = vrot.slane %v7143_v60, 5  ;;  %v3482_v29 = vsel %vm7865_vm13, %v3480_v45, %v3481_v21  ;;  %v7144_v45 = vld [vmem:[#allocation2 + $0x5c] sm:$0x1] }
 0x142   : > { %v1666_v3 = vpop.f32.mrf.mxu0  ;;  %v2052_v21 = vrot.slane %v7144_v45, 5  ;;  %v2921_v60 = vor.u32 %v2920_v12, %v2917_v4  ;;  %v3487_v45 = vrot.slane %v3485_v57, 4 }
 0x143   : > { %v8109_v6 = vadd.f32 %v1899_v9, %v1666_v3  ;;  %v1954_v9 = vld [vmem:[#allocation2 + $0x54] sm:$0xe]  ;;  %v8125_v3 = vrot.slane %v2924_v20, 5  ;;  %v2051_v43 = vrot.slane %v2049_v5, 4  ;;  %v3162_v20 = vpack.c.b16 %v3138_v28, %v3137_v18 }
 0x144   : > { %v1939_v19 = vpop.f32.mrf.mxu3  ;;  %v6104_v13 = vrot.slane %v1954_v9, 9 }
 0x145   : > { %v2931_v35 = vor.u32 %v2930_v1, %v8125_v3  ;;  %v8145_v1 = vld [vmem:[#allocation2 + $0x80] sm:$0x1] }
 0x146   : > { %v8116_v51 = vpop.f32.mrf.mxu1  ;;  %v2050_v9 = vsel %vm7865_vm13, %v6104_v13, %v2049_v5  ;;  %v2936_v5 = vrot.slane %v2934_v31, 5  ;;  %v2701_v13 = vld [vmem:[#allocation2 + $0x78] sm:$0xf] }
 0x147   : > { %v2141_v18 = vunpack.c.l.b16 %v2050_v9  ;;  %v2932_v32 = vrot.slane %v2931_v35, 4 }
 0x149   : > { %2277 = vmatmul.bf16.gmra.mxu2 %v2165_v48  ;;  %v3566_v48 = vunpack.c.l.b16 %v3482_v29  ;;  %v6810_v29 = vld [vmem:[%s9141_s4 + $0x218] sm:$0xff]  ;;  %v2937_v35 = vsel %vm7397_vm9, %v2932_v32, %v2936_v5  ;;  %v7146_v5 = vld [vmem:[#allocation2 + $0x68] sm:$0x1] }
 0x14a   : > { %v1704_v55 = vpop.f32.mrf.mxu2  ;;  %5088 = vmatpush.bf16.msra.mxu0 %v6810_v29  ;;  %v2952_v29 = vshrl.u32 %v2702_v47, 16 }
 0x14b   : > { %v8130_v42 = vadd.f32 %v1937_v36, %v1704_v55  ;;  %2596 = vmatmul.bf16.gmra.mxu3 %v6742_v7  ;;  %v2053_v36 = vsel %vm7865_vm13, %v2051_v43, %v2052_v21  ;;  %v3589_v44 = vpack.c.b16 %v3566_v48, %v3565_v34  ;;  %v2922_v7 = vrot.slane %v2921_v60, 4  ;;  %v1955_v48 = vld [vmem:[#allocation2 + $0x60] sm:$0xe]  ;;  %v7145_v60 = vld [vmem:[#allocation2 + $0x64] sm:$0xf] }
 0x14c   : > { %v2142_v28 = vunpack.c.l.b16 %v2053_v36  ;;  %v6330_v43 = vrot.slane %v3365_v25, 9  ;;  %v3488_v21 = vrot.slane %v8145_v1, 5  ;;  %v2056_v9 = vrot.slane %v7145_v60, 5 }
 0x14d   : > { %9173 = vst [vmem:[#allocation20_spill] sm:$0xff] %v8130_v42  ;;  %v2942_v36 = vshll.u32 %v2701_v13, 16  ;;  %v2954_v10 = vrot.slane %v2952_v29, 4  ;;  %v3366_v29 = vld [vmem:[#allocation2 + $0x84] sm:$0xe] }
 0x14e   : > { %v1669_v24 = vpop.f32.mrf.mxu0  ;;  %v1942_v4 = vpop.f32.mrf.mxu3  ;;  %v2166_v34 = vpack.c.b16 %v2142_v28, %v2141_v18  ;;  %v6105_v28 = vrot.slane %v1955_v48, 9  ;;  %v3486_v60 = vsel %vm7865_vm13, %v6330_v43, %v3485_v57  ;;  %v2058_v32 = vrot.slane %v2056_v9, 4 }
 0x14f   : > { %v8138_v55 = vadd.f32 %v1902_v62, %v1669_v24  ;;  %v8143_v12 = vpop.f32.mrf.mxu1  ;;  %v3567_v22 = vunpack.c.l.b16 %v3486_v60 }
 0x150   : > { %v2057_v57 = vsel %vm7865_vm13, %v6105_v28, %v2056_v9  ;;  %v8177_v28 = vld [vmem:[#allocation2 + $0x8c] sm:$0x1] }
 0x151   : > { %3278 = vmatmul.bf16.gmra.mxu0 %v3162_v20  ;;  %3709 = vmatmul.bf16.gmra.mxu1 %v3589_v44  ;;  %v2927_v20 = vsel %vm7397_vm9, %v2922_v7, %v8125_v3  ;;  %v2948_v44 = vshll.u32 %v2702_v47, 16  ;;  %v3489_v3 = vsel %vm7865_vm13, %v3487_v45, %v3488_v21  ;;  %v6743_v7 = vld [vmem:[#allocation2 + $0x6c] sm:$0xff]  ;;  %v3140_v47 = vunpack.c.l.b16 %v2937_v35  ;;  %v2705_v45 = vld [vmem:[#allocation2 + $0x88] sm:$0xf] }
 0x152   : > { %v1706_v24 = vpop.f32.mrf.mxu2  ;;  %v3568_v53 = vunpack.c.l.b16 %v3489_v3  ;;  %v3492_v60 = vrot.slane %v2705_v45, 5  ;;  %v2704_v3 = vld [vmem:[#allocation2 + $0x84] sm:$0xf]  ;;  %v2143_v9 = vunpack.c.l.b16 %v2057_v57  ;;  %v2976_v57 = vshrl.u32 %v2705_v45, 16 }
 0x153   : > { %v8147_v62 = vadd.f32 %v1939_v19, %v1706_v24  ;;  %v2939_v19 = vshrl.u32 %v2701_v13, 16  ;;  %v2059_v13 = vrot.slane %v7146_v5, 5 }
 0x155   : > { %9174 = vst [vmem:[#allocation21_spill] sm:$0xff] %v8147_v62  ;;  %v3139_v62 = vunpack.c.l.b16 %v2927_v20  ;;  %v2941_v42 = vrot.slane %v2939_v19, 4  ;;  %v2958_v19 = vshll.u32 %v8145_v1, 16 }
 0x156   : > { %v1671_v31 = vpop.f32.mrf.mxu0  ;;  %v1944_v24 = vpop.f32.mrf.mxu3 }
 0x157   : > { %v8156_v25 = vadd.f32 %v8116_v51, %v1671_v31  ;;  %v8158_v18 = vpop.f32.mrf.mxu1  ;;  %v2944_v51 = vrot.slane %v2942_v36, 5  ;;  %v2950_v31 = vrot.slane %v2948_v44, 5  ;;  %v3163_v43 = vpack.c.b16 %v3140_v47, %v3139_v62 }
 0x158   : > { %v3590_v36 = vpack.c.b16 %v3568_v53, %v3567_v22  ;;  %v6331_v22 = vrot.slane %v3366_v29, 9  ;;  %v2963_v53 = vshrl.u32 %v2704_v3, 16  ;;  %v7148_v29 = vld [vmem:[#allocation2 + $0x74] sm:$0x1] }
 0x159   : > { %2282 = vmatmul.bf16.gmra.mxu2 %v2166_v34  ;;  %v2060_v34 = vsel %vm7865_vm13, %v2058_v32, %v2059_v13  ;;  %v2945_v20 = vor.u32 %v2944_v51, %v2941_v42  ;;  %v2955_v35 = vor.u32 %v2954_v10, %v2950_v31  ;;  %v2960_v32 = vrot.slane %v2958_v19, 5  ;;  %v1956_v10 = vld [vmem:[#allocation2 + $0x6c] sm:$0xe]  ;;  %v7147_v42 = vld [vmem:[#allocation2 + $0x70] sm:$0xf] }
 0x15a   : > { %v2144_v62 = vunpack.c.l.b16 %v2060_v34  ;;  %v2063_v1 = vrot.slane %v7147_v42, 5  ;;  %v2966_v13 = vshll.u32 %v2704_v3, 16  ;;  %v3494_v51 = vrot.slane %v3492_v60, 4 }
 0x15b   : > { %2601 = vmatmul.bf16.gmra.mxu3 %v6743_v7  ;;  %v2946_v7 = vrot.slane %v2945_v20, 4  ;;  %v2956_v5 = vrot.slane %v2955_v35, 4  ;;  %v6106_v20 = vrot.slane %v1956_v10, 9  ;;  %v2066_v3 = vrot.slane %v7148_v29, 5  ;;  %v6793_v10 = vld [vmem:[%s9141_s4 + $0x190] sm:$0xff] }
 0x15c   : > { %v1709_v48 = vpop.f32.mrf.mxu2  ;;  %v2965_v42 = vrot.slane %v2963_v53, 4  ;;  %v2968_v54 = vrot.slane %v2966_v13, 5  ;;  %v6801_v53 = vld [vmem:[%s9141_s4 + $0x1d0] sm:$0xff]  ;;  %3981 = vmatpush.bf16.msra.mxu2 %v6793_v10 }
 0x15d   : > { %v8164_v63 = vadd.f32 %v1942_v4, %v1709_v48  ;;  %v3495_v48 = vrot.slane %v8177_v28, 5  ;;  %v2951_v35 = vsel %vm7397_vm9, %v2946_v7, %v2950_v31  ;;  %v2961_v19 = vsel %vm7397_vm9, %v2956_v5, %v2960_v32  ;;  %v6744_v7 = vld [vmem:[#allocation2 + $0x78] sm:$0xff]  ;;  %4663 = vmatpush.bf16.msra.mxu3 %v6801_v53 }
 0x15e   : > { %v8168_v21 = vpop.f32.mrf.mxu0  ;;  %v8173_v44 = vpop.f32.mrf.mxu3  ;;  %v2978_v31 = vrot.slane %v2976_v57, 4  ;;  %v3141_v5 = vunpack.c.l.b16 %v2951_v35  ;;  %v3142_v32 = vunpack.c.l.b16 %v2961_v19  ;;  %v2982_v57 = vshll.u32 %v8177_v28, 16  ;;  %v2708_v19 = vld [vmem:[#allocation2 + $0x94] sm:$0xf] }
 0x15f   : > { %9175 = vst [vmem:[#allocation22_spill] sm:$0xff] %v8164_v63  ;;  %v8175_v4 = vpop.f32.mrf.mxu1  ;;  %v2972_v63 = vshll.u32 %v2705_v45, 16 }
 0x160   : > { %v3164_v35 = vpack.c.b16 %v3142_v32, %v3141_v5  ;;  %v8219_v5 = vld [vmem:[#allocation2 + $0x98] sm:$0x1]  ;;  %v2707_v32 = vld [vmem:[#allocation2 + $0x90] sm:$0xf] }
 0x161   : > { %3283 = vmatmul.bf16.gmra.mxu0 %v3163_v43  ;;  %3714 = vmatmul.bf16.gmra.mxu1 %v3590_v36  ;;  %v2167_v43 = vpack.c.b16 %v2144_v62, %v2143_v9  ;;  %v2065_v36 = vrot.slane %v2063_v1, 4  ;;  %v3496_v9 = vsel %vm7865_vm13, %v3494_v51, %v3495_v48  ;;  %v8196_v62 = vrot.slane %v2972_v63, 5 }
 0x162   : > { %v3570_v13 = vunpack.c.l.b16 %v3496_v9 }
 0x163   : > { %v2067_v63 = vsel %vm7865_vm13, %v2065_v36, %v2066_v3  ;;  %v2979_v48 = vor.u32 %v2978_v31, %v8196_v62  ;;  %v3367_v31 = vld [vmem:[#allocation2 + $0x90] sm:$0xe] }
 0x164   : > { %v1711_v47 = vpop.f32.mrf.mxu2 }
 0x165   : > { %v8180_v34 = vadd.f32 %v1944_v24, %v1711_v47  ;;  %v3493_v24 = vsel %vm7865_vm13, %v6331_v22, %v3492_v60  ;;  %v2064_v60 = vsel %vm7865_vm13, %v6106_v20, %v2063_v1  ;;  %v2969_v47 = vor.u32 %v2968_v54, %v2965_v42  ;;  %v6809_v54 = vld [vmem:[%s9141_s4 + $0x210] sm:$0xff] }
 0x166   : > { %v8182_v15 = vpop.f32.mrf.mxu0  ;;  %v8188_v8 = vpop.f32.mrf.mxu3  ;;  %v3569_v22 = vunpack.c.l.b16 %v3493_v24  ;;  %v2145_v1 = vunpack.c.l.b16 %v2064_v60  ;;  %v2146_v20 = vunpack.c.l.b16 %v2067_v63  ;;  %v2980_v28 = vrot.slane %v2979_v48, 4  ;;  %5089 = vmatpush.bf16.msra.mxu0 %v6809_v54  ;;  %v1957_v60 = vld [vmem:[#allocation2 + $0x78] sm:$0xe]  ;;  %v7149_v63 = vld [vmem:[#allocation2 + $0x7c] sm:$0xf] }
 0x167   : > { %v8190_v45 = vpop.f32.mrf.mxu1  ;;  %v2970_v24 = vrot.slane %v2969_v47, 4  ;;  %v6332_v47 = vrot.slane %v3367_v31, 9 }
 0x168   : > { %v3591_v3 = vpack.c.b16 %v3570_v13, %v3569_v22  ;;  %v2168_v53 = vpack.c.b16 %v2146_v20, %v2145_v1  ;;  %v2070_v22 = vrot.slane %v7149_v63, 5  ;;  %v2996_v1 = vshll.u32 %v2708_v19, 16 }
 0x169   : > { %2287 = vmatmul.bf16.gmra.mxu2 %v2167_v43  ;;  %v2975_v13 = vsel %vm7397_vm9, %v2970_v24, %v8196_v62  ;;  %v3000_v20 = vshrl.u32 %v2708_v19, 16 }
 0x16a   : > { %v2072_v24 = vrot.slane %v2070_v22, 4  ;;  %v3143_v31 = vunpack.c.l.b16 %v2975_v13 }
 0x16b   : > { %2606 = vmatmul.bf16.gmra.mxu3 %v6744_v7  ;;  %v3499_v7 = vrot.slane %v2708_v19, 5 }
 0x16c   : > { %v2248_v51 = vpop.f32.mrf.mxu2 }
 0x16d   : > { %v2328_v43 = vadd.f32 %v2248_v51, %v7849_v14  ;;  %v2984_v14 = vrot.slane %v2982_v57, 5  ;;  %v3501_v57 = vrot.slane %v3499_v7, 4 }
 0x16e   : > { %v8211_v29 = vpop.f32.mrf.mxu0  ;;  %v2567_v42 = vpop.f32.mrf.mxu3 }
 0x16f   : > { %v2642_v36 = vadd.f32 %v8173_v44, %v2328_v43  ;;  %v8217_v9 = vpop.f32.mrf.mxu1  ;;  %v1870_v44 = vadd.f32 %v7861_v33, %v7908_v56  ;;  %v3502_v33 = vrot.slane %v8219_v5, 5  ;;  %v2987_v56 = vshrl.u32 %v2707_v32, 16 }
 0x171   : > { %3288 = vmatmul.bf16.gmra.mxu0 %v3164_v35  ;;  %v3324_v10 = vadd.f32 %v8168_v21, %v2642_v36  ;;  %3719 = vmatmul.bf16.gmra.mxu1 %v3591_v3  ;;  %v2985_v21 = vsel %vm7397_vm9, %v2980_v28, %v2984_v14  ;;  %v2990_v35 = vshll.u32 %v2707_v32, 16  ;;  %v6107_v3 = vrot.slane %v1957_v60, 9  ;;  %v6745_v60 = vld [vmem:[#allocation2 + $0x84] sm:$0xff] }
 0x172   : > { %v3144_v14 = vunpack.c.l.b16 %v2985_v21  ;;  %v3503_v19 = vsel %vm7865_vm13, %v3501_v57, %v3502_v33  ;;  %v2989_v32 = vrot.slane %v2987_v56, 4  ;;  %v2711_v57 = vld [vmem:[#allocation2 + $0xa0] sm:$0xf] }
 0x173   : > { %v8228_v51 = vadd.f32 %v8143_v12, %v3324_v10  ;;  %v7150_v12 = vld [vmem:[#allocation2 + $0x80] sm:$0x1]  ;;  %v2992_v63 = vrot.slane %v2990_v35, 5  ;;  %v3006_v35 = vshll.u32 %v8219_v5, 16  ;;  %v3368_v5 = vld [vmem:[#allocation2 + $0x9c] sm:$0xe] }
 0x174   : > { %v2250_v48 = vpop.f32.mrf.mxu2  ;;  %v2073_v54 = vrot.slane %v7150_v12, 5  ;;  %v3572_v12 = vunpack.c.l.b16 %v3503_v19  ;;  %v8265_v19 = vld [vmem:[#allocation2 + $0xa4] sm:$0x1] }
 0x175   : > { %9176 = vst [vmem:[#allocation23_spill] sm:$0xff] %v8228_v51  ;;  %v2329_v43 = vadd.f32 %v2250_v48, %v1870_v44  ;;  %v3500_v44 = vsel %vm7865_vm13, %v6332_v47, %v3499_v7  ;;  %v3002_v48 = vrot.slane %v3000_v20, 4  ;;  %v2071_v7 = vsel %vm7865_vm13, %v6107_v3, %v2070_v22 }
 0x176   : > { %v8233_v36 = vpop.f32.mrf.mxu0  ;;  %v8236_v10 = vpop.f32.mrf.mxu3  ;;  %v2074_v47 = vsel %vm7865_vm13, %v2072_v24, %v2073_v54  ;;  %v2993_v56 = vor.u32 %v2992_v63, %v2989_v32  ;;  %v1875_v22 = vadd.f32 %v7904_v59, %v7950_v58  ;;  %v2147_v24 = vunpack.c.l.b16 %v2071_v7  ;;  %v1958_v32 = vld [vmem:[#allocation2 + $0x84] sm:$0xe] }
 0x177   : > { %v2643_v62 = vadd.f32 %v8188_v8, %v2329_v43  ;;  %v8238_v28 = vpop.f32.mrf.mxu1  ;;  %v8244_v8 = vrot.slane %v2996_v1, 5  ;;  %v3571_v43 = vunpack.c.l.b16 %v3500_v44  ;;  %v2710_v44 = vld [vmem:[#allocation2 + $0x9c] sm:$0xf]  ;;  %v2148_v54 = vunpack.c.l.b16 %v2074_v47 }
 0x178   : > { %v3008_v63 = vrot.slane %v3006_v35, 5  ;;  %v3014_v59 = vshll.u32 %v2710_v44, 16  ;;  %v3020_v58 = vshll.u32 %v2711_v57, 16  ;;  %v3509_v7 = vrot.slane %v8265_v19, 5  ;;  %v7152_v35 = vld [vmem:[#allocation2 + $0x8c] sm:$0x1] }
 0x179   : > { %2292 = vmatmul.bf16.gmra.mxu2 %v2168_v53  ;;  %v3325_v13 = vadd.f32 %v8182_v15, %v2643_v62  ;;  %v3165_v53 = vpack.c.b16 %v3144_v14, %v3143_v31  ;;  %v3003_v15 = vor.u32 %v3002_v48, %v8244_v8  ;;  %v3592_v20 = vpack.c.b16 %v3572_v12, %v3571_v43  ;;  %v7151_v31 = vld [vmem:[#allocation2 + $0x88] sm:$0xf] }
 0x17a   : > { %v3506_v62 = vrot.slane %v2711_v57, 5  ;;  %v2077_v14 = vrot.slane %v7151_v31, 5  ;;  %v3024_v43 = vshrl.u32 %v2711_v57, 16  ;;  %v6333_v12 = vrot.slane %v3368_v5, 9 }
 0x17b   : > { %v8248_v51 = vadd.f32 %v8158_v18, %v3325_v13  ;;  %2611 = vmatmul.bf16.gmra.mxu3 %v6745_v60  ;;  %v3004_v60 = vrot.slane %v3003_v15, 4  ;;  %v3011_v13 = vshrl.u32 %v2710_v44, 16  ;;  %v6108_v31 = vrot.slane %v1958_v32, 9 }
 0x17c   : > { %v2253_v21 = vpop.f32.mrf.mxu2  ;;  %v3016_v44 = vrot.slane %v3014_v59, 5  ;;  %v3026_v5 = vrot.slane %v3024_v43, 4  ;;  %v8300_v59 = vld [vmem:[#allocation2 + $0xac] sm:$0xf] }
 0x17d   : > { %9177 = vst [vmem:[#allocation24_spill] sm:$0xff] %v8248_v51  ;;  %v2330_v33 = vadd.f32 %v2253_v21, %v7931_v46  ;;  %v3508_v21 = vrot.slane %v3506_v62, 4  ;;  %v2080_v51 = vrot.slane %v7152_v35, 5  ;;  %v3009_v57 = vsel %vm7397_vm9, %v3004_v60, %v3008_v63 }
 0x17e   : > { %v8257_v1 = vpop.f32.mrf.mxu0  ;;  %v8261_v3 = vpop.f32.mrf.mxu3  ;;  %v2078_v60 = vsel %vm7865_vm13, %v6108_v31, %v2077_v14  ;;  %v3513_v35 = vrot.slane %v8300_v59, 5 }
 0x17f   : > { %v2644_v18 = vadd.f32 %v2567_v42, %v2330_v33  ;;  %v8263_v46 = vpop.f32.mrf.mxu1  ;;  %v2994_v42 = vrot.slane %v2993_v56, 4  ;;  %v2079_v56 = vrot.slane %v2077_v14, 4 }
 0x181   : > { %3293 = vmatmul.bf16.gmra.mxu0 %v3165_v53  ;;  %v3326_v48 = vadd.f32 %v8211_v29, %v2644_v18  ;;  %3724 = vmatmul.bf16.gmra.mxu1 %v3592_v20  ;;  %v2169_v53 = vpack.c.b16 %v2148_v54, %v2147_v24  ;;  %v2999_v29 = vsel %vm7397_vm9, %v2994_v42, %v8244_v8  ;;  %v3013_v20 = vrot.slane %v3011_v13, 4  ;;  %v6746_v8 = vld [vmem:[#allocation2 + $0x90] sm:$0xff]  ;;  %v6800_v13 = vld [vmem:[%s9141_s4 + $0x1c8] sm:$0xff] }
 0x182   : > { %v3510_v54 = vsel %vm7865_vm13, %v3508_v21, %v3509_v7  ;;  %v2081_v63 = vsel %vm7865_vm13, %v2079_v56, %v2080_v51  ;;  %v7069_v51 = vld [vmem:[%s7251_s18 + $0x78] sm:$0xff]   ;;  %v3030_v7 = vshll.u32 %v8265_v19, 16  ;;  %4664 = vmatpush.bf16.msra.mxu3 %v6800_v13  ;;  %v7153_v19 = vld [vmem:[%s9138_s1] ss:$0 sm:$0xff] }
 0x183   : > { %v8270_v47 = vadd.f32 %v8175_v4, %v3326_v48  ;;  %v8279_v4 = vrot.slane %v3020_v58, 5  ;;  %v3146_v48 = vunpack.c.l.b16 %v3009_v57  ;;  %v3574_v14 = vunpack.c.l.b16 %v3510_v54  ;;  %v8311_v57 = vld [vmem:[#allocation2 + $0xb0] sm:$0x1] }
 0x184   : > { %v2255_v33 = vpop.f32.mrf.mxu2 }
 0x185   : > { %v2331_v15 = vadd.f32 %v2255_v33, %v1875_v22  ;;  %v3507_v22 = vsel %vm7865_vm13, %v6333_v12, %v3506_v62  ;;  %v6792_v62 = vld [vmem:[%s9141_s4 + $0x188] sm:$0xff]  ;;  %v3017_v12 = vor.u32 %v3016_v44, %v3013_v20  ;;  %v3027_v21 = vor.u32 %v3026_v5, %v8279_v4 }
 0x186   : > { %v8277_v18 = vpop.f32.mrf.mxu0  ;;  %v8286_v32 = vpop.f32.mrf.mxu3  ;;  %v3573_v43 = vunpack.c.l.b16 %v3507_v22  ;;  %3982 = vmatpush.bf16.msra.mxu2 %v6792_v62  ;;  %v6893_v33 = vunpack.c.l.bf16 %v7069_v51  ;;  %v3369_v20 = vld [vmem:[#allocation2 + $0xa8] sm:$0xe] }
 0x187   : > { %v2645_v24 = vadd.f32 %v8236_v10, %v2331_v15  ;;  %v8288_v42 = vpop.f32.mrf.mxu1  ;;  %v3145_v10 = vunpack.c.l.b16 %v2999_v29  ;;  %v2149_v15 = vunpack.c.l.b16 %v2078_v60  ;;  %v3018_v54 = vrot.slane %v3017_v12, 4 }
 0x188   : > { %v448_v44 = vmul.f32 %v7153_v19, %v6893_v33  ;;  %v3593_v22 = vpack.c.b16 %v3574_v14, %v3573_v43  ;;  %v3028_v60 = vrot.slane %v3027_v21, 4  ;;  %v3515_v43 = vrot.slane %v3513_v35, 4 }
 0x189   : > { %2297 = vmatmul.bf16.gmra.mxu2 %v2169_v53  ;;  %v3327_v58 = vadd.f32 %v8233_v36, %v2645_v24  ;;  %v6894_v53 = vunpack.c.h.bf16 %v7069_v51  ;;  %v3166_v29 = vpack.c.b16 %v3146_v48, %v3145_v10  ;;  %v7154_v10 = vld [vmem:[%s9139_s2] ss:$0 sm:$0xff]  ;;  %v3516_v14 = vrot.slane %v8311_v57, 5 }
 0x18a   : > { %v484_v48 = vadd.f32 %v7154_v10, %v448_v44 }
 0x18b   : > { %v8307_v31 = vadd.f32 %v8190_v45, %v3327_v58  ;;  %2616 = vmatmul.bf16.gmra.mxu3 %v6746_v8  ;;  %v449_v5 = vmul.f32 %v7153_v19, %v6894_v53  ;;  %v2150_v45 = vunpack.c.l.b16 %v2081_v63  ;;  %v6808_v8 = vld [vmem:[%s9141_s4 + $0x208] sm:$0xff]  ;;  %v6334_v63 = vrot.slane %v3369_v20, 9  ;;  %v1959_v19 = vld [vmem:[#allocation2 + $0x90] sm:$0xe] }
 0x18c   : > { %v2258_v56 = vpop.f32.mrf.mxu2  ;;  %5090 = vmatpush.bf16.msra.mxu0 %v6808_v8  ;;  %v2713_v53 = vld [vmem:[#allocation2 + $0xa8] sm:$0xf]  ;;  %v3023_v20 = vsel %vm7397_vm9, %v3018_v54, %v8279_v4  ;;  %v6109_v4 = vrot.slane %v1959_v19, 9 }
 0x18d   : > { %9178 = vst [vmem:[#allocation25_spill] sm:$0xff] %v8307_v31  ;;  %v2332_v36 = vadd.f32 %v2258_v56, %v7971_v41  ;;  %v3032_v41 = vrot.slane %v3030_v7, 5  ;;  %v485_v13 = vadd.f32 %v7154_v10, %v449_v5  ;;  %v7155_v7 = vld [vmem:[#allocation2 + $0x94] sm:$0xf]  ;;  %v1880_v56 = vadd.f32 %v7942_v2, %v7986_v17  ;;  %v7156_v10 = vld [vmem:[#allocation2 + $0x98] sm:$0x1] }
 0x18e   : > { %v8316_v24 = vpop.f32.mrf.mxu0  ;;  %v8325_v58 = vpop.f32.mrf.mxu3  ;;  %v2084_v33 = vrot.slane %v7155_v7, 5  ;;  %v3517_v5 = vsel %vm7865_vm13, %v3515_v43, %v3516_v14  ;;  %v3035_v17 = vshrl.u32 %v2713_v53, 16 }
 0x18f   : > { %v2646_v62 = vadd.f32 %v8261_v3, %v2332_v36  ;;  %v8327_v51 = vpop.f32.mrf.mxu1  ;;  %v516_v3 = vmax.f32 %v484_v48, 0.0  ;;  %v517_v12 = vmax.f32 %v485_v13, 0.0  ;;  %v2170_v36 = vpack.c.b16 %v2150_v45, %v2149_v15 }
 0x190   : > { %v3038_v15 = vshll.u32 %v2713_v53, 16  ;;  %v3044_v45 = vshll.u32 %v8300_v59, 16  ;;  %v2086_v54 = vrot.slane %v2084_v33, 4  ;;  %v3147_v48 = vunpack.c.l.b16 %v3023_v20  ;;  %v6747_v53 = vld [vmem:[#allocation2 + $0x9c] sm:$0xff] }
 0x191   : > { %3298 = vmatmul.bf16.gmra.mxu0 %v3166_v29  ;;  %v3328_v21 = vadd.f32 %v8257_v1, %v2646_v62  ;;  %3729 = vmatmul.bf16.gmra.mxu1 %v3593_v22  ;;  %v3033_v29 = vsel %vm7397_vm9, %v3028_v60, %v3032_v41  ;;  %v3514_v1 = vsel %vm7865_vm13, %v6334_v63, %v3513_v35  ;;  %v3048_v60 = vshrl.u32 %v8300_v59, 16 }
 0x192   : > { %v602_v62 = vpack.c.bf16 %v516_v3, %v516_v3  ;;  %v603_v8 = vpack.c.bf16 %v517_v12, %v517_v12  ;;  %v2087_v35 = vrot.slane %v7156_v10, 5  ;;  %v3148_v13 = vunpack.c.l.b16 %v3033_v29 }
 0x193   : > { %v3575_v14 = vunpack.c.l.b16 %v3514_v1  ;;  %v3576_v3 = vunpack.c.l.b16 %v3517_v5  ;;  %v3040_v19 = vrot.slane %v3038_v15, 5  ;;  %v2085_v29 = vsel %vm7865_vm13, %v6109_v4, %v2084_v33  ;;  %v8357_v5 = vld [vmem:[#allocation2 + $0xb8] sm:$0xf] }
 0x194   : > { %v2260_v44 = vpop.f32.mrf.mxu2  ;;  %v863_v12 = vshrl.u32 %v602_v62, 16  ;;  %v871_v7 = vshrl.u32 %v603_v8, 16  ;;  %v866_v59 = vshll.u32 %v602_v62, 16  ;;  %v874_v20 = vshll.u32 %v603_v8, 16  ;;  %v1042_v8 = vld [vmem:[#allocation2 + $0xc8] sm:$0x1] }
 0x195   : > { %v2333_v2 = vadd.f32 %v2260_v44, %v1880_v56  ;;  %v3037_v56 = vrot.slane %v3035_v17, 4  ;;  %v8351_v44 = vrot.slane %v3044_v45, 5  ;;  %v2088_v1 = vsel %vm7865_vm13, %v2086_v54, %v2087_v35 }
 0x196   : > { %v8343_v22 = vpop.f32.mrf.mxu0  ;;  %v8347_v63 = vpop.f32.mrf.mxu3  ;;  %v873_v10 = vrot.slane %v871_v7, 7  ;;  %v3167_v45 = vpack.c.b16 %v3148_v13, %v3147_v48  ;;  %v1038_v7 = vld [vmem:[#allocation2 + $0xc0] sm:$0xf]  ;;  %v3594_v33 = vpack.c.b16 %v3576_v3, %v3575_v14  ;;  %v2152_v11 = vunpack.c.l.b16 %v2088_v1 }
 0x197   : > { %v2647_v41 = vadd.f32 %v8286_v32, %v2333_v2  ;;  %v8349_v43 = vpop.f32.mrf.mxu1  ;;  %v3050_v32 = vrot.slane %v3048_v60, 4  ;;  %v865_v2 = vrot.slane %v863_v12, 7 }
 0x198   : > { %v876_v12 = vor.u32 %v874_v20, %v873_v10  ;;  %v878_v4 = vrot.slane %v873_v10, 4  ;;  %v1960_v10 = vld [vmem:[#allocation2 + $0x9c] sm:$0xe] }
 0x199   : > { %2302 = vmatmul.bf16.gmra.mxu2 %v2170_v36  ;;  %v8360_v36 = vadd.f32 %v8217_v9, %v3328_v21  ;;  %v3329_v17 = vadd.f32 %v8277_v18, %v2647_v41  ;;  %v868_v62 = vor.u32 %v866_v59, %v865_v2  ;;  %v869_v60 = vrot.slane %v865_v2, 4 }
 0x19a   : > { %v3041_v9 = vor.u32 %v3040_v19, %v3037_v56  ;;  %v3051_v18 = vor.u32 %v3050_v32, %v8351_v44  ;;  %v3054_v21 = vshll.u32 %v8311_v57, 16  ;;  %v3520_v41 = vrot.slane %v8357_v5, 5  ;;  %v3370_v57 = vld [vmem:[#allocation2 + $0xb4] sm:$0xe] }
 0x19b   : > { %2621 = vmatmul.bf16.gmra.mxu3 %v6747_v53  ;;  %v8365_v54 = vadd.f32 %v8238_v28, %v3329_v17  ;;  %v1039_v13 = vsel %vm7373_vm6, %v868_v62, %v1038_v7  ;;  %v1043_v28 = vsel %vm7429_vm10, %v878_v4, %v1042_v8  ;;  %v8383_v53 = vld [vmem:[#allocation2 + $0xbc] sm:$0x1]  ;;  %v2716_v56 = vld [vmem:[#allocation2 + $0xb4] sm:$0xf]  ;;  %v2091_v19 = vrot.slane %v7157_v52, 5 }
 0x19c   : > { %v2263_v15 = vpop.f32.mrf.mxu2  ;;  %1040 = vst [vmem:[#allocation2 + $0xc0] sm:$0xf] %v1039_v13  ;;  %v3042_v59 = vrot.slane %v3041_v9, 4  ;;  %v3052_v32 = vrot.slane %v3051_v18, 4  ;;  %v3056_v2 = vrot.slane %v3054_v21, 5  ;;  %v6335_v20 = vrot.slane %v3370_v57, 9 }
 0x19d   : > { %v2334_v31 = vadd.f32 %v2263_v15, %v7997_v0  ;;  %v877_v0 = vsel %vm7363_vm4, %v869_v60, %v876_v12  ;;  %1044 = vst [vmem:[#allocation2 + $0xc8] sm:$0x1] %v1043_v28  ;;  %v3522_v17 = vrot.slane %v3520_v41, 4  ;;  %v3523_v15 = vrot.slane %v8383_v53, 5  ;;  %v6748_v28 = vld [vmem:[#allocation2 + $0xa8] sm:$0xff] }
 0x19e   : > { %v8367_v35 = vpop.f32.mrf.mxu0  ;;  %v8379_v14 = vpop.f32.mrf.mxu3  ;;  %1041 = vst [vmem:[#allocation2 + $0xc4] sm:$0xf] %v877_v0  ;;  %v3062_v1 = vshll.u32 %v2716_v56, 16  ;;  %v6110_v7 = vrot.slane %v1960_v10, 9  ;;  %v3047_v8 = vsel %vm7397_vm9, %v3042_v59, %v8351_v44  ;;  %v2093_v4 = vrot.slane %v2091_v19, 4 }
 0x19f   : > { %v2648_v48 = vadd.f32 %v8325_v58, %v2334_v31  ;;  %v8381_v3 = vpop.f32.mrf.mxu1  ;;  %v1885_v31 = vadd.f32 %v7988_v27, %v8012_v23  ;;  %v2151_v58 = vunpack.c.l.b16 %v2085_v29  ;;  %v3059_v29 = vshrl.u32 %v2716_v56, 16  ;;  %v7158_v57 = vld [vmem:[#allocation2 + $0xa4] sm:$0x1] }
 0x1a0   : > { %v3521_v9 = vsel %vm7865_vm13, %v6335_v20, %v3520_v41  ;;  %v3064_v0 = vrot.slane %v3062_v1, 5  ;;  %v6791_v41 = vld [vmem:[%s9141_s4 + $0x180] sm:$0xff]  ;;  %v2092_v10 = vsel %vm7865_vm13, %v6110_v7, %v2091_v19 }
 0x1a1   : > { %3303 = vmatmul.bf16.gmra.mxu0 %v3167_v45  ;;  %v3330_v16 = vadd.f32 %v8316_v24, %v2648_v48  ;;  %3734 = vmatmul.bf16.gmra.mxu1 %v3594_v33  ;;  %v3068_v24 = vshll.u32 %v8357_v5, 16  ;;  %v3072_v45 = vshrl.u32 %v8357_v5, 16  ;;  %v2171_v60 = vpack.c.b16 %v2152_v11, %v2151_v58  ;;  %v6799_v11 = vld [vmem:[%s9141_s4 + $0x1c0] sm:$0xff] }
 0x1a2   : > { %v3524_v5 = vsel %vm7865_vm13, %v3522_v17, %v3523_v15  ;;  %v3061_v48 = vrot.slane %v3059_v29, 4  ;;  %v3577_v52 = vunpack.c.l.b16 %v3521_v9  ;;  %3983 = vmatpush.bf16.msra.mxu2 %v6791_v41  ;;  %4665 = vmatpush.bf16.msra.mxu3 %v6799_v11  ;;  %v3078_v15 = vshll.u32 %v8383_v53, 16 }
 0x1a3   : > { %v8390_v27 = vadd.f32 %v8263_v46, %v3330_v16  ;;  %v3057_v46 = vsel %vm7397_vm9, %v3052_v32, %v3056_v2  ;;  %v8410_v13 = vrot.slane %v3068_v24, 5  ;;  %v3074_v44 = vrot.slane %v3072_v45, 4  ;;  %v3371_v45 = vld [vmem:[#allocation2 + $0xc0] sm:$0xe] }
 0x1a4   : > { %v2265_v23 = vpop.f32.mrf.mxu2  ;;  %v3150_v58 = vunpack.c.l.b16 %v3057_v46  ;;  %v3578_v59 = vunpack.c.l.b16 %v3524_v5  ;;  %v3065_v20 = vor.u32 %v3064_v0, %v3061_v48  ;;  %v8434_v24 = vld [vmem:[#allocation2 + $0xc8] sm:$0x1]  ;;  %v6336_v9 = vrot.slane %v3371_v45, 9  ;;  %v6749_v45 = vld [vmem:[#allocation2 + $0xb4] sm:$0xff] }
 0x1a5   : > { %v2335_v62 = vadd.f32 %v2265_v23, %v1885_v31  ;;  %v3149_v31 = vunpack.c.l.b16 %v3047_v8  ;;  %v8419_v16 = vld [vmem:[#allocation2 + $0xc4] sm:$0xf]  ;;  %v3075_v17 = vor.u32 %v3074_v44, %v8410_v13  ;;  %v3530_v48 = vrot.slane %v8434_v24, 5  ;;  %v2719_v44 = vld [vmem:[#allocation2 + $0xc0] sm:$0xf] }
 0x1a6   : > { %v8394_v12 = vpop.f32.mrf.mxu0  ;;  %v8406_v18 = vpop.f32.mrf.mxu3  ;;  %v3527_v1 = vrot.slane %v8419_v16, 5  ;;  %v3066_v46 = vrot.slane %v3065_v20, 4  ;;  %v1890_v0 = vadd.f32 %v8032_v49, %v8046_v26 }
 0x1a7   : > { %v2649_v33 = vadd.f32 %v8347_v63, %v2335_v62  ;;  %v8408_v21 = vpop.f32.mrf.mxu1  ;;  %v2094_v63 = vrot.slane %v7158_v57, 5  ;;  %v3168_v29 = vpack.c.b16 %v3150_v58, %v3149_v31  ;;  %v2153_v62 = vunpack.c.l.b16 %v2092_v10  ;;  %v7159_v31 = vld [vmem:[#allocation2 + $0xac] sm:$0xf] }
 0x1a8   : > { %v3529_v5 = vrot.slane %v3527_v1, 4  ;;  %v2098_v58 = vrot.slane %v7159_v31, 5  ;;  %v3071_v41 = vsel %vm7397_vm9, %v3066_v46, %v8410_v13  ;;  %v3528_v49 = vsel %vm7865_vm13, %v6336_v9, %v3527_v1 }
 0x1a9   : > { %2307 = vmatmul.bf16.gmra.mxu2 %v2171_v60  ;;  %v3331_v56 = vadd.f32 %v8343_v22, %v2649_v33  ;;  %v2095_v23 = vsel %vm7865_vm13, %v2093_v4, %v2094_v63  ;;  %v3595_v60 = vpack.c.b16 %v3578_v59, %v3577_v52  ;;  %v3076_v33 = vrot.slane %v3075_v17, 4 }
 0x1aa   : > { %v2154_v7 = vunpack.c.l.b16 %v2095_v23  ;;  %v3080_v4 = vrot.slane %v3078_v15, 5  ;;  %v3531_v26 = vsel %vm7865_vm13, %v3529_v5, %v3530_v48  ;;  %v3083_v52 = vshrl.u32 %v2719_v44, 16  ;;  %v7160_v23 = vld [vmem:[#allocation2 + $0xb0] sm:$0x1]  ;;  %v8475_v48 = vld [vmem:[#allocation2 + $0x1c] sm:$0xf] }
 0x1ab   : > { %v8422_v32 = vadd.f32 %v8288_v42, %v3331_v56  ;;  %2626 = vmatmul.bf16.gmra.mxu3 %v6748_v28  ;;  %v1961_v56 = vld [vmem:[#allocation2 + $0xa8] sm:$0xe]  ;;  %v3086_v59 = vshll.u32 %v2719_v44, 16  ;;  %v3096_v10 = vshrl.u32 %v8419_v16, 16  ;;  %v3151_v1 = vunpack.c.l.b16 %v3071_v41 }
 0x1ac   : > { %v2268_v2 = vpop.f32.mrf.mxu2  ;;  %v2172_v63 = vpack.c.b16 %v2154_v7, %v2153_v62  ;;  %v6111_v15 = vrot.slane %v1961_v56, 9  ;;  %v3579_v62 = vunpack.c.l.b16 %v3528_v49  ;;  %v3085_v7 = vrot.slane %v3083_v52, 4 }
 0x1ad   : > { %v2336_v22 = vadd.f32 %v2268_v2, %v8034_v37  ;;  %v6807_v37 = vld [vmem:[%s9141_s4 + $0x200] sm:$0xff]  ;;  %v3092_v2 = vshll.u32 %v8419_v16, 16  ;;  %v3088_v16 = vrot.slane %v3086_v59, 5  ;;  %v4155_v56 = vshll.u32 %v8475_v48, 16 }
 0x1ae   : > { %v8432_v42 = vpop.f32.mrf.mxu0  ;;  %v8440_v53 = vpop.f32.mrf.mxu3  ;;  %5091 = vmatpush.bf16.msra.mxu0 %v6807_v37  ;;  %v2099_v5 = vsel %vm7865_vm13, %v6111_v15, %v2098_v58 }
 0x1af   : > { %v2650_v19 = vadd.f32 %v8379_v14, %v2336_v22  ;;  %v8442_v8 = vpop.f32.mrf.mxu1  ;;  %v2100_v22 = vrot.slane %v2098_v58, 4  ;;  %v3094_v46 = vrot.slane %v3092_v2, 5  ;;  %v2155_v52 = vunpack.c.l.b16 %v2099_v5  ;;  %v7161_v2 = vld [vmem:[#allocation2 + $0xb8] sm:$0xf] }
 0x1b1   : > { %3308 = vmatmul.bf16.gmra.mxu0 %v3168_v29  ;;  %v3332_v14 = vadd.f32 %v8367_v35, %v2650_v19  ;;  %3739 = vmatmul.bf16.gmra.mxu1 %v3595_v60  ;;  %v3081_v35 = vsel %vm7397_vm9, %v3076_v33, %v3080_v4  ;;  %v2101_v29 = vrot.slane %v7160_v23, 5  ;;  %v3580_v60 = vunpack.c.l.b16 %v3531_v26  ;;  %v4097_v33 = vld [vmem:[#allocation2 + $0x18] sm:$0xf] }
 0x1b2   : > { %v3152_v19 = vunpack.c.l.b16 %v3081_v35  ;;  %v4146_v41 = vshrl.u32 %v4097_v33, 16  ;;  %v4149_v58 = vshll.u32 %v4097_v33, 16  ;;  %v1895_v35 = vadd.f32 %v8058_v50, %v8087_v61 }
 0x1b3   : > { %v8449_v28 = vadd.f32 %v8327_v51, %v3332_v14  ;;  %v3596_v44 = vpack.c.b16 %v3580_v60, %v3579_v62 }
 0x1b4   : > { %v2270_v57 = vpop.f32.mrf.mxu2  ;;  %v4148_v23 = vrot.slane %v4146_v41, 4 }
 0x1b5   : > { %v2337_v11 = vadd.f32 %v2270_v57, %v1890_v0  ;;  %v3169_v0 = vpack.c.b16 %v3152_v19, %v3151_v1  ;;  %v4157_v1 = vrot.slane %v4155_v56, 5  ;;  %v8494_v19 = vld [vmem:[#allocation2 + $0x20] sm:$0x1] }
 0x1b6   : > { %v8460_v51 = vpop.f32.mrf.mxu0  ;;  %v8465_v20 = vpop.f32.mrf.mxu3 }
 0x1b7   : > { %v2651_v13 = vadd.f32 %v8406_v18, %v2337_v11  ;;  %v8467_v17 = vpop.f32.mrf.mxu1  ;;  %v3098_v18 = vrot.slane %v3096_v10, 4  ;;  %v2105_v10 = vrot.slane %v7161_v2, 5  ;;  %v4779_v2 = vld [vmem:[#allocation2 + $0x18] sm:$0xe] }
 0x1b9   : > { %2312 = vmatmul.bf16.gmra.mxu2 %v2172_v63  ;;  %v3333_v37 = vadd.f32 %v8394_v12, %v2651_v13  ;;  %v2102_v12 = vsel %vm7865_vm13, %v2100_v22, %v2101_v29  ;;  %v3089_v63 = vor.u32 %v3088_v16, %v3085_v7  ;;  %v3099_v31 = vor.u32 %v3098_v18, %v3094_v46  ;;  %v1962_v13 = vld [vmem:[#allocation2 + $0xb4] sm:$0xe]  ;;  %v7162_v16 = vld [vmem:[#allocation2 + $0xbc] sm:$0x1] }
 0x1ba   : > { %v2156_v59 = vunpack.c.l.b16 %v2102_v12  ;;  %v4151_v29 = vrot.slane %v4149_v58, 5  ;;  %v2108_v18 = vrot.slane %v7162_v16, 5  ;;  %v4165_v12 = vshll.u32 %v8494_v19, 16 }
 0x1bb   : > { %v8471_v4 = vadd.f32 %v8349_v43, %v3333_v37  ;;  %2631 = vmatmul.bf16.gmra.mxu3 %v6749_v45  ;;  %v3102_v43 = vshll.u32 %v8434_v24, 16  ;;  %v3100_v15 = vrot.slane %v3099_v31, 4  ;;  %v6112_v37 = vrot.slane %v1962_v13, 9 }
 0x1bc   : > { %v2273_v9 = vpop.f32.mrf.mxu2  ;;  %v2173_v60 = vpack.c.b16 %v2156_v59, %v2155_v52  ;;  %v4152_v5 = vor.u32 %v4151_v29, %v4148_v23  ;;  %v4167_v56 = vrot.slane %v4165_v12, 5 }
 0x1bd   : > { %v2338_v14 = vadd.f32 %v2273_v9, %v8061_v40  ;;  %v4159_v40 = vshrl.u32 %v8475_v48, 16  ;;  %v3104_v22 = vrot.slane %v3102_v43, 5 }
 0x1be   : > { %v8480_v57 = vpop.f32.mrf.mxu0  ;;  %v2592_v49 = vpop.f32.mrf.mxu3 }
 0x1bf   : > { %v2652_v11 = vadd.f32 %v8440_v53, %v2338_v14  ;;  %v8488_v26 = vpop.f32.mrf.mxu1  ;;  %v3090_v53 = vrot.slane %v3089_v63, 4  ;;  %v4161_v45 = vrot.slane %v4159_v40, 4  ;;  %v3105_v9 = vsel %vm7397_vm9, %v3100_v15, %v3104_v22  ;;  %v6750_v63 = vld [vmem:[#allocation2 + $0xc0] sm:$0xff] }
 0x1c0   : > { %v3154_v43 = vunpack.c.l.b16 %v3105_v9  ;;  %v6815_v22 = vld [vmem:[%s8518_s26] sm:$0xff] }
 0x1c1   : > { %3313 = vmatmul.bf16.gmra.mxu0 %v3169_v0  ;;  %v3334_v24 = vadd.f32 %v8432_v42, %v2652_v11  ;;  %3744 = vmatmul.bf16.gmra.mxu1 %v3596_v44  ;;  %v2107_v42 = vrot.slane %v2105_v10, 4  ;;  %v3095_v33 = vsel %vm7397_vm9, %v3090_v53, %v3094_v46  ;;  %v4162_v14 = vor.u32 %v4161_v45, %v4157_v1  ;;  %v8524_v53 = vld [vmem:[#allocation2 + $0x28] sm:$0xf] }
 0x1c2   : > { %v3153_v31 = vunpack.c.l.b16 %v3095_v33  ;;  %v2106_v46 = vsel %vm7865_vm13, %v6112_v37, %v2105_v10  ;;  %v4153_v11 = vrot.slane %v4152_v5, 4  ;;  %v4100_v10 = vld [vmem:[#allocation2 + $0x24] sm:$0xf]  ;;  %v6545_v45 = vrot.slane %v4779_v2, 9 }
 0x1c3   : > { %v8492_v50 = vadd.f32 %v8381_v3, %v3334_v24  ;;  %v4163_v58 = vrot.slane %v4162_v14, 4  ;;  %v2157_v13 = vunpack.c.l.b16 %v2106_v46  ;;  %v4173_v37 = vshll.u32 %v4100_v10, 16 }
 0x1c4   : > { %v2275_v61 = vpop.f32.mrf.mxu2  ;;  %v3170_v59 = vpack.c.b16 %v3154_v43, %v3153_v31  ;;  %v4158_v23 = vsel %vm7397_vm9, %v4153_v11, %v4157_v1 }
 0x1c5   : > { %v2339_v62 = vadd.f32 %v2275_v61, %v1895_v35 }
 0x1c6   : > { %v8496_v7 = vpop.f32.mrf.mxu0  ;;  %v2594_v0 = vpop.f32.mrf.mxu3 }
 0x1c7   : > { %v2653_v3 = vadd.f32 %v8465_v20, %v2339_v62  ;;  %v8504_v44 = vpop.f32.mrf.mxu1  ;;  %v2109_v20 = vsel %vm7865_vm13, %v2107_v42, %v2108_v18  ;;  %v4848_v62 = vrot.slane %v8494_v19, 5  ;;  %v4183_v42 = vshrl.u32 %v8524_v53, 16 }
 0x1c8   : > { %v4546_v18 = vunpack.c.l.b16 %v4158_v23 }
 0x1c9   : > { %2317 = vmatmul.bf16.gmra.mxu2 %v2173_v60  ;;  %v3335_v41 = vadd.f32 %v8460_v51, %v2653_v3  ;;  %v4845_v51 = vrot.slane %v8475_v48, 5  ;;  %v4168_v48 = vsel %vm7397_vm9, %v4163_v58, %v4167_v56  ;;  %v4170_v60 = vshrl.u32 %v4100_v10, 16 }
 0x1ca   : > { %v4547_v3 = vunpack.c.l.b16 %v4168_v48  ;;  %v4185_v31 = vrot.slane %v4183_v42, 4 }
 0x1cb   : > { %v8512_v40 = vadd.f32 %v8408_v21, %v3335_v41  ;;  %2636 = vmatmul.bf16.gmra.mxu3 %v6750_v63  ;;  %v2158_v21 = vunpack.c.l.b16 %v2109_v20  ;;  %v4847_v61 = vrot.slane %v4845_v51, 4  ;;  %v4846_v19 = vsel %vm7865_vm13, %v6545_v45, %v4845_v51  ;;  %v4102_v41 = vld [vmem:[#allocation2 + $0x2c] sm:$0x1] }
 0x1cc   : > { %v2278_v35 = vpop.f32.mrf.mxu2  ;;  %v4172_v14 = vrot.slane %v4170_v60, 4  ;;  %v4175_v63 = vrot.slane %v4173_v37, 5  ;;  %v4578_v11 = vpack.c.b16 %v4547_v3, %v4546_v18  ;;  %v4972_v58 = vunpack.c.l.b16 %v4846_v19  ;;  %v4780_v60 = vld [vmem:[#allocation2 + $0x24] sm:$0xe] }
 0x1cd   : > { %v2340_v52 = vadd.f32 %v2278_v35, %v8099_v39  ;;  %v2174_v1 = vpack.c.b16 %v2158_v21, %v2157_v13  ;;  %v4849_v5 = vsel %vm7865_vm13, %v4847_v61, %v4848_v62  ;;  %v4852_v45 = vrot.slane %v8524_v53, 5  ;;  %v6816_v62 = vld [vmem:[%s8518_s26 + $0x8] sm:$0xff] }
 0x1ce   : > { %v8522_v24 = vpop.f32.mrf.mxu0  ;;  %v2597_v39 = vpop.f32.mrf.mxu3  ;;  %v4973_v56 = vunpack.c.l.b16 %v4849_v5  ;;  %v4176_v35 = vor.u32 %v4175_v63, %v4172_v14 }
 0x1cf   : > { %v2654_v15 = vadd.f32 %v2592_v49, %v2340_v52  ;;  %v8531_v29 = vpop.f32.mrf.mxu1  ;;  %v4179_v49 = vshll.u32 %v8524_v53, 16  ;;  %v4189_v52 = vshll.u32 %v4102_v41, 16  ;;  %v4854_v18 = vrot.slane %v4852_v45, 4 }
 0x1d0   : > { %v5004_v13 = vpack.c.b16 %v4973_v56, %v4972_v58 }
 0x1d1   : > { %3318 = vmatmul.bf16.gmra.mxu0 %v3170_v59  ;;  %v3336_v16 = vadd.f32 %v8480_v57, %v2654_v15  ;;  %6673 = vmatmul.msk.bf16.vlgmr.msra.gmra.mxu1 %vm5318_vm14, %v6815_v22  ;;  %v4181_v57 = vrot.slane %v4179_v49, 5  ;;  %v4103_v59 = vld [vmem:[#allocation2 + $0x30] sm:$0xf]  ;;  %v4177_v15 = vrot.slane %v4176_v35, 4  ;;  %v4191_v23 = vrot.slane %v4189_v52, 5 }
 0x1d2   : > { %v4194_v61 = vshrl.u32 %v4103_v59, 16 }
 0x1d3   : > { %v8539_v33 = vadd.f32 %v8442_v8, %v3336_v16  ;;  %v4186_v51 = vor.u32 %v4185_v31, %v4181_v57  ;;  %v4105_v31 = vld [vmem:[#allocation2 + $0x38] sm:$0x1] }
 0x1d4   : > { %v2280_v9 = vpop.f32.mrf.mxu2  ;;  %v4196_v3 = vrot.slane %v4194_v61, 4 }
 0x1d5   : > { %v2341_v12 = vadd.f32 %v2280_v9, %v8109_v6  ;;  %v4187_v22 = vrot.slane %v4186_v51, 4  ;;  %v4855_v9 = vrot.slane %v4102_v41, 5 }
 0x1d6   : > { %v8546_v43 = vpop.f32.mrf.mxu0  ;;  %v2599_v8 = vpop.f32.mrf.mxu3 }
 0x1d7   : > { %v2655_v46 = vadd.f32 %v2594_v0, %v2341_v12  ;;  %v8548_v20 = vpop.f32.mrf.mxu1  ;;  %v8554_v0 = vld [vmem:[#allocation2 + $0x34] sm:$0xf]  ;;  %v4856_v56 = vsel %vm7865_vm13, %v4854_v18, %v4855_v9 }
 0x1d8   : > { %v4203_v37 = vshll.u32 %v8554_v0, 16  ;;  %v4207_v49 = vshrl.u32 %v8554_v0, 16  ;;  %v4859_v61 = vrot.slane %v8554_v0, 5 }
 0x1d9   : > { %2322 = vmatmul.bf16.gmra.mxu2 %v2174_v1  ;;  %v3337_v6 = vadd.f32 %v8496_v7, %v2655_v46  ;;  %v4192_v1 = vsel %vm7397_vm9, %v4187_v22, %v4191_v23  ;;  %v6775_v46 = vld [vmem:[#allocation2 + $0x18] sm:$0xff] }
 0x1da   : > { %v4205_v5 = vrot.slane %v4203_v37, 5  ;;  %v4209_v14 = vrot.slane %v4207_v49, 4  ;;  %v4549_v58 = vunpack.c.l.b16 %v4192_v1  ;;  %v4106_v37 = vld [vmem:[#allocation2 + $0x3c] sm:$0xf]  ;;  %v6817_v1 = vld [vmem:[%s8518_s26 + $0x10] sm:$0xff]  ;;  %v4861_v9 = vrot.slane %v4859_v61, 4 }
 0x1db   : > { %v8552_v2 = vadd.f32 %v8467_v17, %v3337_v6  ;;  %4666 = vmatmul.bf16.vlgmr.msra.gmra.mxu3 %v4578_v11  ;;  %v4197_v17 = vshll.u32 %v4103_v59, 16 }
 0x1dc   : > { %v2283_v10 = vpop.f32.mrf.mxu2  ;;  %v4210_v52 = vor.u32 %v4209_v14, %v4205_v5  ;;  %v4221_v14 = vshll.u32 %v4106_v37, 16 }
 0x1dd   : > { %v2342_v21 = vadd.f32 %v2283_v10, %v8138_v55  ;;  %v4182_v55 = vsel %vm7397_vm9, %v4177_v15, %v4181_v57  ;;  %v4199_v19 = vrot.slane %v4197_v17, 5  ;;  %v4781_v17 = vld [vmem:[#allocation2 + $0x30] sm:$0xe] }
 0x1de   : > { %v8557_v48 = vpop.f32.mrf.mxu0  ;;  %v2602_v42 = vpop.f32.mrf.mxu3  ;;  %v4548_v11 = vunpack.c.l.b16 %v4182_v55  ;;  %v4211_v22 = vrot.slane %v4210_v52, 4  ;;  %v8591_v55 = vld [vmem:[#allocation2 + $0x40] sm:$0xf]  ;;  %v6547_v18 = vrot.slane %v4781_v17, 9 }
 0x1df   : > { %v2656_v7 = vadd.f32 %v2597_v39, %v2342_v21  ;;  %v8563_v16 = vpop.f32.mrf.mxu1  ;;  %v6546_v39 = vrot.slane %v4780_v60, 9  ;;  %v4200_v51 = vor.u32 %v4199_v19, %v4196_v3  ;;  %v4862_v3 = vrot.slane %v4105_v31, 5 }
 0x1e0   : > { %v4218_v19 = vshrl.u32 %v4106_v37, 16 }
 0x1e1   : > { %5092 = vmatmul.bf16.vlgmr.msra.gmra.mxu0 %v5004_v13  ;;  %v3338_v53 = vadd.f32 %v8522_v24, %v2656_v7  ;;  %6674 = vmatmul.msk.bf16.gmra.mxu1 %vm5318_vm14, %v6816_v62  ;;  %v4853_v41 = vsel %vm7865_vm13, %v6546_v39, %v4852_v45  ;;  %v4975_v13 = vunpack.c.l.b16 %v4856_v56  ;;  %v4201_v15 = vrot.slane %v4200_v51, 4  ;;  %v9179_v7 = vld [vmem:[#allocation4_spill] sm:$0xff] }
 0x1e2   : > { %v4974_v10 = vunpack.c.l.b16 %v4853_v41  ;;  %v4863_v51 = vsel %vm7865_vm13, %v4861_v9, %v4862_v3  ;;  %v4220_v52 = vrot.slane %v4218_v19, 4 }
 0x1e3   : > { %v8572_v12 = vadd.f32 %v8488_v26, %v3338_v53  ;;  %v4213_v26 = vshll.u32 %v4105_v31, 16  ;;  %v4206_v53 = vsel %vm7397_vm9, %v4201_v15, %v4205_v5  ;;  %v9181_v5 = vld [vmem:[#allocation3_spill] sm:$0xff]  ;;  %v4108_v15 = vld [vmem:[#allocation2 + $0x44] sm:$0x1] }
 0x1e4   : > { %v2285_v63 = vpop.f32.mrf.mxu2  ;;  %v5005_v60 = vpack.c.b16 %v4975_v13, %v4974_v10  ;;  %v4237_v17 = vshll.u32 %v4108_v15, 16 }
 0x1e5   : > { %v2343_v57 = vadd.f32 %v2285_v63, %v8156_v25  ;;  %v4579_v25 = vpack.c.b16 %v4549_v58, %v4548_v11  ;;  %v4215_v23 = vrot.slane %v4213_v26, 5  ;;  %v4227_v63 = vshll.u32 %v8591_v55, 16 }
 0x1e6   : > { %v8575_v24 = vpop.f32.mrf.mxu0  ;;  %v2604_v6 = vpop.f32.mrf.mxu3  ;;  %v4550_v58 = vunpack.c.l.b16 %v4206_v53 }
 0x1e7   : > { %v2657_v35 = vadd.f32 %v2599_v8, %v2343_v57  ;;  %v8581_v59 = vpop.f32.mrf.mxu1  ;;  %v4229_v10 = vrot.slane %v4227_v63, 5 }
 0x1e9   : > { %3984 = vmatmul.bf16.vlgmr.msra.gmra.mxu2 %v6775_v46  ;;  %v3339_v21 = vadd.f32 %v8546_v43, %v2657_v35  ;;  %v9180_v46 = vld [vmem:[#allocation5_spill] sm:$0xff]  ;;  %v4860_v35 = vsel %vm7865_vm13, %v6547_v18, %v4859_v61  ;;  %v9182_v18 = vld [vmem:[#allocation7_spill] sm:$0xff] }
 0x1ea   : > { %v1910_v11 = vadd.f32 %v9181_v5, %v9180_v46  ;;  %v6818_v46 = vld [vmem:[%s8518_s26 + $0x18] sm:$0xff] }
 0x1eb   : > { %v8585_v45 = vadd.f32 %v8504_v44, %v3339_v21  ;;  %4671 = vmatmul.bf16.gmra.mxu3 %v4579_v25  ;;  %v4216_v44 = vsel %vm7397_vm9, %v4211_v22, %v4215_v23  ;;  %v4223_v25 = vrot.slane %v4221_v14, 5  ;;  %v4239_v14 = vrot.slane %v4237_v17, 5  ;;  %v4782_v5 = vld [vmem:[#allocation2 + $0x3c] sm:$0xe]  ;;  %v4111_v17 = vld [vmem:[#allocation2 + $0x50] sm:$0x1] }
 0x1ec   : > { %v2288_v8 = vpop.f32.mrf.mxu2  ;;  %v4551_v31 = vunpack.c.l.b16 %v4216_v44 }
 0x1ed   : > { %v2344_v62 = vadd.f32 %v2288_v8, %v9179_v7  ;;  %v4976_v7 = vunpack.c.l.b16 %v4860_v35  ;;  %v4224_v61 = vor.u32 %v4223_v25, %v4220_v52  ;;  %v9183_v35 = vld [vmem:[#allocation8_spill] sm:$0xff] }
 0x1ee   : > { %v8589_v49 = vpop.f32.mrf.mxu0  ;;  %v2607_v39 = vpop.f32.mrf.mxu3  ;;  %v4580_v8 = vpack.c.b16 %v4551_v31, %v4550_v58 }
 0x1ef   : > { %v2658_v43 = vadd.f32 %v2602_v42, %v2344_v62  ;;  %v8598_v0 = vpop.f32.mrf.mxu1  ;;  %v4231_v42 = vshrl.u32 %v8591_v55, 16  ;;  %v4977_v62 = vunpack.c.l.b16 %v4863_v51  ;;  %v4225_v3 = vrot.slane %v4224_v61, 4  ;;  %v9184_v51 = vld [vmem:[#allocation6_spill] sm:$0xff] }
 0x1f0   : > { %v1915_v52 = vadd.f32 %v9184_v51, %v9183_v35  ;;  %v9185_v51 = vld [vmem:[#allocation10_spill] sm:$0xff] }
 0x1f1   : > { %5097 = vmatmul.bf16.gmra.mxu0 %v5005_v60  ;;  %v3340_v57 = vadd.f32 %v8557_v48, %v2658_v43  ;;  %6675 = vmatmul.msk.bf16.gmra.mxu1 %vm5318_vm14, %v6817_v1  ;;  %v6776_v48 = vld [vmem:[#allocation2 + $0x24] sm:$0xff]  ;;  %v4233_v13 = vrot.slane %v4231_v42, 4  ;;  %v5006_v44 = vpack.c.b16 %v4977_v62, %v4976_v7  ;;  %v4866_v42 = vrot.slane %v8591_v55, 5 }
 0x1f2   : > { %v4109_v43 = vld [vmem:[#allocation2 + $0x48] sm:$0xf] }
 0x1f3   : > { %v8607_v41 = vadd.f32 %v8531_v29, %v3340_v57  ;;  %v4234_v60 = vor.u32 %v4233_v13, %v4229_v10  ;;  %v4242_v57 = vshrl.u32 %v4109_v43, 16  ;;  %v4868_v25 = vrot.slane %v4866_v42, 4 }
 0x1f4   : > { %v2290_v56 = vpop.f32.mrf.mxu2  ;;  %v4869_v13 = vrot.slane %v4108_v15, 5 }
 0x1f5   : > { %v2345_v26 = vadd.f32 %v2290_v56, %v1910_v11  ;;  %v4235_v19 = vrot.slane %v4234_v60, 4 }
 0x1f6   : > { %v8613_v21 = vpop.f32.mrf.mxu0  ;;  %v2609_v29 = vpop.f32.mrf.mxu3  ;;  %v4870_v15 = vsel %vm7865_vm13, %v4868_v25, %v4869_v13  ;;  %v8659_v25 = vld [vmem:[#allocation2 + $0x58] sm:$0xf]  ;;  %v6819_v13 = vld [vmem:[%s8518_s26 + $0x20] sm:$0xff] }
 0x1f7   : > { %v2659_v22 = vadd.f32 %v2604_v6, %v2345_v26  ;;  %v8615_v23 = vpop.f32.mrf.mxu1  ;;  %v8621_v6 = vld [vmem:[#allocation2 + $0x4c] sm:$0xf]  ;;  %v4230_v26 = vsel %vm7397_vm9, %v4225_v3, %v4229_v10  ;;  %v4240_v55 = vsel %vm7397_vm9, %v4235_v19, %v4239_v14  ;;  %v4261_v19 = vshll.u32 %v4111_v17, 16 }
 0x1f8   : > { %v4251_v11 = vshll.u32 %v8621_v6, 16  ;;  %v4255_v58 = vshrl.u32 %v8621_v6, 16  ;;  %v4873_v35 = vrot.slane %v8621_v6, 5 }
 0x1f9   : > { %3989 = vmatmul.bf16.gmra.mxu2 %v6776_v48  ;;  %v3341_v37 = vadd.f32 %v8575_v24, %v2659_v22  ;;  %v6548_v48 = vrot.slane %v4782_v5, 9  ;;  %v4244_v22 = vrot.slane %v4242_v57, 4 }
 0x1fa   : > { %v4253_v7 = vrot.slane %v4251_v11, 5  ;;  %v4257_v62 = vrot.slane %v4255_v58, 4 }
 0x1fb   : > { %v8619_v1 = vadd.f32 %v8548_v20, %v3341_v37  ;;  %4676 = vmatmul.bf16.gmra.mxu3 %v4580_v8  ;;  %v4245_v20 = vshll.u32 %v4109_v43, 16  ;;  %v6777_v37 = vld [vmem:[#allocation2 + $0x30] sm:$0xff]  ;;  %v4552_v43 = vunpack.c.l.b16 %v4230_v26 }
 0x1fc   : > { %v2293_v53 = vpop.f32.mrf.mxu2  ;;  %v4258_v3 = vor.u32 %v4257_v62, %v4253_v7 }
 0x1fd   : > { %v2346_v9 = vadd.f32 %v2293_v53, %v9182_v18  ;;  %v4247_v8 = vrot.slane %v4245_v20, 5  ;;  %v4553_v53 = vunpack.c.l.b16 %v4240_v55  ;;  %v4783_v55 = vld [vmem:[#allocation2 + $0x48] sm:$0xe] }
 0x1fe   : > { %v8624_v63 = vpop.f32.mrf.mxu0  ;;  %v2612_v56 = vpop.f32.mrf.mxu3  ;;  %v4259_v11 = vrot.slane %v4258_v3, 4  ;;  %v6549_v62 = vrot.slane %v4783_v55, 9 }
 0x1ff   : > { %v2660_v24 = vadd.f32 %v2607_v39, %v2346_v9  ;;  %v8630_v31 = vpop.f32.mrf.mxu1  ;;  %v4248_v9 = vor.u32 %v4247_v8, %v4244_v22  ;;  %v4581_v57 = vpack.c.b16 %v4553_v53, %v4552_v43  ;;  %v4275_v53 = vshll.u32 %v8659_v25, 16 }
 0x201   : > { %5102 = vmatmul.bf16.gmra.mxu0 %v5006_v44  ;;  %v3342_v39 = vadd.f32 %v8589_v49, %v2660_v24  ;;  %6676 = vmatmul.msk.bf16.gmra.mxu1 %vm5318_vm14, %v6818_v46  ;;  %v4867_v49 = vsel %vm7865_vm13, %v6548_v48, %v4866_v42  ;;  %v4979_v46 = vunpack.c.l.b16 %v4870_v15  ;;  %v4249_v20 = vrot.slane %v4248_v9, 4  ;;  %v9186_v15 = vld [vmem:[#allocation11_spill] sm:$0xff] }
 0x202   : > { %v4978_v24 = vunpack.c.l.b16 %v4867_v49  ;;  %v4263_v42 = vrot.slane %v4261_v19, 5 }
 0x203   : > { %v8641_v61 = vadd.f32 %v8563_v16, %v3342_v39  ;;  %v4112_v39 = vld [vmem:[#allocation2 + $0x54] sm:$0xf]  ;;  %v4254_v22 = vsel %vm7397_vm9, %v4249_v20, %v4253_v7  ;;  %v9187_v7 = vld [vmem:[#allocation9_spill] sm:$0xff] }
 0x204   : > { %v2295_v60 = vpop.f32.mrf.mxu2  ;;  %v5007_v26 = vpack.c.b16 %v4979_v46, %v4978_v24  ;;  %v4269_v43 = vshll.u32 %v4112_v39, 16  ;;  %v4554_v9 = vunpack.c.l.b16 %v4254_v22 }
 0x205   : > { %v2347_v10 = vadd.f32 %v2295_v60, %v1915_v52  ;;  %v4875_v60 = vrot.slane %v4873_v35, 4 }
 0x206   : > { %v8643_v44 = vpop.f32.mrf.mxu0  ;;  %v2614_v16 = vpop.f32.mrf.mxu3  ;;  %v4271_v20 = vrot.slane %v4269_v43, 5  ;;  %v9188_v43 = vld [vmem:[#allocation13_spill] sm:$0xff] }
 0x207   : > { %v2661_v18 = vadd.f32 %v2609_v29, %v2347_v10  ;;  %v8649_v14 = vpop.f32.mrf.mxu1  ;;  %v4876_v10 = vrot.slane %v4111_v17, 5 }
 0x209   : > { %3994 = vmatmul.bf16.gmra.mxu2 %v6777_v37  ;;  %v3343_v5 = vadd.f32 %v8613_v21, %v2661_v18  ;;  %v4266_v37 = vshrl.u32 %v4112_v39, 16  ;;  %v1920_v18 = vadd.f32 %v9187_v7, %v9186_v15  ;;  %v4877_v24 = vsel %vm7865_vm13, %v4875_v60, %v4876_v10 }
 0x20b   : > { %v8653_v58 = vadd.f32 %v8581_v59, %v3343_v5  ;;  %4681 = vmatmul.bf16.gmra.mxu3 %v4581_v57  ;;  %v4264_v59 = vsel %vm7397_vm9, %v4259_v11, %v4263_v42  ;;  %v4874_v57 = vsel %vm7865_vm13, %v6549_v62, %v4873_v35  ;;  %v4268_v46 = vrot.slane %v4266_v37, 4  ;;  %v4115_v62 = vld [vmem:[#allocation2 + $0x60] sm:$0xf] }
 0x20c   : > { %v2298_v29 = vpop.f32.mrf.mxu2  ;;  %v4555_v17 = vunpack.c.l.b16 %v4264_v59  ;;  %v4277_v11 = vrot.slane %v4275_v53, 5  ;;  %v4980_v39 = vunpack.c.l.b16 %v4874_v57 }
 0x20d   : > { %v2348_v52 = vadd.f32 %v2298_v29, %v9185_v51  ;;  %v4114_v51 = vld [vmem:[#allocation2 + $0x5c] sm:$0x1]  ;;  %v4272_v35 = vor.u32 %v4271_v20, %v4268_v46  ;;  %v9190_v20 = vld [vmem:[#allocation12_spill] sm:$0xff] }
 0x20e   : > { %v8657_v48 = vpop.f32.mrf.mxu0  ;;  %v2617_v8 = vpop.f32.mrf.mxu3  ;;  %v4582_v55 = vpack.c.b16 %v4555_v17, %v4554_v9  ;;  %v4285_v22 = vshll.u32 %v4114_v51, 16  ;;  %v4290_v9 = vshrl.u32 %v4115_v62, 16  ;;  %v4784_v17 = vld [vmem:[#allocation2 + $0x54] sm:$0xe] }
 0x20f   : > { %v2662_v21 = vadd.f32 %v2612_v56, %v2348_v52  ;;  %v8666_v6 = vpop.f32.mrf.mxu1  ;;  %v4279_v56 = vshrl.u32 %v8659_v25, 16 }
 0x210   : > { %v4287_v15 = vrot.slane %v4285_v22, 5 }
 0x211   : > { %5107 = vmatmul.bf16.gmra.mxu0 %v5007_v26  ;;  %v3344_v49 = vadd.f32 %v8624_v63, %v2662_v21  ;;  %6677 = vmatmul.msk.bf16.gmra.mxu1 %vm5318_vm14, %v6819_v13  ;;  %v6778_v63 = vld [vmem:[#allocation2 + $0x3c] sm:$0xff]  ;;  %v4281_v42 = vrot.slane %v4279_v56, 4  ;;  %v4981_v21 = vunpack.c.l.b16 %v4877_v24  ;;  %v4273_v56 = vrot.slane %v4272_v35, 4 }
 0x212   : > { %v4292_v35 = vrot.slane %v4290_v9, 4 }
 0x213   : > { %v8675_v3 = vadd.f32 %v8598_v0, %v3344_v49  ;;  %v4282_v13 = vor.u32 %v4281_v42, %v4277_v11  ;;  %v5008_v37 = vpack.c.b16 %v4981_v21, %v4980_v39  ;;  %v4883_v21 = vrot.slane %v4114_v51, 5 }
 0x214   : > { %v2300_v19 = vpop.f32.mrf.mxu2 }
 0x215   : > { %v2349_v5 = vadd.f32 %v2300_v19, %v1920_v18  ;;  %v4283_v49 = vrot.slane %v4282_v13, 4  ;;  %v4880_v18 = vrot.slane %v8659_v25, 5  ;;  %v6820_v19 = vld [vmem:[%s8518_s26 + $0x28] sm:$0xff] }
 0x216   : > { %v8681_v29 = vpop.f32.mrf.mxu0  ;;  %v2619_v0 = vpop.f32.mrf.mxu3 }
 0x217   : > { %v2663_v52 = vadd.f32 %v2614_v16, %v2349_v5  ;;  %v8683_v26 = vpop.f32.mrf.mxu1  ;;  %v8689_v16 = vld [vmem:[#allocation2 + $0x64] sm:$0xf]  ;;  %v4288_v25 = vsel %vm7397_vm9, %v4283_v49, %v4287_v15  ;;  %v4882_v39 = vrot.slane %v4880_v18, 4 }
 0x218   : > { %v4299_v57 = vshll.u32 %v8689_v16, 16  ;;  %v4303_v24 = vshrl.u32 %v8689_v16, 16 }
 0x219   : > { %3999 = vmatmul.bf16.gmra.mxu2 %v6778_v63  ;;  %v3345_v59 = vadd.f32 %v8643_v44, %v2663_v52  ;;  %v9189_v63 = vld [vmem:[#allocation14_spill] sm:$0xff]  ;;  %v4278_v52 = vsel %vm7397_vm9, %v4273_v56, %v4277_v11  ;;  %v4557_v56 = vunpack.c.l.b16 %v4288_v25  ;;  %v4884_v51 = vsel %vm7865_vm13, %v4882_v39, %v4883_v21  ;;  %v4785_v21 = vld [vmem:[#allocation2 + $0x60] sm:$0xe] }
 0x21a   : > { %v1925_v42 = vadd.f32 %v9190_v20, %v9189_v63  ;;  %v4301_v22 = vrot.slane %v4299_v57, 5  ;;  %v4887_v25 = vrot.slane %v8689_v16, 5 }
 0x21b   : > { %v8687_v60 = vadd.f32 %v8615_v23, %v3345_v59  ;;  %4686 = vmatmul.bf16.gmra.mxu3 %v4582_v55  ;;  %v4293_v23 = vshll.u32 %v4115_v62, 16  ;;  %v6550_v55 = vrot.slane %v4784_v17, 9  ;;  %v4305_v59 = vrot.slane %v4303_v24, 4 }
 0x21c   : > { %v2303_v10 = vpop.f32.mrf.mxu2  ;;  %v4983_v24 = vunpack.c.l.b16 %v4884_v51 }
 0x21d   : > { %v2350_v53 = vadd.f32 %v2303_v10, %v9188_v43  ;;  %v4295_v13 = vrot.slane %v4293_v23, 5  ;;  %v6779_v43 = vld [vmem:[#allocation2 + $0x48] sm:$0xff] }
 0x21e   : > { %v8692_v7 = vpop.f32.mrf.mxu0  ;;  %v2622_v46 = vpop.f32.mrf.mxu3 }
 0x21f   : > { %v2664_v44 = vadd.f32 %v2617_v8, %v2350_v53  ;;  %v8698_v5 = vpop.f32.mrf.mxu1  ;;  %v4556_v53 = vunpack.c.l.b16 %v4278_v52  ;;  %v4296_v9 = vor.u32 %v4295_v13, %v4292_v35  ;;  %v4118_v35 = vld [vmem:[#allocation2 + $0x6c] sm:$0xf] }
 0x220   : > { %v4314_v51 = vshrl.u32 %v4118_v35, 16 }
 0x221   : > { %5112 = vmatmul.bf16.gmra.mxu0 %v5008_v37  ;;  %v3346_v8 = vadd.f32 %v8657_v48, %v2664_v44  ;;  %6678 = vmatmul.msk.bf16.gmra.mxu1 %vm5318_vm14, %v6820_v19  ;;  %v4117_v37 = vld [vmem:[#allocation2 + $0x68] sm:$0x1]  ;;  %v4881_v48 = vsel %vm7865_vm13, %v6550_v55, %v4880_v18  ;;  %v4306_v44 = vor.u32 %v4305_v59, %v4301_v22  ;;  %v4297_v20 = vrot.slane %v4296_v9, 4  ;;  %v8727_v59 = vld [vmem:[#allocation2 + $0x70] sm:$0xf] }
 0x222   : > { %v4309_v19 = vshll.u32 %v4117_v37, 16  ;;  %v4583_v23 = vpack.c.b16 %v4557_v56, %v4556_v53  ;;  %v4982_v57 = vunpack.c.l.b16 %v4881_v48  ;;  %v6551_v53 = vrot.slane %v4785_v21, 9 }
 0x223   : > { %v8709_v62 = vadd.f32 %v8630_v31, %v3346_v8  ;;  %v9191_v8 = vld [vmem:[#allocation15_spill] sm:$0xff]  ;;  %v4889_v56 = vrot.slane %v4887_v25, 4  ;;  %v4890_v48 = vrot.slane %v4117_v37, 5  ;;  %v4323_v9 = vshll.u32 %v8727_v59, 16 }
 0x224   : > { %v2305_v10 = vpop.f32.mrf.mxu2  ;;  %v4311_v18 = vrot.slane %v4309_v19, 5  ;;  %v5009_v39 = vpack.c.b16 %v4983_v24, %v4982_v57  ;;  %v9192_v19 = vld [vmem:[#allocation17_spill] sm:$0xff] }
 0x225   : > { %v2351_v11 = vadd.f32 %v2305_v10, %v1925_v42  ;;  %v4307_v42 = vrot.slane %v4306_v44, 4  ;;  %v6821_v10 = vld [vmem:[%s8518_s26 + $0x30] sm:$0xff] }
 0x226   : > { %v8711_v49 = vpop.f32.mrf.mxu0  ;;  %v2624_v31 = vpop.f32.mrf.mxu3 }
 0x227   : > { %v2665_v15 = vadd.f32 %v2619_v0, %v2351_v11  ;;  %v8717_v17 = vpop.f32.mrf.mxu1  ;;  %v4302_v11 = vsel %vm7397_vm9, %v4297_v20, %v4301_v22  ;;  %v9193_v22 = vld [vmem:[#allocation16_spill] sm:$0xff]  ;;  %v4888_v20 = vsel %vm7865_vm13, %v6551_v53, %v4887_v25 }
 0x228   : > { %v4558_v57 = vunpack.c.l.b16 %v4302_v11 }
 0x229   : > { %4004 = vmatmul.bf16.gmra.mxu2 %v6779_v43  ;;  %v3347_v63 = vadd.f32 %v8681_v29, %v2665_v15  ;;  %v4317_v15 = vshll.u32 %v4118_v35, 16  ;;  %v4120_v35 = vld [vmem:[#allocation2 + $0x74] sm:$0x1] }
 0x22b   : > { %v8721_v52 = vadd.f32 %v8649_v14, %v3347_v63  ;;  %4691 = vmatmul.bf16.gmra.mxu3 %v4583_v23  ;;  %v4312_v14 = vsel %vm7397_vm9, %v4307_v42, %v4311_v18  ;;  %v1930_v23 = vadd.f32 %v9193_v22, %v9192_v19  ;;  %v4891_v42 = vsel %vm7865_vm13, %v4889_v56, %v4890_v48  ;;  %v9194_v19 = vld [vmem:[#allocation18_spill] sm:$0xff] }
 0x22c   : > { %v2308_v0 = vpop.f32.mrf.mxu2  ;;  %v4559_v37 = vunpack.c.l.b16 %v4312_v14  ;;  %v4316_v18 = vrot.slane %v4314_v51, 4  ;;  %v4984_v14 = vunpack.c.l.b16 %v4888_v20  ;;  %v4333_v56 = vshll.u32 %v4120_v35, 16  ;;  %v4121_v51 = vld [vmem:[#allocation2 + $0x78] sm:$0xf] }
 0x22d   : > { %v2352_v55 = vadd.f32 %v2308_v0, %v9191_v8  ;;  %v4319_v8 = vrot.slane %v4317_v15, 5  ;;  %v4894_v20 = vrot.slane %v8727_v59, 5 }
 0x22e   : > { %v8725_v13 = vpop.f32.mrf.mxu0  ;;  %v2627_v43 = vpop.f32.mrf.mxu3  ;;  %v4584_v11 = vpack.c.b16 %v4559_v37, %v4558_v57 }
 0x22f   : > { %v2666_v29 = vadd.f32 %v2622_v46, %v2352_v55  ;;  %v8734_v16 = vpop.f32.mrf.mxu1  ;;  %v4327_v46 = vshrl.u32 %v8727_v59, 16  ;;  %v4325_v55 = vrot.slane %v4323_v9, 5  ;;  %v4320_v25 = vor.u32 %v4319_v8, %v4316_v18  ;;  %v6822_v18 = vld [vmem:[%s8518_s26 + $0x38] sm:$0xff] }
 0x231   : > { %5117 = vmatmul.bf16.gmra.mxu0 %v5009_v39  ;;  %v3348_v44 = vadd.f32 %v8692_v7, %v2666_v29  ;;  %6679 = vmatmul.msk.bf16.gmra.mxu1 %vm5318_vm14, %v6821_v10  ;;  %v6780_v7 = vld [vmem:[#allocation2 + $0x54] sm:$0xff]  ;;  %v4329_v39 = vrot.slane %v4327_v46, 4 }
 0x233   : > { %v8743_v24 = vadd.f32 %v8666_v6, %v3348_v44  ;;  %v4985_v44 = vunpack.c.l.b16 %v4891_v42  ;;  %v4330_v53 = vor.u32 %v4329_v39, %v4325_v55  ;;  %v4338_v42 = vshrl.u32 %v4121_v51, 16 }
 0x234   : > { %v2310_v63 = vpop.f32.mrf.mxu2 }
 0x235   : > { %v2353_v0 = vadd.f32 %v2310_v63, %v1930_v23  ;;  %v5010_v46 = vpack.c.b16 %v4985_v44, %v4984_v14  ;;  %v4321_v23 = vrot.slane %v4320_v25, 4  ;;  %v4331_v57 = vrot.slane %v4330_v53, 4 }
 0x236   : > { %v8749_v21 = vpop.f32.mrf.mxu0  ;;  %v2629_v6 = vpop.f32.mrf.mxu3  ;;  %v4335_v63 = vrot.slane %v4333_v56, 5  ;;  %v4896_v44 = vrot.slane %v4894_v20, 4  ;;  %v4897_v25 = vrot.slane %v4120_v35, 5  ;;  %v4340_v53 = vrot.slane %v4338_v42, 4 }
 0x237   : > { %v2667_v29 = vadd.f32 %v2624_v31, %v2353_v0  ;;  %v8751_v10 = vpop.f32.mrf.mxu1  ;;  %v8757_v31 = vld [vmem:[#allocation2 + $0x7c] sm:$0xf]  ;;  %v4786_v0 = vld [vmem:[#allocation2 + $0x6c] sm:$0xe] }
 0x238   : > { %v4351_v8 = vshrl.u32 %v8757_v31, 16  ;;  %v4336_v14 = vsel %vm7397_vm9, %v4331_v57, %v4335_v63  ;;  %v4898_v42 = vsel %vm7865_vm13, %v4896_v44, %v4897_v25  ;;  %v9197_v25 = vld [vmem:[#allocation20_spill] sm:$0xff] }
 0x239   : > { %4009 = vmatmul.bf16.gmra.mxu2 %v6780_v7  ;;  %v3349_v48 = vadd.f32 %v8711_v49, %v2667_v29  ;;  %v4347_v7 = vshll.u32 %v8757_v31, 16 }
 0x23b   : > { %v8755_v15 = vadd.f32 %v8683_v26, %v3349_v48  ;;  %4696 = vmatmul.bf16.gmra.mxu3 %v4584_v11  ;;  %v4341_v26 = vshll.u32 %v4121_v51, 16  ;;  %v4326_v11 = vsel %vm7397_vm9, %v4321_v23, %v4325_v55  ;;  %v4349_v48 = vrot.slane %v4347_v7, 5  ;;  %v9195_v55 = vld [vmem:[#allocation19_spill] sm:$0xff]  ;;  %v6781_v23 = vld [vmem:[#allocation2 + $0x60] sm:$0xff] }
 0x23c   : > { %v2313_v9 = vpop.f32.mrf.mxu2  ;;  %v4353_v51 = vrot.slane %v4351_v8, 4  ;;  %v4560_v57 = vunpack.c.l.b16 %v4326_v11 }
 0x23d   : > { %v2354_v22 = vadd.f32 %v2313_v9, %v9194_v19  ;;  %v4343_v56 = vrot.slane %v4341_v26, 5  ;;  %v8777_v19 = vld [vmem:[#allocation2 + $0x80] sm:$0x1] }
 0x23e   : > { %v8760_v37 = vpop.f32.mrf.mxu0  ;;  %v2632_v39 = vpop.f32.mrf.mxu3 }
 0x23f   : > { %v2668_v49 = vadd.f32 %v2627_v43, %v2354_v22  ;;  %v8766_v29 = vpop.f32.mrf.mxu1  ;;  %v6552_v43 = vrot.slane %v4786_v0, 9  ;;  %v4357_v0 = vshll.u32 %v8777_v19, 16 }
 0x241   : > { %5122 = vmatmul.bf16.gmra.mxu0 %v5010_v46  ;;  %v3350_v59 = vadd.f32 %v8725_v13, %v2668_v49  ;;  %6680 = vmatmul.msk.bf16.gmra.mxu1 %vm5318_vm14, %v6822_v18  ;;  %v4561_v13 = vunpack.c.l.b16 %v4336_v14  ;;  %v4895_v35 = vsel %vm7865_vm13, %v6552_v43, %v4894_v20  ;;  %v4344_v18 = vor.u32 %v4343_v56, %v4340_v53 }
 0x242   : > { %v4986_v11 = vunpack.c.l.b16 %v4895_v35  ;;  %v4987_v14 = vunpack.c.l.b16 %v4898_v42  ;;  %v4359_v43 = vrot.slane %v4357_v0, 5 }
 0x243   : > { %v8775_v9 = vadd.f32 %v8698_v5, %v3350_v59  ;;  %v4354_v5 = vor.u32 %v4353_v51, %v4349_v48  ;;  %v4585_v8 = vpack.c.b16 %v4561_v13, %v4560_v57  ;;  %v4124_v51 = vld [vmem:[#allocation2 + $0x84] sm:$0xf]  ;;  %v4901_v57 = vrot.slane %v8757_v31, 5 }
 0x244   : > { %v2315_v46 = vpop.f32.mrf.mxu2  ;;  %v5011_v56 = vpack.c.b16 %v4987_v14, %v4986_v11  ;;  %v6823_v13 = vld [vmem:[%s8518_s26 + $0x40] sm:$0xff]  ;;  %v4904_v14 = vrot.slane %v8777_v19, 5  ;;  %v8815_v19 = vld [vmem:[#allocation2 + $0x8c] sm:$0x1] }
 0x245   : > { %v2355_v22 = vadd.f32 %v2315_v46, %v9195_v55  ;;  %v4345_v46 = vrot.slane %v4344_v18, 4  ;;  %v4355_v20 = vrot.slane %v4354_v5, 4  ;;  %v8794_v55 = vld [vmem:[#allocation2 + $0x88] sm:$0xf]  ;;  %v4362_v18 = vshrl.u32 %v4124_v51, 16 }
 0x246   : > { %v8780_v63 = vpop.f32.mrf.mxu0  ;;  %v2634_v26 = vpop.f32.mrf.mxu3  ;;  %v4365_v5 = vshll.u32 %v4124_v51, 16  ;;  %v4371_v0 = vshll.u32 %v8794_v55, 16 }
 0x247   : > { %v2669_v49 = vadd.f32 %v2629_v6, %v2355_v22  ;;  %v8787_v7 = vpop.f32.mrf.mxu1  ;;  %v4350_v35 = vsel %vm7397_vm9, %v4345_v46, %v4349_v48 }
 0x248   : > { %v4562_v48 = vunpack.c.l.b16 %v4350_v35 }
 0x249   : > { %4014 = vmatmul.bf16.gmra.mxu2 %v6781_v23  ;;  %v3351_v59 = vadd.f32 %v8749_v21, %v2669_v49  ;;  %v4787_v23 = vld [vmem:[#allocation2 + $0x78] sm:$0xe] }
 0x24a   : > { %v6553_v11 = vrot.slane %v4787_v23, 9  ;;  %v6782_v23 = vld [vmem:[#allocation2 + $0x6c] sm:$0xff] }
 0x24b   : > { %v8791_v44 = vadd.f32 %v8717_v17, %v3351_v59  ;;  %4701 = vmatmul.bf16.gmra.mxu3 %v4585_v8  ;;  %v4360_v17 = vsel %vm7397_vm9, %v4355_v20, %v4359_v43  ;;  %v4375_v8 = vshrl.u32 %v8794_v55, 16  ;;  %v4364_v43 = vrot.slane %v4362_v18, 4 }
 0x24c   : > { %v2318_v6 = vpop.f32.mrf.mxu2  ;;  %v4563_v59 = vunpack.c.l.b16 %v4360_v17 }
 0x24d   : > { %9196 = vst [vmem:[#allocation4_spill] sm:$0xff] %v8791_v44  ;;  %v2356_v53 = vadd.f32 %v2318_v6, %v9197_v25  ;;  %v4367_v6 = vrot.slane %v4365_v5, 5  ;;  %v4373_v25 = vrot.slane %v4371_v0, 5  ;;  %v4127_v44 = vld [vmem:[#allocation2 + $0x90] sm:$0xf] }
 0x24e   : > { %v8796_v22 = vpop.f32.mrf.mxu0  ;;  %v2637_v42 = vpop.f32.mrf.mxu3  ;;  %v4586_v17 = vpack.c.b16 %v4563_v59, %v4562_v48 }
 0x24f   : > { %v2670_v21 = vadd.f32 %v2632_v39, %v2356_v53  ;;  %v5380_v49 = vpop.f32.mrf.mxu1  ;;  %v4903_v39 = vrot.slane %v4901_v57, 4  ;;  %v4377_v53 = vrot.slane %v4375_v8, 4 }
 0x250   : > { %v5731_v35 = vmul.f32 %v5380_v49, %v5380_v49 }
 0x251   : > { %5127 = vmatmul.bf16.gmra.mxu0 %v5011_v56  ;;  %v3352_v31 = vadd.f32 %v8760_v37, %v2670_v21  ;;  %6681 = vmatmul.msk.bf16.gmra.mxu1 %vm5318_vm14, %v6823_v13  ;;  %v9199_v56 = vld [vmem:[#allocation21_spill] sm:$0xff]  ;;  %v4902_v37 = vsel %vm7865_vm13, %v6553_v11, %v4901_v57  ;;  %v4368_v57 = vor.u32 %v4367_v6, %v4364_v43  ;;  %v4381_v11 = vshll.u32 %v8815_v19, 16 }
 0x252   : > { %v4988_v0 = vunpack.c.l.b16 %v4902_v37  ;;  %v4378_v8 = vor.u32 %v4377_v53, %v4373_v25  ;;  %v9200_v37 = vld [vmem:[#allocation22_spill] sm:$0xff] }
 0x253   : > { %v8810_v46 = vadd.f32 %v8734_v16, %v3352_v31  ;;  %v4905_v16 = vsel %vm7865_vm13, %v4903_v39, %v4904_v14  ;;  %v8831_v53 = vld [vmem:[#allocation2 + $0x94] sm:$0xf] }
 0x254   : > { %v2320_v20 = vpop.f32.mrf.mxu2  ;;  %v4989_v39 = vunpack.c.l.b16 %v4905_v16  ;;  %v4788_v16 = vld [vmem:[#allocation2 + $0x84] sm:$0xe] }
 0x255   : > { %9198 = vst [vmem:[#allocation5_spill] sm:$0xff] %v8810_v46  ;;  %v2357_v51 = vadd.f32 %v2320_v20, %v9199_v56  ;;  %v4369_v56 = vrot.slane %v4368_v57, 4  ;;  %v4383_v46 = vrot.slane %v4381_v11, 5  ;;  %v4389_v57 = vshll.u32 %v4127_v44, 16 }
 0x256   : > { %v8817_v21 = vpop.f32.mrf.mxu0  ;;  %v2639_v18 = vpop.f32.mrf.mxu3  ;;  %v5012_v6 = vpack.c.b16 %v4989_v39, %v4988_v0 }
 0x257   : > { %v2671_v13 = vadd.f32 %v2634_v26, %v2357_v51  ;;  %v5382_v5 = vpop.f32.mrf.mxu1  ;;  %v4379_v51 = vrot.slane %v4378_v8, 4 }
 0x258   : > { %v6978_v31 = vpack.c.bf16 %v5382_v5, %v5380_v49  ;;  %v5732_v20 = vmul.f32 %v5382_v5, %v5382_v5  ;;  %v5694_v26 = vadd.f32 %v5382_v5, %v5380_v49  ;;  %v4386_v5 = vshrl.u32 %v4127_v44, 16 }
 0x259   : > { %4019 = vmatmul.bf16.gmra.mxu2 %v6782_v23  ;;  %v3353_v48 = vadd.f32 %v8780_v63, %v2671_v13  ;;  %v6824_v13 = vld [vmem:[%s8518_s26 + $0x48] sm:$0xff]  ;;  %v4384_v0 = vsel %vm7397_vm9, %v4379_v51, %v4383_v46 }
 0x25a   : > { %6979 = vst [vmem:[%s8825_s9] sm:$0xff] %v6978_v31   ;;  %v5763_v14 = vadd.f32 %v5732_v20, %v5731_v35  ;;  %v4908_v35 = vrot.slane %v8794_v55, 5  ;;  %v4399_v31 = vshrl.u32 %v8831_v53, 16 }
 0x25b   : > { %4706 = vmatmul.bf16.gmra.mxu3 %v4586_v17  ;;  %v8834_v23 = vadd.f32 %v8751_v10, %v3353_v48  ;;  %v4374_v17 = vsel %vm7397_vm9, %v4369_v56, %v4373_v25  ;;  %v4395_v10 = vshll.u32 %v8831_v53, 16  ;;  %v4911_v48 = vrot.slane %v8815_v19, 5  ;;  %v4129_v19 = vld [vmem:[#allocation2 + $0x98] sm:$0x1] }
 0x25c   : > { %v2323_v59 = vpop.f32.mrf.mxu2  ;;  %v4910_v44 = vrot.slane %v4908_v35, 4  ;;  %v4388_v25 = vrot.slane %v4386_v5, 4  ;;  %v4391_v56 = vrot.slane %v4389_v57, 5 }
 0x25d   : > { %v2358_v43 = vadd.f32 %v2323_v59, %v9200_v37  ;;  %9201 = vst [vmem:[#allocation3_spill] sm:$0xff] %v8834_v23  ;;  %v4564_v37 = vunpack.c.l.b16 %v4374_v17  ;;  %v6783_v23 = vld [vmem:[#allocation2 + $0x78] sm:$0xff] }
 0x25e   : > { %v8836_v49 = vpop.f32.mrf.mxu0  ;;  %v8840_v8 = vpop.f32.mrf.mxu3 }
 0x25f   : > { %v2672_v63 = vadd.f32 %v2637_v42, %v2358_v43  ;;  %v5385_v11 = vpop.f32.mrf.mxu1  ;;  %v6554_v42 = vrot.slane %v4788_v16, 9  ;;  %v4565_v43 = vunpack.c.l.b16 %v4384_v0 }
 0x260   : > { %v5695_v20 = vadd.f32 %v5694_v26, %v5385_v11  ;;  %v5733_v55 = vmul.f32 %v5385_v11, %v5385_v11  ;;  %v4401_v26 = vrot.slane %v4399_v31, 4  ;;  %v4405_v31 = vshll.u32 %v4129_v19, 16 }
 0x261   : > { %5132 = vmatmul.bf16.gmra.mxu0 %v5012_v6  ;;  %v3354_v39 = vadd.f32 %v8796_v22, %v2672_v63  ;;  %6682 = vmatmul.msk.bf16.gmra.mxu1 %vm5318_vm14, %v6824_v13  ;;  %v4397_v6 = vrot.slane %v4395_v10, 5  ;;  %v4909_v22 = vsel %vm7865_vm13, %v6554_v42, %v4908_v35  ;;  %v4912_v63 = vsel %vm7865_vm13, %v4910_v44, %v4911_v48 }
 0x262   : > { %v5764_v59 = vadd.f32 %v5763_v14, %v5733_v55  ;;  %v4392_v13 = vor.u32 %v4391_v56, %v4388_v25  ;;  %v4587_v57 = vpack.c.b16 %v4565_v43, %v4564_v37  ;;  %v4990_v0 = vunpack.c.l.b16 %v4909_v22  ;;  %v4130_v37 = vld [vmem:[#allocation2 + $0x9c] sm:$0xf]  ;;  %v8867_v43 = vld [vmem:[#allocation2 + $0xa0] sm:$0xf]  ;;  %v6825_v22 = vld [vmem:[%s8518_s26 + $0x50] sm:$0xff] }
 0x263   : > { %v8852_v46 = vadd.f32 %v8766_v29, %v3354_v39  ;;  %v4402_v10 = vor.u32 %v4401_v26, %v4397_v6  ;;  %v4991_v39 = vunpack.c.l.b16 %v4912_v63  ;;  %v4407_v48 = vrot.slane %v4405_v31, 5 }
 0x264   : > { %v2325_v51 = vpop.f32.mrf.mxu2  ;;  %v4915_v25 = vrot.slane %v8831_v53, 5 }
 0x265   : > { %9202 = vst [vmem:[#allocation7_spill] sm:$0xff] %v8852_v46  ;;  %v2359_v16 = vadd.f32 %v2325_v51, %v8180_v34  ;;  %v4393_v46 = vrot.slane %v4392_v13, 4 }
 0x266   : > { %v8857_v14 = vpop.f32.mrf.mxu0  ;;  %v4669_v5 = vpop.f32.mrf.mxu3  ;;  %v4917_v31 = vrot.slane %v4915_v25, 4 }
 0x267   : > { %v2673_v29 = vadd.f32 %v2639_v18, %v2359_v16  ;;  %v5387_v17 = vpop.f32.mrf.mxu1  ;;  %v4403_v18 = vrot.slane %v4402_v10, 4  ;;  %v4413_v16 = vshll.u32 %v4130_v37, 16  ;;  %v4398_v63 = vsel %vm7397_vm9, %v4393_v46, %v4397_v6 }
 0x268   : > { %v6983_v34 = vpack.c.bf16 %v5387_v17, %v5385_v11  ;;  %v5734_v55 = vmul.f32 %v5387_v17, %v5387_v17  ;;  %v5696_v35 = vadd.f32 %v5695_v20, %v5387_v17  ;;  %v4789_v11 = vld [vmem:[#allocation2 + $0x90] sm:$0xe]  ;;  %v9204_v20 = vld [vmem:[#allocation23_spill] sm:$0xff]  ;;  %v4423_v17 = vshrl.u32 %v8867_v43, 16 }
 0x269   : > { %4024 = vmatmul.bf16.gmra.mxu2 %v6783_v23  ;;  %v3355_v42 = vadd.f32 %v8817_v21, %v2673_v29  ;;  %v5013_v23 = vpack.c.b16 %v4991_v39, %v4990_v0  ;;  %v4408_v29 = vsel %vm7397_vm9, %v4403_v18, %v4407_v48  ;;  %v6555_v13 = vrot.slane %v4789_v11, 9 }
 0x26a   : > { %7085 = vst [vmem:[%s8825_s9 + $0x8] sm:$0xff] %v6983_v34   ;;  %v5765_v51 = vadd.f32 %v5764_v59, %v5734_v55  ;;  %v4410_v59 = vshrl.u32 %v4130_v37, 16  ;;  %v4918_v34 = vrot.slane %v4129_v19, 5  ;;  %v4415_v46 = vrot.slane %v4413_v16, 5  ;;  %v9205_v37 = vld [vmem:[#allocation24_spill] sm:$0xff] }
 0x26b   : > { %v8865_v56 = vadd.f32 %v8787_v7, %v3355_v42  ;;  %4711 = vmatmul.bf16.gmra.mxu3 %v4587_v57  ;;  %v4419_v57 = vshll.u32 %v8867_v43, 16  ;;  %v4566_v42 = vunpack.c.l.b16 %v4398_v63  ;;  %v4425_v11 = vrot.slane %v4423_v17, 4  ;;  %v8890_v19 = vld [vmem:[#allocation2 + $0xa4] sm:$0x1] }
 0x26c   : > { %v3985_v44 = vpop.f32.mrf.mxu2  ;;  %v4412_v39 = vrot.slane %v4410_v59, 4 }
 0x26d   : > { %9203 = vst [vmem:[#allocation8_spill] sm:$0xff] %v8865_v56  ;;  %v4065_v21 = vadd.f32 %v3985_v44, %v9204_v20  ;;  %v4567_v44 = vunpack.c.l.b16 %v4408_v29  ;;  %v8883_v48 = vrot.slane %v4419_v57, 5  ;;  %v6785_v56 = vld [vmem:[#allocation2 + $0x90] sm:$0xff] }
 0x26e   : > { %v8870_v26 = vpop.f32.mrf.mxu0  ;;  %v8875_v53 = vpop.f32.mrf.mxu3  ;;  %v4416_v59 = vor.u32 %v4415_v46, %v4412_v39 }
 0x26f   : > { %v5390_v7 = vpop.f32.mrf.mxu1  ;;  %v4747_v55 = vadd.f32 %v8840_v8, %v4065_v21  ;;  %v4919_v8 = vsel %vm7865_vm13, %v4917_v31, %v4918_v34 }
 0x270   : > { %v5697_v0 = vadd.f32 %v5696_v35, %v5390_v7  ;;  %v5735_v10 = vmul.f32 %v5390_v7, %v5390_v7  ;;  %v4916_v35 = vsel %vm7865_vm13, %v6555_v13, %v4915_v25  ;;  %v4993_v17 = vunpack.c.l.b16 %v4919_v8  ;;  %v8910_v8 = vld [vmem:[#allocation2 + $0xac] sm:$0xf] }
 0x271   : > { %5137 = vmatmul.bf16.gmra.mxu0 %v5013_v23  ;;  %6683 = vmatmul.msk.bf16.gmra.mxu1 %vm5318_vm14, %v6825_v22  ;;  %v6784_v23 = vld [vmem:[#allocation2 + $0x84] sm:$0xff]  ;;  %v4588_v22 = vpack.c.b16 %v4567_v44, %v4566_v42  ;;  %v4992_v57 = vunpack.c.l.b16 %v4916_v35  ;;  %v4426_v25 = vor.u32 %v4425_v11, %v8883_v48  ;;  %v4429_v13 = vshll.u32 %v8890_v19, 16 }
 0x272   : > { %v5766_v6 = vadd.f32 %v5765_v51, %v5735_v10  ;;  %v5173_v51 = vadd.f32 %v8836_v49, %v4747_v55  ;;  %v4133_v35 = vld [vmem:[#allocation2 + $0xa8] sm:$0xf] }
 0x273   : > { %v4431_v11 = vrot.slane %v4429_v13, 5 }
 0x274   : > { %v3987_v18 = vpop.f32.mrf.mxu2  ;;  %v5625_v55 = vmul.f32 %v5173_v51, %v5173_v51 }
 0x275   : > { %v4066_v20 = vadd.f32 %v3987_v18, %v9205_v37 }
 0x276   : > { %v8893_v21 = vpop.f32.mrf.mxu0  ;;  %v8895_v63 = vpop.f32.mrf.mxu3 }
 0x277   : > { %v4748_v16 = vadd.f32 %v4669_v5, %v4066_v20  ;;  %v5392_v29 = vpop.f32.mrf.mxu1  ;;  %v4417_v5 = vrot.slane %v4416_v59, 4  ;;  %v5014_v20 = vpack.c.b16 %v4993_v17, %v4992_v57  ;;  %v4434_v59 = vshrl.u32 %v4133_v35, 16 }
 0x278   : > { %v6988_v49 = vpack.c.bf16 %v5392_v29, %v5390_v7  ;;  %v5736_v31 = vmul.f32 %v5392_v29, %v5392_v29  ;;  %v5698_v34 = vadd.f32 %v5697_v0, %v5392_v29  ;;  %v4922_v7 = vrot.slane %v8867_v43, 5  ;;  %v6826_v29 = vld [vmem:[%s8518_s26 + $0x58] sm:$0xff] }
 0x279   : > { %v5174_v10 = vadd.f32 %v8857_v14, %v4748_v16  ;;  %4029 = vmatmul.bf16.gmra.mxu2 %v6784_v23  ;;  %v4427_v14 = vrot.slane %v4426_v25, 4  ;;  %v4790_v23 = vld [vmem:[#allocation2 + $0x9c] sm:$0xe]  ;;  %v4422_v43 = vsel %vm7397_vm9, %v4417_v5, %v8883_v48  ;;  %v4443_v25 = vshll.u32 %v8910_v8, 16 }
 0x27a   : > { %7086 = vst [vmem:[%s8825_s9 + $0x10] sm:$0xff] %v6988_v49   ;;  %v5767_v44 = vadd.f32 %v5766_v6, %v5736_v31  ;;  %v4437_v6 = vshll.u32 %v4133_v35, 16  ;;  %v6556_v17 = vrot.slane %v4790_v23, 9  ;;  %v4924_v13 = vrot.slane %v4922_v7, 4 }
 0x27b   : > { %v6898_v39 = vpack.c.bf16 %v5174_v10, %v5173_v51  ;;  %v5588_v46 = vadd.f32 %v5174_v10, %v5173_v51  ;;  %v5626_v42 = vmul.f32 %v5174_v10, %v5174_v10  ;;  %4716 = vmatmul.bf16.gmra.mxu3 %v4588_v22  ;;  %v4432_v57 = vsel %vm7397_vm9, %v4427_v14, %v4431_v11  ;;  %v8930_v14 = vld [vmem:[#allocation2 + $0xb0] sm:$0x1] }
 0x27c   : > { %v3990_v18 = vpop.f32.mrf.mxu2  ;;  %v4447_v10 = vshrl.u32 %v8910_v8, 16  ;;  %v4436_v48 = vrot.slane %v4434_v59, 4  ;;  %v4439_v5 = vrot.slane %v4437_v6, 5  ;;  %v4568_v23 = vunpack.c.l.b16 %v4422_v43 }
 0x27d   : > { %6899 = vst [vmem:[%s8904_s11] sm:$0xff] %v6898_v39   ;;  %v5657_v0 = vadd.f32 %v5626_v42, %v5625_v55  ;;  %v4067_v37 = vadd.f32 %v3990_v18, %v8270_v47  ;;  %v4925_v55 = vrot.slane %v8890_v19, 5  ;;  %v8927_v39 = vrot.slane %v4443_v25, 5 }
 0x27e   : > { %v8912_v51 = vpop.f32.mrf.mxu0  ;;  %v8920_v47 = vpop.f32.mrf.mxu3  ;;  %v4449_v42 = vrot.slane %v4447_v10, 4  ;;  %v4923_v19 = vsel %vm7865_vm13, %v6556_v17, %v4922_v7 }
 0x27f   : > { %v4749_v16 = vadd.f32 %v8875_v53, %v4067_v37  ;;  %v5395_v22 = vpop.f32.mrf.mxu1  ;;  %v4926_v59 = vsel %vm7865_vm13, %v4924_v13, %v4925_v55  ;;  %v4994_v10 = vunpack.c.l.b16 %v4923_v19  ;;  %v8949_v19 = vld [vmem:[#allocation2 + $0xb8] sm:$0xf] }
 0x280   : > { %v5699_v53 = vadd.f32 %v5698_v34, %v5395_v22  ;;  %v5737_v31 = vmul.f32 %v5395_v22, %v5395_v22  ;;  %v9206_v34 = vld [vmem:[#allocation25_spill] sm:$0xff]  ;;  %v4450_v6 = vor.u32 %v4449_v42, %v8927_v39 }
 0x281   : > { %v5175_v49 = vadd.f32 %v8870_v26, %v4749_v16  ;;  %5142 = vmatmul.bf16.gmra.mxu0 %v5014_v20  ;;  %6684 = vmatmul.msk.bf16.gmra.mxu1 %vm5318_vm14, %v6826_v29  ;;  %v4569_v26 = vunpack.c.l.b16 %v4432_v57  ;;  %v4453_v29 = vshll.u32 %v8930_v14, 16 }
 0x282   : > { %v5768_v35 = vadd.f32 %v5767_v44, %v5737_v31  ;;  %v4440_v44 = vor.u32 %v4439_v5, %v4436_v48  ;;  %v4995_v31 = vunpack.c.l.b16 %v4926_v59  ;;  %v4451_v5 = vrot.slane %v4450_v6, 4 }
 0x283   : > { %v5589_v18 = vadd.f32 %v5588_v46, %v5175_v49  ;;  %v5627_v37 = vmul.f32 %v5175_v49, %v5175_v49  ;;  %v4455_v42 = vrot.slane %v4453_v29, 5 }
 0x284   : > { %v3992_v11 = vpop.f32.mrf.mxu2  ;;  %v4441_v48 = vrot.slane %v4440_v44, 4 }
 0x285   : > { %v5658_v20 = vadd.f32 %v5657_v0, %v5627_v37  ;;  %v4068_v16 = vadd.f32 %v3992_v11, %v9206_v34  ;;  %v4589_v0 = vpack.c.b16 %v4569_v26, %v4568_v23  ;;  %v4791_v26 = vld [vmem:[#allocation2 + $0xa8] sm:$0xe] }
 0x286   : > { %v8937_v46 = vpop.f32.mrf.mxu0  ;;  %v8942_v25 = vpop.f32.mrf.mxu3  ;;  %v6557_v29 = vrot.slane %v4791_v26, 9 }
 0x287   : > { %v4750_v43 = vadd.f32 %v8895_v63, %v4068_v16  ;;  %v5397_v57 = vpop.f32.mrf.mxu1  ;;  %v4929_v16 = vrot.slane %v8910_v8, 5  ;;  %v4446_v8 = vsel %vm7397_vm9, %v4441_v48, %v8927_v39 }
 0x288   : > { %v6993_v17 = vpack.c.bf16 %v5397_v57, %v5395_v22  ;;  %v5738_v13 = vmul.f32 %v5397_v57, %v5397_v57  ;;  %v5700_v55 = vadd.f32 %v5699_v53, %v5397_v57  ;;  %v5015_v22 = vpack.c.b16 %v4995_v31, %v4994_v10  ;;  %v4136_v53 = vld [vmem:[#allocation2 + $0xb4] sm:$0xf] }
 0x289   : > { %v5176_v7 = vadd.f32 %v8893_v21, %v4750_v43  ;;  %4034 = vmatmul.bf16.gmra.mxu2 %v6785_v56  ;;  %v4931_v43 = vrot.slane %v4929_v16, 4  ;;  %v4471_v57 = vshrl.u32 %v8949_v19, 16  ;;  %v4570_v39 = vunpack.c.l.b16 %v4446_v8 }
 0x28a   : > { %7087 = vst [vmem:[%s8825_s9 + $0x18] sm:$0xff] %v6993_v17   ;;  %v5769_v34 = vadd.f32 %v5768_v35, %v5738_v13  ;;  %v6827_v35 = vld [vmem:[%s8518_s26 + $0x60] sm:$0xff] }
 0x28b   : > { %v6903_v37 = vpack.c.bf16 %v5176_v7, %v5175_v49  ;;  %v5590_v11 = vadd.f32 %v5589_v18, %v5176_v7  ;;  %v5628_v63 = vmul.f32 %v5176_v7, %v5176_v7  ;;  %4721 = vmatmul.bf16.gmra.mxu3 %v4589_v0  ;;  %v4458_v49 = vshrl.u32 %v4136_v53, 16 }
 0x28c   : > { %v3995_v23 = vpop.f32.mrf.mxu2  ;;  %v4461_v18 = vshll.u32 %v4136_v53, 16  ;;  %v4467_v0 = vshll.u32 %v8949_v19, 16  ;;  %v4932_v7 = vrot.slane %v8930_v14, 5  ;;  %v4473_v26 = vrot.slane %v4471_v57, 4 }
 0x28d   : > { %7070 = vst [vmem:[%s8904_s11 + $0x8] sm:$0xff] %v6903_v37   ;;  %v5659_v21 = vadd.f32 %v5658_v20, %v5628_v63  ;;  %v4069_v56 = vadd.f32 %v3995_v23, %v8360_v36  ;;  %v4456_v20 = vsel %vm7397_vm9, %v4451_v5, %v4455_v42  ;;  %v4460_v17 = vrot.slane %v4458_v49, 4 }
 0x28e   : > { %v8951_v59 = vpop.f32.mrf.mxu0  ;;  %v8960_v36 = vpop.f32.mrf.mxu3  ;;  %v4463_v13 = vrot.slane %v4461_v18, 5  ;;  %v4571_v37 = vunpack.c.l.b16 %v4456_v20  ;;  %v8967_v23 = vrot.slane %v4467_v0, 5  ;;  %v4930_v14 = vsel %vm7865_vm13, %v6557_v29, %v4929_v16 }
 0x28f   : > { %v4751_v44 = vadd.f32 %v8920_v47, %v4069_v56  ;;  %v5400_v6 = vpop.f32.mrf.mxu1 }
 0x290   : > { %v5701_v47 = vadd.f32 %v5700_v55, %v5400_v6  ;;  %v5739_v31 = vmul.f32 %v5400_v6, %v5400_v6  ;;  %v6786_v55 = vld [vmem:[#allocation2 + $0x9c] sm:$0xff]  ;;  %v4464_v53 = vor.u32 %v4463_v13, %v4460_v17  ;;  %v4590_v18 = vpack.c.b16 %v4571_v37, %v4570_v39  ;;  %v4792_v37 = vld [vmem:[#allocation2 + $0xb4] sm:$0xe] }
 0x291   : > { %v5177_v10 = vadd.f32 %v8912_v51, %v4751_v44  ;;  %5147 = vmatmul.bf16.gmra.mxu0 %v5015_v22  ;;  %6685 = vmatmul.msk.bf16.gmra.mxu1 %vm5318_vm14, %v6827_v35  ;;  %v4933_v22 = vsel %vm7865_vm13, %v4931_v43, %v4932_v7  ;;  %v4474_v8 = vor.u32 %v4473_v26, %v8967_v23 }
 0x292   : > { %v5770_v42 = vadd.f32 %v5769_v34, %v5739_v31  ;;  %v4997_v35 = vunpack.c.l.b16 %v4933_v22  ;;  %v4465_v57 = vrot.slane %v4464_v53, 4 }
 0x293   : > { %v5591_v48 = vadd.f32 %v5590_v11, %v5177_v10  ;;  %v5629_v5 = vmul.f32 %v5177_v10, %v5177_v10  ;;  %v8974_v11 = vld [vmem:[#allocation2 + $0xbc] sm:$0x1]  ;;  %v4475_v13 = vrot.slane %v4474_v8, 4 }
 0x294   : > { %v3997_v63 = vpop.f32.mrf.mxu2  ;;  %v4477_v16 = vshll.u32 %v8974_v11, 16  ;;  %v4939_v8 = vrot.slane %v8974_v11, 5 }
 0x295   : > { %v5660_v56 = vadd.f32 %v5659_v21, %v5629_v5  ;;  %v4070_v51 = vadd.f32 %v3997_v63, %v8365_v54  ;;  %v4996_v54 = vunpack.c.l.b16 %v4930_v14  ;;  %v4936_v63 = vrot.slane %v8949_v19, 5  ;;  %v6828_v14 = vld [vmem:[%s8518_s26 + $0x68] sm:$0xff] }
 0x296   : > { %v8976_v34 = vpop.f32.mrf.mxu0  ;;  %v8979_v44 = vpop.f32.mrf.mxu3  ;;  %v4479_v5 = vrot.slane %v4477_v16, 5  ;;  %v4470_v19 = vsel %vm7397_vm9, %v4465_v57, %v8967_v23 }
 0x297   : > { %v4752_v49 = vadd.f32 %v8942_v25, %v4070_v51  ;;  %v5402_v21 = vpop.f32.mrf.mxu1  ;;  %v8988_v51 = vld [vmem:[#allocation2 + $0xc4] sm:$0xf] }
 0x298   : > { %v6998_v29 = vpack.c.bf16 %v5402_v21, %v5400_v6  ;;  %v5702_v43 = vadd.f32 %v5701_v47, %v5402_v21  ;;  %v5740_v0 = vmul.f32 %v5402_v21, %v5402_v21  ;;  %v5016_v6 = vpack.c.b16 %v4997_v35, %v4996_v54  ;;  %v4139_v47 = vld [vmem:[#allocation2 + $0xc0] sm:$0xf] }
 0x299   : > { %v5178_v20 = vadd.f32 %v8937_v46, %v4752_v49  ;;  %4039 = vmatmul.bf16.gmra.mxu2 %v6786_v55  ;;  %v4480_v53 = vsel %vm7397_vm9, %v4475_v13, %v4479_v5  ;;  %v6558_v49 = vrot.slane %v4792_v37, 9  ;;  %v4495_v21 = vshrl.u32 %v8988_v51, 16  ;;  %v6787_v37 = vld [vmem:[#allocation2 + $0xa8] sm:$0xff] }
 0x29a   : > { %7088 = vst [vmem:[%s8825_s9 + $0x20] sm:$0xff] %v6998_v29   ;;  %v5771_v39 = vadd.f32 %v5770_v42, %v5740_v0  ;;  %v4485_v42 = vshll.u32 %v4139_v47, 16  ;;  %v4572_v13 = vunpack.c.l.b16 %v4470_v19 }
 0x29b   : > { %v6908_v25 = vpack.c.bf16 %v5178_v20, %v5177_v10  ;;  %v5592_v31 = vadd.f32 %v5591_v48, %v5178_v20  ;;  %v5630_v7 = vmul.f32 %v5178_v20, %v5178_v20  ;;  %4726 = vmatmul.bf16.gmra.mxu3 %v4590_v18  ;;  %v4482_v48 = vshrl.u32 %v4139_v47, 16 }
 0x29c   : > { %v4000_v17 = vpop.f32.mrf.mxu2  ;;  %v4938_v18 = vrot.slane %v4936_v63, 4  ;;  %v4487_v16 = vrot.slane %v4485_v42, 5  ;;  %v4497_v29 = vrot.slane %v4495_v21, 4  ;;  %v4937_v11 = vsel %vm7865_vm13, %v6558_v49, %v4936_v63 }
 0x29d   : > { %7071 = vst [vmem:[%s8904_s11 + $0x10] sm:$0xff] %v6908_v25   ;;  %v5661_v46 = vadd.f32 %v5660_v56, %v5630_v7  ;;  %v4071_v26 = vadd.f32 %v4000_v17, %v8390_v27  ;;  %v4491_v56 = vshll.u32 %v8988_v51, 16  ;;  %v4484_v23 = vrot.slane %v4482_v48, 4  ;;  %v9008_v7 = vld [vmem:[#allocation2 + $0xc8] sm:$0x1] }
 0x29e   : > { %v8990_v10 = vpop.f32.mrf.mxu0  ;;  %v8998_v22 = vpop.f32.mrf.mxu3  ;;  %v4501_v47 = vshll.u32 %v9008_v7, 16 }
 0x29f   : > { %v4753_v55 = vadd.f32 %v8960_v36, %v4071_v26  ;;  %v5405_v27 = vpop.f32.mrf.mxu1  ;;  %v9005_v20 = vrot.slane %v4491_v56, 5  ;;  %v4940_v26 = vsel %vm7865_vm13, %v4938_v18, %v4939_v8 }
 0x2a0   : > { %v5703_v36 = vadd.f32 %v5702_v43, %v5405_v27  ;;  %v5741_v35 = vmul.f32 %v5405_v27, %v5405_v27  ;;  %v4503_v21 = vrot.slane %v4501_v47, 5 }
 0x2a1   : > { %v5179_v54 = vadd.f32 %v8951_v59, %v4753_v55  ;;  %5152 = vmatmul.bf16.gmra.mxu0 %v5016_v6  ;;  %6686 = vmatmul.msk.bf16.gmra.mxu1 %vm5318_vm14, %v6828_v14  ;;  %v4573_v59 = vunpack.c.l.b16 %v4480_v53  ;;  %v4498_v6 = vor.u32 %v4497_v29, %v9005_v20  ;;  %v4998_v55 = vunpack.c.l.b16 %v4937_v11 }
 0x2a2   : > { %v5772_v25 = vadd.f32 %v5771_v39, %v5741_v35  ;;  %v4488_v39 = vor.u32 %v4487_v16, %v4484_v23  ;;  %v4999_v14 = vunpack.c.l.b16 %v4940_v26  ;;  %v4943_v35 = vrot.slane %v8988_v51, 5 }
 0x2a3   : > { %v5593_v0 = vadd.f32 %v5592_v31, %v5179_v54  ;;  %v5631_v57 = vmul.f32 %v5179_v54, %v5179_v54  ;;  %v4499_v18 = vrot.slane %v4498_v6, 4 }
 0x2a4   : > { %v4002_v17 = vpop.f32.mrf.mxu2  ;;  %v4489_v49 = vrot.slane %v4488_v39, 4 }
 0x2a5   : > { %v5662_v5 = vadd.f32 %v5661_v46, %v5631_v57  ;;  %v4072_v43 = vadd.f32 %v4002_v17, %v8422_v32  ;;  %v4591_v46 = vpack.c.b16 %v4573_v59, %v4572_v13  ;;  %v4793_v57 = vld [vmem:[#allocation2 + $0xc0] sm:$0xe]  ;;  %v9027_v13 = vld [vmem:[#allocation2 + $0xd0] sm:$0xf] }
 0x2a6   : > { %v9015_v31 = vpop.f32.mrf.mxu0  ;;  %v9020_v42 = vpop.f32.mrf.mxu3  ;;  %v4494_v51 = vsel %vm7397_vm9, %v4489_v49, %v9005_v20  ;;  %v4515_v39 = vshll.u32 %v9027_v13, 16  ;;  %v4519_v6 = vshrl.u32 %v9027_v13, 16 }
 0x2a7   : > { %v4754_v48 = vadd.f32 %v8979_v44, %v4072_v43  ;;  %v5407_v32 = vpop.f32.mrf.mxu1  ;;  %v4945_v43 = vrot.slane %v4943_v35, 4 }
 0x2a8   : > { %v7003_v19 = vpack.c.bf16 %v5407_v32, %v5405_v27  ;;  %v5704_v56 = vadd.f32 %v5703_v36, %v5407_v32  ;;  %v5742_v53 = vmul.f32 %v5407_v32, %v5407_v32  ;;  %v5017_v27 = vpack.c.b16 %v4999_v14, %v4998_v55  ;;  %v4142_v36 = vld [vmem:[#allocation2 + $0xcc] sm:$0xf] }
 0x2a9   : > { %v5180_v63 = vadd.f32 %v8976_v34, %v4754_v48  ;;  %4044 = vmatmul.bf16.gmra.mxu2 %v6787_v37  ;;  %v4506_v11 = vshrl.u32 %v4142_v36, 16  ;;  %v4509_v26 = vshll.u32 %v4142_v36, 16 }
 0x2aa   : > { %7089 = vst [vmem:[%s8825_s9 + $0x28] sm:$0xff] %v7003_v19   ;;  %v5773_v16 = vadd.f32 %v5772_v25, %v5742_v53  ;;  %v4504_v25 = vsel %vm7397_vm9, %v4499_v18, %v4503_v21  ;;  %v4517_v21 = vrot.slane %v4515_v39, 5 }
 0x2ab   : > { %v6913_v44 = vpack.c.bf16 %v5180_v63, %v5179_v54  ;;  %v5594_v8 = vadd.f32 %v5593_v0, %v5180_v63  ;;  %v5632_v23 = vmul.f32 %v5180_v63, %v5180_v63  ;;  %4731 = vmatmul.bf16.gmra.mxu3 %v4591_v46  ;;  %v6829_v0 = vld [vmem:[%s8518_s26 + $0x70] sm:$0xff]  ;;  %v4574_v46 = vunpack.c.l.b16 %v4494_v51 }
 0x2ac   : > { %v4005_v29 = vpop.f32.mrf.mxu2  ;;  %v4575_v32 = vunpack.c.l.b16 %v4504_v25  ;;  %v4508_v49 = vrot.slane %v4506_v11, 4  ;;  %v4511_v18 = vrot.slane %v4509_v26, 5 }
 0x2ad   : > { %7072 = vst [vmem:[%s8904_s11 + $0x18] sm:$0xff] %v6913_v44   ;;  %v5663_v34 = vadd.f32 %v5662_v5, %v5632_v23  ;;  %v4073_v17 = vadd.f32 %v4005_v29, %v8449_v28  ;;  %v6559_v5 = vrot.slane %v4793_v57, 9  ;;  %v6788_v23 = vld [vmem:[#allocation2 + $0xb4] sm:$0xff] }
 0x2ae   : > { %v9029_v59 = vpop.f32.mrf.mxu0  ;;  %v4692_v28 = vpop.f32.mrf.mxu3  ;;  %v4592_v57 = vpack.c.b16 %v4575_v32, %v4574_v46  ;;  %v4512_v51 = vor.u32 %v4511_v18, %v4508_v49  ;;  %v4950_v46 = vrot.slane %v9027_v13, 5 }
 0x2af   : > { %v4755_v54 = vadd.f32 %v8998_v22, %v4073_v17  ;;  %v5410_v37 = vpop.f32.mrf.mxu1  ;;  %v4946_v22 = vrot.slane %v9008_v7, 5  ;;  %v4944_v19 = vsel %vm7865_vm13, %v6559_v5, %v4943_v35 }
 0x2b0   : > { %v5705_v20 = vadd.f32 %v5704_v56, %v5410_v37  ;;  %v5743_v48 = vmul.f32 %v5410_v37, %v5410_v37  ;;  %v5000_v35 = vunpack.c.l.b16 %v4944_v19  ;;  %v4952_v13 = vrot.slane %v4950_v46, 4 }
 0x2b1   : > { %v5181_v47 = vadd.f32 %v8990_v10, %v4755_v54  ;;  %5157 = vmatmul.bf16.gmra.mxu0 %v5017_v27  ;;  %6687 = vmatmul.msk.bf16.gmra.mxu1 %vm5318_vm14, %v6829_v0  ;;  %v4521_v10 = vrot.slane %v4519_v6, 4  ;;  %v4947_v7 = vsel %vm7865_vm13, %v4945_v43, %v4946_v22  ;;  %v4513_v6 = vrot.slane %v4512_v51, 4 }
 0x2b2   : > { %v5774_v63 = vadd.f32 %v5773_v16, %v5743_v48  ;;  %v5001_v36 = vunpack.c.l.b16 %v4947_v7 }
 0x2b3   : > { %v5595_v55 = vadd.f32 %v5594_v8, %v5181_v47  ;;  %v5633_v14 = vmul.f32 %v5181_v47, %v5181_v47  ;;  %v4144_v8 = vld [vmem:[#allocation2 + $0xd4] sm:$0x1]  ;;  %v4522_v54 = vor.u32 %v4521_v10, %v4517_v21 }
 0x2b4   : > { %v4007_v53 = vpop.f32.mrf.mxu2 }
 0x2b5   : > { %v5664_v44 = vadd.f32 %v5663_v34, %v5633_v14  ;;  %v4074_v56 = vadd.f32 %v4007_v53, %v8471_v4  ;;  %v4525_v34 = vshll.u32 %v4144_v8, 16  ;;  %v4523_v48 = vrot.slane %v4522_v54, 4 }
 0x2b6   : > { %v9048_v29 = vpop.f32.mrf.mxu0  ;;  %v4694_v17 = vpop.f32.mrf.mxu3 }
 0x2b7   : > { %v4756_v16 = vadd.f32 %v9020_v42, %v4074_v56  ;;  %v5412_v27 = vpop.f32.mrf.mxu1  ;;  %v4527_v22 = vrot.slane %v4525_v34, 5  ;;  %v4953_v56 = vrot.slane %v4144_v8, 5 }
 0x2b8   : > { %v7008_v0 = vpack.c.bf16 %v5412_v27, %v5410_v37  ;;  %v5706_v25 = vadd.f32 %v5705_v20, %v5412_v27  ;;  %v5744_v5 = vmul.f32 %v5412_v27, %v5412_v27  ;;  %v5018_v37 = vpack.c.b16 %v5001_v36, %v5000_v35  ;;  %v4794_v20 = vld [vmem:[#allocation2 + $0xcc] sm:$0xe]  ;;  %v6789_v27 = vld [vmem:[#allocation2 + $0xc0] sm:$0xff] }
 0x2b9   : > { %v5182_v4 = vadd.f32 %v9015_v31, %v4756_v16  ;;  %4049 = vmatmul.bf16.gmra.mxu2 %v6788_v23  ;;  %v4528_v49 = vsel %vm7397_vm9, %v4523_v48, %v4527_v22  ;;  %v6560_v18 = vrot.slane %v4794_v20, 9 }
 0x2ba   : > { %7090 = vst [vmem:[%s8825_s9 + $0x30] sm:$0xff] %v7008_v0   ;;  %v5775_v42 = vadd.f32 %v5774_v63, %v5744_v5  ;;  %v4518_v63 = vsel %vm7397_vm9, %v4513_v6, %v4517_v21  ;;  %v4577_v35 = vunpack.c.l.b16 %v4528_v49 }
 0x2bb   : > { %v6918_v43 = vpack.c.bf16 %v5182_v4, %v5181_v47  ;;  %v5596_v11 = vadd.f32 %v5595_v55, %v5182_v4  ;;  %v5634_v26 = vmul.f32 %v5182_v4, %v5182_v4  ;;  %4736 = vmatmul.bf16.gmra.mxu3 %v4592_v57  ;;  %v6830_v55 = vld [vmem:[%s8518_s26 + $0x78] sm:$0xff]  ;;  %v4576_v57 = vunpack.c.l.b16 %v4518_v63 }
 0x2bc   : > { %v4010_v39 = vpop.f32.mrf.mxu2  ;;  %v4951_v36 = vsel %vm7865_vm13, %v6560_v18, %v4950_v46 }
 0x2bd   : > { %7073 = vst [vmem:[%s8904_s11 + $0x20] sm:$0xff] %v6918_v43   ;;  %v5665_v32 = vadd.f32 %v5664_v44, %v5634_v26  ;;  %v4075_v31 = vadd.f32 %v4010_v39, %v8492_v50  ;;  %v4593_v34 = vpack.c.b16 %v4577_v35, %v4576_v57  ;;  %v5002_v0 = vunpack.c.l.b16 %v4951_v36 }
 0x2be   : > { %v5123_v14 = vpop.f32.mrf.mxu0  ;;  %v4697_v19 = vpop.f32.mrf.mxu3 }
 0x2bf   : > { %v4757_v47 = vadd.f32 %v4692_v28, %v4075_v31  ;;  %v5415_v53 = vpop.f32.mrf.mxu1 }
 0x2c0   : > { %v5707_v50 = vadd.f32 %v5706_v25, %v5415_v53  ;;  %v5745_v44 = vmul.f32 %v5415_v53, %v5415_v53 }
 0x2c1   : > { %v5183_v10 = vadd.f32 %v9029_v59, %v4757_v47  ;;  %5162 = vmatmul.bf16.gmra.mxu0 %v5018_v37  ;;  %6688 = vmatmul.msk.bf16.gmra.mxu1 %vm5318_vm14, %v6830_v55  ;;  %v4954_v59 = vsel %vm7865_vm13, %v4952_v13, %v4953_v56 }
 0x2c2   : > { %v5776_v28 = vadd.f32 %v5775_v42, %v5745_v44  ;;  %v5003_v25 = vunpack.c.l.b16 %v4954_v59 }
 0x2c3   : > { %v5597_v23 = vadd.f32 %v5596_v11, %v5183_v10  ;;  %v5635_v7 = vmul.f32 %v5183_v10, %v5183_v10 }
 0x2c4   : > { %v4012_v16 = vpop.f32.mrf.mxu2  ;;  %v5019_v22 = vpack.c.b16 %v5003_v25, %v5002_v0 }
 0x2c5   : > { %v5666_v21 = vadd.f32 %v5665_v32, %v5635_v7  ;;  %v4076_v30 = vadd.f32 %v4012_v16, %v8512_v40 }
 0x2c6   : > { %v5125_v8 = vpop.f32.mrf.mxu0  ;;  %v4699_v54 = vpop.f32.mrf.mxu3 }
 0x2c7   : > { %v4758_v51 = vadd.f32 %v4694_v17, %v4076_v30  ;;  %v5417_v4 = vpop.f32.mrf.mxu1 }
 0x2c8   : > { %v7013_v40 = vpack.c.bf16 %v5417_v4, %v5415_v53  ;;  %v5708_v43 = vadd.f32 %v5707_v50, %v5417_v4  ;;  %v5746_v11 = vmul.f32 %v5417_v4, %v5417_v4 }
 0x2c9   : > { %v5184_v5 = vadd.f32 %v9048_v29, %v4758_v51  ;;  %4054 = vmatmul.bf16.gmra.mxu2 %v6789_v27 }
 0x2ca   : > { %7091 = vst [vmem:[%s8825_s9 + $0x38] sm:$0xff] %v7013_v40   ;;  %v5777_v38 = vadd.f32 %v5776_v28, %v5746_v11 }
 0x2cb   : > { %v6923_v26 = vpack.c.bf16 %v5184_v5, %v5183_v10  ;;  %v5598_v42 = vadd.f32 %v5597_v23, %v5184_v5  ;;  %v5636_v39 = vmul.f32 %v5184_v5, %v5184_v5  ;;  %4741 = vmatmul.bf16.gmra.mxu3 %v4593_v34  ;;  %v6790_v10 = vld [vmem:[#allocation2 + $0xcc] sm:$0xff] }
 0x2cc   : > { %v4015_v6 = vpop.f32.mrf.mxu2 }
 0x2cd   : > { %7074 = vst [vmem:[%s8904_s11 + $0x28] sm:$0xff] %v6923_v26   ;;  %v5667_v17 = vadd.f32 %v5666_v21, %v5636_v39  ;;  %v4077_v48 = vadd.f32 %v4015_v6, %v8539_v33 }
 0x2ce   : > { %v5128_v46 = vpop.f32.mrf.mxu0  ;;  %v4702_v31 = vpop.f32.mrf.mxu3 }
 0x2cf   : > { %v4759_v32 = vadd.f32 %v4697_v19, %v4077_v48  ;;  %v5420_v29 = vpop.f32.mrf.mxu1 }
 0x2d0   : > { %v5709_v20 = vadd.f32 %v5708_v43, %v5420_v29  ;;  %v5747_v47 = vmul.f32 %v5420_v29, %v5420_v29 }
 0x2d1   : > { %v5185_v37 = vadd.f32 %v5123_v14, %v4759_v32  ;;  %5167 = vmatmul.bf16.gmra.mxu0 %v5019_v22 }
 0x2d2   : > { %v5778_v63 = vadd.f32 %v5777_v38, %v5747_v47 }
 0x2d3   : > { %v5599_v55 = vadd.f32 %v5598_v42, %v5185_v37  ;;  %v5637_v53 = vmul.f32 %v5185_v37, %v5185_v37 }
 0x2d4   : > { %v4017_v49 = vpop.f32.mrf.mxu2 }
 0x2d5   : > { %v5668_v18 = vadd.f32 %v5667_v17, %v5637_v53  ;;  %v4078_v13 = vadd.f32 %v4017_v49, %v8552_v2 }
 0x2d6   : > { %v5130_v33 = vpop.f32.mrf.mxu0  ;;  %v4704_v44 = vpop.f32.mrf.mxu3 }
 0x2d7   : > { %v4760_v50 = vadd.f32 %v4699_v54, %v4078_v13  ;;  %v5422_v19 = vpop.f32.mrf.mxu1 }
 0x2d8   : > { %v7018_v14 = vpack.c.bf16 %v5422_v19, %v5420_v29  ;;  %v5710_v23 = vadd.f32 %v5709_v20, %v5422_v19  ;;  %v5748_v7 = vmul.f32 %v5422_v19, %v5422_v19 }
 0x2d9   : > { %v5186_v56 = vadd.f32 %v5125_v8, %v4760_v50  ;;  %4059 = vmatmul.bf16.gmra.mxu2 %v6790_v10 }
 0x2da   : > { %7092 = vst [vmem:[%s8825_s9 + $0x40] sm:$0xff] %v7018_v14   ;;  %v5779_v35 = vadd.f32 %v5778_v63, %v5748_v7 }
 0x2db   : > { %v6928_v28 = vpack.c.bf16 %v5186_v56, %v5185_v37  ;;  %v5600_v16 = vadd.f32 %v5599_v55, %v5186_v56  ;;  %v5638_v57 = vmul.f32 %v5186_v56, %v5186_v56 }
 0x2dc   : > { %v4020_v21 = vpop.f32.mrf.mxu2 }
 0x2dd   : > { %7075 = vst [vmem:[%s8904_s11 + $0x30] sm:$0xff] %v6928_v28   ;;  %v5669_v30 = vadd.f32 %v5668_v18, %v5638_v57  ;;  %v4079_v2 = vadd.f32 %v4020_v21, %v8572_v12 }
 0x2de   : > { %v5133_v27 = vpop.f32.mrf.mxu0  ;;  %v4707_v59 = vpop.f32.mrf.mxu3 }
 0x2df   : > { %v4761_v36 = vadd.f32 %v4702_v31, %v4079_v2  ;;  %v5425_v51 = vpop.f32.mrf.mxu1 }
 0x2e0   : > { %v5711_v8 = vadd.f32 %v5710_v23, %v5425_v51  ;;  %v5749_v34 = vmul.f32 %v5425_v51, %v5425_v51 }
 0x2e1   : > { %v5187_v54 = vadd.f32 %v5128_v46, %v4761_v36 }
 0x2e2   : > { %v5780_v25 = vadd.f32 %v5779_v35, %v5749_v34 }
 0x2e3   : > { %v5601_v4 = vadd.f32 %v5600_v16, %v5187_v54  ;;  %v5639_v0 = vmul.f32 %v5187_v54, %v5187_v54 }
 0x2e4   : > { %v4022_v5 = vpop.f32.mrf.mxu2 }
 0x2e5   : > { %v5670_v40 = vadd.f32 %v5669_v30, %v5639_v0  ;;  %v4080_v43 = vadd.f32 %v4022_v5, %v8585_v45 }
 0x2e6   : > { %v5135_v11 = vpop.f32.mrf.mxu0  ;;  %v4709_v42 = vpop.f32.mrf.mxu3 }
 0x2e7   : > { %v4762_v26 = vadd.f32 %v4704_v44, %v4080_v43  ;;  %v5427_v12 = vpop.f32.mrf.mxu1 }
 0x2e8   : > { %v7023_v38 = vpack.c.bf16 %v5427_v12, %v5425_v51  ;;  %v5712_v6 = vadd.f32 %v5711_v8, %v5427_v12  ;;  %v5750_v17 = vmul.f32 %v5427_v12, %v5427_v12 }
 0x2e9   : > { %v5188_v39 = vadd.f32 %v5130_v33, %v4762_v26 }
 0x2ea   : > { %7093 = vst [vmem:[%s8825_s9 + $0x48] sm:$0xff] %v7023_v38   ;;  %v5781_v32 = vadd.f32 %v5780_v25, %v5750_v17 }
 0x2eb   : > { %v6933_v48 = vpack.c.bf16 %v5188_v39, %v5187_v54  ;;  %v5602_v22 = vadd.f32 %v5601_v4, %v5188_v39  ;;  %v5640_v46 = vmul.f32 %v5188_v39, %v5188_v39 }
 0x2ec   : > { %v4025_v31 = vpop.f32.mrf.mxu2 }
 0x2ed   : > { %7076 = vst [vmem:[%s8904_s11 + $0x38] sm:$0xff] %v6933_v48   ;;  %v5671_v29 = vadd.f32 %v5670_v40, %v5640_v46  ;;  %v4081_v37 = vadd.f32 %v4025_v31, %v8607_v41 }
 0x2ee   : > { %v5138_v20 = vpop.f32.mrf.mxu0  ;;  %v4712_v47 = vpop.f32.mrf.mxu3 }
 0x2ef   : > { %v4763_v45 = vadd.f32 %v4707_v59, %v4081_v37  ;;  %v5430_v55 = vpop.f32.mrf.mxu1 }
 0x2f0   : > { %v5713_v63 = vadd.f32 %v5712_v6, %v5430_v55  ;;  %v5751_v49 = vmul.f32 %v5430_v55, %v5430_v55 }
 0x2f1   : > { %v5189_v53 = vadd.f32 %v5133_v27, %v4763_v45 }
 0x2f2   : > { %v5782_v10 = vadd.f32 %v5781_v32, %v5751_v49 }
 0x2f3   : > { %v5603_v18 = vadd.f32 %v5602_v22, %v5189_v53  ;;  %v5641_v13 = vmul.f32 %v5189_v53, %v5189_v53 }
 0x2f4   : > { %v4027_v33 = vpop.f32.mrf.mxu2 }
 0x2f5   : > { %v5672_v50 = vadd.f32 %v5671_v29, %v5641_v13  ;;  %v4082_v44 = vadd.f32 %v4027_v33, %v8619_v1 }
 0x2f6   : > { %v5140_v19 = vpop.f32.mrf.mxu0  ;;  %v4714_v14 = vpop.f32.mrf.mxu3 }
 0x2f7   : > { %v4764_v56 = vadd.f32 %v4709_v42, %v4082_v44  ;;  %v5432_v41 = vpop.f32.mrf.mxu1 }
 0x2f8   : > { %v7028_v7 = vpack.c.bf16 %v5432_v41, %v5430_v55  ;;  %v5714_v28 = vadd.f32 %v5713_v63, %v5432_v41  ;;  %v5752_v16 = vmul.f32 %v5432_v41, %v5432_v41 }
 0x2f9   : > { %v5190_v23 = vadd.f32 %v5135_v11, %v4764_v56 }
 0x2fa   : > { %7094 = vst [vmem:[%s8825_s9 + $0x50] sm:$0xff] %v7028_v7   ;;  %v5783_v30 = vadd.f32 %v5782_v10, %v5752_v16 }
 0x2fb   : > { %v6938_v57 = vpack.c.bf16 %v5190_v23, %v5189_v53  ;;  %v5604_v35 = vadd.f32 %v5603_v18, %v5190_v23  ;;  %v5642_v21 = vmul.f32 %v5190_v23, %v5190_v23 }
 0x2fc   : > { %v4030_v2 = vpop.f32.mrf.mxu2 }
 0x2fd   : > { %7077 = vst [vmem:[%s8904_s11 + $0x40] sm:$0xff] %v6938_v57   ;;  %v5673_v27 = vadd.f32 %v5672_v50, %v5642_v21  ;;  %v4083_v36 = vadd.f32 %v4030_v2, %v8641_v61 }
 0x2fe   : > { %v5143_v59 = vpop.f32.mrf.mxu0  ;;  %v4717_v51 = vpop.f32.mrf.mxu3 }
 0x2ff   : > { %v4765_v1 = vadd.f32 %v4712_v47, %v4083_v36  ;;  %v5435_v54 = vpop.f32.mrf.mxu1 }
 0x300   : > { %v5715_v34 = vadd.f32 %v5714_v28, %v5435_v54  ;;  %v5753_v4 = vmul.f32 %v5435_v54, %v5435_v54 }
 0x301   : > { %v5191_v8 = vadd.f32 %v5138_v20, %v4765_v1 }
 0x302   : > { %v5784_v5 = vadd.f32 %v5783_v30, %v5753_v4 }
 0x303   : > { %v5605_v0 = vadd.f32 %v5604_v35, %v5191_v8  ;;  %v5643_v25 = vmul.f32 %v5191_v8, %v5191_v8 }
 0x304   : > { %v4032_v40 = vpop.f32.mrf.mxu2 }
 0x305   : > { %v5674_v43 = vadd.f32 %v5673_v27, %v5643_v25  ;;  %v4084_v11 = vadd.f32 %v4032_v40, %v8653_v58 }
 0x306   : > { %v5145_v26 = vpop.f32.mrf.mxu0  ;;  %v4719_v12 = vpop.f32.mrf.mxu3 }
 0x307   : > { %v4766_v42 = vadd.f32 %v4714_v14, %v4084_v11  ;;  %v5437_v61 = vpop.f32.mrf.mxu1 }
 0x308   : > { %v7033_v38 = vpack.c.bf16 %v5437_v61, %v5435_v54  ;;  %v5716_v6 = vadd.f32 %v5715_v34, %v5437_v61  ;;  %v5754_v17 = vmul.f32 %v5437_v61, %v5437_v61 }
 0x309   : > { %v5192_v39 = vadd.f32 %v5140_v19, %v4766_v42 }
 0x30a   : > { %7095 = vst [vmem:[%s8825_s9 + $0x58] sm:$0xff] %v7033_v38   ;;  %v5785_v32 = vadd.f32 %v5784_v5, %v5754_v17 }
 0x30b   : > { %v6943_v48 = vpack.c.bf16 %v5192_v39, %v5191_v8  ;;  %v5606_v22 = vadd.f32 %v5605_v0, %v5192_v39  ;;  %v5644_v46 = vmul.f32 %v5192_v39, %v5192_v39 }
 0x30c   : > { %v4035_v31 = vpop.f32.mrf.mxu2 }
 0x30d   : > { %7078 = vst [vmem:[%s8904_s11 + $0x48] sm:$0xff] %v6943_v48   ;;  %v5675_v29 = vadd.f32 %v5674_v43, %v5644_v46  ;;  %v4085_v37 = vadd.f32 %v4035_v31, %v8675_v3 }
 0x30e   : > { %v5148_v20 = vpop.f32.mrf.mxu0  ;;  %v4722_v45 = vpop.f32.mrf.mxu3 }
 0x30f   : > { %v4767_v58 = vadd.f32 %v4717_v51, %v4085_v37  ;;  %v5440_v47 = vpop.f32.mrf.mxu1 }
 0x310   : > { %v5717_v53 = vadd.f32 %v5716_v6, %v5440_v47  ;;  %v5755_v63 = vmul.f32 %v5440_v47, %v5440_v47 }
 0x311   : > { %v5193_v55 = vadd.f32 %v5143_v59, %v4767_v58 }
 0x312   : > { %v5786_v13 = vadd.f32 %v5785_v32, %v5755_v63 }
 0x313   : > { %v5607_v49 = vadd.f32 %v5606_v22, %v5193_v55  ;;  %v5645_v18 = vmul.f32 %v5193_v55, %v5193_v55 }
 0x314   : > { %v4037_v10 = vpop.f32.mrf.mxu2 }
 0x315   : > { %v5676_v33 = vadd.f32 %v5675_v29, %v5645_v18  ;;  %v4086_v50 = vadd.f32 %v4037_v10, %v8687_v60 }
 0x316   : > { %v5150_v19 = vpop.f32.mrf.mxu0  ;;  %v4724_v56 = vpop.f32.mrf.mxu3 }
 0x317   : > { %v4768_v44 = vadd.f32 %v4719_v12, %v4086_v50  ;;  %v5442_v3 = vpop.f32.mrf.mxu1 }
 0x318   : > { %v7038_v41 = vpack.c.bf16 %v5442_v3, %v5440_v47  ;;  %v5718_v23 = vadd.f32 %v5717_v53, %v5442_v3  ;;  %v5756_v7 = vmul.f32 %v5442_v3, %v5442_v3 }
 0x319   : > { %v5194_v14 = vadd.f32 %v5145_v26, %v4768_v44 }
 0x31a   : > { %7096 = vst [vmem:[%s8825_s9 + $0x60] sm:$0xff] %v7038_v41   ;;  %v5787_v35 = vadd.f32 %v5786_v13, %v5756_v7 }
 0x31b   : > { %v6948_v28 = vpack.c.bf16 %v5194_v14, %v5193_v55  ;;  %v5608_v16 = vadd.f32 %v5607_v49, %v5194_v14  ;;  %v5646_v57 = vmul.f32 %v5194_v14, %v5194_v14 }
 0x31c   : > { %v4040_v21 = vpop.f32.mrf.mxu2 }
 0x31d   : > { %7079 = vst [vmem:[%s8904_s11 + $0x50] sm:$0xff] %v6948_v28   ;;  %v5677_v30 = vadd.f32 %v5676_v33, %v5646_v57  ;;  %v4087_v2 = vadd.f32 %v4040_v21, %v8709_v62 }
 0x31e   : > { %v4727_v60 = vpop.f32.mrf.mxu3  ;;  %v5153_v54 = vpop.f32.mrf.mxu0 }
 0x31f   : > { %v4769_v27 = vadd.f32 %v4722_v45, %v4087_v2  ;;  %v5445_v36 = vpop.f32.mrf.mxu1 }
 0x320   : > { %v9092_v1 = vadd.f32 %v5718_v23, %v5445_v36  ;;  %v5757_v51 = vmul.f32 %v5445_v36, %v5445_v36  ;;  %v9207_v23 = vld [vmem:[#allocation4_spill] sm:$0xff] }
 0x321   : > { %v5195_v59 = vadd.f32 %v5148_v20, %v4769_v27 }
 0x322   : > { %v9094_v4 = vadd.f32 %v5787_v35, %v5757_v51 }
 0x323   : > { %v5609_v8 = vadd.f32 %v5608_v16, %v5195_v59  ;;  %v5647_v34 = vmul.f32 %v5195_v59, %v5195_v59 }
 0x324   : > { %v4042_v0 = vpop.f32.mrf.mxu2 }
 0x325   : > { %v5678_v25 = vadd.f32 %v5677_v30, %v5647_v34  ;;  %v4088_v5 = vadd.f32 %v4042_v0, %v8721_v52 }
 0x326   : > { %v4729_v26 = vpop.f32.mrf.mxu3  ;;  %v5155_v38 = vpop.f32.mrf.mxu0 }
 0x327   : > { %v4770_v40 = vadd.f32 %v4724_v56, %v4088_v5  ;;  %v9097_v62 = vpop.f32.mrf.mxu1 }
 0x328   : > { %v7043_v11 = vpack.c.bf16 %v9097_v62, %v5445_v36 }
 0x329   : > { %v5196_v43 = vadd.f32 %v5150_v19, %v4770_v40 }
 0x32a   : > { %7097 = vst [vmem:[%s8825_s9 + $0x68] sm:$0xff] %v7043_v11   ;;  %v9209_v11 = vld [vmem:[#allocation3_spill] sm:$0xff] }
 0x32b   : > { %v6953_v42 = vpack.c.bf16 %v5196_v43, %v5195_v59  ;;  %v5610_v12 = vadd.f32 %v5609_v8, %v5196_v43  ;;  %v5648_v61 = vmul.f32 %v5196_v43, %v5196_v43  ;;  %v9208_v59 = vld [vmem:[#allocation5_spill] sm:$0xff] }
 0x32c   : > { %v4045_v39 = vpop.f32.mrf.mxu2 }
 0x32d   : > { %7080 = vst [vmem:[%s8904_s11 + $0x58] sm:$0xff] %v6953_v42   ;;  %v5679_v6 = vadd.f32 %v5678_v25, %v5648_v61  ;;  %v4089_v17 = vadd.f32 %v4045_v39, %v8743_v24  ;;  %v5758_v42 = vmul.f32 %v9097_v62, %v9097_v62 }
 0x32e   : > { %v4732_v29 = vpop.f32.mrf.mxu3  ;;  %v5158_v58 = vpop.f32.mrf.mxu0 }
 0x32f   : > { %v4771_v48 = vadd.f32 %v4727_v60, %v4089_v17  ;;  %v9103_v22 = vpop.f32.mrf.mxu1 }
 0x330   : > { %v5759_v61 = vmul.f32 %v9103_v22, %v9103_v22 }
 0x331   : > { %v5197_v52 = vadd.f32 %v5153_v54, %v4771_v48 }
 0x333   : > { %v5611_v46 = vadd.f32 %v5610_v12, %v5197_v52  ;;  %v5649_v32 = vmul.f32 %v5197_v52, %v5197_v52 }
 0x334   : > { %v4047_v31 = vpop.f32.mrf.mxu2 }
 0x335   : > { %v5680_v37 = vadd.f32 %v5679_v6, %v5649_v32  ;;  %v4090_v20 = vadd.f32 %v4047_v31, %v8755_v15  ;;  %v5789_v6 = vadd.f32 %v9094_v4, %v5758_v42 }
 0x336   : > { %v4734_v33 = vpop.f32.mrf.mxu3  ;;  %v5160_v44 = vpop.f32.mrf.mxu0 }
 0x337   : > { %v4772_v45 = vadd.f32 %v4729_v26, %v4090_v20  ;;  %v5452_v47 = vpop.f32.mrf.mxu1 }
 0x338   : > { %v7048_v53 = vpack.c.bf16 %v5452_v47, %v9103_v22  ;;  %v5760_v17 = vmul.f32 %v5452_v47, %v5452_v47 }
 0x339   : > { %v5198_v55 = vadd.f32 %v5155_v38, %v4772_v45  ;;  %v5720_v38 = vadd.f32 %v9092_v1, %v9097_v62  ;;  %v9210_v45 = vld [vmem:[#allocation7_spill] sm:$0xff] }
 0x33a   : > { %7098 = vst [vmem:[%s8825_s9 + $0x70] sm:$0xff] %v7048_v53  }
 0x33b   : > { %v6958_v24 = vpack.c.bf16 %v5198_v55, %v5197_v52  ;;  %v5612_v63 = vadd.f32 %v5611_v46, %v5198_v55  ;;  %v5650_v49 = vmul.f32 %v5198_v55, %v5198_v55  ;;  %v5721_v32 = vadd.f32 %v5720_v38, %v9103_v22 }
 0x33c   : > { %v4050_v18 = vpop.f32.mrf.mxu2 }
 0x33d   : > { %7081 = vst [vmem:[%s8904_s11 + $0x60] sm:$0xff] %v6958_v24   ;;  %v5681_v13 = vadd.f32 %v5680_v37, %v5650_v49  ;;  %v4091_v10 = vadd.f32 %v4050_v18, %v8775_v9  ;;  %v5790_v37 = vadd.f32 %v5789_v6, %v5759_v61  ;;  %v5722_v53 = vadd.f32 %v5721_v32, %v5452_v47 }
 0x33e   : > { %v4737_v16 = vpop.f32.mrf.mxu3  ;;  %v5163_v30 = vpop.f32.mrf.mxu0 }
 0x33f   : > { %v4773_v50 = vadd.f32 %v4732_v29, %v4091_v10  ;;  %v5455_v19 = vpop.f32.mrf.mxu1 }
 0x340   : > { %v5761_v20 = vmul.f32 %v5455_v19, %v5455_v19  ;;  %v5723_v4 = vadd.f32 %v5722_v53, %v5455_v19 }
 0x341   : > { %v5199_v15 = vadd.f32 %v5158_v58, %v4773_v50 }
 0x343   : > { %v5613_v56 = vadd.f32 %v5612_v63, %v5199_v15  ;;  %v5651_v3 = vmul.f32 %v5199_v15, %v5199_v15  ;;  %v5791_v63 = vadd.f32 %v5790_v37, %v5760_v17 }
 0x344   : > { %v4052_v14 = vpop.f32.mrf.mxu2 }
 0x345   : > { %v5682_v41 = vadd.f32 %v5681_v13, %v5651_v3  ;;  %v4092_v7 = vadd.f32 %v4052_v14, %v9207_v23  ;;  %v5792_v49 = vadd.f32 %v5791_v63, %v5761_v20 }
 0x346   : > { %v4739_v34 = vpop.f32.mrf.mxu3  ;;  %v5165_v5 = vpop.f32.mrf.mxu0 }
 0x347   : > { %v4774_v28 = vadd.f32 %v4734_v33, %v4092_v7  ;;  %v5457_v57 = vpop.f32.mrf.mxu1 }
 0x348   : > { %v7053_v21 = vpack.c.bf16 %v5457_v57, %v5455_v19  ;;  %v5762_v1 = vmul.f32 %v5457_v57, %v5457_v57  ;;  %v5724_v13 = vadd.f32 %v5723_v4, %v5457_v57 }
 0x349   : > { %v5200_v35 = vadd.f32 %v5160_v44, %v4774_v28 }
 0x34a   : > { %7099 = vst [vmem:[%s8825_s9 + $0x78] sm:$0xff] %v7053_v21   ;;  %v5793_v10 = vadd.f32 %v5792_v49, %v5762_v1  ;;  %v5725_v3 = vrot.slane %v5724_v13, 4 }
 0x34b   : > { %v6963_v9 = vpack.c.bf16 %v5200_v35, %v5199_v15  ;;  %v5614_v2 = vadd.f32 %v5613_v56, %v5200_v35  ;;  %v5652_v27 = vmul.f32 %v5200_v35, %v5200_v35  ;;  %v9211_v15 = vld [vmem:[#allocation8_spill] sm:$0xff] }
 0x34c   : > { %v4055_v60 = vpop.f32.mrf.mxu2  ;;  %v5726_v28 = vadd.f32 %v5725_v3, %v5724_v13 }
 0x34d   : > { %7082 = vst [vmem:[%s8904_s11 + $0x68] sm:$0xff] %v6963_v9   ;;  %v5683_v36 = vadd.f32 %v5682_v41, %v5652_v27  ;;  %v4093_v51 = vadd.f32 %v4055_v60, %v9208_v59  ;;  %v5794_v41 = vrot.slane %v5793_v10, 4 }
 0x34e   : > { %v4742_v31 = vpop.f32.mrf.mxu3  ;;  %v5168_v24 = vpop.f32.mrf.mxu0  ;;  %v5727_v9 = vrot.slane %v5726_v28, 2 }
 0x34f   : > { %v4775_v54 = vadd.f32 %v4737_v16, %v4093_v51  ;;  %v5795_v16 = vadd.f32 %v5794_v41, %v5793_v10 }
 0x350   : > { %v5728_v51 = vadd.f32 %v5727_v9, %v5726_v28 }
 0x351   : > { %v5201_v8 = vadd.f32 %v5163_v30, %v4775_v54 }
 0x353   : > { %v5615_v0 = vadd.f32 %v5614_v2, %v5201_v8  ;;  %v5653_v25 = vmul.f32 %v5201_v8, %v5201_v8  ;;  %v5796_v2 = vrot.slane %v5795_v16, 2 }
 0x354   : > { %v4057_v40 = vpop.f32.mrf.mxu2 }
 0x355   : > { %v5684_v43 = vadd.f32 %v5683_v36, %v5653_v25  ;;  %v4094_v26 = vadd.f32 %v4057_v40, %v9209_v11  ;;  %v5797_v54 = vadd.f32 %v5796_v2, %v5795_v16 }
 0x356   : > { %v4744_v14 = vpop.f32.mrf.mxu3  ;;  %v5170_v23 = vpop.f32.mrf.mxu0 }
 0x357   : > { %v4776_v12 = vadd.f32 %v4739_v34, %v4094_v26  ;;  %v5798_v40 = vrot.slane %v5797_v54, 1 }
 0x359   : > { %v5202_v39 = vadd.f32 %v5165_v5, %v4776_v12  ;;  %v5729_v5 = vrot.slane %v5728_v51, 1  ;;  %v5799_v12 = vadd.f32 %v5798_v40, %v5797_v54 }
 0x35b   : > { %v6968_v48 = vpack.c.bf16 %v5202_v39, %v5201_v8  ;;  %v5616_v52 = vadd.f32 %v5615_v0, %v5202_v39  ;;  %v5654_v46 = vmul.f32 %v5202_v39, %v5202_v39  ;;  %v5730_v42 = vadd.f32 %v5729_v5, %v5728_v51 }
 0x35c   : > { %v4060_v29 = vpop.f32.mrf.mxu2 }
 0x35d   : > { %7083 = vst [vmem:[%s8904_s11 + $0x70] sm:$0xff] %v6968_v48   ;;  %v5685_v58 = vadd.f32 %v5684_v43, %v5654_v46  ;;  %v4095_v55 = vadd.f32 %v4060_v29, %v9210_v45 }
 0x35f   : > { %v4777_v62 = vadd.f32 %v4742_v31, %v4095_v55 }
 0x361   : > { %v5203_v18 = vadd.f32 %v5168_v24, %v4777_v62 }
 0x363   : > { %v5617_v33 = vadd.f32 %v5616_v52, %v5203_v18  ;;  %v5655_v22 = vmul.f32 %v5203_v18, %v5203_v18 }
 0x364   : > { %v4062_v50 = vpop.f32.mrf.mxu2 }
 0x365   : > { %v5686_v44 = vadd.f32 %v5685_v58, %v5655_v22  ;;  %v4096_v56 = vadd.f32 %v4062_v50, %v9211_v15 }
 0x367   : > { %v4778_v47 = vadd.f32 %v4744_v14, %v4096_v56 }
 0x369   : > { %v5204_v7 = vadd.f32 %v5170_v23, %v4778_v47 }
 0x36b   : > { %v6973_v19 = vpack.c.bf16 %v5204_v7, %v5203_v18  ;;  %v5618_v35 = vadd.f32 %v5617_v33, %v5204_v7  ;;  %v5656_v21 = vmul.f32 %v5204_v7, %v5204_v7 }
 0x36d   : > { %7084 = vst [vmem:[%s8904_s11 + $0x78] sm:$0xff] %v6973_v19   ;;  %v5619_v57 = vrot.slane %v5618_v35, 4  ;;  %v5687_v30 = vadd.f32 %v5686_v44, %v5656_v21 }
 0x36f   : > { %v5620_v27 = vadd.f32 %v5619_v57, %v5618_v35  ;;  %v5688_v60 = vrot.slane %v5687_v30, 4 }
 0x371   : > { %v5621_v36 = vrot.slane %v5620_v27, 2  ;;  %v5689_v59 = vadd.f32 %v5688_v60, %v5687_v30 }
 0x373   : > { %v5622_v8 = vadd.f32 %v5621_v36, %v5620_v27  ;;  %v5690_v34 = vrot.slane %v5689_v59, 2 }
 0x375   : > { %v5623_v0 = vrot.slane %v5622_v8, 1  ;;  %v5691_v25 = vadd.f32 %v5690_v34, %v5689_v59 }
 0x377   : > { %v5692_v43 = vrot.slane %v5691_v25, 1  ;;  %v5624_v11 = vadd.f32 %v5623_v0, %v5622_v8 }
 0x379   : > { %v5693_v26 = vadd.f32 %v5692_v43, %v5691_v25 }
 0x37b   : > { %v5801_v61 = vsel %vm935_vm8, %v5624_v11, %v5693_v26 }
 0x37c   : > { %v5803_v39 = vsel %vm5802_vm15, %v5801_v61, %v5730_v42 }
 0x37d   : > { %v5805_v38 = vsel %vm1995_vm11, %v5803_v39, %v5799_v12 }
 0x37e   : > { %v5806_v6 = vsel %vm928_vm3, %v5805_v38, 0.0 }
 0x37f   : > { %5807 = vst [vmem:[%s348_s14] sm:$0xff] %v5806_v6 }
 0x380 PF: > { %s19_s27 = sadd.s32 1, %s7169_s27  }
 0x381   : > { %p16_p4 = scmp.ge.s32.totalorder %s19_s27, 4  }
 0x383   :  { %18 = sbr.rel (!%p16_p4) target bundleno = 1 (0x1), region = 111 }

</bundles_post_ra>
